<compile_context>
chip_gen: v7x
topology: tpu7x:2x2x1
jax: 0.10.0
libtpu: 0.0.40
codegen_flags: <defaults>
</compile_context>

<pallas_src>
import jax
import jax.numpy as jnp
from jax.experimental import pallas as pl
from jax.experimental.pallas import tpu as pltpu

Z_DIM = 64
HIDDEN_DIM = 128
IM_DIM = 784            # 6*128 + 16: stored directly (last 16-lane tile masked)
BATCH_BLOCK = 128       # rows per grid step == one independent BN batch
NUM_BATCHES = 2         # grid length G in the example (total 256 noise rows)
BN_EPS = 1e-5


def _generator_kernel(noise_ref,
                      w1, g1, be1,
                      w2, g2, be2,
                      w3, g3, be3,
                      w4, g4, be4,
                      w5, b5,
                      out_ref):
    """Fused [Linear + BatchNorm(train) + ReLU] x4, then Linear + Sigmoid.

    One invocation processes one independent 128-row noise batch; all weights
    are VMEM-resident (constant index_map) across the grid.
    """

    def gen_block(x_bf16, w_ref, g_ref, be_ref):
        # Linear (bias omitted: it cancels exactly inside batch-stat BatchNorm).
        h = jnp.dot(x_bf16, w_ref[...], preferred_element_type=jnp.float32)
        # Single-pass BatchNorm1d statistics (biased, training mode).
        inv_n = 1.0 / h.shape[0]
        mu = jnp.sum(h, axis=0, keepdims=True) * inv_n
        ex2 = jnp.sum(h * h, axis=0, keepdims=True) * inv_n
        var = ex2 - mu * mu
        # Fold gamma into the scale and (beta - mu*scale) into the shift:
        # per-element work is one mul + one add.
        scale = g_ref[...] * jax.lax.rsqrt(var + BN_EPS)
        shift = be_ref[...] - mu * scale
        y = h * scale + shift
        # ReLU fused with the bf16 cast: only the bf16 activation stays live.
        return jnp.maximum(y, 0.0).astype(jnp.bfloat16)

    x = noise_ref[...].astype(jnp.bfloat16)
    x = gen_block(x, w1, g1, be1)
    x = gen_block(x, w2, g2, be2)
    x = gen_block(x, w3, g3, be3)
    x = gen_block(x, w4, g4, be4)

    # Final Linear -> Sigmoid, stored directly as (128, 784) bf16.
    logits = jnp.dot(x, w5[...], preferred_element_type=jnp.float32) + b5[...]
    out_ref[...] = jax.nn.sigmoid(logits).astype(out_ref.dtype)


def init_params(key, z_dim=Z_DIM, hidden_dim=HIDDEN_DIM, im_dim=IM_DIM):
    """Deterministic synthetic f32 module parameters (weights stored (in, out)),
    matching PyTorch's default Linear init scale and BN gamma=1 / beta=0."""
    dims = [
        (z_dim, hidden_dim),
        (hidden_dim, 2 * hidden_dim),
        (2 * hidden_dim, 4 * hidden_dim),
        (4 * hidden_dim, 8 * hidden_dim),
    ]
    params = []
    for (din, dout) in dims:
        key, kw, kb = jax.random.split(key, 3)
        scale = 1.0 / jnp.sqrt(jnp.float32(din))
        w = jax.random.uniform(kw, (din, dout), jnp.float32, -scale, scale)
        b = jax.random.uniform(kb, (1, dout), jnp.float32, -scale, scale)
        gamma = jnp.ones((1, dout), jnp.float32)
        beta = jnp.zeros((1, dout), jnp.float32)
        params.extend([w, b, gamma, beta])
    din, dout = 8 * hidden_dim, im_dim
    key, kw, kb = jax.random.split(key, 3)
    scale = 1.0 / jnp.sqrt(jnp.float32(din))
    w5 = jax.random.uniform(kw, (din, dout), jnp.float32, -scale, scale)
    b5 = jax.random.uniform(kb, (1, dout), jnp.float32, -scale, scale)
    params.extend([w5, b5])
    return params


def prepare_kernel_params(params):
    """Pack f32 module params into the kernel layout:
       - bf16 weights (half the HBM weight traffic; f32 MXU accumulation),
       - drop b1..b4 (exactly cancelled by batch-statistic BatchNorm),
       - γ/β/b5 stay f32.
    Order: (w1,g1,be1, ..., w4,g4,be4, w5, b5)."""
    kp = []
    for i in range(4):
        w, _b, g, be = params[4 * i:4 * i + 4]
        kp.extend([w.astype(jnp.bfloat16), g, be])
    w5, b5 = params[-2:]
    kp.extend([w5.astype(jnp.bfloat16), b5])
    return kp


def _resident_spec(arr):
    """Weight BlockSpec: full array, constant index_map -> VMEM-resident,
    DMA'd once per TensorCore regardless of grid length."""
    return pl.BlockSpec(arr.shape, lambda i: (0,) * arr.ndim)


@jax.jit
def generator_forward(noise, *kparams):
    total = noise.shape[0]
    assert total % BATCH_BLOCK == 0, "batch must be a multiple of 128"
    g = total // BATCH_BLOCK

    in_specs = [pl.BlockSpec((BATCH_BLOCK, Z_DIM), lambda i: (i, 0))]
    in_specs += [_resident_spec(p) for p in kparams]
    out_specs = pl.BlockSpec((BATCH_BLOCK, IM_DIM), lambda i: (i, 0))

    return pl.pallas_call(
        _generator_kernel,
        out_shape=jax.ShapeDtypeStruct((total, IM_DIM), jnp.bfloat16),
        grid=(g,),
        in_specs=in_specs,
        out_specs=out_specs,
        compiler_params=pltpu.CompilerParams(
            dimension_semantics=("parallel",),   # shard batches across TCs on v7x
            vmem_limit_bytes=24 << 20,
        ),
    )(noise, *kparams)


def generator_reference(noise, params, batch_block=BATCH_BLOCK):
    """Pure-JAX f32 reference with the original module semantics (incl. biases),
    applied independently to each 128-row batch (== one forward() call each)."""
    def fwd(x):
        for i in range(4):
            w, b, g, be = params[4 * i:4 * i + 4]
            h = x @ w + b
            mu = jnp.mean(h, axis=0, keepdims=True)
            var = jnp.mean((h - mu) ** 2, axis=0, keepdims=True)
            x = jnp.maximum((h - mu) * jax.lax.rsqrt(var + BN_EPS) * g + be, 0.0)
        w5, b5 = params[-2:]
        return jax.nn.sigmoid(x @ w5 + b5)

    nblk = noise.shape[0] // batch_block
    outs = [fwd(noise[i * batch_block:(i + 1) * batch_block]) for i in range(nblk)]
    return jnp.concatenate(outs, axis=0)


if __name__ == "__main__":
    key = jax.random.PRNGKey(0)
    key_noise, key_params = jax.random.split(key)

    noise = jax.random.normal(
        key_noise, (NUM_BATCHES * BATCH_BLOCK, Z_DIM), jnp.float32)
    params = init_params(key_params)
    kparams = prepare_kernel_params(params)

    out = generator_forward(noise, *kparams)
    out = jax.block_until_ready(out)

    ref = generator_reference(noise, params)
    assert out.shape == (NUM_BATCHES * BATCH_BLOCK, IM_DIM)
    assert out.dtype == jnp.bfloat16

    out_f32 = out.astype(jnp.float32)
    assert bool(jnp.all(jnp.isfinite(out_f32)))
    # bf16 weights / activations / output (f32 MXU accumulation) vs. pure-f32
    # reference: sigmoid outputs agree to ~1e-2 level -> relaxed absolute tol.
    max_err = float(jnp.max(jnp.abs(out_f32 - ref)))
    assert max_err < 4e-2, max_err

    print("KERNEL_OK")
</pallas_src>

<mosaic_0001>
module attributes {stable_mosaic.version = 11 : i64} {
  func.func @_generator_kernel(%arg0: i32, %arg1: memref<128x64xf32, #tpu.memory_space<vmem>>, %arg2: memref<64x128xbf16, #tpu.memory_space<vmem>>, %arg3: memref<1x128xf32, #tpu.memory_space<vmem>>, %arg4: memref<1x128xf32, #tpu.memory_space<vmem>>, %arg5: memref<128x256xbf16, #tpu.memory_space<vmem>>, %arg6: memref<1x256xf32, #tpu.memory_space<vmem>>, %arg7: memref<1x256xf32, #tpu.memory_space<vmem>>, %arg8: memref<256x512xbf16, #tpu.memory_space<vmem>>, %arg9: memref<1x512xf32, #tpu.memory_space<vmem>>, %arg10: memref<1x512xf32, #tpu.memory_space<vmem>>, %arg11: memref<512x1024xbf16, #tpu.memory_space<vmem>>, %arg12: memref<1x1024xf32, #tpu.memory_space<vmem>>, %arg13: memref<1x1024xf32, #tpu.memory_space<vmem>>, %arg14: memref<1024x784xbf16, #tpu.memory_space<vmem>>, %arg15: memref<1x784xf32, #tpu.memory_space<vmem>>, %arg16: memref<128x784xbf16, #tpu.memory_space<vmem>>) attributes {dimension_semantics = [#tpu.dimension_semantics<parallel>], iteration_bounds = array<i64: 2>, scalar_prefetch = 0 : i64, scratch_operands = 0 : i64, tpu.core_type = #tpu.core_type<tc>, window_params = [{transform_indices = @transform_0, window_bounds = array<i64: 128, 64>}, {pipeline_mode = #tpu.pipeline_mode<synchronous>, transform_indices = @transform_1, window_bounds = array<i64: 64, 128>}, {pipeline_mode = #tpu.pipeline_mode<synchronous>, transform_indices = @transform_2, window_bounds = array<i64: 1, 128>}, {pipeline_mode = #tpu.pipeline_mode<synchronous>, transform_indices = @transform_3, window_bounds = array<i64: 1, 128>}, {pipeline_mode = #tpu.pipeline_mode<synchronous>, transform_indices = @transform_4, window_bounds = array<i64: 128, 256>}, {pipeline_mode = #tpu.pipeline_mode<synchronous>, transform_indices = @transform_5, window_bounds = array<i64: 1, 256>}, {pipeline_mode = #tpu.pipeline_mode<synchronous>, transform_indices = @transform_6, window_bounds = array<i64: 1, 256>}, {pipeline_mode = #tpu.pipeline_mode<synchronous>, transform_indices = @transform_7, window_bounds = array<i64: 256, 512>}, {pipeline_mode = #tpu.pipeline_mode<synchronous>, transform_indices = @transform_8, window_bounds = array<i64: 1, 512>}, {pipeline_mode = #tpu.pipeline_mode<synchronous>, transform_indices = @transform_9, window_bounds = array<i64: 1, 512>}, {pipeline_mode = #tpu.pipeline_mode<synchronous>, transform_indices = @transform_10, window_bounds = array<i64: 512, 1024>}, {pipeline_mode = #tpu.pipeline_mode<synchronous>, transform_indices = @transform_11, window_bounds = array<i64: 1, 1024>}, {pipeline_mode = #tpu.pipeline_mode<synchronous>, transform_indices = @transform_12, window_bounds = array<i64: 1, 1024>}, {pipeline_mode = #tpu.pipeline_mode<synchronous>, transform_indices = @transform_13, window_bounds = array<i64: 1024, 784>}, {pipeline_mode = #tpu.pipeline_mode<synchronous>, transform_indices = @transform_14, window_bounds = array<i64: 1, 784>}, {transform_indices = @transform_15, window_bounds = array<i64: 128, 784>}]} {
    %c0 = arith.constant 0 : index
    %c0_0 = arith.constant 0 : index
    %0 = vector.load %arg1[%c0, %c0_0] : memref<128x64xf32, #tpu.memory_space<vmem>>, vector<128x64xf32>
    %1 = arith.truncf %0 : vector<128x64xf32> to vector<128x64xbf16>
    %c0_1 = arith.constant 0 : index
    %c0_2 = arith.constant 0 : index
    %2 = vector.load %arg2[%c0_1, %c0_2] : memref<64x128xbf16, #tpu.memory_space<vmem>>, vector<64x128xbf16>
    %cst = arith.constant dense<0.000000e+00> : vector<128x128xf32>
    %3 = tpu.matmul %1, %2, %cst {dimension_numbers = #tpu.dot_dimension_numbers<[1], [0], [0], [1], [0, 0, 1, 1], [], []>} : vector<128x64xbf16>, vector<64x128xbf16>, vector<128x128xf32> -> vector<128x128xf32>
    %cst_3 = arith.constant dense<0.000000e+00> : vector<128xf32>
    %4 = vector.multi_reduction <add>, %3, %cst_3 [0] : vector<128x128xf32> to vector<128xf32>
    %5 = vector.shape_cast %4 : vector<128xf32> to vector<1x128xf32>
    %cst_4 = arith.constant 7.812500e-03 : f32
    %6 = vector.broadcast %cst_4 : f32 to vector<1x128xf32>
    %7 = arith.mulf %5, %6 : vector<1x128xf32>
    %8 = arith.mulf %3, %3 : vector<128x128xf32>
    %cst_5 = arith.constant dense<0.000000e+00> : vector<128xf32>
    %9 = vector.multi_reduction <add>, %8, %cst_5 [0] : vector<128x128xf32> to vector<128xf32>
    %10 = vector.shape_cast %9 : vector<128xf32> to vector<1x128xf32>
    %cst_6 = arith.constant 7.812500e-03 : f32
    %11 = vector.broadcast %cst_6 : f32 to vector<1x128xf32>
    %12 = arith.mulf %10, %11 : vector<1x128xf32>
    %13 = arith.mulf %7, %7 : vector<1x128xf32>
    %14 = arith.subf %12, %13 : vector<1x128xf32>
    %c0_7 = arith.constant 0 : index
    %c0_8 = arith.constant 0 : index
    %15 = vector.load %arg3[%c0_7, %c0_8] : memref<1x128xf32, #tpu.memory_space<vmem>>, vector<1x128xf32>
    %cst_9 = arith.constant 9.99999974E-6 : f32
    %16 = vector.broadcast %cst_9 : f32 to vector<1x128xf32>
    %17 = arith.addf %14, %16 : vector<1x128xf32>
    %18 = math.rsqrt %17 : vector<1x128xf32>
    %19 = arith.mulf %15, %18 : vector<1x128xf32>
    %c0_10 = arith.constant 0 : index
    %c0_11 = arith.constant 0 : index
    %20 = vector.load %arg4[%c0_10, %c0_11] : memref<1x128xf32, #tpu.memory_space<vmem>>, vector<1x128xf32>
    %21 = arith.mulf %7, %19 : vector<1x128xf32>
    %22 = arith.subf %20, %21 : vector<1x128xf32>
    %23 = vector.broadcast %19 : vector<1x128xf32> to vector<128x128xf32>
    %24 = arith.mulf %3, %23 : vector<128x128xf32>
    %25 = vector.broadcast %22 : vector<1x128xf32> to vector<128x128xf32>
    %26 = arith.addf %24, %25 : vector<128x128xf32>
    %cst_12 = arith.constant 0.000000e+00 : f32
    %27 = vector.broadcast %cst_12 : f32 to vector<128x128xf32>
    %28 = arith.maximumf %26, %27 : vector<128x128xf32>
    %29 = arith.truncf %28 : vector<128x128xf32> to vector<128x128xbf16>
    %c0_13 = arith.constant 0 : index
    %c0_14 = arith.constant 0 : index
    %30 = vector.load %arg5[%c0_13, %c0_14] : memref<128x256xbf16, #tpu.memory_space<vmem>>, vector<128x256xbf16>
    %cst_15 = arith.constant dense<0.000000e+00> : vector<128x256xf32>
    %31 = tpu.matmul %29, %30, %cst_15 {dimension_numbers = #tpu.dot_dimension_numbers<[1], [0], [0], [1], [0, 0, 1, 1], [], []>} : vector<128x128xbf16>, vector<128x256xbf16>, vector<128x256xf32> -> vector<128x256xf32>
    %cst_16 = arith.constant dense<0.000000e+00> : vector<256xf32>
    %32 = vector.multi_reduction <add>, %31, %cst_16 [0] : vector<128x256xf32> to vector<256xf32>
    %33 = vector.shape_cast %32 : vector<256xf32> to vector<1x256xf32>
    %cst_17 = arith.constant 7.812500e-03 : f32
    %34 = vector.broadcast %cst_17 : f32 to vector<1x256xf32>
    %35 = arith.mulf %33, %34 : vector<1x256xf32>
    %36 = arith.mulf %31, %31 : vector<128x256xf32>
    %cst_18 = arith.constant dense<0.000000e+00> : vector<256xf32>
    %37 = vector.multi_reduction <add>, %36, %cst_18 [0] : vector<128x256xf32> to vector<256xf32>
    %38 = vector.shape_cast %37 : vector<256xf32> to vector<1x256xf32>
    %cst_19 = arith.constant 7.812500e-03 : f32
    %39 = vector.broadcast %cst_19 : f32 to vector<1x256xf32>
    %40 = arith.mulf %38, %39 : vector<1x256xf32>
    %41 = arith.mulf %35, %35 : vector<1x256xf32>
    %42 = arith.subf %40, %41 : vector<1x256xf32>
    %c0_20 = arith.constant 0 : index
    %c0_21 = arith.constant 0 : index
    %43 = vector.load %arg6[%c0_20, %c0_21] : memref<1x256xf32, #tpu.memory_space<vmem>>, vector<1x256xf32>
    %cst_22 = arith.constant 9.99999974E-6 : f32
    %44 = vector.broadcast %cst_22 : f32 to vector<1x256xf32>
    %45 = arith.addf %42, %44 : vector<1x256xf32>
    %46 = math.rsqrt %45 : vector<1x256xf32>
    %47 = arith.mulf %43, %46 : vector<1x256xf32>
    %c0_23 = arith.constant 0 : index
    %c0_24 = arith.constant 0 : index
    %48 = vector.load %arg7[%c0_23, %c0_24] : memref<1x256xf32, #tpu.memory_space<vmem>>, vector<1x256xf32>
    %49 = arith.mulf %35, %47 : vector<1x256xf32>
    %50 = arith.subf %48, %49 : vector<1x256xf32>
    %51 = vector.broadcast %47 : vector<1x256xf32> to vector<128x256xf32>
    %52 = arith.mulf %31, %51 : vector<128x256xf32>
    %53 = vector.broadcast %50 : vector<1x256xf32> to vector<128x256xf32>
    %54 = arith.addf %52, %53 : vector<128x256xf32>
    %cst_25 = arith.constant 0.000000e+00 : f32
    %55 = vector.broadcast %cst_25 : f32 to vector<128x256xf32>
    %56 = arith.maximumf %54, %55 : vector<128x256xf32>
    %57 = arith.truncf %56 : vector<128x256xf32> to vector<128x256xbf16>
    %c0_26 = arith.constant 0 : index
    %c0_27 = arith.constant 0 : index
    %58 = vector.load %arg8[%c0_26, %c0_27] : memref<256x512xbf16, #tpu.memory_space<vmem>>, vector<256x512xbf16>
    %cst_28 = arith.constant dense<0.000000e+00> : vector<128x512xf32>
    %59 = tpu.matmul %57, %58, %cst_28 {dimension_numbers = #tpu.dot_dimension_numbers<[1], [0], [0], [1], [0, 0, 1, 1], [], []>} : vector<128x256xbf16>, vector<256x512xbf16>, vector<128x512xf32> -> vector<128x512xf32>
    %cst_29 = arith.constant dense<0.000000e+00> : vector<512xf32>
    %60 = vector.multi_reduction <add>, %59, %cst_29 [0] : vector<128x512xf32> to vector<512xf32>
    %61 = vector.shape_cast %60 : vector<512xf32> to vector<1x512xf32>
    %cst_30 = arith.constant 7.812500e-03 : f32
    %62 = vector.broadcast %cst_30 : f32 to vector<1x512xf32>
    %63 = arith.mulf %61, %62 : vector<1x512xf32>
    %64 = arith.mulf %59, %59 : vector<128x512xf32>
    %cst_31 = arith.constant dense<0.000000e+00> : vector<512xf32>
    %65 = vector.multi_reduction <add>, %64, %cst_31 [0] : vector<128x512xf32> to vector<512xf32>
    %66 = vector.shape_cast %65 : vector<512xf32> to vector<1x512xf32>
    %cst_32 = arith.constant 7.812500e-03 : f32
    %67 = vector.broadcast %cst_32 : f32 to vector<1x512xf32>
    %68 = arith.mulf %66, %67 : vector<1x512xf32>
    %69 = arith.mulf %63, %63 : vector<1x512xf32>
    %70 = arith.subf %68, %69 : vector<1x512xf32>
    %c0_33 = arith.constant 0 : index
    %c0_34 = arith.constant 0 : index
    %71 = vector.load %arg9[%c0_33, %c0_34] : memref<1x512xf32, #tpu.memory_space<vmem>>, vector<1x512xf32>
    %cst_35 = arith.constant 9.99999974E-6 : f32
    %72 = vector.broadcast %cst_35 : f32 to vector<1x512xf32>
    %73 = arith.addf %70, %72 : vector<1x512xf32>
    %74 = math.rsqrt %73 : vector<1x512xf32>
    %75 = arith.mulf %71, %74 : vector<1x512xf32>
    %c0_36 = arith.constant 0 : index
    %c0_37 = arith.constant 0 : index
    %76 = vector.load %arg10[%c0_36, %c0_37] : memref<1x512xf32, #tpu.memory_space<vmem>>, vector<1x512xf32>
    %77 = arith.mulf %63, %75 : vector<1x512xf32>
    %78 = arith.subf %76, %77 : vector<1x512xf32>
    %79 = vector.broadcast %75 : vector<1x512xf32> to vector<128x512xf32>
    %80 = arith.mulf %59, %79 : vector<128x512xf32>
    %81 = vector.broadcast %78 : vector<1x512xf32> to vector<128x512xf32>
    %82 = arith.addf %80, %81 : vector<128x512xf32>
    %cst_38 = arith.constant 0.000000e+00 : f32
    %83 = vector.broadcast %cst_38 : f32 to vector<128x512xf32>
    %84 = arith.maximumf %82, %83 : vector<128x512xf32>
    %85 = arith.truncf %84 : vector<128x512xf32> to vector<128x512xbf16>
    %c0_39 = arith.constant 0 : index
    %c0_40 = arith.constant 0 : index
    %86 = vector.load %arg11[%c0_39, %c0_40] : memref<512x1024xbf16, #tpu.memory_space<vmem>>, vector<512x1024xbf16>
    %cst_41 = arith.constant dense<0.000000e+00> : vector<128x1024xf32>
    %87 = tpu.matmul %85, %86, %cst_41 {dimension_numbers = #tpu.dot_dimension_numbers<[1], [0], [0], [1], [0, 0, 1, 1], [], []>} : vector<128x512xbf16>, vector<512x1024xbf16>, vector<128x1024xf32> -> vector<128x1024xf32>
    %cst_42 = arith.constant dense<0.000000e+00> : vector<1024xf32>
    %88 = vector.multi_reduction <add>, %87, %cst_42 [0] : vector<128x1024xf32> to vector<1024xf32>
    %89 = vector.shape_cast %88 : vector<1024xf32> to vector<1x1024xf32>
    %cst_43 = arith.constant 7.812500e-03 : f32
    %90 = vector.broadcast %cst_43 : f32 to vector<1x1024xf32>
    %91 = arith.mulf %89, %90 : vector<1x1024xf32>
    %92 = arith.mulf %87, %87 : vector<128x1024xf32>
    %cst_44 = arith.constant dense<0.000000e+00> : vector<1024xf32>
    %93 = vector.multi_reduction <add>, %92, %cst_44 [0] : vector<128x1024xf32> to vector<1024xf32>
    %94 = vector.shape_cast %93 : vector<1024xf32> to vector<1x1024xf32>
    %cst_45 = arith.constant 7.812500e-03 : f32
    %95 = vector.broadcast %cst_45 : f32 to vector<1x1024xf32>
    %96 = arith.mulf %94, %95 : vector<1x1024xf32>
    %97 = arith.mulf %91, %91 : vector<1x1024xf32>
    %98 = arith.subf %96, %97 : vector<1x1024xf32>
    %c0_46 = arith.constant 0 : index
    %c0_47 = arith.constant 0 : index
    %99 = vector.load %arg12[%c0_46, %c0_47] : memref<1x1024xf32, #tpu.memory_space<vmem>>, vector<1x1024xf32>
    %cst_48 = arith.constant 9.99999974E-6 : f32
    %100 = vector.broadcast %cst_48 : f32 to vector<1x1024xf32>
    %101 = arith.addf %98, %100 : vector<1x1024xf32>
    %102 = math.rsqrt %101 : vector<1x1024xf32>
    %103 = arith.mulf %99, %102 : vector<1x1024xf32>
    %c0_49 = arith.constant 0 : index
    %c0_50 = arith.constant 0 : index
    %104 = vector.load %arg13[%c0_49, %c0_50] : memref<1x1024xf32, #tpu.memory_space<vmem>>, vector<1x1024xf32>
    %105 = arith.mulf %91, %103 : vector<1x1024xf32>
    %106 = arith.subf %104, %105 : vector<1x1024xf32>
    %107 = vector.broadcast %103 : vector<1x1024xf32> to vector<128x1024xf32>
    %108 = arith.mulf %87, %107 : vector<128x1024xf32>
    %109 = vector.broadcast %106 : vector<1x1024xf32> to vector<128x1024xf32>
    %110 = arith.addf %108, %109 : vector<128x1024xf32>
    %cst_51 = arith.constant 0.000000e+00 : f32
    %111 = vector.broadcast %cst_51 : f32 to vector<128x1024xf32>
    %112 = arith.maximumf %110, %111 : vector<128x1024xf32>
    %113 = arith.truncf %112 : vector<128x1024xf32> to vector<128x1024xbf16>
    %c0_52 = arith.constant 0 : index
    %c0_53 = arith.constant 0 : index
    %114 = vector.load %arg14[%c0_52, %c0_53] : memref<1024x784xbf16, #tpu.memory_space<vmem>>, vector<1024x784xbf16>
    %cst_54 = arith.constant dense<0.000000e+00> : vector<128x784xf32>
    %115 = tpu.matmul %113, %114, %cst_54 {dimension_numbers = #tpu.dot_dimension_numbers<[1], [0], [0], [1], [0, 0, 1, 1], [], []>} : vector<128x1024xbf16>, vector<1024x784xbf16>, vector<128x784xf32> -> vector<128x784xf32>
    %c0_55 = arith.constant 0 : index
    %c0_56 = arith.constant 0 : index
    %116 = vector.load %arg15[%c0_55, %c0_56] : memref<1x784xf32, #tpu.memory_space<vmem>>, vector<1x784xf32>
    %117 = vector.broadcast %116 : vector<1x784xf32> to vector<128x784xf32>
    %118 = arith.addf %115, %117 : vector<128x784xf32>
    %119 = arith.negf %118 : vector<128x784xf32>
    %120 = math.exp %119 : vector<128x784xf32>
    %cst_57 = arith.constant 1.000000e+00 : f32
    %121 = vector.broadcast %cst_57 : f32 to vector<128x784xf32>
    %122 = arith.addf %121, %120 : vector<128x784xf32>
    %123 = arith.divf %121, %122 : vector<128x784xf32>
    %124 = arith.truncf %123 : vector<128x784xf32> to vector<128x784xbf16>
    %c0_58 = arith.constant 0 : index
    %c0_59 = arith.constant 0 : index
    %125 = vector.load %arg16[%c0_58, %c0_59] : memref<128x784xbf16, #tpu.memory_space<vmem>>, vector<128x784xbf16>
    tpu.vector_store %arg16[%c0_58, %c0_59], %124 {strides = array<i32>} : memref<128x784xbf16, #tpu.memory_space<vmem>>, vector<128x784xbf16>,
    return
  }
  func.func @transform_0(%arg0: i32) -> (i32, i32) {
    %c0_i32 = arith.constant 0 : i32
    %c0_i32_0 = arith.constant 0 : i32
    return %arg0, %c0_i32 : i32, i32
  }
  func.func @transform_1(%arg0: i32) -> (i32, i32) {
    %c0_i32 = arith.constant 0 : i32
    %c0_i32_0 = arith.constant 0 : i32
    %c0_i32_1 = arith.constant 0 : i32
    return %c0_i32, %c0_i32_0 : i32, i32
  }
  func.func @transform_2(%arg0: i32) -> (i32, i32) {
    %c0_i32 = arith.constant 0 : i32
    %c0_i32_0 = arith.constant 0 : i32
    %c0_i32_1 = arith.constant 0 : i32
    return %c0_i32, %c0_i32_0 : i32, i32
  }
  func.func @transform_3(%arg0: i32) -> (i32, i32) {
    %c0_i32 = arith.constant 0 : i32
    %c0_i32_0 = arith.constant 0 : i32
    %c0_i32_1 = arith.constant 0 : i32
    return %c0_i32, %c0_i32_0 : i32, i32
  }
  func.func @transform_4(%arg0: i32) -> (i32, i32) {
    %c0_i32 = arith.constant 0 : i32
    %c0_i32_0 = arith.constant 0 : i32
    %c0_i32_1 = arith.constant 0 : i32
    return %c0_i32, %c0_i32_0 : i32, i32
  }
  func.func @transform_5(%arg0: i32) -> (i32, i32) {
    %c0_i32 = arith.constant 0 : i32
    %c0_i32_0 = arith.constant 0 : i32
    %c0_i32_1 = arith.constant 0 : i32
    return %c0_i32, %c0_i32_0 : i32, i32
  }
  func.func @transform_6(%arg0: i32) -> (i32, i32) {
    %c0_i32 = arith.constant 0 : i32
    %c0_i32_0 = arith.constant 0 : i32
    %c0_i32_1 = arith.constant 0 : i32
    return %c0_i32, %c0_i32_0 : i32, i32
  }
  func.func @transform_7(%arg0: i32) -> (i32, i32) {
    %c0_i32 = arith.constant 0 : i32
    %c0_i32_0 = arith.constant 0 : i32
    %c0_i32_1 = arith.constant 0 : i32
    return %c0_i32, %c0_i32_0 : i32, i32
  }
  func.func @transform_8(%arg0: i32) -> (i32, i32) {
    %c0_i32 = arith.constant 0 : i32
    %c0_i32_0 = arith.constant 0 : i32
    %c0_i32_1 = arith.constant 0 : i32
    return %c0_i32, %c0_i32_0 : i32, i32
  }
  func.func @transform_9(%arg0: i32) -> (i32, i32) {
    %c0_i32 = arith.constant 0 : i32
    %c0_i32_0 = arith.constant 0 : i32
    %c0_i32_1 = arith.constant 0 : i32
    return %c0_i32, %c0_i32_0 : i32, i32
  }
  func.func @transform_10(%arg0: i32) -> (i32, i32) {
    %c0_i32 = arith.constant 0 : i32
    %c0_i32_0 = arith.constant 0 : i32
    %c0_i32_1 = arith.constant 0 : i32
    return %c0_i32, %c0_i32_0 : i32, i32
  }
  func.func @transform_11(%arg0: i32) -> (i32, i32) {
    %c0_i32 = arith.constant 0 : i32
    %c0_i32_0 = arith.constant 0 : i32
    %c0_i32_1 = arith.constant 0 : i32
    return %c0_i32, %c0_i32_0 : i32, i32
  }
  func.func @transform_12(%arg0: i32) -> (i32, i32) {
    %c0_i32 = arith.constant 0 : i32
    %c0_i32_0 = arith.constant 0 : i32
    %c0_i32_1 = arith.constant 0 : i32
    return %c0_i32, %c0_i32_0 : i32, i32
  }
  func.func @transform_13(%arg0: i32) -> (i32, i32) {
    %c0_i32 = arith.constant 0 : i32
    %c0_i32_0 = arith.constant 0 : i32
    %c0_i32_1 = arith.constant 0 : i32
    return %c0_i32, %c0_i32_0 : i32, i32
  }
  func.func @transform_14(%arg0: i32) -> (i32, i32) {
    %c0_i32 = arith.constant 0 : i32
    %c0_i32_0 = arith.constant 0 : i32
    %c0_i32_1 = arith.constant 0 : i32
    return %c0_i32, %c0_i32_0 : i32, i32
  }
  func.func @transform_15(%arg0: i32) -> (i32, i32) {
    %c0_i32 = arith.constant 0 : i32
    %c0_i32_0 = arith.constant 0 : i32
    return %arg0, %c0_i32 : i32, i32
  }
}

</mosaic_0001>

<bundles_post_ra>
// kernel: generator_forward.1
= control target key start
LH: loop header
LB: loop body
LE: loop exit
PB: predicated region body
PF: predicated region fallthrough
CT: control target
= control target key end

     0   :  { %s15108_s18 = smov 0   ;;  %s21236_s0 = inlined_call_operand.vmem [shape: f32[256,64], index: 0, kind: input, shape index: {}]   ;;  %s21237_s1 = inlined_call_operand.vmem [shape: bf16[64,128], index: 1, kind: input, shape index: {}]   ;;  %s21238_s2 = inlined_call_operand.vmem [shape: f32[1,128], index: 2, kind: input, shape index: {}]   ;;  %s21239_s3 = inlined_call_operand.vmem [shape: f32[1,128], index: 3, kind: input, shape index: {}]   ;;  %s21240_s4 = inlined_call_operand.vmem [shape: bf16[128,256], index: 4, kind: input, shape index: {}]   ;;  %s21241_s5 = inlined_call_operand.vmem [shape: f32[1,256], index: 5, kind: input, shape index: {}]   ;;  %s21242_s6 = inlined_call_operand.vmem [shape: f32[1,256], index: 6, kind: input, shape index: {}]   ;;  %s21243_s7 = inlined_call_operand.vmem [shape: bf16[256,512], index: 7, kind: input, shape index: {}]   ;;  %s21244_s8 = inlined_call_operand.vmem [shape: f32[1,512], index: 8, kind: input, shape index: {}]   ;;  %s21245_s9 = inlined_call_operand.vmem [shape: f32[1,512], index: 9, kind: input, shape index: {}]   ;;  %s21246_s10 = inlined_call_operand.vmem [shape: bf16[512,1024], index: 10, kind: input, shape index: {}]   ;;  %s21247_s11 = inlined_call_operand.vmem [shape: f32[1,1024], index: 11, kind: input, shape index: {}]   ;;  %s21248_s12 = inlined_call_operand.vmem [shape: f32[1,1024], index: 12, kind: input, shape index: {}]   ;;  %s21249_s13 = inlined_call_operand.vmem [shape: bf16[1024,784], index: 13, kind: input, shape index: {}]   ;;  %s21250_s14 = inlined_call_operand.vmem [shape: f32[1,784], index: 14, kind: input, shape index: {}]   ;;  %s21251_s15 = inlined_call_operand.vmem [shape: bf16[256,784], index: 15, kind: output, shape index: {}]  }
   0x1 LB: > { %s11881_s19 = sadd.s32 4294967295, %s15024_s18   ;;  %p11885_p0 = scmp.ge.s32.totalorder %s15024_s18, 1  ;;  %s15024_s18 = sphi %s15108_s18, %s25_s18  }
   0x2   : > { %p438_p1 = scmp.lt.s32.totalorder %s15024_s18, 3 }
   0x4   : > { %p439_p2 = pnand %p11885_p0, %p438_p1 }
   0x6   : > { %442 = sbr.rel (%p439_p2) target bundleno = 2324 (0x914), region = 80 }
   0xd   : > { %v13759_v0 = vld [vmem:[%s21237_s1] sm:$0xff]   ;;  %s11886_s22 = sshll.u32 %s11881_s19, 4  ;;  %v13760_v1 = vld [vmem:[%s21237_s1 + $0x8] sm:$0xff]   ;;  %v13761_v2 = vld [vmem:[%s21237_s1 + $0x10] sm:$0xff]   ;;  %vm557_vm0 = vcmask 523264   ;;  %v15026_v44 = vmov 0  }
   0xe   : > { %p488_p3 = scmp.lt.s32.totalorder %s11886_s22, 31  ;;  %13196 = vmatprep.subr.bf16.mxu0 %v13759_v0  ;;  %v13762_v5 = vld [vmem:[%s21237_s1 + $0x18] sm:$0xff]   ;;  %v13763_v28 = vld [vmem:[%s21240_s4 + $0x4] ss:$8 sps:$4 sm:$0xff]   ;;  %v13765_v29 = vld [vmem:[%s21240_s4] ss:$8 sps:$4 sm:$0xff]   ;;  %944 = vmatprep.mubr.bf16.mxu1 %v15026_v44 }
   0xf   : > { %13197 = vmatpush3.bf16.msra.mxu0 %v13759_v0  ;;  %912 = vmatprep.subr.bf16.mxu1 %v13763_v28  ;;  %v13766_v30 = vld [vmem:[%s21240_s4 + $0x14] ss:$8 sps:$4 sm:$0xff]   ;;  %v13768_v31 = vld [vmem:[%s21240_s4 + $0x10] ss:$8 sps:$4 sm:$0xff]   ;;  %v13769_v32 = vld [vmem:[%s21240_s4 + $0x24] ss:$8 sps:$4 sm:$0xff]  }
  0x10   : > { %s21994_s22 = smov (!%p488_p3, %s11886_s22), 31  ;;  %13198 = vmatprep.subr.bf16.mxu0 %v13760_v1  ;;  %913 = vmatpush1.bf16.msra.mxu1 %v13765_v29  ;;  %v13771_v33 = vld [vmem:[%s21240_s4 + $0x20] ss:$8 sps:$4 sm:$0xff]   ;;  %v13772_v34 = vld [vmem:[%s21240_s4 + $0x34] ss:$8 sps:$4 sm:$0xff]   ;;  %vm11761_vm1 = vcmask 125952  }
  0x11   : > { %s11887_s27 = sshll.u32 %s21994_s22, 3  ;;  %914 = vmatprep.subr.bf16.mxu1 %v13766_v30  ;;  %v13774_v35 = vld [vmem:[%s21240_s4 + $0x30] ss:$8 sps:$4 sm:$0xff]   ;;  %v13775_v36 = vld [vmem:[%s21240_s4 + $0x44] ss:$8 sps:$4 sm:$0xff]   ;;  %s13748_s17 = smul.u32 28, %s21994_s22 }
  0x12   : > { %s15131_s30 = scalar_lea.vmem %s21236_s0, %s11887_s27  ;;  %v13777_v37 = vld [vmem:[%s21240_s4 + $0x40] ss:$8 sps:$4 sm:$0xff]   ;;  %v13778_v38 = vld [vmem:[%s21240_s4 + $0x54] ss:$8 sps:$4 sm:$0xff]   ;;  %v13780_v39 = vld [vmem:[%s21240_s4 + $0x50] ss:$8 sps:$4 sm:$0xff]  }
  0x13   : > { %13199 = vmatpush3.bf16.msra.mxu0 %v13760_v1  ;;  %v501_v3 = vld [vmem:[%s15131_s30] sm:$0xff]  ;;  %v502_v4 = vld [vmem:[%s15131_s30 + $0x8] sm:$0xff]  ;;  %v503_v7 = vld [vmem:[%s15131_s30 + $0x10] sm:$0xff]  ;;  %s20613_s26 = scalar_lea.vmem %s21251_s15, %s13748_s17 }
  0x14   : > { %13200 = vmatprep.subr.bf16.mxu0 %v13761_v2  ;;  %v517_v6 = vpack.c.bf16 %v502_v4, %v501_v3  ;;  %v504_v8 = vld [vmem:[%s15131_s30 + $0x18] sm:$0xff]  ;;  %v505_v9 = vld [vmem:[%s15131_s30 + $0x20] sm:$0xff]  ;;  %v506_v10 = vld [vmem:[%s15131_s30 + $0x28] sm:$0xff]  ;;  %915 = vmatpush1.bf16.msra.mxu1 %v13768_v31 }
  0x15   : > { %v518_v11 = vpack.c.bf16 %v504_v8, %v503_v7  ;;  %v519_v12 = vpack.c.bf16 %v506_v10, %v505_v9  ;;  %v507_v13 = vld [vmem:[%s15131_s30 + $0x30] sm:$0xff]  ;;  %v508_v14 = vld [vmem:[%s15131_s30 + $0x38] sm:$0xff]  ;;  %v509_v15 = vld [vmem:[%s15131_s30 + $0x40] sm:$0xff]  ;;  %916 = vmatprep.subr.bf16.mxu1 %v13769_v32 }
  0x16   : > { %13204 = vmatprep.mubr.msk.bf16.mxu0 %vm557_vm0, %v517_v6  ;;  %v510_v16 = vld [vmem:[%s15131_s30 + $0x48] sm:$0xff]  ;;  %v520_v17 = vpack.c.bf16 %v508_v14, %v507_v13  ;;  %v511_v19 = vld [vmem:[%s15131_s30 + $0x50] sm:$0xff]  ;;  %v512_v20 = vld [vmem:[%s15131_s30 + $0x58] sm:$0xff] }
  0x17   : > { %13201 = vmatpush3.bf16.msra.mxu0 %v13761_v2  ;;  %v521_v18 = vpack.c.bf16 %v510_v16, %v509_v15  ;;  %v513_v21 = vld [vmem:[%s15131_s30 + $0x60] sm:$0xff]  ;;  %v514_v22 = vld [vmem:[%s15131_s30 + $0x68] sm:$0xff]  ;;  %v522_v23 = vpack.c.bf16 %v512_v20, %v511_v19  ;;  %v515_v25 = vld [vmem:[%s15131_s30 + $0x70] sm:$0xff] }
  0x18   : > { %13202 = vmatprep.subr.bf16.mxu0 %v13762_v5  ;;  %v523_v24 = vpack.c.bf16 %v514_v22, %v513_v21  ;;  %v516_v26 = vld [vmem:[%s15131_s30 + $0x78] sm:$0xff]  ;;  %917 = vmatpush1.bf16.msra.mxu1 %v13771_v33  ;;  %v13781_v40 = vld [vmem:[%s21240_s4 + $0x64] ss:$8 sps:$4 sm:$0xff]   ;;  %v13783_v41 = vld [vmem:[%s21240_s4 + $0x60] ss:$8 sps:$4 sm:$0xff]  }
  0x19   : > { %v524_v27 = vpack.c.bf16 %v516_v26, %v515_v25  ;;  %918 = vmatprep.subr.bf16.mxu1 %v13772_v34  ;;  %v13784_v42 = vld [vmem:[%s21240_s4 + $0x74] ss:$8 sps:$4 sm:$0xff]   ;;  %v13786_v43 = vld [vmem:[%s21240_s4 + $0x70] ss:$8 sps:$4 sm:$0xff]  }
  0x1b   : > { %13203 = vmatpush3.bf16.msra.mxu0 %v13762_v5 }
  0x1c   : > { %919 = vmatpush1.bf16.msra.mxu1 %v13774_v35 }
  0x1d   : > { %920 = vmatprep.subr.bf16.mxu1 %v13775_v36 }
  0x1e   : > { %13205 = vmatmul.mubr.msk.bf16.vlgmr.msra.gmra.mrb[0].mxu0 %vm557_vm0, %v518_v11 }
  0x1f   : > { %13208 = vmatprep.mubr.msk.bf16.mxu0 %vm557_vm0, %v519_v12 }
  0x20   : > { %921 = vmatpush1.bf16.msra.mxu1 %v13777_v37 }
  0x21   : > { %922 = vmatprep.subr.bf16.mxu1 %v13778_v38 }
  0x24   : > { %923 = vmatpush1.bf16.msra.mxu1 %v13780_v39 }
  0x25   : > { %924 = vmatprep.subr.bf16.mxu1 %v13781_v40 }
  0x26   : > { %13209 = vmatmul.mubr.msk.bf16.gmra.mrb[4].mxu0 %vm557_vm0, %v520_v17 }
  0x27   : > { %13212 = vmatprep.mubr.msk.bf16.mxu0 %vm557_vm0, %v521_v18 }
  0x28   : > { %925 = vmatpush1.bf16.msra.mxu1 %v13783_v41 }
  0x29   : > { %926 = vmatprep.subr.bf16.mxu1 %v13784_v42 }
  0x2c   : > { %927 = vmatpush1.bf16.msra.mxu1 %v13786_v43 }
  0x2e   : > { %13213 = vmatmul.mubr.msk.bf16.gmra.mrb[8].mxu0 %vm557_vm0, %v522_v23 }
  0x2f   : > { %13216 = vmatprep.mubr.msk.bf16.mxu0 %vm557_vm0, %v523_v24 }
  0x36   : > { %13217 = vmatmul.mubr.msk.bf16.gmra.mrb[12].mxu0 %vm557_vm0, %v524_v27 }
  0xf1   : > { %v15209_v45 = vpop.f32.mrb[0].mxu0 }
  0xf2   : > { %v15211_v46 = vpop.f32.mrb[1].mxu0  ;;  %v703_v52 = vmul.f32 %v15209_v45, %v15209_v45 }
  0xf3   : > { %v15213_v47 = vpop.f32.mrb[2].mxu0  ;;  %v701_v49 = vmul.f32 %v15211_v46, %v15211_v46 }
  0xf4   : > { %v15215_v48 = vpop.f32.mrb[3].mxu0  ;;  %v704_v55 = vmul.f32 %v15213_v47, %v15213_v47 }
  0xf5   : > { %v679_v50 = vadd.f32 %v15215_v48, %v15211_v46  ;;  %v702_v51 = vmul.f32 %v15215_v48, %v15215_v48 }
  0xf7   : > { %v680_v53 = vadd.f32 %v15209_v45, %v679_v50  ;;  %v717_v54 = vadd.f32 %v702_v51, %v701_v49 }
  0xf9   : > { %v718_v56 = vadd.f32 %v717_v54, %v703_v52  ;;  %v15228_v57 = vpop.f32.mrb[4].mxu0  ;;  %v681_v58 = vadd.f32 %v15213_v47, %v680_v53 }
  0xfa   : > { %v15231_v59 = vpop.f32.mrb[5].mxu0  ;;  %v707_v4 = vmul.f32 %v15228_v57, %v15228_v57 }
  0xfb   : > { %v682_v60 = vadd.f32 %v681_v58, %v15231_v59  ;;  %v705_v61 = vmul.f32 %v15231_v59, %v15231_v59  ;;  %v719_v62 = vadd.f32 %v718_v56, %v704_v55  ;;  %v15236_v63 = vpop.f32.mrb[6].mxu0 }
  0xfc   : > { %v15238_v0 = vpop.f32.mrb[7].mxu0  ;;  %v708_v7 = vmul.f32 %v15236_v63, %v15236_v63 }
  0xfd   : > { %v720_v1 = vadd.f32 %v719_v62, %v705_v61  ;;  %v683_v2 = vadd.f32 %v682_v60, %v15238_v0  ;;  %v706_v3 = vmul.f32 %v15238_v0, %v15238_v0 }
  0xff   : > { %v684_v5 = vadd.f32 %v15228_v57, %v683_v2  ;;  %v721_v6 = vadd.f32 %v720_v1, %v706_v3 }
 0x101   : > { %v722_v8 = vadd.f32 %v721_v6, %v707_v4  ;;  %v15248_v9 = vpop.f32.mrb[8].mxu0  ;;  %v685_v10 = vadd.f32 %v15236_v63, %v684_v5  ;;  %v749_v5 = vlaneseq }
 0x102   : > { %v15251_v11 = vpop.f32.mrb[9].mxu0  ;;  %v711_v20 = vmul.f32 %v15248_v9, %v15248_v9 }
 0x103   : > { %v686_v12 = vadd.f32 %v685_v10, %v15251_v11  ;;  %v709_v13 = vmul.f32 %v15251_v11, %v15251_v11  ;;  %v723_v14 = vadd.f32 %v722_v8, %v708_v7  ;;  %v15256_v15 = vpop.f32.mrb[10].mxu0  ;;  %v15279_v6 = vshrl.u32 %v749_v5, 7  ;;  %v741_v7 = vld [vmem:[%s21238_s2] sm:$0x1] }
 0x104   : > { %v15258_v16 = vpop.f32.mrb[11].mxu0  ;;  %v712_v23 = vmul.f32 %v15256_v15, %v15256_v15 }
 0x105   : > { %v724_v17 = vadd.f32 %v723_v14, %v709_v13  ;;  %v687_v18 = vadd.f32 %v686_v12, %v15258_v16  ;;  %v710_v19 = vmul.f32 %v15258_v16, %v15258_v16  ;;  %21525 = vst [vmem:[#allocation2_spill] sm:$0xff] %v15279_v6  ;;  %v15285_v8 = vsub.s32 0, %v15279_v6  ;;  %v745_v13 = vld [vmem:[%s21239_s3] sm:$0x1] }
 0x107   : > { %v688_v21 = vadd.f32 %v15248_v9, %v687_v18  ;;  %v725_v22 = vadd.f32 %v724_v17, %v710_v19  ;;  %21526 = vst [vmem:[#allocation3_spill] sm:$0xff] %v15285_v8 }
 0x109   : > { %v726_v24 = vadd.f32 %v725_v22, %v711_v20  ;;  %v15268_v25 = vpop.f32.mrb[12].mxu0  ;;  %v689_v26 = vadd.f32 %v15256_v15, %v688_v21 }
 0x10a   : > { %v664_v27 = vpop.f32.mrb[13].mxu0  ;;  %v715_v36 = vmul.f32 %v15268_v25, %v15268_v25 }
 0x10b   : > { %v690_v28 = vadd.f32 %v689_v26, %v664_v27  ;;  %v713_v29 = vmul.f32 %v664_v27, %v664_v27  ;;  %v727_v30 = vadd.f32 %v726_v24, %v712_v23  ;;  %v15271_v31 = vpop.f32.mrb[14].mxu0 }
 0x10c   : > { %v667_v32 = vpop.f32.mrb[15].mxu0  ;;  %v716_v39 = vmul.f32 %v15271_v31, %v15271_v31 }
 0x10d   : > { %v728_v33 = vadd.f32 %v727_v30, %v713_v29  ;;  %v691_v34 = vadd.f32 %v690_v28, %v667_v32  ;;  %v714_v35 = vmul.f32 %v667_v32, %v667_v32 }
 0x10f   : > { %v692_v37 = vadd.f32 %v15268_v25, %v691_v34  ;;  %v729_v38 = vadd.f32 %v728_v33, %v714_v35 }
 0x111   : > { %v693_v40 = vadd.f32 %v15271_v31, %v692_v37  ;;  %v730_v41 = vadd.f32 %v729_v38, %v715_v36 }
 0x113   : > { %v694_v42 = vrot.slane %v693_v40, 4  ;;  %v731_v43 = vadd.f32 %v730_v41, %v716_v39 }
 0x115   : > { %v695_v49 = vadd.f32 %v694_v42, %v693_v40  ;;  %v732_v50 = vrot.slane %v731_v43, 4 }
 0x117   : > { %v696_v51 = vrot.slane %v695_v49, 2  ;;  %v733_v52 = vadd.f32 %v732_v50, %v731_v43 }
 0x119   : > { %v697_v53 = vadd.f32 %v696_v51, %v695_v49  ;;  %v734_v54 = vrot.slane %v733_v52, 2 }
 0x11b   : > { %v698_v55 = vrot.slane %v697_v53, 1  ;;  %v735_v56 = vadd.f32 %v734_v54, %v733_v52 }
 0x11d   : > { %v699_v58 = vadd.f32 %v698_v55, %v697_v53  ;;  %v736_v60 = vrot.slane %v735_v56, 1 }
 0x11f   : > { %v700_v61 = vmul.f32 0.0078125, %v699_v58  ;;  %v737_v62 = vadd.f32 %v736_v60, %v735_v56 }
 0x121   : > { %v738_v1 = vmul.f32 0.0078125, %v737_v62  ;;  %v739_v2 = vmul.f32 %v700_v61, %v700_v61 }
 0x123   : > { %v740_v3 = vsub.f32 %v738_v1, %v739_v2 }
 0x125   : > { %v742_v4 = vadd.f32 1e-05, %v740_v3 }
 0x127   : > { %14523 = vrsqrt.f32 %v742_v4 }
 0x131   : > { %v14524_v10 = vpop.eup %14523 }
 0x132   : > { %v744_v12 = vmul.f32 %v14524_v10, %v741_v7 }
 0x134   : > { %v746_v14 = vmul.f32 %v744_v12, %v700_v61  ;;  %v752_v17 = vrot.slane %v744_v12, %v15285_v8 }
 0x136   : > { %v747_v18 = vsub.f32 %v745_v13, %v746_v14  ;;  %v767_v19 = vmul.f32 %v752_v17, %v667_v32  ;;  %v754_v20 = vmul.f32 %v752_v17, %v15211_v46  ;;  %v755_v21 = vmul.f32 %v752_v17, %v15215_v48 }
 0x137   : > { %v756_v22 = vmul.f32 %v15209_v45, %v752_v17  ;;  %v757_v23 = vmul.f32 %v15213_v47, %v752_v17  ;;  %v758_v24 = vmul.f32 %v752_v17, %v15231_v59  ;;  %v759_v26 = vmul.f32 %v752_v17, %v15238_v0 }
 0x138   : > { %v774_v28 = vrot.slane %v747_v18, %v15285_v8  ;;  %v760_v29 = vmul.f32 %v15228_v57, %v752_v17  ;;  %v761_v30 = vmul.f32 %v15236_v63, %v752_v17  ;;  %v762_v32 = vmul.f32 %v752_v17, %v15251_v11  ;;  %v13790_v18 = vld [vmem:[%s21243_s7] ss:$16 sps:$4 sm:$0xff]  }
 0x139   : > { %v763_v46 = vmul.f32 %v752_v17, %v15258_v16  ;;  %v764_v48 = vmul.f32 %v15248_v9, %v752_v17  ;;  %v765_v45 = vmul.f32 %v15256_v15, %v752_v17  ;;  %v766_v33 = vmul.f32 %v752_v17, %v664_v27 }
 0x13a   : > { %v789_v47 = vadd.f32 %v774_v28, %v767_v19  ;;  %v776_v34 = vadd.f32 %v774_v28, %v754_v20  ;;  %v777_v59 = vadd.f32 %v774_v28, %v755_v21  ;;  %v778_v35 = vadd.f32 %v774_v28, %v756_v22  ;;  %v13798_v19 = vld [vmem:[%s21243_s7 + $0x24] ss:$16 sps:$4 sm:$0xff]   ;;  %v13793_v20 = vld [vmem:[%s21243_s7 + $0x28] ss:$16 sps:$4 sm:$0xff]   ;;  %v13796_v21 = vld [vmem:[%s21243_s7 + $0x20] ss:$16 sps:$4 sm:$0xff]  }
 0x13b   : > { %v779_v0 = vadd.f32 %v774_v28, %v757_v23  ;;  %v780_v36 = vadd.f32 %v774_v28, %v758_v24  ;;  %v781_v37 = vadd.f32 %v774_v28, %v759_v26  ;;  %v782_v38 = vadd.f32 %v774_v28, %v760_v29  ;;  %v13801_v22 = vld [vmem:[%s21243_s7 + $0x4c] ss:$16 sps:$4 sm:$0xff]   ;;  %v13804_v23 = vld [vmem:[%s21243_s7 + $0x44] ss:$16 sps:$4 sm:$0xff]   ;;  %v13799_v24 = vld [vmem:[%s21243_s7 + $0x48] ss:$16 sps:$4 sm:$0xff]  }
 0x13c   : > { %v792_v57 = vmax.f32 %v776_v34, 0.0  ;;  %v793_v39 = vmax.f32 %v777_v59, 0.0  ;;  %v794_v63 = vmax.f32 %v778_v35, 0.0  ;;  %v783_v40 = vadd.f32 %v774_v28, %v761_v30  ;;  %v13802_v26 = vld [vmem:[%s21243_s7 + $0x40] ss:$16 sps:$4 sm:$0xff]  }
 0x13d   : > { %v795_v11 = vmax.f32 %v779_v0, 0.0  ;;  %v796_v41 = vmax.f32 %v780_v36, 0.0  ;;  %v797_v16 = vmax.f32 %v781_v37, 0.0  ;;  %v798_v42 = vmax.f32 %v782_v38, 0.0  ;;  %v13810_v29 = vld [vmem:[%s21243_s7 + $0x64] ss:$16 sps:$4 sm:$0xff]  }
 0x13e   : > { %v808_v9 = vpack.c.bf16 %v793_v39, %v792_v57  ;;  %v799_v43 = vmax.f32 %v783_v40, 0.0  ;;  %v784_v15 = vadd.f32 %v774_v28, %v762_v32  ;;  %v785_v27 = vadd.f32 %v774_v28, %v763_v46  ;;  %v13805_v30 = vld [vmem:[%s21243_s7 + $0x68] ss:$16 sps:$4 sm:$0xff]   ;;  %v13808_v32 = vld [vmem:[%s21243_s7 + $0x60] ss:$16 sps:$4 sm:$0xff]  }
 0x13f   : > { %v809_v49 = vpack.c.bf16 %v795_v11, %v794_v63  ;;  %v810_v50 = vpack.c.bf16 %v797_v16, %v796_v41  ;;  %v786_v51 = vadd.f32 %v774_v28, %v764_v48  ;;  %v787_v52 = vadd.f32 %v774_v28, %v765_v45  ;;  %v13813_v46 = vld [vmem:[%s21243_s7 + $0x8c] ss:$16 sps:$4 sm:$0xff]   ;;  %v13816_v48 = vld [vmem:[%s21243_s7 + $0x84] ss:$16 sps:$4 sm:$0xff]   ;;  %v13811_v45 = vld [vmem:[%s21243_s7 + $0x88] ss:$16 sps:$4 sm:$0xff]  }
 0x140   : > { %945 = vmatmul.mubr.bf16.vlgmr.msra.gmra.mrb[0].mxu1 %v808_v9  ;;  %v811_v53 = vpack.c.bf16 %v799_v43, %v798_v42  ;;  %v800_v54 = vmax.f32 %v784_v15, 0.0  ;;  %v801_v55 = vmax.f32 %v785_v27, 0.0  ;;  %v788_v56 = vadd.f32 %v774_v28, %v766_v33  ;;  %v13814_v33 = vld [vmem:[%s21243_s7 + $0x80] ss:$16 sps:$4 sm:$0xff]   ;;  %v13822_v34 = vld [vmem:[%s21243_s7 + $0xa4] ss:$16 sps:$4 sm:$0xff]  }
 0x141   : > { %954 = vmatprep.mubr.bf16.mxu1 %v15026_v44  ;;  %v802_v58 = vmax.f32 %v786_v51, 0.0  ;;  %v803_v60 = vmax.f32 %v787_v52, 0.0  ;;  %v805_v61 = vmax.f32 %v789_v47, 0.0  ;;  %v768_v62 = vmul.f32 %v15268_v25, %v752_v17  ;;  %v13787_v25 = vld [vmem:[%s21243_s7 + $0x8] ss:$16 sps:$4 sm:$0xff]  }
 0x142   : > { %v812_v1 = vpack.c.bf16 %v801_v55, %v800_v54  ;;  %v804_v2 = vmax.f32 %v788_v56, 0.0  ;;  %v769_v3 = vmul.f32 %v15271_v31, %v752_v17  ;;  %v13789_v31 = vld [vmem:[%s21243_s7 + $0xc] ss:$16 sps:$4 sm:$0xff]   ;;  %v13792_v17 = vld [vmem:[%s21243_s7 + $0x4] ss:$16 sps:$4 sm:$0xff]  }
 0x143   : > { %v813_v4 = vpack.c.bf16 %v803_v60, %v802_v58  ;;  %v790_v5 = vadd.f32 %v774_v28, %v768_v62  ;;  %1826 = vmatprep.subr.bf16.mxu1 %v13789_v31  ;;  %1713 = vmatprep.subr.bf16.mxu0 %v13792_v17  ;;  %v13819_v47 = vld [vmem:[%s21243_s7 + $0xac] ss:$16 sps:$4 sm:$0xff]   ;;  %v13817_v59 = vld [vmem:[%s21243_s7 + $0xa8] ss:$16 sps:$4 sm:$0xff]   ;;  %v13820_v35 = vld [vmem:[%s21243_s7 + $0xa0] ss:$16 sps:$4 sm:$0xff]  }
 0x144   : > { %v814_v7 = vpack.c.bf16 %v805_v61, %v804_v2  ;;  %v791_v10 = vadd.f32 %v774_v28, %v769_v3  ;;  %1827 = vmatpush1.bf16.msra.mxu1 %v13787_v25  ;;  %1714 = vmatpush1.bf16.msra.mxu0 %v13790_v18  ;;  %v13807_v28 = vld [vmem:[%s21243_s7 + $0x6c] ss:$16 sps:$4 sm:$0xff]   ;;  %v13828_v36 = vld [vmem:[%s21243_s7 + $0xc4] ss:$16 sps:$4 sm:$0xff]   ;;  %v13823_v37 = vld [vmem:[%s21243_s7 + $0xc8] ss:$16 sps:$4 sm:$0xff]  }
 0x145   : > { %v806_v12 = vmax.f32 %v790_v5, 0.0  ;;  %1715 = vmatprep.subr.bf16.mxu0 %v13798_v19  ;;  %v13825_v0 = vld [vmem:[%s21243_s7 + $0xcc] ss:$16 sps:$4 sm:$0xff]   ;;  %v13826_v38 = vld [vmem:[%s21243_s7 + $0xc0] ss:$16 sps:$4 sm:$0xff]  }
 0x146   : > { %v807_v13 = vmax.f32 %v791_v10, 0.0  ;;  %v13831_v57 = vld [vmem:[%s21243_s7 + $0xec] ss:$16 sps:$4 sm:$0xff]   ;;  %v13834_v39 = vld [vmem:[%s21243_s7 + $0xe4] ss:$16 sps:$4 sm:$0xff]  }
 0x147   : > { %v13829_v63 = vld [vmem:[%s21243_s7 + $0xe8] ss:$16 sps:$4 sm:$0xff]   ;;  %v13832_v40 = vld [vmem:[%s21243_s7 + $0xe0] ss:$16 sps:$4 sm:$0xff]   ;;  %v13837_v11 = vld [vmem:[%s21243_s7 + $0x10c] ss:$16 sps:$4 sm:$0xff]  }
 0x148   : > { %955 = vmatmul.mubr.bf16.gmra.mrb[4].mxu1 %v809_v49  ;;  %v815_v14 = vpack.c.bf16 %v807_v13, %v806_v12  ;;  %1716 = vmatpush1.bf16.msra.mxu0 %v13796_v21  ;;  %v13840_v41 = vld [vmem:[%s21243_s7 + $0x104] ss:$16 sps:$4 sm:$0xff]   ;;  %v13835_v16 = vld [vmem:[%s21243_s7 + $0x108] ss:$16 sps:$4 sm:$0xff]   ;;  %v13838_v42 = vld [vmem:[%s21243_s7 + $0x100] ss:$16 sps:$4 sm:$0xff]  }
 0x149   : > { %964 = vmatprep.mubr.bf16.mxu1 %v15026_v44  ;;  %1717 = vmatprep.subr.bf16.mxu0 %v13804_v23  ;;  %v13843_v9 = vld [vmem:[%s21243_s7 + $0x12c] ss:$16 sps:$4 sm:$0xff]   ;;  %v13846_v43 = vld [vmem:[%s21243_s7 + $0x124] ss:$16 sps:$4 sm:$0xff]   ;;  %v13841_v15 = vld [vmem:[%s21243_s7 + $0x128] ss:$16 sps:$4 sm:$0xff]  }
 0x14a   : > { %v13844_v27 = vld [vmem:[%s21243_s7 + $0x120] ss:$16 sps:$4 sm:$0xff]   ;;  %v13849_v49 = vld [vmem:[%s21243_s7 + $0x14c] ss:$16 sps:$4 sm:$0xff]   ;;  %v13847_v51 = vld [vmem:[%s21243_s7 + $0x148] ss:$16 sps:$4 sm:$0xff]  }
 0x14b   : > { %v13850_v52 = vld [vmem:[%s21243_s7 + $0x140] ss:$16 sps:$4 sm:$0xff]   ;;  %v13858_v54 = vld [vmem:[%s21243_s7 + $0x164] ss:$16 sps:$4 sm:$0xff]   ;;  %v13853_v55 = vld [vmem:[%s21243_s7 + $0x168] ss:$16 sps:$4 sm:$0xff]  }
 0x14c   : > { %1718 = vmatpush1.bf16.msra.mxu0 %v13802_v26  ;;  %v13856_v56 = vld [vmem:[%s21243_s7 + $0x160] ss:$16 sps:$4 sm:$0xff]   ;;  %v13859_v58 = vld [vmem:[%s21243_s7 + $0x188] ss:$16 sps:$4 sm:$0xff]   ;;  %v13861_v60 = vld [vmem:[%s21243_s7 + $0x18c] ss:$16 sps:$4 sm:$0xff]  }
 0x14d   : > { %1719 = vmatprep.subr.bf16.mxu0 %v13810_v29  ;;  %v13862_v61 = vld [vmem:[%s21243_s7 + $0x180] ss:$16 sps:$4 sm:$0xff]   ;;  %v13864_v62 = vld [vmem:[%s21243_s7 + $0x184] ss:$16 sps:$4 sm:$0xff]   ;;  %v13865_v3 = vld [vmem:[%s21243_s7 + $0x1a8] ss:$16 sps:$4 sm:$0xff]  }
 0x14e   : > { %v13870_v2 = vld [vmem:[%s21243_s7 + $0x1a4] ss:$16 sps:$4 sm:$0xff]   ;;  %v13873_v5 = vld [vmem:[%s21243_s7 + $0x1cc] ss:$16 sps:$4 sm:$0xff]   ;;  %v13871_v10 = vld [vmem:[%s21243_s7 + $0x1c8] ss:$16 sps:$4 sm:$0xff]  }
 0x14f   : > { %v13874_v12 = vld [vmem:[%s21243_s7 + $0x1c0] ss:$16 sps:$4 sm:$0xff]   ;;  %v13879_v13 = vld [vmem:[%s21243_s7 + $0x1ec] ss:$16 sps:$4 sm:$0xff]   ;;  %v13877_v25 = vld [vmem:[%s21243_s7 + $0x1e8] ss:$16 sps:$4 sm:$0xff]  }
 0x150   : > { %965 = vmatmul.mubr.bf16.gmra.mrb[8].mxu1 %v810_v50  ;;  %1720 = vmatpush1.bf16.msra.mxu0 %v13808_v32  ;;  %v13852_v50 = vld [vmem:[%s21243_s7 + $0x144] ss:$16 sps:$4 sm:$0xff]   ;;  %v13880_v31 = vld [vmem:[%s21243_s7 + $0x1e0] ss:$16 sps:$4 sm:$0xff]  }
 0x151   : > { %974 = vmatprep.mubr.bf16.mxu1 %v15026_v44  ;;  %1721 = vmatprep.subr.bf16.mxu0 %v13816_v48 }
 0x154   : > { %1722 = vmatpush1.bf16.msra.mxu0 %v13814_v33 }
 0x155   : > { %1723 = vmatprep.subr.bf16.mxu0 %v13822_v34 }
 0x158   : > { %975 = vmatmul.mubr.bf16.gmra.mrb[12].mxu1 %v811_v53  ;;  %1724 = vmatpush1.bf16.msra.mxu0 %v13820_v35  ;;  %v13855_v53 = vld [vmem:[%s21243_s7 + $0x16c] ss:$16 sps:$4 sm:$0xff]  }
 0x159   : > { %984 = vmatprep.mubr.bf16.mxu1 %v15026_v44  ;;  %1725 = vmatprep.subr.bf16.mxu0 %v13828_v36 }
 0x15c   : > { %1726 = vmatpush1.bf16.msra.mxu0 %v13826_v38 }
 0x15d   : > { %1727 = vmatprep.subr.bf16.mxu0 %v13834_v39 }
 0x160   : > { %985 = vmatmul.mubr.bf16.gmra.mrb[16].mxu1 %v812_v1  ;;  %1728 = vmatpush1.bf16.msra.mxu0 %v13832_v40  ;;  %v13867_v1 = vld [vmem:[%s21243_s7 + $0x1ac] ss:$16 sps:$4 sm:$0xff]  }
 0x161   : > { %994 = vmatprep.mubr.bf16.mxu1 %v15026_v44  ;;  %1729 = vmatprep.subr.bf16.mxu0 %v13840_v41 }
 0x164   : > { %1730 = vmatpush1.bf16.msra.mxu0 %v13838_v42 }
 0x165   : > { %1731 = vmatprep.subr.bf16.mxu0 %v13846_v43 }
 0x168   : > { %995 = vmatmul.mubr.bf16.gmra.mrb[20].mxu1 %v813_v4  ;;  %1732 = vmatpush1.bf16.msra.mxu0 %v13844_v27  ;;  %v13868_v4 = vld [vmem:[%s21243_s7 + $0x1a0] ss:$16 sps:$4 sm:$0xff]  }
 0x169   : > { %1004 = vmatprep.mubr.bf16.mxu1 %v15026_v44  ;;  %1733 = vmatprep.subr.bf16.mxu0 %v13852_v50 }
 0x16c   : > { %1734 = vmatpush1.bf16.msra.mxu0 %v13850_v52 }
 0x16d   : > { %1735 = vmatprep.subr.bf16.mxu0 %v13858_v54 }
 0x170   : > { %1005 = vmatmul.mubr.bf16.gmra.mrb[24].mxu1 %v814_v7  ;;  %1736 = vmatpush1.bf16.msra.mxu0 %v13856_v56  ;;  %v13876_v7 = vld [vmem:[%s21243_s7 + $0x1c4] ss:$16 sps:$4 sm:$0xff]  }
 0x171   : > { %1014 = vmatprep.mubr.bf16.mxu1 %v15026_v44  ;;  %v13795_v44 = vld [vmem:[%s21243_s7 + $0x2c] ss:$16 sps:$4 sm:$0xff]   ;;  %1737 = vmatprep.subr.bf16.mxu0 %v13864_v62 }
 0x172   : > { %1828 = vmatprep.subr.bf16.mxu1 %v13795_v44 }
 0x173   : > { %1829 = vmatpush1.bf16.msra.mxu1 %v13793_v20 }
 0x174   : > { %1830 = vmatprep.subr.bf16.mxu1 %v13801_v22  ;;  %1738 = vmatpush1.bf16.msra.mxu0 %v13862_v61 }
 0x175   : > { %1739 = vmatprep.subr.bf16.mxu0 %v13870_v2 }
 0x177   : > { %1831 = vmatpush1.bf16.msra.mxu1 %v13799_v24 }
 0x178   : > { %1015 = vmatmul.mubr.bf16.gmra.mrb[28].mxu1 %v815_v14  ;;  %1832 = vmatprep.subr.bf16.mxu1 %v13807_v28  ;;  %v13882_v14 = vld [vmem:[%s21243_s7 + $0x1e4] ss:$16 sps:$4 sm:$0xff]  }
 0x179   : > { %1740 = vmatpush1.bf16.msra.mxu0 %v13868_v4 }
 0x17a   : > { %1741 = vmatprep.subr.bf16.mxu0 %v13876_v7 }
 0x17b   : > { %1833 = vmatpush1.bf16.msra.mxu1 %v13805_v30 }
 0x17c   : > { %1834 = vmatprep.subr.bf16.mxu1 %v13813_v46 }
 0x17d   : > { %1742 = vmatpush1.bf16.msra.mxu0 %v13874_v12 }
 0x17e   : > { %1743 = vmatprep.subr.bf16.mxu0 %v13882_v14 }
 0x17f   : > { %1835 = vmatpush1.bf16.msra.mxu1 %v13811_v45 }
 0x180   : > { %1836 = vmatprep.subr.bf16.mxu1 %v13819_v47 }
 0x181   : > { %1744 = vmatpush1.bf16.msra.mxu0 %v13880_v31 }
 0x183   : > { %1837 = vmatpush1.bf16.msra.mxu1 %v13817_v59 }
 0x184   : > { %1838 = vmatprep.subr.bf16.mxu1 %v13825_v0 }
 0x187   : > { %1839 = vmatpush1.bf16.msra.mxu1 %v13823_v37 }
 0x188   : > { %1840 = vmatprep.subr.bf16.mxu1 %v13831_v57 }
 0x18b   : > { %1841 = vmatpush1.bf16.msra.mxu1 %v13829_v63 }
 0x18c   : > { %1842 = vmatprep.subr.bf16.mxu1 %v13837_v11 }
 0x18f   : > { %1843 = vmatpush1.bf16.msra.mxu1 %v13835_v16 }
 0x190   : > { %1844 = vmatprep.subr.bf16.mxu1 %v13843_v9 }
 0x193   : > { %1845 = vmatpush1.bf16.msra.mxu1 %v13841_v15 }
 0x194   : > { %1846 = vmatprep.subr.bf16.mxu1 %v13849_v49 }
 0x197   : > { %1847 = vmatpush1.bf16.msra.mxu1 %v13847_v51 }
 0x198   : > { %1848 = vmatprep.subr.bf16.mxu1 %v13855_v53 }
 0x19b   : > { %1849 = vmatpush1.bf16.msra.mxu1 %v13853_v55 }
 0x19c   : > { %1850 = vmatprep.subr.bf16.mxu1 %v13861_v60 }
 0x19f   : > { %1851 = vmatpush1.bf16.msra.mxu1 %v13859_v58 }
 0x1a0   : > { %1852 = vmatprep.subr.bf16.mxu1 %v13867_v1 }
 0x1a3   : > { %1853 = vmatpush1.bf16.msra.mxu1 %v13865_v3 }
 0x1a4   : > { %1854 = vmatprep.subr.bf16.mxu1 %v13873_v5 }
 0x1a7   : > { %1855 = vmatpush1.bf16.msra.mxu1 %v13871_v10 }
 0x1a8   : > { %1856 = vmatprep.subr.bf16.mxu1 %v13879_v13 }
 0x1ab   : > { %1857 = vmatpush1.bf16.msra.mxu1 %v13877_v25 }
 0x213   : > { %v15505_v17 = vpop.f32.mrb[0].mxu1 }
 0x214   : > { %v15507_v18 = vpop.f32.mrb[1].mxu1  ;;  %v1069_v19 = vmul.f32 %v15505_v17, %v15505_v17 }
 0x215   : > { %v15509_v44 = vpop.f32.mrb[2].mxu1  ;;  %v1070_v23 = vmul.f32 %v15507_v18, %v15507_v18 }
 0x216   : > { %v1025_v20 = vadd.f32 %v15509_v44, %v15505_v17  ;;  %v1071_v21 = vmul.f32 %v15509_v44, %v15509_v44  ;;  %v15517_v22 = vpop.f32.mrb[3].mxu1 }
 0x217   : > { %v1046_v24 = vadd.f32 %v15517_v22, %v15507_v18  ;;  %v1072_v26 = vmul.f32 %v15517_v22, %v15517_v22 }
 0x218   : > { %v1101_v28 = vadd.f32 %v1071_v21, %v1069_v19 }
 0x219   : > { %v1122_v29 = vadd.f32 %v1072_v26, %v1070_v23 }
 0x21b   : > { %v15525_v30 = vpop.f32.mrb[4].mxu1 }
 0x21c   : > { %v1026_v32 = vadd.f32 %v1025_v20, %v15525_v30  ;;  %v1073_v46 = vmul.f32 %v15525_v30, %v15525_v30  ;;  %v15530_v48 = vpop.f32.mrb[5].mxu1 }
 0x21d   : > { %v1047_v45 = vadd.f32 %v1046_v24, %v15530_v48  ;;  %v1074_v33 = vmul.f32 %v15530_v48, %v15530_v48  ;;  %v15535_v47 = vpop.f32.mrb[6].mxu1 }
 0x21e   : > { %v1102_v34 = vadd.f32 %v1101_v28, %v1073_v46  ;;  %v1027_v59 = vadd.f32 %v1026_v32, %v15535_v47  ;;  %v1075_v35 = vmul.f32 %v15535_v47, %v15535_v47  ;;  %v15540_v0 = vpop.f32.mrb[7].mxu1 }
 0x21f   : > { %v1123_v36 = vadd.f32 %v1122_v29, %v1074_v33  ;;  %v1048_v37 = vadd.f32 %v1047_v45, %v15540_v0  ;;  %v1076_v38 = vmul.f32 %v15540_v0, %v15540_v0 }
 0x220   : > { %v1103_v57 = vadd.f32 %v1102_v34, %v1075_v35 }
 0x221   : > { %v1124_v39 = vadd.f32 %v1123_v36, %v1076_v38 }
 0x223   : > { %v15545_v63 = vpop.f32.mrb[8].mxu1 }
 0x224   : > { %v1028_v40 = vadd.f32 %v1027_v59, %v15545_v63  ;;  %v1077_v11 = vmul.f32 %v15545_v63, %v15545_v63  ;;  %v15550_v41 = vpop.f32.mrb[9].mxu1 }
 0x225   : > { %v1049_v16 = vadd.f32 %v1048_v37, %v15550_v41  ;;  %v1078_v42 = vmul.f32 %v15550_v41, %v15550_v41  ;;  %v15555_v9 = vpop.f32.mrb[10].mxu1 }
 0x226   : > { %v1104_v43 = vadd.f32 %v1103_v57, %v1077_v11  ;;  %v1029_v15 = vadd.f32 %v1028_v40, %v15555_v9  ;;  %v1079_v27 = vmul.f32 %v15555_v9, %v15555_v9  ;;  %v15560_v49 = vpop.f32.mrb[11].mxu1 }
 0x227   : > { %v1125_v50 = vadd.f32 %v1124_v39, %v1078_v42  ;;  %v1050_v51 = vadd.f32 %v1049_v16, %v15560_v49  ;;  %v1080_v52 = vmul.f32 %v15560_v49, %v15560_v49 }
 0x228   : > { %v1105_v53 = vadd.f32 %v1104_v43, %v1079_v27 }
 0x229   : > { %v1126_v54 = vadd.f32 %v1125_v50, %v1080_v52 }
 0x22b   : > { %v15565_v55 = vpop.f32.mrb[12].mxu1 }
 0x22c   : > { %v1030_v56 = vadd.f32 %v1029_v15, %v15565_v55  ;;  %v1081_v58 = vmul.f32 %v15565_v55, %v15565_v55  ;;  %v15570_v60 = vpop.f32.mrb[13].mxu1 }
 0x22d   : > { %v1051_v61 = vadd.f32 %v1050_v51, %v15570_v60  ;;  %v1082_v62 = vmul.f32 %v15570_v60, %v15570_v60  ;;  %v15575_v1 = vpop.f32.mrb[14].mxu1 }
 0x22e   : > { %v1106_v2 = vadd.f32 %v1105_v53, %v1081_v58  ;;  %v1031_v3 = vadd.f32 %v1030_v56, %v15575_v1  ;;  %v1083_v4 = vmul.f32 %v15575_v1, %v15575_v1  ;;  %v15580_v5 = vpop.f32.mrb[15].mxu1 }
 0x22f   : > { %v1127_v7 = vadd.f32 %v1126_v54, %v1082_v62  ;;  %v1052_v10 = vadd.f32 %v1051_v61, %v15580_v5  ;;  %v1084_v12 = vmul.f32 %v15580_v5, %v15580_v5 }
 0x230   : > { %v1107_v13 = vadd.f32 %v1106_v2, %v1083_v4 }
 0x231   : > { %v1128_v14 = vadd.f32 %v1127_v7, %v1084_v12 }
 0x233   : > { %v15585_v25 = vpop.f32.mrb[16].mxu1 }
 0x234   : > { %v1032_v31 = vadd.f32 %v1031_v3, %v15585_v25  ;;  %v1085_v19 = vmul.f32 %v15585_v25, %v15585_v25  ;;  %v15590_v20 = vpop.f32.mrb[17].mxu1 }
 0x235   : > { %v1053_v21 = vadd.f32 %v1052_v10, %v15590_v20  ;;  %v1086_v23 = vmul.f32 %v15590_v20, %v15590_v20  ;;  %v15595_v24 = vpop.f32.mrb[18].mxu1 }
 0x236   : > { %v1108_v26 = vadd.f32 %v1107_v13, %v1085_v19  ;;  %v1033_v28 = vadd.f32 %v1032_v31, %v15595_v24  ;;  %v1087_v29 = vmul.f32 %v15595_v24, %v15595_v24  ;;  %v15600_v32 = vpop.f32.mrb[19].mxu1 }
 0x237   : > { %v1129_v46 = vadd.f32 %v1128_v14, %v1086_v23  ;;  %v1054_v45 = vadd.f32 %v1053_v21, %v15600_v32  ;;  %v1088_v33 = vmul.f32 %v15600_v32, %v15600_v32 }
 0x238   : > { %v1109_v34 = vadd.f32 %v1108_v26, %v1087_v29 }
 0x239   : > { %v1130_v59 = vadd.f32 %v1129_v46, %v1088_v33 }
 0x23b   : > { %v15605_v35 = vpop.f32.mrb[20].mxu1 }
 0x23c   : > { %v1034_v36 = vadd.f32 %v1033_v28, %v15605_v35  ;;  %v1089_v37 = vmul.f32 %v15605_v35, %v15605_v35  ;;  %v15610_v38 = vpop.f32.mrb[21].mxu1 }
 0x23d   : > { %v1055_v57 = vadd.f32 %v1054_v45, %v15610_v38  ;;  %v1090_v39 = vmul.f32 %v15610_v38, %v15610_v38  ;;  %v15615_v40 = vpop.f32.mrb[22].mxu1 }
 0x23e   : > { %v1110_v11 = vadd.f32 %v1109_v34, %v1089_v37  ;;  %v1035_v16 = vadd.f32 %v1034_v36, %v15615_v40  ;;  %v1091_v42 = vmul.f32 %v15615_v40, %v15615_v40  ;;  %v15620_v43 = vpop.f32.mrb[23].mxu1 }
 0x23f   : > { %v1131_v15 = vadd.f32 %v1130_v59, %v1090_v39  ;;  %v1056_v27 = vadd.f32 %v1055_v57, %v15620_v43  ;;  %v1092_v50 = vmul.f32 %v15620_v43, %v15620_v43 }
 0x240   : > { %v1111_v51 = vadd.f32 %v1110_v11, %v1091_v42 }
 0x241   : > { %v1132_v52 = vadd.f32 %v1131_v15, %v1092_v50 }
 0x243   : > { %v15625_v53 = vpop.f32.mrb[24].mxu1 }
 0x244   : > { %v1093_v54 = vmul.f32 %v15625_v53, %v15625_v53  ;;  %v15629_v56 = vpop.f32.mrb[25].mxu1  ;;  %v1036_v58 = vadd.f32 %v1035_v16, %v15625_v53 }
 0x245   : > { %v1094_v61 = vmul.f32 %v15629_v56, %v15629_v56  ;;  %v15634_v62 = vpop.f32.mrb[26].mxu1  ;;  %v1057_v2 = vadd.f32 %v1056_v27, %v15629_v56 }
 0x246   : > { %v1095_v3 = vmul.f32 %v15634_v62, %v15634_v62  ;;  %v15639_v4 = vpop.f32.mrb[27].mxu1  ;;  %v1037_v7 = vadd.f32 %v1036_v58, %v15634_v62  ;;  %v1112_v10 = vadd.f32 %v1111_v51, %v1093_v54 }
 0x247   : > { %v1096_v12 = vmul.f32 %v15639_v4, %v15639_v4  ;;  %v1058_v13 = vadd.f32 %v1057_v2, %v15639_v4  ;;  %v1133_v14 = vadd.f32 %v1132_v52, %v1094_v61 }
 0x248   : > { %v1113_v31 = vadd.f32 %v1112_v10, %v1095_v3 }
 0x249   : > { %v1134_v19 = vadd.f32 %v1133_v14, %v1096_v12 }
 0x24b   : > { %v15645_v21 = vpop.f32.mrb[28].mxu1 }
 0x24c   : > { %v1038_v23 = vadd.f32 %v1037_v7, %v15645_v21  ;;  %v1097_v26 = vmul.f32 %v15645_v21, %v15645_v21  ;;  %v15650_v28 = vpop.f32.mrb[29].mxu1 }
 0x24d   : > { %v1059_v29 = vadd.f32 %v1058_v13, %v15650_v28  ;;  %v1098_v46 = vmul.f32 %v15650_v28, %v15650_v28  ;;  %v15655_v45 = vpop.f32.mrb[30].mxu1 }
 0x24e   : > { %v1114_v33 = vadd.f32 %v1113_v31, %v1097_v26  ;;  %v1039_v34 = vadd.f32 %v1038_v23, %v15655_v45  ;;  %v1099_v59 = vmul.f32 %v15655_v45, %v15655_v45  ;;  %v1022_v36 = vpop.f32.mrb[31].mxu1 }
 0x24f   : > { %v1135_v37 = vadd.f32 %v1134_v19, %v1098_v46  ;;  %v1060_v57 = vadd.f32 %v1059_v29, %v1022_v36  ;;  %v1100_v39 = vmul.f32 %v1022_v36, %v1022_v36 }
 0x250   : > { %v1040_v11 = vrot.slane %v1039_v34, 4  ;;  %v1115_v16 = vadd.f32 %v1114_v33, %v1099_v59 }
 0x251   : > { %v1061_v42 = vrot.slane %v1060_v57, 4  ;;  %v1136_v15 = vadd.f32 %v1135_v37, %v1100_v39 }
 0x252   : > { %v1041_v27 = vadd.f32 %v1040_v11, %v1039_v34  ;;  %v1116_v50 = vrot.slane %v1115_v16, 4 }
 0x253   : > { %v1062_v51 = vadd.f32 %v1061_v42, %v1060_v57  ;;  %v1137_v52 = vrot.slane %v1136_v15, 4 }
 0x254   : > { %v1042_v54 = vrot.slane %v1041_v27, 2  ;;  %v1117_v58 = vadd.f32 %v1116_v50, %v1115_v16 }
 0x255   : > { %v1063_v61 = vrot.slane %v1062_v51, 2  ;;  %v1138_v2 = vadd.f32 %v1137_v52, %v1136_v15 }
 0x256   : > { %v1043_v3 = vadd.f32 %v1042_v54, %v1041_v27  ;;  %v1118_v7 = vrot.slane %v1117_v58, 2 }
 0x257   : > { %v1064_v10 = vadd.f32 %v1063_v61, %v1062_v51  ;;  %v1139_v12 = vrot.slane %v1138_v2, 2  ;;  %v15027_v51 = vmov 1966171168  }
 0x258   : > { %v1044_v13 = vrot.slane %v1043_v3, 1  ;;  %v1119_v14 = vadd.f32 %v1118_v7, %v1117_v58  ;;  %v1158_v52 = vunpack.c.l.s4 %v15027_v51 }
 0x259   : > { %v1065_v31 = vrot.slane %v1064_v10, 1  ;;  %v1140_v19 = vadd.f32 %v1139_v12, %v1138_v2 }
 0x25a   : > { %v1045_v23 = vadd.f32 %v1044_v13, %v1043_v3  ;;  %v1120_v26 = vrot.slane %v1119_v14, 1  ;;  %v1159_v54 = vunpack.c.0.s8 %v1158_v52  ;;  %v15669_v13 = vsub.s32 1, %v15279_v6 }
 0x25b   : > { %v1066_v29 = vadd.f32 %v1065_v31, %v1064_v10  ;;  %v1141_v46 = vrot.slane %v1140_v19, 1  ;;  %v1149_v10 = vld [vmem:[%s21241_s5] sm:$0x3] }
 0x25c   : > { %v1067_v33 = vmul.f32 0.0078125, %v1045_v23  ;;  %v1121_v34 = vadd.f32 %v1120_v26, %v1119_v14  ;;  %v15661_v61 = vsub.s32 %v1159_v54, %v15279_v6  ;;  %21528 = vst [vmem:[#allocation5_spill] sm:$0xff] %v15669_v13 }
 0x25d   : > { %v1068_v59 = vmul.f32 0.0078125, %v1066_v29  ;;  %v1142_v37 = vadd.f32 %v1141_v46, %v1140_v19 }
 0x25e   : > { %v1143_v57 = vmul.f32 0.0078125, %v1121_v34  ;;  %v1145_v39 = vmul.f32 %v1067_v33, %v1067_v33  ;;  %21527 = vst [vmem:[#allocation4_spill] sm:$0xff] %v15661_v61 }
 0x25f   : > { %v1144_v11 = vmul.f32 0.0078125, %v1142_v37  ;;  %v1146_v16 = vmul.f32 %v1068_v59, %v1068_v59 }
 0x260   : > { %v1147_v42 = vsub.f32 %v1143_v57, %v1145_v39 }
 0x261   : > { %v1148_v15 = vsub.f32 %v1144_v11, %v1146_v16 }
 0x262   : > { %v1150_v27 = vadd.f32 1e-05, %v1147_v42 }
 0x263   : > { %v1151_v50 = vadd.f32 1e-05, %v1148_v15 }
 0x264   : > { %14525 = vrsqrt.f32 %v1150_v27 }
 0x265   : > { %14527 = vrsqrt.f32 %v1151_v50 }
 0x26e   : > { %v14526_v58 = vpop.eup %14525 }
 0x26f   : > { %v14528_v2 = vpop.eup %14527 }
 0x270   : > { %v1156_v3 = vcombine.low %v14526_v58, %v14528_v2 }
 0x272   : > { %v1163_v7 = vrot.slane %v1156_v3, %v15661_v61 }
 0x274   : > { %v1170_v12 = vrot.slane %v1163_v7, %v15661_v61 }
 0x276   : > { %v1172_v14 = vmul.f32 %v1170_v12, %v1149_v10 }
 0x278   : > { %v1178_v31 = vrot.slane %v1172_v14, %v15285_v8  ;;  %v1182_v19 = vrot.slane %v1172_v14, %v15669_v13 }
 0x27a   : > { %v1185_v23 = vmul.f32 %v1178_v31, %v1067_v33  ;;  %v1186_v26 = vmul.f32 %v1182_v19, %v1068_v59  ;;  %v1237_v29 = vmul.f32 %v1182_v19, %v1022_v36  ;;  %v1207_v46 = vmul.f32 %v1182_v19, %v15507_v18 }
 0x27b   : > { %v1209_v34 = vmul.f32 %v1182_v19, %v15517_v22  ;;  %v1206_v37 = vmul.f32 %v1178_v31, %v15505_v17  ;;  %v1208_v57 = vmul.f32 %v1178_v31, %v15509_v44  ;;  %v1211_v39 = vmul.f32 %v1182_v19, %v15530_v48 }
 0x27c   : > { %v1189_v11 = vcombine.low %v1185_v23, %v1186_v26  ;;  %v1213_v16 = vmul.f32 %v1182_v19, %v15540_v0  ;;  %v1210_v42 = vmul.f32 %v1178_v31, %v15525_v30  ;;  %v1212_v15 = vmul.f32 %v1178_v31, %v15535_v47  ;;  %v1173_v30 = vld [vmem:[%s21242_s6] sm:$0x3] }
 0x27d   : > { %v1215_v33 = vmul.f32 %v1182_v19, %v15550_v41  ;;  %v1217_v36 = vmul.f32 %v1182_v19, %v15560_v49  ;;  %v1214_v18 = vmul.f32 %v1178_v31, %v15545_v63  ;;  %v1216_v22 = vmul.f32 %v1178_v31, %v15555_v9 }
 0x27e   : > { %v1196_v17 = vrot.slane %v1189_v11, %v15661_v61  ;;  %v1219_v44 = vmul.f32 %v1182_v19, %v15570_v60  ;;  %v1221_v48 = vmul.f32 %v1182_v19, %v15580_v5  ;;  %v1218_v0 = vmul.f32 %v1178_v31, %v15565_v55 }
 0x27f   : > { %v1220_v47 = vmul.f32 %v1178_v31, %v15575_v1  ;;  %v1223_v41 = vmul.f32 %v1182_v19, %v15590_v20  ;;  %v15695_v63 = vmul.f32 %v1182_v19, %v15600_v32  ;;  %v15698_v9 = vmul.f32 %v1178_v31, %v15585_v25 }
 0x280   : > { %v1203_v49 = vrot.slane %v1196_v17, %v15661_v61  ;;  %v15702_v60 = vmul.f32 %v1178_v31, %v15595_v24  ;;  %v15705_v55 = vmul.f32 %v1182_v19, %v15610_v38  ;;  %v15708_v5 = vmul.f32 %v1182_v19, %v15620_v43 }
 0x281   : > { %v15711_v1 = vmul.f32 %v1178_v31, %v15605_v35  ;;  %v15714_v20 = vmul.f32 %v1178_v31, %v15615_v40  ;;  %v15717_v25 = vmul.f32 %v1182_v19, %v15629_v56  ;;  %v15720_v32 = vmul.f32 %v1182_v19, %v15639_v4 }
 0x282   : > { %v1205_v24 = vsub.f32 %v1173_v30, %v1203_v49  ;;  %v15723_v59 = vmul.f32 %v1178_v31, %v15625_v53  ;;  %v15726_v38 = vmul.f32 %v1178_v31, %v15634_v62  ;;  %v15729_v43 = vmul.f32 %v1182_v19, %v15650_v28 }
 0x283   : > { %v15732_v35 = vmul.f32 %v1178_v31, %v15645_v21  ;;  %v15735_v40 = vmul.f32 %v1178_v31, %v15655_v45 }
 0x284   : > { %v15738_v56 = vrot.slane %v1205_v24, %v15285_v8  ;;  %v15741_v4 = vrot.slane %v1205_v24, %v15669_v13 }
 0x286   : > { %v15744_v53 = vadd.f32 %v15741_v4, %v1237_v29  ;;  %v1250_v62 = vadd.f32 %v15741_v4, %v1207_v46  ;;  %v1252_v28 = vadd.f32 %v15741_v4, %v1209_v34  ;;  %v1249_v27 = vadd.f32 %v15738_v56, %v1206_v37 }
 0x287   : > { %v1251_v21 = vadd.f32 %v15738_v56, %v1208_v57  ;;  %v1254_v45 = vadd.f32 %v15741_v4, %v1211_v39  ;;  %v1256_v50 = vadd.f32 %v15741_v4, %v1213_v16  ;;  %v1253_v51 = vadd.f32 %v15738_v56, %v1210_v42 }
 0x288   : > { %v1282_v52 = vmax.f32 %v1250_v62, 0.0  ;;  %v1284_v54 = vmax.f32 %v1252_v28, 0.0  ;;  %v1281_v58 = vmax.f32 %v1249_v27, 0.0  ;;  %v1255_v2 = vadd.f32 %v15738_v56, %v1212_v15 }
 0x289   : > { %v1283_v3 = vmax.f32 %v1251_v21, 0.0  ;;  %v1286_v7 = vmax.f32 %v1254_v45, 0.0  ;;  %v1288_v10 = vmax.f32 %v1256_v50, 0.0  ;;  %v1285_v12 = vmax.f32 %v1253_v51, 0.0 }
 0x28a   : > { %v1314_v14 = vpack.c.bf16 %v1284_v54, %v1282_v52  ;;  %v1287_v31 = vmax.f32 %v1255_v2, 0.0  ;;  %v1258_v19 = vadd.f32 %v15741_v4, %v1215_v33  ;;  %v1260_v23 = vadd.f32 %v15741_v4, %v1217_v36 }
 0x28b   : > { %v1313_v26 = vpack.c.bf16 %v1283_v3, %v1281_v58  ;;  %v1316_v29 = vpack.c.bf16 %v1288_v10, %v1286_v7  ;;  %v1257_v46 = vadd.f32 %v15738_v56, %v1214_v18  ;;  %v1259_v34 = vadd.f32 %v15738_v56, %v1216_v22 }
 0x28c   : > { %1745 = vmatprep.mubr.bf16.mxu0 %v1314_v14  ;;  %1858 = vmatprep.mubr.bf16.mxu1 %v1314_v14  ;;  %v1315_v37 = vpack.c.bf16 %v1287_v31, %v1285_v12  ;;  %v1290_v57 = vmax.f32 %v1258_v19, 0.0  ;;  %v1292_v39 = vmax.f32 %v1260_v23, 0.0  ;;  %v1262_v11 = vadd.f32 %v15741_v4, %v1219_v44 }
 0x28d   : > { %1746 = vmatmul.mubr.bf16.vlgmr.msra.gmra.mrb[16].mxu0 %v1313_v26  ;;  %1859 = vmatmul.mubr.bf16.vlgmr.msra.gmra.mrb[32].mxu1 %v1313_v26  ;;  %v1289_v16 = vmax.f32 %v1257_v46, 0.0  ;;  %v1291_v42 = vmax.f32 %v1259_v34, 0.0  ;;  %v1264_v15 = vadd.f32 %v15741_v4, %v1221_v48  ;;  %v1261_v33 = vadd.f32 %v15738_v56, %v1218_v0 }
 0x28e   : > { %1755 = vmatprep.mubr.bf16.mxu0 %v1316_v29  ;;  %1868 = vmatprep.mubr.bf16.mxu1 %v1316_v29  ;;  %v1318_v36 = vpack.c.bf16 %v1292_v39, %v1290_v57  ;;  %v1294_v18 = vmax.f32 %v1262_v11, 0.0  ;;  %v1263_v22 = vadd.f32 %v15738_v56, %v1220_v47  ;;  %v1266_v17 = vadd.f32 %v15741_v4, %v1223_v41 }
 0x28f   : > { %v1317_v30 = vpack.c.bf16 %v1291_v42, %v1289_v16  ;;  %v1296_v49 = vmax.f32 %v1264_v15, 0.0  ;;  %v1293_v24 = vmax.f32 %v1261_v33, 0.0  ;;  %v1268_v44 = vadd.f32 %v15741_v4, %v15695_v63  ;;  %v2535_v16 = vld [vmem:[%s21246_s10 + $0x40] sm:$0xff]  ;;  %v2536_v15 = vld [vmem:[%s21246_s10 + $0x48] sm:$0xff] }
 0x290   : > { %v1295_v62 = vmax.f32 %v1263_v22, 0.0  ;;  %v1298_v28 = vmax.f32 %v1266_v17, 0.0  ;;  %v1265_v48 = vadd.f32 %v15738_v56, %v15698_v9  ;;  %v1267_v0 = vadd.f32 %v15738_v56, %v15702_v60  ;;  %v2539_v42 = vld [vmem:[%s21246_s10 + $0x60] sm:$0xff] }
 0x291   : > { %v1320_v27 = vpack.c.bf16 %v1296_v49, %v1294_v18  ;;  %v1300_v21 = vmax.f32 %v1268_v44, 0.0  ;;  %v1270_v47 = vadd.f32 %v15741_v4, %v15705_v55  ;;  %v1272_v41 = vadd.f32 %v15741_v4, %v15708_v5  ;;  %v2547_v49 = vld [vmem:[%s21246_s10 + $0xa0] sm:$0xff] }
 0x292   : > { %v1319_v45 = vpack.c.bf16 %v1295_v62, %v1293_v24  ;;  %v1297_v50 = vmax.f32 %v1265_v48, 0.0  ;;  %v1299_v51 = vmax.f32 %v1267_v0, 0.0  ;;  %v1269_v63 = vadd.f32 %v15738_v56, %v15711_v1  ;;  %v2544_v24 = vld [vmem:[%s21246_s10 + $0x88] sm:$0xff] }
 0x293   : > { %v1322_v52 = vpack.c.bf16 %v1300_v21, %v1298_v28  ;;  %v1302_v54 = vmax.f32 %v1270_v47, 0.0  ;;  %v1304_v9 = vmax.f32 %v1272_v41, 0.0  ;;  %v1271_v60 = vadd.f32 %v15738_v56, %v15714_v20  ;;  %v2548_v62 = vld [vmem:[%s21246_s10 + $0xa8] sm:$0xff]  ;;  %v2555_v21 = vld [vmem:[%s21246_s10 + $0xe0] sm:$0xff] }
 0x294   : > { %v1321_v58 = vpack.c.bf16 %v1299_v51, %v1297_v50  ;;  %v1301_v2 = vmax.f32 %v1269_v63, 0.0  ;;  %v1274_v55 = vadd.f32 %v15741_v4, %v15717_v25  ;;  %v1276_v5 = vadd.f32 %v15741_v4, %v15720_v32  ;;  %v2552_v47 = vld [vmem:[%s21246_s10 + $0xc8] sm:$0xff] }
 0x295   : > { %1756 = vmatmul.mubr.bf16.gmra.mrb[20].mxu0 %v1315_v37  ;;  %1869 = vmatmul.mubr.bf16.gmra.mrb[36].mxu1 %v1315_v37  ;;  %v1324_v3 = vpack.c.bf16 %v1304_v9, %v1302_v54  ;;  %v1303_v7 = vmax.f32 %v1271_v60, 0.0  ;;  %v1273_v1 = vadd.f32 %v15738_v56, %v15723_v59  ;;  %v1275_v10 = vadd.f32 %v15738_v56, %v15726_v38  ;;  %v2563_v54 = vld [vmem:[%s21246_s10 + $0x120] sm:$0xff]  ;;  %v2560_v9 = vld [vmem:[%s21246_s10 + $0x108] sm:$0xff] }
 0x296   : > { %1765 = vmatprep.mubr.bf16.mxu0 %v1318_v36  ;;  %1878 = vmatprep.mubr.bf16.mxu1 %v1318_v36  ;;  %v1306_v20 = vmax.f32 %v1274_v55, 0.0  ;;  %v1308_v12 = vmax.f32 %v1276_v5, 0.0  ;;  %v1278_v25 = vadd.f32 %v15741_v4, %v15729_v43  ;;  %v1312_v14 = vmax.f32 %v15744_v53, 0.0  ;;  %v2527_v43 = vld [vmem:[%s21246_s10] sm:$0xff]  ;;  %v2532_v4 = vld [vmem:[%s21246_s10 + $0x28] sm:$0xff] }
 0x297   : > { %v1323_v32 = vpack.c.bf16 %v1303_v7, %v1301_v2  ;;  %v1305_v31 = vmax.f32 %v1273_v1, 0.0  ;;  %v1307_v19 = vmax.f32 %v1275_v10, 0.0  ;;  %v1277_v23 = vadd.f32 %v15738_v56, %v15732_v35  ;;  %v2531_v35 = vld [vmem:[%s21246_s10 + $0x20] sm:$0xff]  ;;  %v2540_v36 = vld [vmem:[%s21246_s10 + $0x68] sm:$0xff] }
 0x298   : > { %v1326_v26 = vpack.c.bf16 %v1308_v12, %v1306_v20  ;;  %v1310_v59 = vmax.f32 %v1278_v25, 0.0  ;;  %v1279_v38 = vadd.f32 %v15738_v56, %v15735_v40  ;;  %v2528_v40 = vld [vmem:[%s21246_s10 + $0x8] sm:$0xff]  ;;  %v11983_v56 = vcombine.high %v2527_v43, %v2531_v35  ;;  %v2571_v7 = vld [vmem:[%s21246_s10 + $0x160] sm:$0xff] }
 0x299   : > { %v1325_v29 = vpack.c.bf16 %v1307_v19, %v1305_v31  ;;  %v1309_v46 = vmax.f32 %v1277_v23, 0.0  ;;  %v11982_v53 = vcombine.low %v2527_v43, %v2531_v35  ;;  %v11984_v39 = vcombine.low %v2528_v40, %v2532_v4  ;;  %v2568_v1 = vld [vmem:[%s21246_s10 + $0x148] sm:$0xff]  ;;  %v2579_v31 = vld [vmem:[%s21246_s10 + $0x1a0] sm:$0xff] }
 0x29a   : > { %v1328_v34 = vpack.c.bf16 %v1312_v14, %v1310_v59  ;;  %v1311_v37 = vmax.f32 %v1279_v38, 0.0  ;;  %v11985_v11 = vcombine.high %v2528_v40, %v2532_v4  ;;  %4063 = vmatprep.subr.bf16.mxu0 %v11983_v56  ;;  %v11991_v33 = vcombine.high %v2535_v16, %v2539_v42  ;;  %v2572_v20 = vld [vmem:[%s21246_s10 + $0x168] sm:$0xff]  ;;  %v2591_v4 = vld [vmem:[%s21246_s10 + $0x200] sm:$0xff] }
 0x29b   : > { %4064 = vmatpush1.bf16.msra.mxu0 %v11982_v53  ;;  %v11990_v18 = vcombine.low %v2535_v16, %v2539_v42  ;;  %v11992_v22 = vcombine.low %v2536_v15, %v2540_v36  ;;  %v11993_v17 = vcombine.high %v2536_v15, %v2540_v36  ;;  %v12000_v48 = vcombine.low %v2544_v24, %v2548_v62  ;;  %v2576_v19 = vld [vmem:[%s21246_s10 + $0x188] sm:$0xff]  ;;  %v2595_v53 = vld [vmem:[%s21246_s10 + $0x220] sm:$0xff] }
 0x29c   : > { %v1327_v57 = vpack.c.bf16 %v1311_v37, %v1309_v46  ;;  %4289 = vmatprep.subr.bf16.mxu1 %v11985_v11  ;;  %4065 = vmatprep.subr.bf16.mxu0 %v11991_v33  ;;  %v12001_v0 = vcombine.high %v2544_v24, %v2548_v62  ;;  %v12024_v25 = vcombine.low %v2568_v1, %v2572_v20  ;;  %v2583_v46 = vld [vmem:[%s21246_s10 + $0x1c0] sm:$0xff]  ;;  %v2584_v37 = vld [vmem:[%s21246_s10 + $0x1c8] sm:$0xff] }
 0x29d   : > { %1766 = vmatmul.mubr.bf16.gmra.mrb[24].mxu0 %v1317_v30  ;;  %1879 = vmatmul.mubr.bf16.gmra.mrb[40].mxu1 %v1317_v30  ;;  %v2543_v30 = vld [vmem:[%s21246_s10 + $0x80] sm:$0xff]  ;;  %v12025_v14 = vcombine.high %v2568_v1, %v2572_v20  ;;  %v2588_v43 = vld [vmem:[%s21246_s10 + $0x1e8] sm:$0xff]  ;;  %v12047_v11 = vcombine.high %v2591_v4, %v2595_v53  ;;  %v12046_v42 = vcombine.low %v2591_v4, %v2595_v53 }
 0x29e   : > { %1775 = vmatprep.mubr.bf16.mxu0 %v1320_v27  ;;  %1888 = vmatprep.mubr.bf16.mxu1 %v1320_v27  ;;  %v11999_v44 = vcombine.high %v2543_v30, %v2547_v49  ;;  %v11998_v28 = vcombine.low %v2543_v30, %v2547_v49  ;;  %v2551_v27 = vld [vmem:[%s21246_s10 + $0xc0] sm:$0xff]  ;;  %v12040_v40 = vcombine.low %v2584_v37, %v2588_v43  ;;  %v2596_v16 = vld [vmem:[%s21246_s10 + $0x228] sm:$0xff] }
 0x29f   : > { %4290 = vmatpush1.bf16.msra.mxu1 %v11984_v39  ;;  %4066 = vmatpush1.bf16.msra.mxu0 %v11990_v18  ;;  %v12007_v41 = vcombine.high %v2551_v27, %v2555_v21  ;;  %v12006_v50 = vcombine.low %v2551_v27, %v2555_v21  ;;  %v12041_v56 = vcombine.high %v2584_v37, %v2588_v43  ;;  %v2592_v39 = vld [vmem:[%s21246_s10 + $0x208] sm:$0xff]  ;;  %v2599_v36 = vld [vmem:[%s21246_s10 + $0x240] sm:$0xff] }
 0x2a0   : > { %4291 = vmatprep.subr.bf16.mxu1 %v11993_v17  ;;  %4067 = vmatprep.subr.bf16.mxu0 %v11999_v44  ;;  %v12048_v15 = vcombine.low %v2592_v39, %v2596_v16  ;;  %v12049_v33 = vcombine.high %v2592_v39, %v2596_v16  ;;  %v2603_v18 = vld [vmem:[%s21246_s10 + $0x260] sm:$0xff]  ;;  %v2604_v30 = vld [vmem:[%s21246_s10 + $0x268] sm:$0xff] }
 0x2a1   : > { %v12055_v17 = vcombine.high %v2599_v36, %v2603_v18  ;;  %v12054_v49 = vcombine.low %v2599_v36, %v2603_v18  ;;  %v2607_v62 = vld [vmem:[%s21246_s10 + $0x280] sm:$0xff]  ;;  %v2612_v27 = vld [vmem:[%s21246_s10 + $0x2a8] sm:$0xff] }
 0x2a2   : > { %v2635_v20 = vld [vmem:[%s21246_s10 + $0x360] sm:$0xff]  ;;  %v16024_v36 = vld [vmem:[%s21246_s10 + $0x428] sm:$0xff] }
 0x2a3   : > { %4292 = vmatpush1.bf16.msra.mxu1 %v11992_v22  ;;  %4068 = vmatpush1.bf16.msra.mxu0 %v11998_v28  ;;  %v2600_v22 = vld [vmem:[%s21246_s10 + $0x248] sm:$0xff]  ;;  %v2611_v28 = vld [vmem:[%s21246_s10 + $0x2a0] sm:$0xff]  ;;  %21535 = vst [vmem:[#allocation12_spill] sm:$0xff] %v16024_v36 }
 0x2a4   : > { %4293 = vmatprep.subr.bf16.mxu1 %v12001_v0  ;;  %4069 = vmatprep.subr.bf16.mxu0 %v12007_v41  ;;  %v12056_v24 = vcombine.low %v2600_v22, %v2604_v30  ;;  %v12057_v44 = vcombine.high %v2600_v22, %v2604_v30  ;;  %v12063_v0 = vcombine.high %v2607_v62, %v2611_v28  ;;  %v15987_v37 = vld [vmem:[%s21246_s10 + $0x400] sm:$0xff] }
 0x2a5   : > { %1776 = vmatmul.mubr.bf16.gmra.mrb[28].mxu0 %v1319_v45  ;;  %1889 = vmatmul.mubr.bf16.gmra.mrb[44].mxu1 %v1319_v45  ;;  %v2556_v45 = vld [vmem:[%s21246_s10 + $0xe8] sm:$0xff]  ;;  %v12062_v21 = vcombine.low %v2607_v62, %v2611_v28  ;;  %21530 = vst [vmem:[#allocation7_spill] sm:$0xff] %v15987_v37  ;;  %v16004_v53 = vld [vmem:[%s21246_s10 + $0x420] sm:$0xff] }
 0x2a6   : > { %1785 = vmatprep.mubr.bf16.mxu0 %v1322_v52  ;;  %1898 = vmatprep.mubr.bf16.mxu1 %v1322_v52  ;;  %v12008_v51 = vcombine.low %v2552_v47, %v2556_v45  ;;  %v12009_v63 = vcombine.high %v2552_v47, %v2556_v45  ;;  %v2559_v52 = vld [vmem:[%s21246_s10 + $0x100] sm:$0xff]  ;;  %21532 = vst [vmem:[#allocation9_spill] sm:$0xff] %v16004_v53 }
 0x2a7   : > { %4294 = vmatpush1.bf16.msra.mxu1 %v12000_v48  ;;  %4070 = vmatpush1.bf16.msra.mxu0 %v12006_v50  ;;  %v12015_v60 = vcombine.high %v2559_v52, %v2563_v54  ;;  %v12014_v2 = vcombine.low %v2559_v52, %v2563_v54  ;;  %v2608_v48 = vld [vmem:[%s21246_s10 + $0x288] sm:$0xff]  ;;  %v2615_v45 = vld [vmem:[%s21246_s10 + $0x2c0] sm:$0xff] }
 0x2a8   : > { %4295 = vmatprep.subr.bf16.mxu1 %v12009_v63  ;;  %v12064_v47 = vcombine.low %v2608_v48, %v2612_v27  ;;  %v12065_v41 = vcombine.high %v2608_v48, %v2612_v27  ;;  %v2619_v50 = vld [vmem:[%s21246_s10 + $0x2e0] sm:$0xff]  ;;  %v2620_v52 = vld [vmem:[%s21246_s10 + $0x2e8] sm:$0xff] }
 0x2a9   : > { %4071 = vmatprep.subr.bf16.mxu0 %v12015_v60  ;;  %v12071_v63 = vcombine.high %v2615_v45, %v2619_v50  ;;  %v12070_v54 = vcombine.low %v2615_v45, %v2619_v50  ;;  %v2651_v27 = vld [vmem:[%s21246_s10 + $0x3e0] sm:$0xff]  ;;  %v2648_v45 = vld [vmem:[%s21246_s10 + $0x3c8] sm:$0xff] }
 0x2aa   : > { %v2652_v50 = vld [vmem:[%s21246_s10 + $0x3e8] sm:$0xff] }
 0x2ab   : > { %4296 = vmatpush1.bf16.msra.mxu1 %v12008_v51  ;;  %4072 = vmatpush1.bf16.msra.mxu0 %v12014_v2  ;;  %v2616_v51 = vld [vmem:[%s21246_s10 + $0x2c8] sm:$0xff]  ;;  %v2627_v2 = vld [vmem:[%s21246_s10 + $0x320] sm:$0xff] }
 0x2ac   : > { %v12073_v60 = vcombine.high %v2616_v51, %v2620_v52 }
 0x2ad   : > { %1786 = vmatmul.mubr.bf16.gmra.mrb[32].mxu0 %v1321_v58  ;;  %1899 = vmatmul.mubr.bf16.gmra.mrb[48].mxu1 %v1321_v58  ;;  %v2564_v58 = vld [vmem:[%s21246_s10 + $0x128] sm:$0xff] }
 0x2ae   : > { %1795 = vmatprep.mubr.bf16.mxu0 %v1324_v3  ;;  %1908 = vmatprep.mubr.bf16.mxu1 %v1324_v3  ;;  %v12016_v55 = vcombine.low %v2560_v9, %v2564_v58  ;;  %v12017_v5 = vcombine.high %v2560_v9, %v2564_v58  ;;  %v2567_v3 = vld [vmem:[%s21246_s10 + $0x140] sm:$0xff]  ;;  %v12072_v9 = vcombine.low %v2616_v51, %v2620_v52 }
 0x2af   : > { %v12023_v10 = vcombine.high %v2567_v3, %v2571_v7  ;;  %v12022_v12 = vcombine.low %v2567_v3, %v2571_v7  ;;  %v2623_v58 = vld [vmem:[%s21246_s10 + $0x300] sm:$0xff]  ;;  %v2628_v3 = vld [vmem:[%s21246_s10 + $0x328] sm:$0xff] }
 0x2b0   : > { %4297 = vmatprep.subr.bf16.mxu1 %v12017_v5  ;;  %v2624_v5 = vld [vmem:[%s21246_s10 + $0x308] sm:$0xff]  ;;  %v2631_v7 = vld [vmem:[%s21246_s10 + $0x340] sm:$0xff]  ;;  %v12078_v1 = vcombine.low %v2623_v58, %v2627_v2 }
 0x2b1   : > { %4298 = vmatpush1.bf16.msra.mxu1 %v12016_v55  ;;  %4073 = vmatprep.subr.bf16.mxu0 %v12023_v10  ;;  %v12079_v55 = vcombine.high %v2623_v58, %v2627_v2  ;;  %v12081_v10 = vcombine.high %v2624_v5, %v2628_v3 }
 0x2b2   : > { %4299 = vmatprep.subr.bf16.mxu1 %v12025_v14  ;;  %4074 = vmatpush1.bf16.msra.mxu0 %v12022_v12  ;;  %v2632_v12 = vld [vmem:[%s21246_s10 + $0x348] sm:$0xff]  ;;  %v12080_v14 = vcombine.low %v2624_v5, %v2628_v3  ;;  %v12105_v5 = vcombine.high %v2648_v45, %v2652_v50  ;;  %v12111_v3 = vcombine.high %v15987_v37, %v16004_v53 }
 0x2b5   : > { %1796 = vmatmul.mubr.bf16.gmra.mrb[36].mxu0 %v1323_v32  ;;  %1909 = vmatmul.mubr.bf16.gmra.mrb[52].mxu1 %v1323_v32  ;;  %v2575_v32 = vld [vmem:[%s21246_s10 + $0x180] sm:$0xff] }
 0x2b6   : > { %1805 = vmatprep.mubr.bf16.mxu0 %v1326_v26  ;;  %1918 = vmatprep.mubr.bf16.mxu1 %v1326_v26  ;;  %v12031_v23 = vcombine.high %v2575_v32, %v2579_v31  ;;  %v2580_v26 = vld [vmem:[%s21246_s10 + $0x1a8] sm:$0xff]  ;;  %v12030_v59 = vcombine.low %v2575_v32, %v2579_v31  ;;  %v12087_v32 = vcombine.high %v2631_v7, %v2635_v20  ;;  %v15963_v31 = vld [vmem:[%s21246_s10 + $0x380] sm:$0xff] }
 0x2b7   : > { %4300 = vmatpush1.bf16.msra.mxu1 %v12024_v25  ;;  %v12032_v38 = vcombine.low %v2576_v19, %v2580_v26  ;;  %v2636_v25 = vld [vmem:[%s21246_s10 + $0x368] sm:$0xff] }
 0x2b8   : > { %4075 = vmatprep.subr.bf16.mxu0 %v12031_v23  ;;  %v15973_v23 = vld [vmem:[%s21246_s10 + $0x388] sm:$0xff] }
 0x2b9   : > { %4076 = vmatpush1.bf16.msra.mxu0 %v12030_v59  ;;  %v15978_v59 = vld [vmem:[%s21246_s10 + $0x3a8] sm:$0xff] }
 0x2ba   : > { %v12097_v4 = vcombine.high %v15973_v23, %v15978_v59 }
 0x2bd   : > { %1806 = vmatmul.mubr.bf16.gmra.mrb[40].mxu0 %v1325_v29  ;;  %1919 = vmatmul.mubr.bf16.gmra.mrb[56].mxu1 %v1325_v29  ;;  %v12033_v29 = vcombine.high %v2576_v19, %v2580_v26  ;;  %v15968_v19 = vld [vmem:[%s21246_s10 + $0x3a0] sm:$0xff]  ;;  %v12089_v26 = vcombine.high %v2632_v12, %v2636_v25 }
 0x2be   : > { %1815 = vmatprep.mubr.bf16.mxu0 %v1328_v34  ;;  %1928 = vmatprep.mubr.bf16.mxu1 %v1328_v34  ;;  %v2587_v34 = vld [vmem:[%s21246_s10 + $0x1e0] sm:$0xff] }
 0x2bf   : > { %4301 = vmatprep.subr.bf16.mxu1 %v12033_v29  ;;  %v12038_v35 = vcombine.low %v2583_v46, %v2587_v34 }
 0x2c0   : > { %4302 = vmatpush1.bf16.msra.mxu1 %v12032_v38 }
 0x2c1   : > { %4303 = vmatprep.subr.bf16.mxu1 %v12041_v56  ;;  %v12095_v56 = vcombine.high %v15963_v31, %v15968_v19 }
 0x2c4   : > { %4304 = vmatpush1.bf16.msra.mxu1 %v12040_v40 }
 0x2c5   : > { %1816 = vmatmul.mubr.bf16.gmra.mrb[44].mxu0 %v1327_v57  ;;  %1929 = vmatmul.mubr.bf16.gmra.mrb[60].mxu1 %v1327_v57  ;;  %v12039_v57 = vcombine.high %v2583_v46, %v2587_v34  ;;  %v12086_v46 = vcombine.low %v2631_v7, %v2635_v20  ;;  %v12088_v34 = vcombine.low %v2632_v12, %v2636_v25 }
 0x2c6   : > { %4305 = vmatprep.subr.bf16.mxu1 %v12049_v33  ;;  %v16019_v33 = vld [vmem:[%s21246_s10 + $0x408] sm:$0xff] }
 0x2c7   : > { %4077 = vmatprep.subr.bf16.mxu0 %v12039_v57  ;;  %21534 = vst [vmem:[#allocation11_spill] sm:$0xff] %v16019_v33  ;;  %v12113_v7 = vcombine.high %v16019_v33, %v16024_v36 }
 0x2c8   : > { %4078 = vmatpush1.bf16.msra.mxu0 %v12038_v35  ;;  %4306 = vmatpush1.bf16.msra.mxu1 %v12048_v15 }
 0x2c9   : > { %4079 = vmatprep.subr.bf16.mxu0 %v12047_v11  ;;  %4307 = vmatprep.subr.bf16.mxu1 %v12057_v44 }
 0x2cc   : > { %4080 = vmatpush1.bf16.msra.mxu0 %v12046_v42  ;;  %4308 = vmatpush1.bf16.msra.mxu1 %v12056_v24 }
 0x2cd   : > { %4081 = vmatprep.subr.bf16.mxu0 %v12055_v17  ;;  %4309 = vmatprep.subr.bf16.mxu1 %v12065_v41  ;;  %v12094_v41 = vcombine.low %v15963_v31, %v15968_v19 }
 0x2d0   : > { %4082 = vmatpush1.bf16.msra.mxu0 %v12054_v49  ;;  %4310 = vmatpush1.bf16.msra.mxu1 %v12064_v47 }
 0x2d1   : > { %4083 = vmatprep.subr.bf16.mxu0 %v12063_v0  ;;  %4311 = vmatprep.subr.bf16.mxu1 %v12073_v60  ;;  %v2647_v0 = vld [vmem:[%s21246_s10 + $0x3c0] sm:$0xff] }
 0x2d2   : > { %v12103_v60 = vcombine.high %v2647_v0, %v2651_v27 }
 0x2d4   : > { %4084 = vmatpush1.bf16.msra.mxu0 %v12062_v21  ;;  %4312 = vmatpush1.bf16.msra.mxu1 %v12072_v9  ;;  %v12102_v9 = vcombine.low %v2647_v0, %v2651_v27 }
 0x2d5   : > { %4085 = vmatprep.subr.bf16.mxu0 %v12071_v63  ;;  %4313 = vmatprep.subr.bf16.mxu1 %v12081_v10 }
 0x2d8   : > { %4086 = vmatpush1.bf16.msra.mxu0 %v12070_v54  ;;  %4314 = vmatpush1.bf16.msra.mxu1 %v12080_v14  ;;  %v12096_v54 = vcombine.low %v15973_v23, %v15978_v59 }
 0x2d9   : > { %4087 = vmatprep.subr.bf16.mxu0 %v12079_v55  ;;  %4315 = vmatprep.subr.bf16.mxu1 %v12089_v26  ;;  %v12104_v55 = vcombine.low %v2648_v45, %v2652_v50 }
 0x2dc   : > { %4088 = vmatpush1.bf16.msra.mxu0 %v12078_v1  ;;  %4316 = vmatpush1.bf16.msra.mxu1 %v12088_v34 }
 0x2dd   : > { %4089 = vmatprep.subr.bf16.mxu0 %v12087_v32  ;;  %4317 = vmatprep.subr.bf16.mxu1 %v12097_v4 }
 0x2e0   : > { %4090 = vmatpush1.bf16.msra.mxu0 %v12086_v46  ;;  %4318 = vmatpush1.bf16.msra.mxu1 %v12096_v54 }
 0x2e1   : > { %4091 = vmatprep.subr.bf16.mxu0 %v12095_v56  ;;  %4319 = vmatprep.subr.bf16.mxu1 %v12105_v5 }
 0x2e4   : > { %4092 = vmatpush1.bf16.msra.mxu0 %v12094_v41  ;;  %4320 = vmatpush1.bf16.msra.mxu1 %v12104_v55 }
 0x2e5   : > { %4093 = vmatprep.subr.bf16.mxu0 %v12103_v60  ;;  %4402 = vmatprep.subr.bf16.mxu1 %v12113_v7 }
 0x2e8   : > { %4094 = vmatpush1.bf16.msra.mxu0 %v12102_v9 }
 0x2e9   : > { %4176 = vmatprep.subr.bf16.mxu0 %v12111_v3 }
 0x360   : > { %v15980_v38 = vpop.f32.mrb[16].mxu0  ;;  %v15982_v29 = vpop.f32.mrb[32].mxu1 }
 0x361   : > { %21529 = vst [vmem:[#allocation6_spill] sm:$0xff] %v15982_v29  ;;  %v2027_v57 = vmul.f32 %v15980_v38, %v15980_v38  ;;  %v2029_v43 = vmul.f32 %v15982_v29, %v15982_v29  ;;  %v15993_v35 = vpop.f32.mrb[17].mxu0  ;;  %v15995_v40 = vpop.f32.mrb[33].mxu1 }
 0x362   : > { %21531 = vst [vmem:[#allocation8_spill] sm:$0xff] %v15995_v40  ;;  %v2028_v39 = vmul.f32 %v15993_v35, %v15993_v35  ;;  %v2030_v11 = vmul.f32 %v15995_v40, %v15995_v40  ;;  %v16010_v16 = vpop.f32.mrb[18].mxu0  ;;  %v16012_v42 = vpop.f32.mrb[34].mxu1 }
 0x363   : > { %21533 = vst [vmem:[#allocation10_spill] sm:$0xff] %v16012_v42  ;;  %v1939_v18 = vadd.f32 %v16010_v16, %v15980_v38  ;;  %v2031_v22 = vmul.f32 %v16010_v16, %v16010_v16  ;;  %v1981_v17 = vadd.f32 %v16012_v42, %v15982_v29  ;;  %v2033_v30 = vmul.f32 %v16012_v42, %v16012_v42  ;;  %v16034_v49 = vpop.f32.mrb[19].mxu0  ;;  %v16036_v24 = vpop.f32.mrb[35].mxu1 }
 0x364   : > { %21536 = vst [vmem:[#allocation13_spill] sm:$0xff] %v16036_v24  ;;  %v1960_v44 = vadd.f32 %v16034_v49, %v15993_v35  ;;  %v2032_v62 = vmul.f32 %v16034_v49, %v16034_v49  ;;  %v2002_v28 = vadd.f32 %v16036_v24, %v15995_v40  ;;  %v2034_v48 = vmul.f32 %v16036_v24, %v16036_v24 }
 0x365   : > { %v2091_v21 = vadd.f32 %v2031_v22, %v2027_v57  ;;  %v2133_v47 = vadd.f32 %v2033_v30, %v2029_v43 }
 0x366   : > { %v2112_v63 = vadd.f32 %v2032_v62, %v2028_v39  ;;  %v2154_v52 = vadd.f32 %v2034_v48, %v2030_v11 }
 0x368   : > { %v16064_v58 = vpop.f32.mrb[20].mxu0  ;;  %v16066_v2 = vpop.f32.mrb[36].mxu1 }
 0x369   : > { %21537 = vst [vmem:[#allocation14_spill] sm:$0xff] %v16066_v2  ;;  %v1940_v1 = vadd.f32 %v1939_v18, %v16064_v58  ;;  %v2035_v10 = vmul.f32 %v16064_v58, %v16064_v58  ;;  %v1982_v20 = vadd.f32 %v1981_v17, %v16066_v2  ;;  %v2037_v12 = vmul.f32 %v16066_v2, %v16066_v2  ;;  %v16078_v25 = vpop.f32.mrb[21].mxu0  ;;  %v16080_v14 = vpop.f32.mrb[37].mxu1 }
 0x36a   : > { %21538 = vst [vmem:[#allocation15_spill] sm:$0xff] %v16080_v14  ;;  %v1961_v32 = vadd.f32 %v1960_v44, %v16078_v25  ;;  %v2036_v31 = vmul.f32 %v16078_v25, %v16078_v25  ;;  %v2003_v19 = vadd.f32 %v2002_v28, %v16080_v14  ;;  %v2038_v23 = vmul.f32 %v16080_v14, %v16080_v14  ;;  %v16088_v26 = vpop.f32.mrb[22].mxu0  ;;  %v16090_v59 = vpop.f32.mrb[38].mxu1 }
 0x36b   : > { %21539 = vst [vmem:[#allocation16_spill] sm:$0xff] %v16090_v59  ;;  %v2092_v46 = vadd.f32 %v2091_v21, %v2035_v10  ;;  %v2134_v34 = vadd.f32 %v2133_v47, %v2037_v12  ;;  %v1941_v57 = vadd.f32 %v1940_v1, %v16088_v26  ;;  %v2039_v43 = vmul.f32 %v16088_v26, %v16088_v26  ;;  %v16095_v56 = vpop.f32.mrb[23].mxu0  ;;  %v16097_v4 = vpop.f32.mrb[39].mxu1 }
 0x36c   : > { %21540 = vst [vmem:[#allocation17_spill] sm:$0xff] %v16097_v4  ;;  %v2113_v39 = vadd.f32 %v2112_v63, %v2036_v31  ;;  %v2155_v11 = vadd.f32 %v2154_v52, %v2038_v23  ;;  %v1983_v18 = vadd.f32 %v1982_v20, %v16090_v59  ;;  %v2041_v22 = vmul.f32 %v16090_v59, %v16090_v59 }
 0x36d   : > { %v2093_v17 = vadd.f32 %v2092_v46, %v2039_v43  ;;  %v1962_v30 = vadd.f32 %v1961_v32, %v16095_v56  ;;  %v2040_v44 = vmul.f32 %v16095_v56, %v16095_v56  ;;  %v2004_v62 = vadd.f32 %v2003_v19, %v16097_v4 }
 0x36e   : > { %v2135_v28 = vadd.f32 %v2134_v34, %v2041_v22  ;;  %v2042_v48 = vmul.f32 %v16097_v4, %v16097_v4 }
 0x36f   : > { %v2114_v0 = vadd.f32 %v2113_v39, %v2040_v44 }
 0x370   : > { %v2156_v27 = vadd.f32 %v2155_v11, %v2042_v48  ;;  %v16108_v21 = vpop.f32.mrb[24].mxu0  ;;  %v16110_v47 = vpop.f32.mrb[40].mxu1 }
 0x371   : > { %21541 = vst [vmem:[#allocation18_spill] sm:$0xff] %v16110_v47  ;;  %v1942_v41 = vadd.f32 %v1941_v57, %v16108_v21  ;;  %v2043_v45 = vmul.f32 %v16108_v21, %v16108_v21  ;;  %v1984_v50 = vadd.f32 %v1983_v18, %v16110_v47  ;;  %v2045_v63 = vmul.f32 %v16110_v47, %v16110_v47  ;;  %v16118_v52 = vpop.f32.mrb[25].mxu0  ;;  %v16120_v54 = vpop.f32.mrb[41].mxu1 }
 0x372   : > { %21542 = vst [vmem:[#allocation19_spill] sm:$0xff] %v16120_v54  ;;  %v1963_v9 = vadd.f32 %v1962_v30, %v16118_v52  ;;  %v2044_v60 = vmul.f32 %v16118_v52, %v16118_v52  ;;  %v2005_v55 = vadd.f32 %v2004_v62, %v16120_v54  ;;  %v2046_v5 = vmul.f32 %v16120_v54, %v16120_v54  ;;  %v16128_v3 = vpop.f32.mrb[26].mxu0  ;;  %v16130_v7 = vpop.f32.mrb[42].mxu1 }
 0x373   : > { %21543 = vst [vmem:[#allocation20_spill] sm:$0xff] %v16130_v7  ;;  %v2094_v1 = vadd.f32 %v2093_v17, %v2043_v45  ;;  %v2136_v10 = vadd.f32 %v2135_v28, %v2045_v63  ;;  %v1943_v20 = vadd.f32 %v1942_v41, %v16128_v3  ;;  %v2047_v12 = vmul.f32 %v16128_v3, %v16128_v3  ;;  %v16135_v32 = vpop.f32.mrb[27].mxu0  ;;  %v16137_v31 = vpop.f32.mrb[43].mxu1 }
 0x374   : > { %21544 = vst [vmem:[#allocation21_spill] sm:$0xff] %v16137_v31  ;;  %v2115_v19 = vadd.f32 %v2114_v0, %v2044_v60  ;;  %v2157_v23 = vadd.f32 %v2156_v27, %v2046_v5  ;;  %v1985_v46 = vadd.f32 %v1984_v50, %v16130_v7  ;;  %v2049_v34 = vmul.f32 %v16130_v7, %v16130_v7 }
 0x375   : > { %v2095_v57 = vadd.f32 %v2094_v1, %v2047_v12  ;;  %v1964_v43 = vadd.f32 %v1963_v9, %v16135_v32  ;;  %v2048_v39 = vmul.f32 %v16135_v32, %v16135_v32  ;;  %v2006_v11 = vadd.f32 %v2005_v55, %v16137_v31 }
 0x376   : > { %v2137_v18 = vadd.f32 %v2136_v10, %v2049_v34  ;;  %v2050_v22 = vmul.f32 %v16137_v31, %v16137_v31 }
 0x377   : > { %v2116_v17 = vadd.f32 %v2115_v19, %v2048_v39 }
 0x378   : > { %v2158_v30 = vadd.f32 %v2157_v23, %v2050_v22  ;;  %v16148_v44 = vpop.f32.mrb[28].mxu0  ;;  %v16150_v62 = vpop.f32.mrb[44].mxu1 }
 0x379   : > { %21545 = vst [vmem:[#allocation22_spill] sm:$0xff] %v16150_v62  ;;  %v1944_v28 = vadd.f32 %v1943_v20, %v16148_v44  ;;  %v2051_v48 = vmul.f32 %v16148_v44, %v16148_v44  ;;  %v1986_v0 = vadd.f32 %v1985_v46, %v16150_v62  ;;  %v2053_v27 = vmul.f32 %v16150_v62, %v16150_v62  ;;  %v16158_v41 = vpop.f32.mrb[29].mxu0  ;;  %v16160_v45 = vpop.f32.mrb[45].mxu1 }
 0x37a   : > { %21546 = vst [vmem:[#allocation23_spill] sm:$0xff] %v16160_v45  ;;  %v1965_v50 = vadd.f32 %v1964_v43, %v16158_v41  ;;  %v2052_v63 = vmul.f32 %v16158_v41, %v16158_v41  ;;  %v2007_v9 = vadd.f32 %v2006_v11, %v16160_v45  ;;  %v2054_v60 = vmul.f32 %v16160_v45, %v16160_v45  ;;  %v16168_v55 = vpop.f32.mrb[30].mxu0  ;;  %v16170_v5 = vpop.f32.mrb[46].mxu1 }
 0x37b   : > { %21547 = vst [vmem:[#allocation24_spill] sm:$0xff] %v16170_v5  ;;  %v2096_v1 = vadd.f32 %v2095_v57, %v2051_v48  ;;  %v2138_v10 = vadd.f32 %v2137_v18, %v2053_v27  ;;  %v1945_v20 = vadd.f32 %v1944_v28, %v16168_v55  ;;  %v2055_v12 = vmul.f32 %v16168_v55, %v16168_v55  ;;  %v16175_v19 = vpop.f32.mrb[31].mxu0  ;;  %v16177_v23 = vpop.f32.mrb[47].mxu1 }
 0x37c   : > { %21548 = vst [vmem:[#allocation25_spill] sm:$0xff] %v16177_v23  ;;  %v2117_v46 = vadd.f32 %v2116_v17, %v2052_v63  ;;  %v2159_v34 = vadd.f32 %v2158_v30, %v2054_v60  ;;  %v1987_v43 = vadd.f32 %v1986_v0, %v16170_v5  ;;  %v2057_v39 = vmul.f32 %v16170_v5, %v16170_v5 }
 0x37d   : > { %v2097_v11 = vadd.f32 %v2096_v1, %v2055_v12  ;;  %v1966_v57 = vadd.f32 %v1965_v50, %v16175_v19  ;;  %v2056_v18 = vmul.f32 %v16175_v19, %v16175_v19  ;;  %v2008_v22 = vadd.f32 %v2007_v9, %v16177_v23 }
 0x37e   : > { %v2139_v28 = vadd.f32 %v2138_v10, %v2057_v39  ;;  %v2058_v48 = vmul.f32 %v16177_v23, %v16177_v23 }
 0x37f   : > { %v2118_v27 = vadd.f32 %v2117_v46, %v2056_v18 }
 0x380   : > { %v2160_v17 = vadd.f32 %v2159_v34, %v2058_v48  ;;  %v16188_v30 = vpop.f32.mrb[32].mxu0  ;;  %v16190_v0 = vpop.f32.mrb[48].mxu1 }
 0x381   : > { %21549 = vst [vmem:[#allocation26_spill] sm:$0xff] %v16190_v0  ;;  %v1946_v63 = vadd.f32 %v1945_v20, %v16188_v30  ;;  %v2059_v50 = vmul.f32 %v16188_v30, %v16188_v30  ;;  %v1988_v60 = vadd.f32 %v1987_v43, %v16190_v0  ;;  %v2061_v9 = vmul.f32 %v16190_v0, %v16190_v0  ;;  %v16198_v1 = vpop.f32.mrb[33].mxu0  ;;  %v16200_v10 = vpop.f32.mrb[49].mxu1 }
 0x382   : > { %21550 = vst [vmem:[#allocation27_spill] sm:$0xff] %v16200_v10  ;;  %v1967_v12 = vadd.f32 %v1966_v57, %v16198_v1  ;;  %v2060_v46 = vmul.f32 %v16198_v1, %v16198_v1  ;;  %v2009_v34 = vadd.f32 %v2008_v22, %v16200_v10  ;;  %v2062_v20 = vmul.f32 %v16200_v10, %v16200_v10  ;;  %v16208_v39 = vpop.f32.mrb[34].mxu0  ;;  %v16210_v43 = vpop.f32.mrb[50].mxu1 }
 0x383   : > { %21551 = vst [vmem:[#allocation28_spill] sm:$0xff] %v16210_v43  ;;  %v2098_v18 = vadd.f32 %v2097_v11, %v2059_v50  ;;  %v2140_v48 = vadd.f32 %v2139_v28, %v2061_v9  ;;  %v1947_v51 = vadd.f32 %v1946_v63, %v16208_v39  ;;  %v2063_v15 = vmul.f32 %v16208_v39, %v16208_v39  ;;  %v16215_v57 = vpop.f32.mrb[35].mxu0  ;;  %v16217_v0 = vpop.f32.mrb[51].mxu1 }
 0x384   : > { %21552 = vst [vmem:[#allocation29_spill] sm:$0xff] %v16217_v0  ;;  %v2119_v5 = vadd.f32 %v2118_v27, %v2060_v46  ;;  %v2161_v22 = vadd.f32 %v2160_v17, %v2062_v20  ;;  %v1989_v62 = vadd.f32 %v1988_v60, %v16210_v43  ;;  %v2065_v10 = vmul.f32 %v16210_v43, %v16210_v43 }
 0x385   : > { %v2099_v23 = vadd.f32 %v2098_v18, %v2063_v15  ;;  %v1968_v11 = vadd.f32 %v1967_v12, %v16215_v57  ;;  %v2064_v28 = vmul.f32 %v16215_v57, %v16215_v57  ;;  %v2010_v63 = vadd.f32 %v2009_v34, %v16217_v0 }
 0x386   : > { %v2141_v50 = vadd.f32 %v2140_v48, %v2065_v10  ;;  %v2066_v9 = vmul.f32 %v16217_v0, %v16217_v0 }
 0x387   : > { %v2120_v45 = vadd.f32 %v2119_v5, %v2064_v28 }
 0x388   : > { %v2162_v27 = vadd.f32 %v2161_v22, %v2066_v9  ;;  %v16228_v17 = vpop.f32.mrb[36].mxu0  ;;  %v16230_v60 = vpop.f32.mrb[52].mxu1 }
 0x389   : > { %21553 = vst [vmem:[#allocation30_spill] sm:$0xff] %v16230_v60  ;;  %v1948_v46 = vadd.f32 %v1947_v51, %v16228_v17  ;;  %v2067_v15 = vmul.f32 %v16228_v17, %v16228_v17  ;;  %v1990_v12 = vadd.f32 %v1989_v62, %v16230_v60  ;;  %v2069_v34 = vmul.f32 %v16230_v60, %v16230_v60  ;;  %v16238_v10 = vpop.f32.mrb[37].mxu0  ;;  %v16240_v20 = vpop.f32.mrb[53].mxu1 }
 0x38a   : > { %21554 = vst [vmem:[#allocation31_spill] sm:$0xff] %v16240_v20  ;;  %v1969_v5 = vadd.f32 %v1968_v11, %v16238_v10  ;;  %v2068_v18 = vmul.f32 %v16238_v10, %v16238_v10  ;;  %v2011_v48 = vadd.f32 %v2010_v63, %v16240_v20  ;;  %v2070_v51 = vmul.f32 %v16240_v20, %v16240_v20  ;;  %v16248_v22 = vpop.f32.mrb[38].mxu0  ;;  %v16250_v62 = vpop.f32.mrb[54].mxu1 }
 0x38b   : > { %21555 = vst [vmem:[#allocation32_spill] sm:$0xff] %v16250_v62  ;;  %v2100_v28 = vadd.f32 %v2099_v23, %v2067_v15  ;;  %v2142_v9 = vadd.f32 %v2141_v50, %v2069_v34  ;;  %v1949_v60 = vadd.f32 %v1948_v46, %v16248_v22  ;;  %v2071_v43 = vmul.f32 %v16248_v22, %v16248_v22  ;;  %v16255_v11 = vpop.f32.mrb[39].mxu0  ;;  %v16257_v0 = vpop.f32.mrb[55].mxu1 }
 0x38c   : > { %21556 = vst [vmem:[#allocation33_spill] sm:$0xff] %v16257_v0  ;;  %v2121_v7 = vadd.f32 %v2120_v45, %v2068_v18  ;;  %v2163_v63 = vadd.f32 %v2162_v27, %v2070_v51  ;;  %v1991_v47 = vadd.f32 %v1990_v12, %v16250_v62  ;;  %v2073_v20 = vmul.f32 %v16250_v62, %v16250_v62 }
 0x38d   : > { %v2101_v31 = vadd.f32 %v2100_v28, %v2071_v43  ;;  %v1970_v23 = vadd.f32 %v1969_v5, %v16255_v11  ;;  %v2072_v50 = vmul.f32 %v16255_v11, %v16255_v11  ;;  %v2012_v46 = vadd.f32 %v2011_v48, %v16257_v0 }
 0x38e   : > { %v2143_v15 = vadd.f32 %v2142_v9, %v2073_v20  ;;  %v2074_v34 = vmul.f32 %v16257_v0, %v16257_v0 }
 0x38f   : > { %v2122_v54 = vadd.f32 %v2121_v7, %v2072_v50 }
 0x390   : > { %v2164_v45 = vadd.f32 %v2163_v63, %v2074_v34  ;;  %v16268_v27 = vpop.f32.mrb[40].mxu0  ;;  %v16270_v12 = vpop.f32.mrb[56].mxu1 }
 0x391   : > { %21557 = vst [vmem:[#allocation34_spill] sm:$0xff] %v16268_v27  ;;  %21558 = vst [vmem:[#allocation35_spill] sm:$0xff] %v16270_v12  ;;  %v1950_v18 = vadd.f32 %v1949_v60, %v16268_v27  ;;  %v2075_v43 = vmul.f32 %v16268_v27, %v16268_v27  ;;  %v1992_v5 = vadd.f32 %v1991_v47, %v16270_v12  ;;  %v16278_v20 = vpop.f32.mrb[41].mxu0  ;;  %v16280_v51 = vpop.f32.mrb[57].mxu1 }
 0x392   : > { %v2077_v48 = vmul.f32 %v16270_v12, %v16270_v12  ;;  %21559 = vst [vmem:[#allocation36_spill] sm:$0xff] %v16280_v51  ;;  %v1971_v7 = vadd.f32 %v1970_v23, %v16278_v20  ;;  %v2076_v28 = vmul.f32 %v16278_v20, %v16278_v20  ;;  %v2013_v9 = vadd.f32 %v2012_v46, %v16280_v51  ;;  %v16288_v63 = vpop.f32.mrb[42].mxu0  ;;  %v16290_v47 = vpop.f32.mrb[58].mxu1 }
 0x393   : > { %v2078_v60 = vmul.f32 %v16280_v51, %v16280_v51  ;;  %21560 = vst [vmem:[#allocation37_spill] sm:$0xff] %v16288_v63  ;;  %21561 = vst [vmem:[#allocation38_spill] sm:$0xff] %v16290_v47  ;;  %v2102_v50 = vadd.f32 %v2101_v31, %v2075_v43  ;;  %v1951_v12 = vadd.f32 %v1950_v18, %v16288_v63  ;;  %v16295_v23 = vpop.f32.mrb[43].mxu0  ;;  %v16297_v0 = vpop.f32.mrb[59].mxu1 }
 0x394   : > { %v2144_v34 = vadd.f32 %v2143_v15, %v2077_v48  ;;  %v2079_v62 = vmul.f32 %v16288_v63, %v16288_v63  ;;  %21562 = vst [vmem:[#allocation39_spill] sm:$0xff] %v16297_v0  ;;  %v2123_v36 = vadd.f32 %v2122_v54, %v2076_v28  ;;  %v1993_v33 = vadd.f32 %v1992_v5, %v16290_v47 }
 0x395   : > { %v2165_v46 = vadd.f32 %v2164_v45, %v2078_v60  ;;  %v2081_v51 = vmul.f32 %v16290_v47, %v16290_v47  ;;  %v1972_v31 = vadd.f32 %v1971_v7, %v16295_v23  ;;  %v2080_v15 = vmul.f32 %v16295_v23, %v16295_v23 }
 0x396   : > { %v2103_v53 = vadd.f32 %v2102_v50, %v2079_v62  ;;  %v2014_v18 = vadd.f32 %v2013_v9, %v16297_v0  ;;  %v2082_v48 = vmul.f32 %v16297_v0, %v16297_v0 }
 0x397   : > { %v2145_v43 = vadd.f32 %v2144_v34, %v2081_v51  ;;  %v2124_v37 = vadd.f32 %v2123_v36, %v2080_v15 }
 0x398   : > { %v2166_v54 = vadd.f32 %v2165_v46, %v2082_v48  ;;  %v16308_v45 = vpop.f32.mrb[44].mxu0  ;;  %v16310_v5 = vpop.f32.mrb[60].mxu1 }
 0x399   : > { %21563 = vst [vmem:[#allocation40_spill] sm:$0xff] %v16308_v45  ;;  %21564 = vst [vmem:[#allocation41_spill] sm:$0xff] %v16310_v5  ;;  %v1952_v28 = vadd.f32 %v1951_v12, %v16308_v45  ;;  %v2083_v62 = vmul.f32 %v16308_v45, %v16308_v45  ;;  %v1994_v7 = vadd.f32 %v1993_v33, %v16310_v5  ;;  %v16318_v51 = vpop.f32.mrb[45].mxu0  ;;  %v16320_v60 = vpop.f32.mrb[61].mxu1 }
 0x39a   : > { %v2085_v9 = vmul.f32 %v16310_v5, %v16310_v5  ;;  %21565 = vst [vmem:[#allocation42_spill] sm:$0xff] %v16318_v51  ;;  %21566 = vst [vmem:[#allocation43_spill] sm:$0xff] %v16320_v60  ;;  %v1973_v36 = vadd.f32 %v1972_v31, %v16318_v51  ;;  %v2084_v50 = vmul.f32 %v16318_v51, %v16318_v51  ;;  %v16328_v46 = vpop.f32.mrb[46].mxu0  ;;  %v16330_v33 = vpop.f32.mrb[62].mxu1 }
 0x39b   : > { %v2015_v34 = vadd.f32 %v2014_v18, %v16320_v60  ;;  %v2086_v12 = vmul.f32 %v16320_v60, %v16320_v60  ;;  %21567 = vst [vmem:[#allocation44_spill] sm:$0xff] %v16328_v46  ;;  %21568 = vst [vmem:[#allocation45_spill] sm:$0xff] %v16330_v33  ;;  %v2104_v15 = vadd.f32 %v2103_v53, %v2083_v62  ;;  %v16335_v31 = vpop.f32.mrb[47].mxu0  ;;  %v16337_v0 = vpop.f32.mrb[63].mxu1 }
 0x39c   : > { %v2146_v48 = vadd.f32 %v2145_v43, %v2085_v9  ;;  %v1953_v5 = vadd.f32 %v1952_v28, %v16328_v46  ;;  %v2087_v47 = vmul.f32 %v16328_v46, %v16328_v46  ;;  %21569 = vst [vmem:[#allocation46_spill] sm:$0xff] %v16335_v31  ;;  %v2125_v59 = vadd.f32 %v2124_v37, %v2084_v50 }
 0x39d   : > { %v2167_v18 = vadd.f32 %v2166_v54, %v2086_v12  ;;  %v1995_v2 = vadd.f32 %v1994_v7, %v16330_v33  ;;  %v2089_v60 = vmul.f32 %v16330_v33, %v16330_v33  ;;  %v1974_v53 = vadd.f32 %v1973_v36, %v16335_v31 }
 0x39e   : > { %v1954_v4 = vrot.slane %v1953_v5, 4  ;;  %v2105_v14 = vadd.f32 %v2104_v15, %v2087_v47  ;;  %v2088_v43 = vmul.f32 %v16335_v31, %v16335_v31  ;;  %v2016_v9 = vadd.f32 %v2015_v34, %v16337_v0 }
 0x39f   : > { %v1996_v28 = vrot.slane %v1995_v2, 4  ;;  %v2147_v62 = vadd.f32 %v2146_v48, %v2089_v60  ;;  %v2090_v37 = vmul.f32 %v16337_v0, %v16337_v0  ;;  %v1975_v7 = vrot.slane %v1974_v53, 4 }
 0x3a0   : > { %v1955_v54 = vadd.f32 %v1954_v4, %v1953_v5  ;;  %v2106_v50 = vrot.slane %v2105_v14, 4  ;;  %v2126_v12 = vadd.f32 %v2125_v59, %v2088_v43  ;;  %v2017_v29 = vrot.slane %v2016_v9, 4 }
 0x3a1   : > { %v1997_v42 = vadd.f32 %v1996_v28, %v1995_v2  ;;  %v2148_v33 = vrot.slane %v2147_v62, 4  ;;  %v2168_v47 = vadd.f32 %v2167_v18, %v2090_v37  ;;  %v1976_v24 = vadd.f32 %v1975_v7, %v1974_v53 }
 0x3a2   : > { %v1956_v15 = vrot.slane %v1955_v54, 2  ;;  %v2107_v36 = vadd.f32 %v2106_v50, %v2105_v14  ;;  %v2127_v40 = vrot.slane %v2126_v12, 4  ;;  %v2018_v60 = vadd.f32 %v2017_v29, %v2016_v9 }
 0x3a3   : > { %v1998_v46 = vrot.slane %v1997_v42, 2  ;;  %v2149_v45 = vadd.f32 %v2148_v33, %v2147_v62  ;;  %v2169_v48 = vrot.slane %v2168_v47, 4  ;;  %v1977_v51 = vrot.slane %v1976_v24, 2 }
 0x3a4   : > { %v1957_v34 = vadd.f32 %v1956_v15, %v1955_v54  ;;  %v2108_v31 = vrot.slane %v2107_v36, 2  ;;  %v2128_v63 = vadd.f32 %v2127_v40, %v2126_v12  ;;  %v2019_v27 = vrot.slane %v2018_v60, 2 }
 0x3a5   : > { %v1999_v4 = vadd.f32 %v1998_v46, %v1997_v42  ;;  %v2150_v5 = vrot.slane %v2149_v45, 2  ;;  %v2170_v59 = vadd.f32 %v2169_v48, %v2168_v47  ;;  %v1978_v28 = vadd.f32 %v1977_v51, %v1976_v24 }
 0x3a6   : > { %v1958_v2 = vrot.slane %v1957_v34, 1  ;;  %v2109_v43 = vadd.f32 %v2108_v31, %v2107_v36  ;;  %v2129_v18 = vrot.slane %v2128_v63, 2  ;;  %v2020_v53 = vadd.f32 %v2019_v27, %v2018_v60 }
 0x3a7   : > { %v2000_v37 = vrot.slane %v1999_v4, 1  ;;  %v2151_v14 = vadd.f32 %v2150_v5, %v2149_v45  ;;  %v2171_v50 = vrot.slane %v2170_v59, 2  ;;  %v1979_v29 = vrot.slane %v1978_v28, 1 }
 0x3a8   : > { %v1959_v7 = vadd.f32 %v1958_v2, %v1957_v34  ;;  %v2110_v33 = vrot.slane %v2109_v43, 1  ;;  %v2130_v62 = vadd.f32 %v2129_v18, %v2128_v63  ;;  %v2021_v15 = vrot.slane %v2020_v53, 1 }
 0x3a9   : > { %v2001_v9 = vadd.f32 %v2000_v37, %v1999_v4  ;;  %v2152_v54 = vrot.slane %v2151_v14, 1  ;;  %v2172_v40 = vadd.f32 %v2171_v50, %v2170_v59  ;;  %v1980_v12 = vadd.f32 %v1979_v29, %v1978_v28 }
 0x3aa   : > { %v16348_v42 = vmul.f32 0.0078125, %v1959_v7  ;;  %v2111_v46 = vadd.f32 %v2110_v33, %v2109_v43  ;;  %v2131_v47 = vrot.slane %v2130_v62, 1  ;;  %v2022_v51 = vadd.f32 %v2021_v15, %v2020_v53  ;;  %v16372_v15 = vld [vmem:[%s21246_s10 + $0x460] sm:$0xff] }
 0x3ab   : > { %v16350_v31 = vmul.f32 0.0078125, %v2001_v9  ;;  %v2153_v24 = vadd.f32 %v2152_v54, %v2151_v14  ;;  %v2173_v45 = vrot.slane %v2172_v40, 1  ;;  %v16354_v60 = vmul.f32 0.0078125, %v1980_v12  ;;  %v16367_v54 = vld [vmem:[%s21246_s10 + $0x440] sm:$0xff]  ;;  %v16382_v12 = vld [vmem:[%s21246_s10 + $0x468] sm:$0xff] }
 0x3ac   : > { %v2175_v27 = vmul.f32 0.0078125, %v2111_v46  ;;  %v2179_v36 = vmul.f32 %v16348_v42, %v16348_v42  ;;  %v2132_v63 = vadd.f32 %v2131_v47, %v2130_v62  ;;  %v16358_v4 = vmul.f32 0.0078125, %v2022_v51  ;;  %v16387_v47 = vld [vmem:[%s21246_s10 + $0x480] sm:$0xff] }
 0x3ad   : > { %v2177_v48 = vmul.f32 0.0078125, %v2153_v24  ;;  %v2181_v34 = vmul.f32 %v16350_v31, %v16350_v31  ;;  %v2174_v5 = vadd.f32 %v2173_v45, %v2172_v40  ;;  %v2180_v43 = vmul.f32 %v16354_v60, %v16354_v60  ;;  %v16377_v40 = vld [vmem:[%s21246_s10 + $0x448] sm:$0xff]  ;;  %v16392_v24 = vld [vmem:[%s21246_s10 + $0x4a0] sm:$0xff] }
 0x3ae   : > { %v2183_v59 = vsub.f32 %v2175_v27, %v2179_v36  ;;  %v2176_v2 = vmul.f32 0.0078125, %v2132_v63  ;;  %v2182_v37 = vmul.f32 %v16358_v4, %v16358_v4  ;;  %v16397_v27 = vld [vmem:[%s21246_s10 + $0x488] sm:$0xff]  ;;  %v16407_v63 = vld [vmem:[%s21246_s10 + $0x4c0] sm:$0xff] }
 0x3af   : > { %v2185_v28 = vsub.f32 %v2177_v48, %v2181_v34  ;;  %v2178_v18 = vmul.f32 0.0078125, %v2174_v5  ;;  %21570 = vst [vmem:[#allocation47_spill] sm:$0xff] %v16397_v27  ;;  %v16402_v36 = vld [vmem:[%s21246_s10 + $0x4a8] sm:$0xff]  ;;  %v16410_v34 = vsub.s32 2, %v15279_v6  ;;  %v16415_v5 = vld [vmem:[%s21246_s10 + $0x4e0] sm:$0xff] }
 0x3b0   : > { %v2188_v14 = vadd.f32 1e-05, %v2183_v59  ;;  %v2184_v53 = vsub.f32 %v2176_v2, %v2180_v43  ;;  %21571 = vst [vmem:[#allocation48_spill] sm:$0xff] %v16402_v36  ;;  %21573 = vst [vmem:[#allocation50_spill] sm:$0xff] %v16415_v5  ;;  %v16420_v59 = vld [vmem:[%s21246_s10 + $0x4c8] sm:$0xff]  ;;  %v16507_v36 = vld [vmem:[%s21246_s10 + $0x5a0] sm:$0xff] }
 0x3b1   : > { %v2190_v50 = vadd.f32 1e-05, %v2185_v28  ;;  %v2186_v7 = vsub.f32 %v2178_v18, %v2182_v37  ;;  %21572 = vst [vmem:[#allocation49_spill] sm:$0xff] %v16410_v34  ;;  %21574 = vst [vmem:[#allocation51_spill] sm:$0xff] %v16420_v59  ;;  %v16425_v2 = vld [vmem:[%s21246_s10 + $0x4e8] sm:$0xff]  ;;  %v16429_v28 = vsub.s32 3, %v15279_v6 }
 0x3b2   : > { %14529 = vrsqrt.f32 %v2188_v14  ;;  %v2189_v33 = vadd.f32 1e-05, %v2184_v53  ;;  %21575 = vst [vmem:[#allocation52_spill] sm:$0xff] %v16425_v2  ;;  %v16438_v14 = vld [vmem:[%s21246_s10 + $0x500] sm:$0xff]  ;;  %v16491_v37 = vld [vmem:[%s21246_s10 + $0x568] sm:$0xff]  ;;  %21586 = vst [vmem:[#allocation63_spill] sm:$0xff] %v16507_v36 }
 0x3b3   : > { %14531 = vrsqrt.f32 %v2190_v50  ;;  %v2191_v29 = vadd.f32 1e-05, %v2186_v7  ;;  %21576 = vst [vmem:[#allocation53_spill] sm:$0xff] %v16429_v28  ;;  %21577 = vst [vmem:[#allocation54_spill] sm:$0xff] %v16438_v14  ;;  %v16443_v53 = vld [vmem:[%s21246_s10 + $0x520] sm:$0xff]  ;;  %v16448_v50 = vld [vmem:[%s21246_s10 + $0x508] sm:$0xff] }
 0x3b4   : > { %14533 = vrsqrt.f32 %v2189_v33  ;;  %21578 = vst [vmem:[#allocation55_spill] sm:$0xff] %v16443_v53  ;;  %21579 = vst [vmem:[#allocation56_spill] sm:$0xff] %v16448_v50  ;;  %v16512_v27 = vld [vmem:[%s21246_s10 + $0x588] sm:$0xff]  ;;  %v16530_v2 = vld [vmem:[%s21246_s10 + $0x5c0] sm:$0xff] }
 0x3b5   : > { %14535 = vrsqrt.f32 %v2191_v29  ;;  %v16486_v29 = vld [vmem:[%s21246_s10 + $0x548] sm:$0xff]  ;;  %21584 = vst [vmem:[#allocation61_spill] sm:$0xff] %v16491_v37  ;;  %21587 = vst [vmem:[#allocation64_spill] sm:$0xff] %v16512_v27  ;;  %v16535_v59 = vld [vmem:[%s21246_s10 + $0x5e0] sm:$0xff] }
 0x3b6   : > { %21583 = vst [vmem:[#allocation60_spill] sm:$0xff] %v16486_v29  ;;  %21589 = vst [vmem:[#allocation66_spill] sm:$0xff] %v16530_v2  ;;  %v16552_v50 = vld [vmem:[%s21246_s10 + $0x5e8] sm:$0xff]  ;;  %v16557_v53 = vld [vmem:[%s21246_s10 + $0x600] sm:$0xff] }
 0x3b7   : > { %21590 = vst [vmem:[#allocation67_spill] sm:$0xff] %v16535_v59  ;;  %21592 = vst [vmem:[#allocation69_spill] sm:$0xff] %v16552_v50  ;;  %v16586_v18 = vld [vmem:[%s21246_s10 + $0x628] sm:$0xff]  ;;  %v21610_v36 = vld [vmem:[#allocation13_spill] sm:$0xff] }
 0x3b8   : > { %21593 = vst [vmem:[#allocation70_spill] sm:$0xff] %v16557_v53  ;;  %21596 = vst [vmem:[#allocation73_spill] sm:$0xff] %v16586_v18 }
 0x3bc   : > { %v14530_v62 = vpop.eup %14529 }
 0x3bd   : > { %v14532_v9 = vpop.eup %14531 }
 0x3be   : > { %v14534_v46 = vpop.eup %14533 }
 0x3bf   : > { %v14536_v51 = vpop.eup %14535  ;;  %v2200_v45 = vcombine.low %v14530_v62, %v14534_v46  ;;  %v16465_v46 = vld [vmem:[%s21246_s10 + $0x540] sm:$0xff] }
 0x3c0   : > { %v2201_v48 = vcombine.low %v14532_v9, %v14536_v51  ;;  %v16460_v9 = vld [vmem:[%s21246_s10 + $0x528] sm:$0xff]  ;;  %21581 = vst [vmem:[#allocation58_spill] sm:$0xff] %v16465_v46  ;;  %v16470_v51 = vld [vmem:[%s21246_s10 + $0x560] sm:$0xff] }
 0x3c1   : > { %v2208_v43 = vrot.slane %v2200_v45, %v15661_v61  ;;  %21580 = vst [vmem:[#allocation57_spill] sm:$0xff] %v16460_v9  ;;  %21582 = vst [vmem:[#allocation59_spill] sm:$0xff] %v16470_v51  ;;  %v2187_v45 = vld [vmem:[%s21244_s8] sm:$0xf]  ;;  %v16575_v46 = vld [vmem:[%s21246_s10 + $0x608] sm:$0xff] }
 0x3c2   : > { %v2215_v7 = vrot.slane %v2201_v48, %v15661_v61  ;;  %v16496_v62 = vld [vmem:[%s21246_s10 + $0x580] sm:$0xff]  ;;  %21595 = vst [vmem:[#allocation72_spill] sm:$0xff] %v16575_v46  ;;  %v21608_v46 = vld [vmem:[#allocation44_spill] sm:$0xff] }
 0x3c3   : > { %21585 = vst [vmem:[#allocation62_spill] sm:$0xff] %v16496_v62  ;;  %v16591_v51 = vld [vmem:[%s21246_s10 + $0x640] sm:$0xff] }
 0x3c4   : > { %v2216_v48 = vcombine.low %v2208_v43, %v2215_v7  ;;  %v16517_v43 = vld [vmem:[%s21246_s10 + $0x5a8] sm:$0xff]  ;;  %21597 = vst [vmem:[#allocation74_spill] sm:$0xff] %v16591_v51  ;;  %v21615_v62 = vld [vmem:[#allocation14_spill] sm:$0xff] }
 0x3c5   : > { %21588 = vst [vmem:[#allocation65_spill] sm:$0xff] %v16517_v43  ;;  %v16540_v7 = vld [vmem:[%s21246_s10 + $0x5c8] sm:$0xff] }
 0x3c6   : > { %21591 = vst [vmem:[#allocation68_spill] sm:$0xff] %v16540_v7  ;;  %v2223_v6 = vrot.slane %v2216_v48, %v15661_v61  ;;  %v16562_v48 = vld [vmem:[%s21246_s10 + $0x620] sm:$0xff] }
 0x3c7   : > { %21594 = vst [vmem:[#allocation71_spill] sm:$0xff] %v16562_v48 }
 0x3c8   : > { %v2225_v14 = vmul.f32 %v2223_v6, %v2187_v45  ;;  %v16596_v6 = vld [vmem:[%s21246_s10 + $0x660] sm:$0xff] }
 0x3c9   : > { %21598 = vst [vmem:[#allocation75_spill] sm:$0xff] %v16596_v6 }
 0x3ca   : > { %v2231_v59 = vrot.slane %v2225_v14, %v15285_v8  ;;  %v2235_v2 = vrot.slane %v2225_v14, %v15669_v13  ;;  %v16609_v43 = vrot.slane %v2225_v14, %v16410_v34  ;;  %v16612_v27 = vrot.slane %v2225_v14, %v16429_v28 }
 0x3cc   : > { %21599 = vst [vmem:[#allocation76_spill] sm:$0xff] %v16609_v43  ;;  %21600 = vst [vmem:[#allocation77_spill] sm:$0xff] %v16612_v27  ;;  %v2248_v48 = vmul.f32 %v2231_v59, %v16348_v42  ;;  %v2249_v53 = vmul.f32 %v2235_v2, %v16354_v60  ;;  %v2250_v14 = vmul.f32 %v16609_v43, %v16350_v31 }
 0x3cd   : > { %v2251_v50 = vmul.f32 %v16612_v27, %v16358_v4  ;;  %v2345_v45 = vmul.f32 %v16612_v27, %v16337_v0  ;;  %v2283_v33 = vmul.f32 %v2235_v2, %v15993_v35  ;;  %v2287_v9 = vmul.f32 %v2235_v2, %v16034_v49 }
 0x3ce   : > { %v2282_v18 = vmul.f32 %v2231_v59, %v15980_v38  ;;  %v2256_v5 = vcombine.low %v2248_v48, %v2249_v53  ;;  %v2286_v42 = vmul.f32 %v2231_v59, %v16010_v16  ;;  %v2291_v60 = vmul.f32 %v2235_v2, %v16078_v25 }
 0x3cf   : > { %v2257_v6 = vcombine.low %v2250_v14, %v2251_v50  ;;  %v2295_v31 = vmul.f32 %v2235_v2, %v16095_v56  ;;  %v2290_v51 = vmul.f32 %v2231_v59, %v16064_v58  ;;  %v2294_v4 = vmul.f32 %v2231_v59, %v16088_v26 }
 0x3d0   : > { %v2299_v0 = vmul.f32 %v2235_v2, %v16118_v52  ;;  %v2264_v35 = vrot.slane %v2256_v5, %v15661_v61  ;;  %v2303_v38 = vmul.f32 %v2235_v2, %v16135_v32  ;;  %v16643_v53 = vmul.f32 %v2231_v59, %v16108_v21 }
 0x3d1   : > { %v2271_v49 = vrot.slane %v2257_v6, %v15661_v61  ;;  %v16646_v16 = vmul.f32 %v2231_v59, %v16128_v3  ;;  %v16649_v25 = vmul.f32 %v2235_v2, %v16158_v41  ;;  %v16652_v58 = vmul.f32 %v2235_v2, %v16175_v19  ;;  %v2226_v3 = vld [vmem:[%s21245_s9] sm:$0xf] }
 0x3d2   : > { %v16655_v26 = vmul.f32 %v2231_v59, %v16148_v44  ;;  %v16658_v52 = vmul.f32 %v2231_v59, %v16168_v55  ;;  %v16661_v32 = vmul.f32 %v2235_v2, %v16198_v1  ;;  %v16664_v21 = vmul.f32 %v2235_v2, %v16215_v57 }
 0x3d3   : > { %v2272_v56 = vcombine.low %v2264_v35, %v2271_v49  ;;  %v16670_v41 = vmul.f32 %v2231_v59, %v16188_v30  ;;  %v16673_v44 = vmul.f32 %v2231_v59, %v16208_v39  ;;  %v16676_v19 = vmul.f32 %v2235_v2, %v16238_v10  ;;  %v16694_v39 = vld [vmem:[%s21246_s10 + $0x648] sm:$0xff]  ;;  %v21606_v35 = vld [vmem:[#allocation46_spill] sm:$0xff] }
 0x3d4   : > { %v16679_v55 = vmul.f32 %v2235_v2, %v16255_v11  ;;  %v16683_v57 = vmul.f32 %v2231_v59, %v16228_v17  ;;  %v16686_v5 = vmul.f32 %v2231_v59, %v16248_v22  ;;  %v16689_v30 = vmul.f32 %v2235_v2, %v16278_v20  ;;  %21601 = vst [vmem:[#allocation78_spill] sm:$0xff] %v16694_v39  ;;  %v16699_v10 = vld [vmem:[%s21246_s10 + $0x668] sm:$0xff]  ;;  %v21603_v17 = vld [vmem:[#allocation34_spill] sm:$0xff]  ;;  %v21604_v22 = vld [vmem:[#allocation37_spill] sm:$0xff] }
 0x3d5   : > { %v2279_v1 = vrot.slane %v2272_v56, %v15661_v61  ;;  %21602 = vst [vmem:[#allocation79_spill] sm:$0xff] %v16699_v10  ;;  %v16702_v11 = vmul.f32 %v2235_v2, %v16295_v23  ;;  %v16705_v50 = vmul.f32 %v2231_v59, %v21603_v17  ;;  %v16708_v48 = vmul.f32 %v2231_v59, %v21604_v22  ;;  %v21605_v20 = vld [vmem:[#allocation42_spill] sm:$0xff]  ;;  %v21607_v56 = vld [vmem:[#allocation40_spill] sm:$0xff] }
 0x3d6   : > { %v16711_v6 = vmul.f32 %v2235_v2, %v21605_v20  ;;  %v16714_v49 = vmul.f32 %v2235_v2, %v21606_v35  ;;  %v16717_v61 = vmul.f32 %v2231_v59, %v21607_v56  ;;  %v16720_v7 = vmul.f32 %v2231_v59, %v21608_v46  ;;  %v21609_v23 = vld [vmem:[#allocation8_spill] sm:$0xff]  ;;  %v21611_v20 = vld [vmem:[#allocation6_spill] sm:$0xff]  ;;  %v21613_v56 = vld [vmem:[#allocation15_spill] sm:$0xff] }
 0x3d7   : > { %v2281_v14 = vsub.f32 %v2226_v3, %v2279_v1  ;;  %v16724_v17 = vmul.f32 %v16612_v27, %v21609_v23  ;;  %v16728_v22 = vmul.f32 %v16612_v27, %v21610_v36  ;;  %v16732_v3 = vmul.f32 %v16609_v43, %v21611_v20  ;;  %v21612_v2 = vld [vmem:[#allocation10_spill] sm:$0xff]  ;;  %v21614_v20 = vld [vmem:[#allocation17_spill] sm:$0xff] }
 0x3d8   : > { %v16736_v1 = vmul.f32 %v16609_v43, %v21612_v2  ;;  %v16751_v23 = vmul.f32 %v16612_v27, %v21613_v56  ;;  %v16755_v2 = vmul.f32 %v16612_v27, %v21614_v20 }
 0x3d9   : > { %v16739_v35 = vrot.slane %v2281_v14, %v15285_v8  ;;  %v16742_v59 = vrot.slane %v2281_v14, %v15669_v13  ;;  %v16745_v46 = vrot.slane %v2281_v14, %v16429_v28  ;;  %v16759_v8 = vmul.f32 %v16609_v43, %v21615_v62  ;;  %v21617_v13 = vld [vmem:[#allocation16_spill] sm:$0xff] }
 0x3da   : > { %v16763_v37 = vmul.f32 %v16609_v43, %v21617_v13  ;;  %v16776_v13 = vrot.slane %v2281_v14, %v16410_v34 }
 0x3db   : > { %21616 = vst [vmem:[#allocation34_spill] sm:$0xff] %v16759_v8  ;;  %v16766_v28 = vadd.f32 %v16745_v46, %v2345_v45  ;;  %v2368_v36 = vadd.f32 %v16742_v59, %v2283_v33  ;;  %v2372_v56 = vadd.f32 %v16742_v59, %v2287_v9  ;;  %v2367_v39 = vadd.f32 %v16739_v35, %v2282_v18 }
 0x3dc   : > { %21618 = vst [vmem:[#allocation37_spill] sm:$0xff] %v16763_v37  ;;  %v2371_v20 = vadd.f32 %v16739_v35, %v2286_v42  ;;  %v2376_v10 = vadd.f32 %v16742_v59, %v2291_v60  ;;  %v2380_v62 = vadd.f32 %v16742_v59, %v2295_v31  ;;  %v2375_v29 = vadd.f32 %v16739_v35, %v2290_v51 }
 0x3dd   : > { %21619 = vst [vmem:[#allocation42_spill] sm:$0xff] %v16766_v28  ;;  %v2432_v43 = vmax.f32 %v2368_v36, 0.0  ;;  %v2436_v45 = vmax.f32 %v2372_v56, 0.0  ;;  %v2431_v28 = vmax.f32 %v2367_v39, 0.0  ;;  %v2379_v9 = vadd.f32 %v16739_v35, %v2294_v4  ;;  %v21624_v56 = vld [vmem:[#allocation12_spill] sm:$0xff] }
 0x3de   : > { %v2435_v27 = vmax.f32 %v2371_v20, 0.0  ;;  %v2440_v33 = vmax.f32 %v2376_v10, 0.0  ;;  %v2444_v37 = vmax.f32 %v2380_v62, 0.0  ;;  %v2439_v42 = vmax.f32 %v2375_v29, 0.0  ;;  %v21621_v10 = vld [vmem:[#allocation9_spill] sm:$0xff] }
 0x3df   : > { %v16779_v18 = vpack.c.bf16 %v2436_v45, %v2432_v43  ;;  %v2384_v60 = vadd.f32 %v16742_v59, %v2299_v0  ;;  %v2388_v31 = vadd.f32 %v16742_v59, %v2303_v38  ;;  %v2443_v14 = vmax.f32 %v2379_v9, 0.0 }
 0x3e0   : > { %v16783_v8 = vpack.c.bf16 %v2435_v27, %v2431_v28  ;;  %v16785_v51 = vpack.c.bf16 %v2444_v37, %v2440_v33  ;;  %v2383_v39 = vadd.f32 %v16739_v35, %v16643_v53  ;;  %v2387_v29 = vadd.f32 %v16739_v35, %v16646_v16  ;;  %v21620_v53 = vld [vmem:[#allocation7_spill] sm:$0xff] }
 0x3e1   : > { %4095 = vmatprep.mubr.bf16.mxu0 %v16779_v18  ;;  %4321 = vmatprep.mubr.bf16.mxu1 %v16779_v18  ;;  %v2448_v4 = vmax.f32 %v2384_v60, 0.0  ;;  %v2452_v43 = vmax.f32 %v2388_v31, 0.0  ;;  %v2392_v0 = vadd.f32 %v16742_v59, %v16649_v25  ;;  %v16797_v27 = vpack.c.bf16 %v2443_v14, %v2439_v42  ;;  %v21623_v16 = vld [vmem:[#allocation11_spill] sm:$0xff] }
 0x3e2   : > { %4096 = vmatmul.mubr.bf16.vlgmr.msra.gmra.mrb[48].mxu0 %v16783_v8  ;;  %4322 = vmatmul.mubr.bf16.vlgmr.msra.gmra.mrb[64].mxu1 %v16783_v8  ;;  %v2447_v28 = vmax.f32 %v2383_v39, 0.0  ;;  %v2396_v37 = vadd.f32 %v16742_v59, %v16652_v58  ;;  %v2391_v38 = vadd.f32 %v16739_v35, %v16655_v26  ;;  %v21622_v36 = vcombine.low %v21620_v53, %v21621_v10  ;;  %v21632_v10 = vld [vmem:[#allocation48_spill] sm:$0xff] }
 0x3e3   : > { %v21625_v25 = vcombine.low %v21623_v16, %v21624_v56  ;;  %v16809_v20 = vpack.c.bf16 %v2452_v43, %v2448_v4  ;;  %v2451_v62 = vmax.f32 %v2387_v29, 0.0  ;;  %v2456_v45 = vmax.f32 %v2392_v0, 0.0  ;;  %4105 = vmatprep.mubr.bf16.mxu0 %v16785_v51  ;;  %4331 = vmatprep.mubr.bf16.mxu1 %v16785_v51 }
 0x3e4   : > { %4177 = vmatpush1.bf16.msra.mxu0 %v21622_v36  ;;  %v2395_v33 = vadd.f32 %v16739_v35, %v16658_v52  ;;  %v2460_v58 = vmax.f32 %v2396_v37, 0.0  ;;  %v2455_v26 = vmax.f32 %v2391_v38, 0.0  ;;  %v2400_v9 = vadd.f32 %v16742_v59, %v16661_v32 }
 0x3e5   : > { %4403 = vmatpush1.bf16.msra.mxu1 %v21625_v25  ;;  %v2404_v42 = vadd.f32 %v16742_v59, %v16664_v21  ;;  %v21626_v60 = vcombine.high %v16367_v54, %v16372_v15  ;;  %v21627_v31 = vcombine.high %v16377_v40, %v16382_v12  ;;  %v16825_v52 = vpack.c.bf16 %v2451_v62, %v2447_v28 }
 0x3e6   : > { %v2459_v14 = vmax.f32 %v2395_v33, 0.0  ;;  %v2399_v39 = vadd.f32 %v16739_v35, %v16670_v41  ;;  %v2403_v32 = vadd.f32 %v16739_v35, %v16673_v44  ;;  %v16831_v4 = vpack.c.bf16 %v2460_v58, %v2456_v45 }
 0x3e7   : > { %4178 = vmatprep.subr.bf16.mxu0 %v21626_v60  ;;  %4404 = vmatprep.subr.bf16.mxu1 %v21627_v31  ;;  %v2464_v21 = vmax.f32 %v2400_v9, 0.0  ;;  %v2468_v43 = vmax.f32 %v2404_v42, 0.0  ;;  %v2408_v29 = vadd.f32 %v16742_v59, %v16676_v19  ;;  %v21628_v0 = vcombine.low %v16367_v54, %v16372_v15  ;;  %v21631_v19 = vld [vmem:[#allocation47_spill] sm:$0xff]  ;;  %v21636_v42 = vld [vmem:[#allocation50_spill] sm:$0xff] }
 0x3e8   : > { %v21629_v28 = vcombine.low %v16377_v40, %v16382_v12  ;;  %v16841_v37 = vpack.c.bf16 %v2459_v14, %v2455_v26  ;;  %v2463_v41 = vmax.f32 %v2399_v39, 0.0  ;;  %v2467_v38 = vmax.f32 %v2403_v32, 0.0  ;;  %v21638_v31 = vld [vmem:[#allocation51_spill] sm:$0xff]  ;;  %v21639_v14 = vld [vmem:[#allocation52_spill] sm:$0xff] }
 0x3e9   : > { %4179 = vmatpush1.bf16.msra.mxu0 %v21628_v0  ;;  %v2412_v44 = vadd.f32 %v16742_v59, %v16679_v55  ;;  %v21630_v53 = vcombine.high %v16387_v47, %v16392_v24  ;;  %v21633_v36 = vcombine.high %v21631_v19, %v21632_v10  ;;  %v16851_v54 = vpack.c.bf16 %v2468_v43, %v2464_v21 }
 0x3ea   : > { %4405 = vmatpush1.bf16.msra.mxu1 %v21629_v28  ;;  %v2472_v15 = vmax.f32 %v2408_v29, 0.0  ;;  %v2407_v40 = vadd.f32 %v16739_v35, %v16683_v57  ;;  %v2411_v12 = vadd.f32 %v16739_v35, %v16686_v5  ;;  %v16857_v16 = vpack.c.bf16 %v2467_v38, %v2463_v41  ;;  %4106 = vmatmul.mubr.bf16.gmra.mrb[52].mxu0 %v16797_v27 }
 0x3eb   : > { %4180 = vmatprep.subr.bf16.mxu0 %v21630_v53  ;;  %4406 = vmatprep.subr.bf16.mxu1 %v21633_v36  ;;  %v2476_v55 = vmax.f32 %v2412_v44, 0.0  ;;  %v2416_v56 = vadd.f32 %v16742_v59, %v16689_v30  ;;  %v2420_v25 = vadd.f32 %v16742_v59, %v16702_v11  ;;  %v2415_v57 = vadd.f32 %v16739_v35, %v16705_v50  ;;  %v21644_v44 = vld [vmem:[#allocation55_spill] sm:$0xff] }
 0x3ec   : > { %4332 = vmatmul.mubr.bf16.gmra.mrb[68].mxu1 %v16797_v27  ;;  %v2471_v62 = vmax.f32 %v2407_v40, 0.0  ;;  %v2475_v45 = vmax.f32 %v2411_v12, 0.0  ;;  %v2419_v5 = vadd.f32 %v16739_v35, %v16708_v48  ;;  %v21634_v33 = vcombine.low %v16387_v47, %v16392_v24  ;;  %4115 = vmatprep.mubr.bf16.mxu0 %v16809_v20 }
 0x3ed   : > { %v21635_v30 = vcombine.low %v21631_v19, %v21632_v10  ;;  %v16875_v11 = vpack.c.bf16 %v2476_v55, %v2472_v15  ;;  %v2480_v58 = vmax.f32 %v2416_v56, 0.0  ;;  %v2484_v26 = vmax.f32 %v2420_v25, 0.0  ;;  %4341 = vmatprep.mubr.bf16.mxu1 %v16809_v20  ;;  %v21647_v19 = vld [vmem:[#allocation57_spill] sm:$0xff] }
 0x3ee   : > { %4181 = vmatpush1.bf16.msra.mxu0 %v21634_v33  ;;  %v2424_v9 = vadd.f32 %v16742_v59, %v16711_v6  ;;  %v16881_v50 = vpack.c.bf16 %v2475_v45, %v2471_v62  ;;  %v2479_v48 = vmax.f32 %v2415_v57, 0.0  ;;  %v2483_v47 = vmax.f32 %v2419_v5, 0.0  ;;  %v21649_v62 = vld [vmem:[#allocation34_spill] sm:$0xff]  ;;  %v21650_v57 = vld [vmem:[#allocation37_spill] sm:$0xff] }
 0x3ef   : > { %4407 = vmatpush1.bf16.msra.mxu1 %v21635_v30  ;;  %v2428_v24 = vadd.f32 %v16742_v59, %v16714_v49  ;;  %v21637_v60 = vcombine.high %v16407_v63, %v21636_v42  ;;  %v21640_v39 = vcombine.high %v21638_v31, %v21639_v14  ;;  %v16891_v6 = vpack.c.bf16 %v2484_v26, %v2480_v58  ;;  %v21653_v58 = vld [vmem:[#allocation19_spill] sm:$0xff]  ;;  %v21654_v26 = vld [vmem:[#allocation77_spill] sm:$0xff] }
 0x3f0   : > { %v2488_v32 = vmax.f32 %v2424_v9, 0.0  ;;  %v2423_v21 = vadd.f32 %v16739_v35, %v16717_v61  ;;  %v2427_v43 = vadd.f32 %v16739_v35, %v16720_v7  ;;  %v16897_v29 = vpack.c.bf16 %v2483_v47, %v2479_v48  ;;  %v21655_v48 = vld [vmem:[#allocation21_spill] sm:$0xff] }
 0x3f1   : > { %4182 = vmatprep.subr.bf16.mxu0 %v21637_v60  ;;  %4408 = vmatprep.subr.bf16.mxu1 %v21640_v39  ;;  %v2492_v49 = vmax.f32 %v2428_v24, 0.0  ;;  %v2370_v59 = vadd.f32 %v16745_v46, %v16724_v17  ;;  %v2374_v0 = vadd.f32 %v16745_v46, %v16728_v22  ;;  %v21641_v28 = vcombine.low %v16407_v63, %v21636_v42  ;;  %v21643_v17 = vld [vmem:[#allocation54_spill] sm:$0xff]  ;;  %v21646_v22 = vld [vmem:[#allocation56_spill] sm:$0xff] }
 0x3f2   : > { %v21642_v41 = vcombine.low %v21638_v31, %v21639_v14  ;;  %v2487_v61 = vmax.f32 %v2423_v21, 0.0  ;;  %v2491_v38 = vmax.f32 %v2427_v43, 0.0  ;;  %v2369_v7 = vadd.f32 %v16776_v13, %v16732_v3  ;;  %4116 = vmatmul.mubr.bf16.gmra.mrb[56].mxu0 %v16825_v52  ;;  %v21656_v60 = vld [vmem:[#allocation18_spill] sm:$0xff]  ;;  %v21657_v31 = vld [vmem:[#allocation76_spill] sm:$0xff]  ;;  %v21660_v43 = vld [vmem:[#allocation59_spill] sm:$0xff] }
 0x3f3   : > { %4183 = vmatpush1.bf16.msra.mxu0 %v21641_v28  ;;  %v2373_v35 = vadd.f32 %v16776_v13, %v16736_v1  ;;  %v21645_v53 = vcombine.high %v21643_v17, %v21644_v44  ;;  %v21648_v63 = vcombine.high %v21646_v22, %v21647_v19  ;;  %v16919_v10 = vpack.c.bf16 %v2492_v49, %v2488_v32  ;;  %v21658_v39 = vld [vmem:[#allocation20_spill] sm:$0xff]  ;;  %v21659_v21 = vld [vmem:[#allocation58_spill] sm:$0xff] }
 0x3f4   : > { %4409 = vmatpush1.bf16.msra.mxu1 %v21642_v41  ;;  %v2434_v36 = vmax.f32 %v2370_v59, 0.0  ;;  %v2438_v15 = vmax.f32 %v2374_v0, 0.0  ;;  %v2378_v40 = vadd.f32 %v16745_v46, %v16751_v23  ;;  %v16923_v12 = vpack.c.bf16 %v2491_v38, %v2487_v61  ;;  %4125 = vmatprep.mubr.bf16.mxu0 %v16831_v4  ;;  %v21662_v59 = vld [vmem:[#allocation60_spill] sm:$0xff]  ;;  %v21663_v0 = vld [vmem:[#allocation61_spill] sm:$0xff] }
 0x3f5   : > { %4184 = vmatprep.subr.bf16.mxu0 %v21645_v53  ;;  %4410 = vmatprep.subr.bf16.mxu1 %v21648_v63  ;;  %v2433_v3 = vmax.f32 %v2369_v7, 0.0  ;;  %v2437_v55 = vmax.f32 %v2373_v35, 0.0  ;;  %v2382_v1 = vadd.f32 %v16745_v46, %v16755_v2  ;;  %v2377_v45 = vadd.f32 %v16776_v13, %v21649_v62 }
 0x3f6   : > { %4342 = vmatmul.mubr.bf16.gmra.mrb[72].mxu1 %v16825_v52  ;;  %v16929_v56 = vpack.c.bf16 %v2438_v15, %v2434_v36  ;;  %v2442_v25 = vmax.f32 %v2378_v40, 0.0  ;;  %v2381_v23 = vadd.f32 %v16776_v13, %v21650_v57  ;;  %v21651_v5 = vcombine.low %v21643_v17, %v21644_v44  ;;  %v21665_v44 = vld [vmem:[#allocation23_spill] sm:$0xff]  ;;  %v21668_v15 = vld [vmem:[#allocation25_spill] sm:$0xff] }
 0x3f7   : > { %v21652_v2 = vcombine.low %v21646_v22, %v21647_v19  ;;  %v16941_v33 = vpack.c.bf16 %v2437_v55, %v2433_v3  ;;  %v2446_v30 = vmax.f32 %v2382_v1, 0.0  ;;  %v2301_v9 = vmul.f32 %v21654_v26, %v21653_v58  ;;  %4351 = vmatprep.mubr.bf16.mxu1 %v16831_v4  ;;  %v21669_v3 = vld [vmem:[#allocation22_spill] sm:$0xff]  ;;  %v21674_v57 = vld [vmem:[#allocation65_spill] sm:$0xff]  ;;  %v21676_v58 = vld [vmem:[#allocation24_spill] sm:$0xff] }
 0x3f8   : > { %4185 = vmatpush1.bf16.msra.mxu0 %v21651_v5  ;;  %v2305_v47 = vmul.f32 %v21654_v26, %v21655_v48  ;;  %v2441_v24 = vmax.f32 %v2377_v45, 0.0  ;;  %v2445_v42 = vmax.f32 %v2381_v23, 0.0  ;;  %v2300_v14 = vmul.f32 %v21657_v31, %v21656_v60  ;;  %v21670_v1 = vld [vmem:[#allocation62_spill] sm:$0xff]  ;;  %v21673_v45 = vld [vmem:[#allocation64_spill] sm:$0xff] }
 0x3f9   : > { %4411 = vmatpush1.bf16.msra.mxu1 %v21652_v2  ;;  %v2304_v32 = vmul.f32 %v21657_v31, %v21658_v39  ;;  %v21661_v49 = vcombine.high %v21659_v21, %v21660_v43  ;;  %v21664_v28 = vcombine.high %v21662_v59, %v21663_v0  ;;  %v16959_v41 = vpack.c.bf16 %v2446_v30, %v2442_v25  ;;  %v21671_v25 = vld [vmem:[#allocation63_spill] sm:$0xff] }
 0x3fa   : > { %v2386_v61 = vadd.f32 %v16745_v46, %v2301_v9  ;;  %v2390_v38 = vadd.f32 %v16745_v46, %v2305_v47  ;;  %v16963_v7 = vpack.c.bf16 %v2445_v42, %v2441_v24  ;;  %v2385_v35 = vadd.f32 %v16776_v13, %v2300_v14  ;;  %v21677_v42 = vld [vmem:[#allocation27_spill] sm:$0xff]  ;;  %4126 = vmatmul.mubr.bf16.gmra.mrb[60].mxu0 %v16841_v37 }
 0x3fb   : > { %4186 = vmatprep.subr.bf16.mxu0 %v21661_v49  ;;  %4412 = vmatprep.subr.bf16.mxu1 %v21664_v28  ;;  %v2389_v17 = vadd.f32 %v16776_v13, %v2304_v32  ;;  %v2309_v53 = vmul.f32 %v21654_v26, %v21665_v44  ;;  %v21666_v22 = vcombine.low %v21659_v21, %v21660_v43  ;;  %v21678_v21 = vld [vmem:[#allocation29_spill] sm:$0xff] }
 0x3fc   : > { %v21667_v19 = vcombine.low %v21662_v59, %v21663_v0  ;;  %v2450_v63 = vmax.f32 %v2386_v61, 0.0  ;;  %v2454_v36 = vmax.f32 %v2390_v38, 0.0  ;;  %v2313_v40 = vmul.f32 %v21654_v26, %v21668_v15  ;;  %v21681_v38 = vld [vmem:[#allocation26_spill] sm:$0xff]  ;;  %4135 = vmatprep.mubr.bf16.mxu0 %v16851_v54  ;;  %v21685_v15 = vld [vmem:[#allocation67_spill] sm:$0xff] }
 0x3fd   : > { %4187 = vmatpush1.bf16.msra.mxu0 %v21666_v22  ;;  %v2308_v55 = vmul.f32 %v21657_v31, %v21669_v3  ;;  %v21672_v62 = vcombine.high %v21670_v1, %v21671_v25  ;;  %v21675_v23 = vcombine.high %v21673_v45, %v21674_v57  ;;  %v2449_v5 = vmax.f32 %v2385_v35, 0.0  ;;  %v21687_v3 = vld [vmem:[#allocation68_spill] sm:$0xff] }
 0x3fe   : > { %4413 = vmatpush1.bf16.msra.mxu1 %v21667_v19  ;;  %v2453_v2 = vmax.f32 %v2389_v17, 0.0  ;;  %v2394_v30 = vadd.f32 %v16745_v46, %v2309_v53  ;;  %v2312_v9 = vmul.f32 %v21657_v31, %v21676_v58  ;;  %v16988_v48 = vpack.c.bf16 %v2454_v36, %v2450_v63  ;;  %v21682_v53 = vld [vmem:[#allocation28_spill] sm:$0xff]  ;;  %v21683_v19 = vld [vmem:[#allocation31_spill] sm:$0xff]  ;;  %v21684_v36 = vld [vmem:[#allocation66_spill] sm:$0xff] }
 0x3ff   : > { %4188 = vmatprep.subr.bf16.mxu0 %v21672_v62  ;;  %4414 = vmatprep.subr.bf16.mxu1 %v21675_v23  ;;  %v2398_v47 = vadd.f32 %v16745_v46, %v2313_v40  ;;  %v2393_v24 = vadd.f32 %v16776_v13, %v2308_v55  ;;  %v2317_v60 = vmul.f32 %v21654_v26, %v21677_v42  ;;  %v21688_v55 = vld [vmem:[#allocation69_spill] sm:$0xff] }
 0x400   : > { %4352 = vmatmul.mubr.bf16.gmra.mrb[76].mxu1 %v16841_v37  ;;  %v16996_v14 = vpack.c.bf16 %v2453_v2, %v2449_v5  ;;  %v2458_v39 = vmax.f32 %v2394_v30, 0.0  ;;  %v2397_v32 = vadd.f32 %v16776_v13, %v2312_v9  ;;  %v2321_v43 = vmul.f32 %v21654_v26, %v21678_v21 }
 0x401   : > { %v21679_v49 = vcombine.low %v21670_v1, %v21671_v25  ;;  %v21680_v59 = vcombine.low %v21673_v45, %v21674_v57  ;;  %v2462_v0 = vmax.f32 %v2398_v47, 0.0  ;;  %v2457_v28 = vmax.f32 %v2393_v24, 0.0  ;;  %4361 = vmatprep.mubr.bf16.mxu1 %v16851_v54  ;;  %v21690_v57 = vld [vmem:[#allocation33_spill] sm:$0xff] }
 0x402   : > { %v2402_v61 = vadd.f32 %v16745_v46, %v2317_v60  ;;  %v2316_v35 = vmul.f32 %v21657_v31, %v21681_v38  ;;  %v2461_v17 = vmax.f32 %v2397_v32, 0.0  ;;  %v2406_v44 = vadd.f32 %v16745_v46, %v2321_v43  ;;  %v21693_v60 = vld [vmem:[#allocation30_spill] sm:$0xff]  ;;  %v21694_v32 = vld [vmem:[#allocation32_spill] sm:$0xff]  ;;  %4136 = vmatmul.mubr.bf16.gmra.mrb[64].mxu0 %v16857_v16 }
 0x403   : > { %4189 = vmatpush1.bf16.msra.mxu0 %v21679_v49  ;;  %4415 = vmatpush1.bf16.msra.mxu1 %v21680_v59  ;;  %v2320_v22 = vmul.f32 %v21657_v31, %v21682_v53  ;;  %v2325_v63 = vmul.f32 %v21654_v26, %v21683_v19  ;;  %v21686_v40 = vcombine.high %v21684_v36, %v21685_v15  ;;  %v21695_v43 = vld [vmem:[#allocation70_spill] sm:$0xff]  ;;  %v21696_v49 = vld [vmem:[#allocation71_spill] sm:$0xff]  ;;  %v21701_v53 = vld [vmem:[#allocation36_spill] sm:$0xff] }
 0x404   : > { %v21689_v1 = vcombine.high %v21687_v3, %v21688_v55  ;;  %v17023_v25 = vpack.c.bf16 %v2462_v0, %v2458_v39  ;;  %v2466_v62 = vmax.f32 %v2402_v61, 0.0  ;;  %v2401_v45 = vadd.f32 %v16776_v13, %v2316_v35  ;;  %v21698_v0 = vld [vmem:[#allocation72_spill] sm:$0xff]  ;;  %v2735_v38 = vld [vmem:[%s21246_s10 + $0x680] sm:$0xff]  ;;  %4145 = vmatprep.mubr.bf16.mxu0 %v16875_v11 }
 0x405   : > { %4190 = vmatprep.subr.bf16.mxu0 %v21686_v40  ;;  %v2329_v23 = vmul.f32 %v21654_v26, %v21690_v57  ;;  %v17028_v5 = vpack.c.bf16 %v2461_v17, %v2457_v28  ;;  %v2470_v2 = vmax.f32 %v2406_v44, 0.0  ;;  %v2405_v30 = vadd.f32 %v16776_v13, %v2320_v22  ;;  %v21699_v28 = vld [vmem:[#allocation73_spill] sm:$0xff]  ;;  %v2739_v19 = vld [vmem:[%s21246_s10 + $0x6a0] sm:$0xff] }
 0x406   : > { %4416 = vmatprep.subr.bf16.mxu1 %v21689_v1  ;;  %v2410_v58 = vadd.f32 %v16745_v46, %v2325_v63  ;;  %v21691_v9 = vcombine.low %v21684_v36, %v21685_v15  ;;  %v21692_v47 = vcombine.low %v21687_v3, %v21688_v55  ;;  %v2465_v24 = vmax.f32 %v2401_v45, 0.0  ;;  %v2736_v63 = vld [vmem:[%s21246_s10 + $0x688] sm:$0xff]  ;;  %v21704_v45 = vld [vmem:[#allocation78_spill] sm:$0xff] }
 0x407   : > { %v2414_v42 = vadd.f32 %v16745_v46, %v2329_v23  ;;  %v2324_v39 = vmul.f32 %v21657_v31, %v21693_v60  ;;  %v2328_v21 = vmul.f32 %v21657_v31, %v21694_v32  ;;  %v21697_v59 = vcombine.high %v21695_v43, %v21696_v49  ;;  %v2740_v36 = vld [vmem:[%s21246_s10 + $0x6a8] sm:$0xff] }
 0x408   : > { %4191 = vmatpush1.bf16.msra.mxu0 %v21691_v9  ;;  %4417 = vmatpush1.bf16.msra.mxu1 %v21692_v47  ;;  %v21700_v61 = vcombine.high %v21698_v0, %v21699_v28  ;;  %v17052_v35 = vpack.c.bf16 %v2470_v2, %v2466_v62  ;;  %v2469_v17 = vmax.f32 %v2405_v30, 0.0  ;;  %v2474_v44 = vmax.f32 %v2410_v58, 0.0  ;;  %v21702_v55 = vld [vmem:[#allocation39_spill] sm:$0xff] }
 0x409   : > { %4192 = vmatprep.subr.bf16.mxu0 %v21697_v59  ;;  %v2333_v22 = vmul.f32 %v21654_v26, %v21701_v53  ;;  %v2478_v15 = vmax.f32 %v2414_v42, 0.0  ;;  %v2409_v40 = vadd.f32 %v16776_v13, %v2324_v39  ;;  %v2413_v3 = vadd.f32 %v16776_v13, %v2328_v21  ;;  %4362 = vmatmul.mubr.bf16.gmra.mrb[80].mxu1 %v16857_v16  ;;  %v21703_v62 = vld [vmem:[#allocation79_spill] sm:$0xff]  ;;  %v21707_v21 = vld [vmem:[#allocation74_spill] sm:$0xff] }
 0x40a   : > { %4418 = vmatprep.subr.bf16.mxu1 %v21700_v61  ;;  %v2337_v1 = vmul.f32 %v21654_v26, %v21702_v55  ;;  %v12184_v57 = vcombine.low %v21704_v45, %v21703_v62  ;;  %v17073_v23 = vpack.c.bf16 %v2469_v17, %v2465_v24  ;;  %v21705_v30 = vcombine.low %v21695_v43, %v21696_v49  ;;  %v21708_v43 = vld [vmem:[#allocation75_spill] sm:$0xff] }
 0x40b   : > { %v2418_v2 = vadd.f32 %v16745_v46, %v2333_v22  ;;  %v21706_v58 = vcombine.low %v21698_v0, %v21699_v28  ;;  %v17082_v9 = vpack.c.bf16 %v2478_v15, %v2474_v44  ;;  %v2473_v47 = vmax.f32 %v2409_v40, 0.0  ;;  %4371 = vmatprep.mubr.bf16.mxu1 %v16875_v11  ;;  %v2743_v0 = vld [vmem:[%s21246_s10 + $0x6c0] sm:$0xff]  ;;  %v2744_v53 = vld [vmem:[%s21246_s10 + $0x6c8] sm:$0xff]  ;;  %4146 = vmatmul.mubr.bf16.gmra.mrb[68].mxu0 %v16881_v50 }
 0x40c   : > { %4193 = vmatpush1.bf16.msra.mxu0 %v21705_v30  ;;  %v2477_v42 = vmax.f32 %v2413_v3, 0.0  ;;  %v2422_v60 = vadd.f32 %v16745_v46, %v2337_v1  ;;  %v12191_v24 = vcombine.high %v2735_v38, %v2739_v19  ;;  %v12193_v39 = vcombine.high %v2736_v63, %v2740_v36  ;;  %v2747_v44 = vld [vmem:[%s21246_s10 + $0x6e0] sm:$0xff]  ;;  %v2748_v22 = vld [vmem:[%s21246_s10 + $0x6e8] sm:$0xff]  ;;  %4155 = vmatprep.mubr.bf16.mxu0 %v16891_v6 }
 0x40d   : > { %4419 = vmatpush1.bf16.msra.mxu1 %v21706_v58  ;;  %v2482_v32 = vmax.f32 %v2418_v2, 0.0  ;;  %v21709_v49 = vcombine.high %v21707_v21, %v21708_v43  ;;  %v21710_v59 = vcombine.high %v21704_v45, %v21703_v62  ;;  %v12190_v17 = vcombine.low %v2735_v38, %v2739_v19  ;;  %v21711_v15 = vld [vmem:[#allocation35_spill] sm:$0xff]  ;;  %v21712_v3 = vld [vmem:[#allocation38_spill] sm:$0xff] }
 0x40e   : > { %v17096_v28 = vpack.c.bf16 %v2477_v42, %v2473_v47  ;;  %v2486_v61 = vmax.f32 %v2422_v60, 0.0  ;;  %v2332_v40 = vmul.f32 %v21657_v31, %v21711_v15  ;;  %v2336_v55 = vmul.f32 %v21657_v31, %v21712_v3  ;;  %v21714_v62 = vld [vmem:[#allocation43_spill] sm:$0xff]  ;;  %v2751_v2 = vld [vmem:[%s21246_s10 + $0x700] sm:$0xff]  ;;  %v21717_v15 = vld [vmem:[#allocation45_spill] sm:$0xff] }
 0x40f   : > { %4194 = vmatprep.subr.bf16.mxu0 %v21709_v49  ;;  %4420 = vmatprep.subr.bf16.mxu1 %v21710_v59  ;;  %v21713_v38 = vcombine.low %v21707_v21, %v21708_v43  ;;  %v12192_v19 = vcombine.low %v2736_v63, %v2740_v36  ;;  %v2341_v45 = vmul.f32 %v21654_v26, %v21714_v62  ;;  %v21715_v47 = vld [vmem:[#allocation42_spill] sm:$0xff]  ;;  %v2752_v26 = vld [vmem:[%s21246_s10 + $0x708] sm:$0xff]  ;;  %v21716_v59 = vld [vmem:[#allocation41_spill] sm:$0xff] }
 0x410   : > { %v17114_v1 = vpack.c.bf16 %v2486_v61, %v2482_v32  ;;  %v2417_v30 = vadd.f32 %v16776_v13, %v2332_v40  ;;  %v2421_v58 = vadd.f32 %v16776_v13, %v2336_v55  ;;  %v2494_v42 = vmax.f32 %v21715_v47, 0.0  ;;  %v2755_v63 = vld [vmem:[%s21246_s10 + $0x720] sm:$0xff]  ;;  %v2756_v36 = vld [vmem:[%s21246_s10 + $0x728] sm:$0xff] }
 0x411   : > { %4195 = vmatpush1.bf16.msra.mxu0 %v21713_v38  ;;  %4421 = vmatpush1.bf16.msra.mxu1 %v12184_v57  ;;  %v12199_v60 = vcombine.high %v2743_v0, %v2747_v44  ;;  %v12201_v57 = vcombine.high %v2744_v53, %v2748_v22  ;;  %v12200_v43 = vcombine.low %v2744_v53, %v2748_v22  ;;  %v2763_v53 = vld [vmem:[%s21246_s10 + $0x760] sm:$0xff]  ;;  %v2760_v22 = vld [vmem:[%s21246_s10 + $0x748] sm:$0xff] }
 0x412   : > { %4196 = vmatprep.subr.bf16.mxu0 %v12191_v24  ;;  %4422 = vmatprep.subr.bf16.mxu1 %v12193_v39  ;;  %v2426_v24 = vadd.f32 %v16745_v46, %v2341_v45  ;;  %v12198_v39 = vcombine.low %v2743_v0, %v2747_v44  ;;  %v2481_v32 = vmax.f32 %v2417_v30, 0.0  ;;  %v2485_v21 = vmax.f32 %v2421_v58, 0.0  ;;  %v2759_v0 = vld [vmem:[%s21246_s10 + $0x740] sm:$0xff]  ;;  %v2764_v38 = vld [vmem:[%s21246_s10 + $0x768] sm:$0xff] }
 0x413   : > { %4372 = vmatmul.mubr.bf16.gmra.mrb[84].mxu1 %v16881_v50  ;;  %v2340_v61 = vmul.f32 %v21657_v31, %v21716_v59  ;;  %v2344_v40 = vmul.f32 %v21657_v31, %v21717_v15  ;;  %v12207_v46 = vcombine.high %v2751_v2, %v2755_v63  ;;  %v12209_v3 = vcombine.high %v2752_v26, %v2756_v36 }
 0x414   : > { %v2490_v49 = vmax.f32 %v2426_v24, 0.0  ;;  %4381 = vmatprep.mubr.bf16.mxu1 %v16891_v6  ;;  %v17142_v55 = vpack.c.bf16 %v2485_v21, %v2481_v32  ;;  %v12208_v62 = vcombine.low %v2752_v26, %v2756_v36  ;;  %v12215_v58 = vcombine.high %v2759_v0, %v2763_v53  ;;  %4156 = vmatmul.mubr.bf16.gmra.mrb[72].mxu0 %v16897_v29  ;;  %v2779_v32 = vld [vmem:[%s21246_s10 + $0x7e0] sm:$0xff]  ;;  %v2776_v21 = vld [vmem:[%s21246_s10 + $0x7c8] sm:$0xff] }
 0x415   : > { %4197 = vmatpush1.bf16.msra.mxu0 %v12190_v17  ;;  %4423 = vmatpush1.bf16.msra.mxu1 %v12192_v19  ;;  %v2425_v44 = vadd.f32 %v16776_v13, %v2340_v61  ;;  %v2429_v31 = vadd.f32 %v16776_v13, %v2344_v40  ;;  %v12206_v19 = vcombine.low %v2751_v2, %v2755_v63  ;;  %v2767_v13 = vld [vmem:[%s21246_s10 + $0x780] sm:$0xff]  ;;  %v2772_v2 = vld [vmem:[%s21246_s10 + $0x7a8] sm:$0xff]  ;;  %v2529_v61 = vld [vmem:[%s21246_s10 + $0x10] sm:$0xff] }
 0x416   : > { %4198 = vmatprep.subr.bf16.mxu0 %v12199_v60  ;;  %4424 = vmatprep.subr.bf16.mxu1 %v12201_v57  ;;  %v17147_v17 = vpack.c.bf16 %v2494_v42, %v2490_v49  ;;  %v12217_v47 = vcombine.high %v2760_v22, %v2764_v38  ;;  %v2771_v42 = vld [vmem:[%s21246_s10 + $0x7a0] sm:$0xff]  ;;  %v2768_v60 = vld [vmem:[%s21246_s10 + $0x788] sm:$0xff]  ;;  %v12214_v63 = vcombine.low %v2759_v0, %v2763_v53  ;;  %v2534_v0 = vld [vmem:[%s21246_s10 + $0x38] sm:$0xff] }
 0x417   : > { %v2489_v45 = vmax.f32 %v2425_v44, 0.0  ;;  %v2493_v30 = vmax.f32 %v2429_v31, 0.0  ;;  %v12216_v26 = vcombine.low %v2760_v22, %v2764_v38  ;;  %4165 = vmatprep.mubr.bf16.mxu0 %v16919_v10  ;;  %v12223_v36 = vcombine.high %v2767_v13, %v2771_v42  ;;  %v2537_v38 = vld [vmem:[%s21246_s10 + $0x50] sm:$0xff] }
 0x418   : > { %v12225_v24 = vcombine.high %v2768_v60, %v2772_v2  ;;  %v12222_v49 = vcombine.low %v2767_v13, %v2771_v42  ;;  %v12224_v59 = vcombine.low %v2768_v60, %v2772_v2  ;;  %v2549_v60 = vld [vmem:[%s21246_s10 + $0xb0] sm:$0xff]  ;;  %v2546_v2 = vld [vmem:[%s21246_s10 + $0x98] sm:$0xff] }
 0x419   : > { %4199 = vmatpush1.bf16.msra.mxu0 %v12198_v39  ;;  %4425 = vmatpush1.bf16.msra.mxu1 %v12200_v43  ;;  %v17172_v57 = vpack.c.bf16 %v2493_v30, %v2489_v45  ;;  %v2775_v39 = vld [vmem:[%s21246_s10 + $0x7c0] sm:$0xff]  ;;  %v2780_v43 = vld [vmem:[%s21246_s10 + $0x7e8] sm:$0xff]  ;;  %v2542_v45 = vld [vmem:[%s21246_s10 + $0x78] sm:$0xff] }
 0x41a   : > { %4200 = vmatprep.subr.bf16.mxu0 %v12207_v46  ;;  %4426 = vmatprep.subr.bf16.mxu1 %v12209_v3  ;;  %v12231_v15 = vcombine.high %v2775_v39, %v2779_v32  ;;  %v12233_v40 = vcombine.high %v2776_v21, %v2780_v43  ;;  %v2533_v46 = vld [vmem:[%s21246_s10 + $0x30] sm:$0xff]  ;;  %v2530_v3 = vld [vmem:[%s21246_s10 + $0x18] sm:$0xff]  ;;  %v12230_v44 = vcombine.low %v2775_v39, %v2779_v32 }
 0x41b   : > { %4382 = vmatmul.mubr.bf16.gmra.mrb[88].mxu1 %v16897_v29  ;;  %v12232_v31 = vcombine.low %v2776_v21, %v2780_v43  ;;  %v11987_v53 = vcombine.high %v2529_v61, %v2533_v46  ;;  %v11989_v22 = vcombine.high %v2530_v3, %v2534_v0  ;;  %v11986_v30 = vcombine.low %v2529_v61, %v2533_v46  ;;  %v2553_v32 = vld [vmem:[%s21246_s10 + $0xd0] sm:$0xff]  ;;  %v2554_v43 = vld [vmem:[%s21246_s10 + $0xd8] sm:$0xff] }
 0x41c   : > { %4391 = vmatprep.mubr.bf16.mxu1 %v16919_v10  ;;  %4166 = vmatmul.mubr.bf16.gmra.mrb[76].mxu0 %v16923_v12  ;;  %v11988_v13 = vcombine.low %v2530_v3, %v2534_v0  ;;  %v2557_v21 = vld [vmem:[%s21246_s10 + $0xf0] sm:$0xff]  ;;  %v2562_v0 = vld [vmem:[%s21246_s10 + $0x118] sm:$0xff] }
 0x41d   : > { %4201 = vmatpush1.bf16.msra.mxu0 %v12206_v19  ;;  %4427 = vmatpush1.bf16.msra.mxu1 %v12208_v62  ;;  %v2541_v19 = vld [vmem:[%s21246_s10 + $0x70] sm:$0xff]  ;;  %v2538_v62 = vld [vmem:[%s21246_s10 + $0x58] sm:$0xff] }
 0x41e   : > { %4202 = vmatprep.subr.bf16.mxu0 %v12215_v58  ;;  %4428 = vmatprep.subr.bf16.mxu1 %v12217_v47  ;;  %v2545_v58 = vld [vmem:[%s21246_s10 + $0x90] sm:$0xff]  ;;  %v11995_v47 = vcombine.high %v2537_v38, %v2541_v19  ;;  %v11997_v42 = vcombine.high %v2538_v62, %v2542_v45 }
 0x41f   : > { %4208 = vmatprep.mubr.bf16.mxu0 %v16929_v56  ;;  %v2565_v3 = vld [vmem:[%s21246_s10 + $0x130] sm:$0xff] }
 0x421   : > { %4203 = vmatpush1.bf16.msra.mxu0 %v12214_v63  ;;  %4429 = vmatpush1.bf16.msra.mxu1 %v12216_v26  ;;  %v2550_v63 = vld [vmem:[%s21246_s10 + $0xb8] sm:$0xff]  ;;  %v11994_v26 = vcombine.low %v2537_v38, %v2541_v19  ;;  %v2569_v19 = vld [vmem:[%s21246_s10 + $0x150] sm:$0xff] }
 0x422   : > { %4204 = vmatprep.subr.bf16.mxu0 %v12223_v36  ;;  %4430 = vmatprep.subr.bf16.mxu1 %v12225_v24  ;;  %v11996_v36 = vcombine.low %v2538_v62, %v2542_v45  ;;  %v12003_v24 = vcombine.high %v2545_v58, %v2549_v60  ;;  %v12005_v39 = vcombine.high %v2546_v2, %v2550_v63  ;;  %v2573_v62 = vld [vmem:[%s21246_s10 + $0x170] sm:$0xff]  ;;  %v2570_v45 = vld [vmem:[%s21246_s10 + $0x158] sm:$0xff] }
 0x423   : > { %4392 = vmatmul.mubr.bf16.gmra.mrb[92].mxu1 %v16923_v12  ;;  %v12004_v61 = vcombine.low %v2546_v2, %v2550_v63  ;;  %v2581_v2 = vld [vmem:[%s21246_s10 + $0x1b0] sm:$0xff]  ;;  %v2578_v63 = vld [vmem:[%s21246_s10 + $0x198] sm:$0xff] }
 0x424   : > { %4434 = vmatprep.mubr.bf16.mxu1 %v16929_v56 }
 0x425   : > { %4205 = vmatpush1.bf16.msra.mxu0 %v12222_v49  ;;  %4431 = vmatpush1.bf16.msra.mxu1 %v12224_v59  ;;  %v2558_v49 = vld [vmem:[%s21246_s10 + $0xf8] sm:$0xff]  ;;  %v12002_v59 = vcombine.low %v2545_v58, %v2549_v60 }
 0x426   : > { %4206 = vmatprep.subr.bf16.mxu0 %v12231_v15  ;;  %4432 = vmatprep.subr.bf16.mxu1 %v12233_v40  ;;  %v2561_v15 = vld [vmem:[%s21246_s10 + $0x110] sm:$0xff]  ;;  %v12011_v40 = vcombine.high %v2553_v32, %v2557_v21  ;;  %v12013_v46 = vcombine.high %v2554_v43, %v2558_v49 }
 0x429   : > { %4207 = vmatpush1.bf16.msra.mxu0 %v12230_v44  ;;  %4433 = vmatpush1.bf16.msra.mxu1 %v12232_v31  ;;  %v2566_v44 = vld [vmem:[%s21246_s10 + $0x138] sm:$0xff]  ;;  %v12010_v31 = vcombine.low %v2553_v32, %v2557_v21  ;;  %v2585_v21 = vld [vmem:[%s21246_s10 + $0x1d0] sm:$0xff] }
 0x42a   : > { %4515 = vmatprep.subr.bf16.mxu0 %v11987_v53  ;;  %4741 = vmatprep.subr.bf16.mxu1 %v11989_v22  ;;  %v12012_v53 = vcombine.low %v2554_v43, %v2558_v49  ;;  %v12019_v22 = vcombine.high %v2561_v15, %v2565_v3  ;;  %v12021_v38 = vcombine.high %v2562_v0, %v2566_v44  ;;  %v2589_v43 = vld [vmem:[%s21246_s10 + $0x1f0] sm:$0xff]  ;;  %v2586_v49 = vld [vmem:[%s21246_s10 + $0x1d8] sm:$0xff] }
 0x42b   : > { %v12020_v58 = vcombine.low %v2562_v0, %v2566_v44  ;;  %v2597_v0 = vld [vmem:[%s21246_s10 + $0x230] sm:$0xff]  ;;  %v2594_v44 = vld [vmem:[%s21246_s10 + $0x218] sm:$0xff] }
 0x42c   : > { %4209 = vmatmul.mubr.bf16.vlgmr.msra.gmra.mrb[48].mxu0 %v16941_v33  ;;  %4435 = vmatmul.mubr.bf16.vlgmr.msra.gmra.mrb[64].mxu1 %v16941_v33 }
 0x42d   : > { %4516 = vmatpush1.bf16.msra.mxu0 %v11986_v30  ;;  %4742 = vmatpush1.bf16.msra.mxu1 %v11988_v13  ;;  %v2574_v30 = vld [vmem:[%s21246_s10 + $0x178] sm:$0xff]  ;;  %v12018_v13 = vcombine.low %v2561_v15, %v2565_v3 }
 0x42e   : > { %4218 = vmatprep.mubr.bf16.mxu0 %v16959_v41  ;;  %4444 = vmatprep.mubr.bf16.mxu1 %v16959_v41  ;;  %v12029_v60 = vcombine.high %v2570_v45, %v2574_v30 }
 0x42f   : > { %4517 = vmatprep.subr.bf16.mxu0 %v11995_v47  ;;  %4743 = vmatprep.subr.bf16.mxu1 %v11997_v42  ;;  %v2577_v47 = vld [vmem:[%s21246_s10 + $0x190] sm:$0xff]  ;;  %v12027_v42 = vcombine.high %v2569_v19, %v2573_v62 }
 0x431   : > { %4518 = vmatpush1.bf16.msra.mxu0 %v11994_v26  ;;  %4744 = vmatpush1.bf16.msra.mxu1 %v11996_v36  ;;  %v2582_v26 = vld [vmem:[%s21246_s10 + $0x1b8] sm:$0xff]  ;;  %v12026_v36 = vcombine.low %v2569_v19, %v2573_v62  ;;  %v2601_v62 = vld [vmem:[%s21246_s10 + $0x250] sm:$0xff] }
 0x432   : > { %4519 = vmatprep.subr.bf16.mxu0 %v12003_v24  ;;  %4745 = vmatprep.subr.bf16.mxu1 %v12005_v39  ;;  %v12028_v24 = vcombine.low %v2570_v45, %v2574_v30  ;;  %v12035_v39 = vcombine.high %v2577_v47, %v2581_v2  ;;  %v12037_v32 = vcombine.high %v2578_v63, %v2582_v26  ;;  %v2605_v45 = vld [vmem:[%s21246_s10 + $0x270] sm:$0xff]  ;;  %v2602_v30 = vld [vmem:[%s21246_s10 + $0x258] sm:$0xff] }
 0x433   : > { %v12036_v15 = vcombine.low %v2578_v63, %v2582_v26  ;;  %v2613_v63 = vld [vmem:[%s21246_s10 + $0x2b0] sm:$0xff]  ;;  %v2610_v26 = vld [vmem:[%s21246_s10 + $0x298] sm:$0xff] }
 0x434   : > { %4219 = vmatmul.mubr.bf16.gmra.mrb[52].mxu0 %v16963_v7  ;;  %4445 = vmatmul.mubr.bf16.gmra.mrb[68].mxu1 %v16963_v7 }
 0x435   : > { %4520 = vmatpush1.bf16.msra.mxu0 %v12002_v59  ;;  %4746 = vmatpush1.bf16.msra.mxu1 %v12004_v61  ;;  %v2590_v59 = vld [vmem:[%s21246_s10 + $0x1f8] sm:$0xff]  ;;  %v12034_v61 = vcombine.low %v2577_v47, %v2581_v2 }
 0x436   : > { %4228 = vmatprep.mubr.bf16.mxu0 %v16988_v48  ;;  %4454 = vmatprep.mubr.bf16.mxu1 %v16988_v48  ;;  %v12045_v3 = vcombine.high %v2586_v49, %v2590_v59 }
 0x437   : > { %4521 = vmatprep.subr.bf16.mxu0 %v12011_v40  ;;  %4747 = vmatprep.subr.bf16.mxu1 %v12013_v46  ;;  %v2593_v40 = vld [vmem:[%s21246_s10 + $0x210] sm:$0xff]  ;;  %v12043_v46 = vcombine.high %v2585_v21, %v2589_v43 }
 0x439   : > { %4522 = vmatpush1.bf16.msra.mxu0 %v12010_v31  ;;  %4748 = vmatpush1.bf16.msra.mxu1 %v12012_v53  ;;  %v2598_v31 = vld [vmem:[%s21246_s10 + $0x238] sm:$0xff]  ;;  %v12042_v53 = vcombine.low %v2585_v21, %v2589_v43  ;;  %v2617_v43 = vld [vmem:[%s21246_s10 + $0x2d0] sm:$0xff] }
 0x43a   : > { %4523 = vmatprep.subr.bf16.mxu0 %v12019_v22  ;;  %4749 = vmatprep.subr.bf16.mxu1 %v12021_v38  ;;  %v12044_v22 = vcombine.low %v2586_v49, %v2590_v59  ;;  %v12051_v38 = vcombine.high %v2593_v40, %v2597_v0  ;;  %v12053_v19 = vcombine.high %v2594_v44, %v2598_v31  ;;  %v2621_v49 = vld [vmem:[%s21246_s10 + $0x2f0] sm:$0xff]  ;;  %v2618_v59 = vld [vmem:[%s21246_s10 + $0x2d8] sm:$0xff] }
 0x43b   : > { %v12052_v47 = vcombine.low %v2594_v44, %v2598_v31  ;;  %v2629_v44 = vld [vmem:[%s21246_s10 + $0x330] sm:$0xff]  ;;  %v2626_v31 = vld [vmem:[%s21246_s10 + $0x318] sm:$0xff] }
 0x43c   : > { %4229 = vmatmul.mubr.bf16.gmra.mrb[56].mxu0 %v16996_v14  ;;  %4455 = vmatmul.mubr.bf16.gmra.mrb[72].mxu1 %v16996_v14 }
 0x43d   : > { %4524 = vmatpush1.bf16.msra.mxu0 %v12018_v13  ;;  %4750 = vmatpush1.bf16.msra.mxu1 %v12020_v58  ;;  %v2606_v13 = vld [vmem:[%s21246_s10 + $0x278] sm:$0xff]  ;;  %v12050_v58 = vcombine.low %v2593_v40, %v2597_v0 }
 0x43e   : > { %4238 = vmatprep.mubr.bf16.mxu0 %v17023_v25  ;;  %4464 = vmatprep.mubr.bf16.mxu1 %v17023_v25  ;;  %v12061_v2 = vcombine.high %v2602_v30, %v2606_v13 }
 0x43f   : > { %4525 = vmatprep.subr.bf16.mxu0 %v12027_v42  ;;  %4751 = vmatprep.subr.bf16.mxu1 %v12029_v60  ;;  %v2609_v42 = vld [vmem:[%s21246_s10 + $0x290] sm:$0xff]  ;;  %v12059_v60 = vcombine.high %v2601_v62, %v2605_v45 }
 0x441   : > { %4526 = vmatpush1.bf16.msra.mxu0 %v12026_v36  ;;  %4752 = vmatpush1.bf16.msra.mxu1 %v12028_v24  ;;  %v2614_v36 = vld [vmem:[%s21246_s10 + $0x2b8] sm:$0xff]  ;;  %v12058_v24 = vcombine.low %v2601_v62, %v2605_v45  ;;  %v2633_v45 = vld [vmem:[%s21246_s10 + $0x350] sm:$0xff] }
 0x442   : > { %4527 = vmatprep.subr.bf16.mxu0 %v12035_v39  ;;  %4753 = vmatprep.subr.bf16.mxu1 %v12037_v32  ;;  %v12060_v39 = vcombine.low %v2602_v30, %v2606_v13  ;;  %v12067_v32 = vcombine.high %v2609_v42, %v2613_v63  ;;  %v12069_v21 = vcombine.high %v2610_v26, %v2614_v36  ;;  %v2637_v30 = vld [vmem:[%s21246_s10 + $0x370] sm:$0xff]  ;;  %v2634_v13 = vld [vmem:[%s21246_s10 + $0x358] sm:$0xff] }
 0x443   : > { %v12068_v40 = vcombine.low %v2610_v26, %v2614_v36  ;;  %v2645_v26 = vld [vmem:[%s21246_s10 + $0x3b0] sm:$0xff]  ;;  %v2642_v36 = vld [vmem:[%s21246_s10 + $0x398] sm:$0xff] }
 0x444   : > { %4239 = vmatmul.mubr.bf16.gmra.mrb[60].mxu0 %v17028_v5  ;;  %4465 = vmatmul.mubr.bf16.gmra.mrb[76].mxu1 %v17028_v5 }
 0x445   : > { %4528 = vmatpush1.bf16.msra.mxu0 %v12034_v61  ;;  %4754 = vmatpush1.bf16.msra.mxu1 %v12036_v15  ;;  %v2622_v61 = vld [vmem:[%s21246_s10 + $0x2f8] sm:$0xff]  ;;  %v12066_v15 = vcombine.low %v2609_v42, %v2613_v63 }
 0x446   : > { %4248 = vmatprep.mubr.bf16.mxu0 %v17052_v35  ;;  %4474 = vmatprep.mubr.bf16.mxu1 %v17052_v35  ;;  %v12077_v0 = vcombine.high %v2618_v59, %v2622_v61 }
 0x447   : > { %4529 = vmatprep.subr.bf16.mxu0 %v12043_v46  ;;  %4755 = vmatprep.subr.bf16.mxu1 %v12045_v3  ;;  %v2625_v46 = vld [vmem:[%s21246_s10 + $0x310] sm:$0xff]  ;;  %v12075_v3 = vcombine.high %v2617_v43, %v2621_v49 }
 0x449   : > { %4530 = vmatpush1.bf16.msra.mxu0 %v12042_v53  ;;  %4756 = vmatpush1.bf16.msra.mxu1 %v12044_v22  ;;  %v2630_v53 = vld [vmem:[%s21246_s10 + $0x338] sm:$0xff]  ;;  %v12074_v22 = vcombine.low %v2617_v43, %v2621_v49  ;;  %v2649_v49 = vld [vmem:[%s21246_s10 + $0x3d0] sm:$0xff] }
 0x44a   : > { %4531 = vmatprep.subr.bf16.mxu0 %v12051_v38  ;;  %4757 = vmatprep.subr.bf16.mxu1 %v12053_v19  ;;  %v12076_v38 = vcombine.low %v2618_v59, %v2622_v61  ;;  %v12083_v19 = vcombine.high %v2625_v46, %v2629_v44  ;;  %v12085_v62 = vcombine.high %v2626_v31, %v2630_v53  ;;  %v2653_v59 = vld [vmem:[%s21246_s10 + $0x3f0] sm:$0xff]  ;;  %v2650_v61 = vld [vmem:[%s21246_s10 + $0x3d8] sm:$0xff] }
 0x44b   : > { %v12084_v42 = vcombine.low %v2626_v31, %v2630_v53  ;;  %v2661_v31 = vld [vmem:[%s21246_s10 + $0x430] sm:$0xff]  ;;  %v2658_v53 = vld [vmem:[%s21246_s10 + $0x418] sm:$0xff] }
 0x44c   : > { %4249 = vmatmul.mubr.bf16.gmra.mrb[64].mxu0 %v17073_v23  ;;  %4475 = vmatmul.mubr.bf16.gmra.mrb[80].mxu1 %v17073_v23 }
 0x44d   : > { %4532 = vmatpush1.bf16.msra.mxu0 %v12050_v58  ;;  %4758 = vmatpush1.bf16.msra.mxu1 %v12052_v47  ;;  %v2638_v58 = vld [vmem:[%s21246_s10 + $0x378] sm:$0xff]  ;;  %v12082_v47 = vcombine.low %v2625_v46, %v2629_v44 }
 0x44e   : > { %4258 = vmatprep.mubr.bf16.mxu0 %v17082_v9  ;;  %4484 = vmatprep.mubr.bf16.mxu1 %v17082_v9  ;;  %v12093_v63 = vcombine.high %v2634_v13, %v2638_v58 }
 0x44f   : > { %4533 = vmatprep.subr.bf16.mxu0 %v12059_v60  ;;  %4759 = vmatprep.subr.bf16.mxu1 %v12061_v2  ;;  %v2641_v60 = vld [vmem:[%s21246_s10 + $0x390] sm:$0xff]  ;;  %v12091_v2 = vcombine.high %v2633_v45, %v2637_v30 }
 0x451   : > { %4534 = vmatpush1.bf16.msra.mxu0 %v12058_v24  ;;  %4760 = vmatpush1.bf16.msra.mxu1 %v12060_v39  ;;  %v2646_v24 = vld [vmem:[%s21246_s10 + $0x3b8] sm:$0xff]  ;;  %v12090_v39 = vcombine.low %v2633_v45, %v2637_v30  ;;  %v2665_v30 = vld [vmem:[%s21246_s10 + $0x450] sm:$0xff] }
 0x452   : > { %4535 = vmatprep.subr.bf16.mxu0 %v12067_v32  ;;  %4761 = vmatprep.subr.bf16.mxu1 %v12069_v21  ;;  %v12092_v32 = vcombine.low %v2634_v13, %v2638_v58  ;;  %v12099_v21 = vcombine.high %v2641_v60, %v2645_v26  ;;  %v12101_v43 = vcombine.high %v2642_v36, %v2646_v24  ;;  %v2669_v13 = vld [vmem:[%s21246_s10 + $0x470] sm:$0xff]  ;;  %v2666_v58 = vld [vmem:[%s21246_s10 + $0x458] sm:$0xff] }
 0x453   : > { %v12100_v46 = vcombine.low %v2642_v36, %v2646_v24  ;;  %v2674_v36 = vld [vmem:[%s21246_s10 + $0x498] sm:$0xff] }
 0x454   : > { %4259 = vmatmul.mubr.bf16.gmra.mrb[68].mxu0 %v17096_v28  ;;  %4485 = vmatmul.mubr.bf16.gmra.mrb[84].mxu1 %v17096_v28  ;;  %v2678_v24 = vld [vmem:[%s21246_s10 + $0x4b8] sm:$0xff] }
 0x455   : > { %4536 = vmatpush1.bf16.msra.mxu0 %v12066_v15  ;;  %4762 = vmatpush1.bf16.msra.mxu1 %v12068_v40  ;;  %v2654_v15 = vld [vmem:[%s21246_s10 + $0x3f8] sm:$0xff]  ;;  %v12098_v40 = vcombine.low %v2641_v60, %v2645_v26  ;;  %v2673_v60 = vld [vmem:[%s21246_s10 + $0x490] sm:$0xff] }
 0x456   : > { %4268 = vmatprep.mubr.bf16.mxu0 %v17114_v1  ;;  %4494 = vmatprep.mubr.bf16.mxu1 %v17114_v1  ;;  %v12109_v44 = vcombine.high %v2650_v61, %v2654_v15  ;;  %v2677_v26 = vld [vmem:[%s21246_s10 + $0x4b0] sm:$0xff] }
 0x457   : > { %4537 = vmatprep.subr.bf16.mxu0 %v12075_v3  ;;  %4763 = vmatprep.subr.bf16.mxu1 %v12077_v0  ;;  %v2657_v3 = vld [vmem:[%s21246_s10 + $0x410] sm:$0xff]  ;;  %v12107_v0 = vcombine.high %v2649_v49, %v2653_v59 }
 0x459   : > { %4538 = vmatpush1.bf16.msra.mxu0 %v12074_v22  ;;  %4764 = vmatpush1.bf16.msra.mxu1 %v12076_v38  ;;  %v2662_v22 = vld [vmem:[%s21246_s10 + $0x438] sm:$0xff]  ;;  %v12106_v38 = vcombine.low %v2649_v49, %v2653_v59  ;;  %v2681_v49 = vld [vmem:[%s21246_s10 + $0x4d0] sm:$0xff] }
 0x45a   : > { %4539 = vmatprep.subr.bf16.mxu0 %v12083_v19  ;;  %4765 = vmatprep.subr.bf16.mxu1 %v12085_v62  ;;  %v12108_v19 = vcombine.low %v2650_v61, %v2654_v15  ;;  %v12115_v62 = vcombine.high %v2657_v3, %v2661_v31  ;;  %v12117_v45 = vcombine.high %v2658_v53, %v2662_v22  ;;  %v2682_v59 = vld [vmem:[%s21246_s10 + $0x4d8] sm:$0xff] }
 0x45b   : > { %v12130_v61 = vcombine.low %v2673_v60, %v2677_v26  ;;  %v12132_v15 = vcombine.low %v2674_v36, %v2678_v24 }
 0x45c   : > { %4269 = vmatmul.mubr.bf16.gmra.mrb[72].mxu0 %v17142_v55  ;;  %4495 = vmatmul.mubr.bf16.gmra.mrb[88].mxu1 %v17142_v55 }
 0x45d   : > { %4540 = vmatpush1.bf16.msra.mxu0 %v12082_v47  ;;  %4766 = vmatpush1.bf16.msra.mxu1 %v12084_v42  ;;  %v12114_v47 = vcombine.low %v2657_v3, %v2661_v31  ;;  %v12116_v42 = vcombine.low %v2658_v53, %v2662_v22  ;;  %v2694_v31 = vld [vmem:[%s21246_s10 + $0x538] sm:$0xff] }
 0x45e   : > { %4278 = vmatprep.mubr.bf16.mxu0 %v17147_v17  ;;  %4504 = vmatprep.mubr.bf16.mxu1 %v17147_v17 }
 0x45f   : > { %4541 = vmatprep.subr.bf16.mxu0 %v12091_v2  ;;  %4767 = vmatprep.subr.bf16.mxu1 %v12093_v63  ;;  %v12123_v2 = vcombine.high %v2665_v30, %v2669_v13 }
 0x461   : > { %4542 = vmatpush1.bf16.msra.mxu0 %v12090_v39  ;;  %4768 = vmatpush1.bf16.msra.mxu1 %v12092_v32  ;;  %v12122_v39 = vcombine.low %v2665_v30, %v2669_v13 }
 0x462   : > { %4543 = vmatprep.subr.bf16.mxu0 %v12099_v21  ;;  %4769 = vmatprep.subr.bf16.mxu1 %v12101_v43  ;;  %v12131_v21 = vcombine.high %v2673_v60, %v2677_v26  ;;  %v12133_v43 = vcombine.high %v2674_v36, %v2678_v24  ;;  %v2706_v60 = vld [vmem:[%s21246_s10 + $0x598] sm:$0xff] }
 0x464   : > { %4279 = vmatmul.mubr.bf16.gmra.mrb[76].mxu0 %v17172_v57  ;;  %4505 = vmatmul.mubr.bf16.gmra.mrb[92].mxu1 %v17172_v57 }
 0x465   : > { %4544 = vmatpush1.bf16.msra.mxu0 %v12098_v40  ;;  %4770 = vmatpush1.bf16.msra.mxu1 %v12100_v46  ;;  %v2689_v40 = vld [vmem:[%s21246_s10 + $0x510] sm:$0xff] }
 0x466   : > { %4547 = vmatprep.mubr.bf16.mxu0 %v16779_v18  ;;  %4773 = vmatprep.mubr.bf16.mxu1 %v16779_v18  ;;  %v2670_v18 = vld [vmem:[%s21246_s10 + $0x478] sm:$0xff] }
 0x467   : > { %4545 = vmatprep.subr.bf16.mxu0 %v12107_v0  ;;  %4771 = vmatprep.subr.bf16.mxu1 %v12109_v44  ;;  %v12125_v63 = vcombine.high %v2666_v58, %v2670_v18  ;;  %v12124_v32 = vcombine.low %v2666_v58, %v2670_v18  ;;  %v2693_v0 = vld [vmem:[%s21246_s10 + $0x530] sm:$0xff]  ;;  %v2690_v44 = vld [vmem:[%s21246_s10 + $0x518] sm:$0xff] }
 0x468   : > { %v12146_v30 = vcombine.low %v2689_v40, %v2693_v0  ;;  %v12148_v13 = vcombine.low %v2690_v44, %v2694_v31  ;;  %v2705_v58 = vld [vmem:[%s21246_s10 + $0x590] sm:$0xff] }
 0x469   : > { %4546 = vmatpush1.bf16.msra.mxu0 %v12106_v38  ;;  %4772 = vmatpush1.bf16.msra.mxu1 %v12108_v19  ;;  %v12147_v38 = vcombine.high %v2689_v40, %v2693_v0  ;;  %v12149_v19 = vcombine.high %v2690_v44, %v2694_v31  ;;  %v2729_v44 = vld [vmem:[%s21246_s10 + $0x650] sm:$0xff]  ;;  %v2730_v31 = vld [vmem:[%s21246_s10 + $0x658] sm:$0xff] }
 0x46a   : > { %4628 = vmatprep.subr.bf16.mxu0 %v12115_v62  ;;  %4854 = vmatprep.subr.bf16.mxu1 %v12117_v45  ;;  %v2697_v62 = vld [vmem:[%s21246_s10 + $0x550] sm:$0xff]  ;;  %v2698_v45 = vld [vmem:[%s21246_s10 + $0x558] sm:$0xff] }
 0x46c   : > { %4548 = vmatmul.mubr.bf16.vlgmr.msra.gmra.mrb[80].mxu0 %v16783_v8  ;;  %4774 = vmatmul.mubr.bf16.vlgmr.msra.gmra.mrb[96].mxu1 %v16783_v8  ;;  %v2685_v8 = vld [vmem:[%s21246_s10 + $0x4f0] sm:$0xff] }
 0x46d   : > { %4629 = vmatpush1.bf16.msra.mxu0 %v12114_v47  ;;  %4855 = vmatpush1.bf16.msra.mxu1 %v12116_v42  ;;  %v12139_v46 = vcombine.high %v2681_v49, %v2685_v8  ;;  %v12138_v53 = vcombine.low %v2681_v49, %v2685_v8  ;;  %v2709_v42 = vld [vmem:[%s21246_s10 + $0x5b0] sm:$0xff] }
 0x46e   : > { %4557 = vmatprep.mubr.bf16.mxu0 %v16785_v51  ;;  %4783 = vmatprep.mubr.bf16.mxu1 %v16785_v51  ;;  %v2686_v51 = vld [vmem:[%s21246_s10 + $0x4f8] sm:$0xff]  ;;  %v12163_v36 = vcombine.high %v2705_v58, %v2709_v42  ;;  %v2721_v49 = vld [vmem:[%s21246_s10 + $0x610] sm:$0xff] }
 0x46f   : > { %4630 = vmatprep.subr.bf16.mxu0 %v12123_v2  ;;  %4856 = vmatprep.subr.bf16.mxu1 %v12125_v63  ;;  %v12141_v3 = vcombine.high %v2682_v59, %v2686_v51  ;;  %v12140_v22 = vcombine.low %v2682_v59, %v2686_v51  ;;  %v2710_v2 = vld [vmem:[%s21246_s10 + $0x5b8] sm:$0xff]  ;;  %v2725_v51 = vld [vmem:[%s21246_s10 + $0x630] sm:$0xff] }
 0x470   : > { %v12165_v24 = vcombine.high %v2706_v60, %v2710_v2 }
 0x471   : > { %4631 = vmatpush1.bf16.msra.mxu0 %v12122_v39  ;;  %4857 = vmatpush1.bf16.msra.mxu1 %v12124_v32  ;;  %v2713_v39 = vld [vmem:[%s21246_s10 + $0x5d0] sm:$0xff]  ;;  %v2714_v32 = vld [vmem:[%s21246_s10 + $0x5d8] sm:$0xff] }
 0x472   : > { %4632 = vmatprep.subr.bf16.mxu0 %v12131_v21  ;;  %4858 = vmatprep.subr.bf16.mxu1 %v12133_v43  ;;  %v12162_v21 = vcombine.low %v2705_v58, %v2709_v42  ;;  %v12164_v43 = vcombine.low %v2706_v60, %v2710_v2  ;;  %v2746_v42 = vld [vmem:[%s21246_s10 + $0x6d8] sm:$0xff] }
 0x474   : > { %4558 = vmatmul.mubr.bf16.gmra.mrb[84].mxu0 %v16797_v27  ;;  %4784 = vmatmul.mubr.bf16.gmra.mrb[100].mxu1 %v16797_v27  ;;  %v2701_v27 = vld [vmem:[%s21246_s10 + $0x570] sm:$0xff] }
 0x475   : > { %4633 = vmatpush1.bf16.msra.mxu0 %v12130_v61  ;;  %4859 = vmatpush1.bf16.msra.mxu1 %v12132_v15  ;;  %v12155_v18 = vcombine.high %v2697_v62, %v2701_v27  ;;  %v12154_v63 = vcombine.low %v2697_v62, %v2701_v27  ;;  %v2722_v61 = vld [vmem:[%s21246_s10 + $0x618] sm:$0xff]  ;;  %v2741_v27 = vld [vmem:[%s21246_s10 + $0x6b0] sm:$0xff] }
 0x476   : > { %4567 = vmatprep.mubr.bf16.mxu0 %v16809_v20  ;;  %4793 = vmatprep.mubr.bf16.mxu1 %v16809_v20  ;;  %v2702_v20 = vld [vmem:[%s21246_s10 + $0x578] sm:$0xff] }
 0x477   : > { %4634 = vmatprep.subr.bf16.mxu0 %v12139_v46  ;;  %4860 = vmatprep.subr.bf16.mxu1 %v12141_v3  ;;  %v12157_v47 = vcombine.high %v2698_v45, %v2702_v20  ;;  %v12156_v26 = vcombine.low %v2698_v45, %v2702_v20  ;;  %v2726_v15 = vld [vmem:[%s21246_s10 + $0x638] sm:$0xff]  ;;  %v12179_v3 = vcombine.high %v2721_v49, %v2725_v51 }
 0x478   : > { %v12181_v0 = vcombine.high %v2722_v61, %v2726_v15  ;;  %v2738_v45 = vld [vmem:[%s21246_s10 + $0x698] sm:$0xff] }
 0x479   : > { %4635 = vmatpush1.bf16.msra.mxu0 %v12138_v53  ;;  %4861 = vmatpush1.bf16.msra.mxu1 %v12140_v22  ;;  %v12178_v53 = vcombine.low %v2721_v49, %v2725_v51  ;;  %v12180_v22 = vcombine.low %v2722_v61, %v2726_v15  ;;  %v2742_v20 = vld [vmem:[%s21246_s10 + $0x6b8] sm:$0xff]  ;;  %v2761_v49 = vld [vmem:[%s21246_s10 + $0x750] sm:$0xff] }
 0x47a   : > { %4636 = vmatprep.subr.bf16.mxu0 %v12147_v38  ;;  %4862 = vmatprep.subr.bf16.mxu1 %v12149_v19  ;;  %v2737_v38 = vld [vmem:[%s21246_s10 + $0x690] sm:$0xff]  ;;  %v12196_v2 = vcombine.low %v2738_v45, %v2742_v20 }
 0x47b   : > { %v12195_v58 = vcombine.high %v2737_v38, %v2741_v27  ;;  %v12194_v60 = vcombine.low %v2737_v38, %v2741_v27  ;;  %v2769_v61 = vld [vmem:[%s21246_s10 + $0x790] sm:$0xff] }
 0x47c   : > { %4568 = vmatmul.mubr.bf16.gmra.mrb[88].mxu0 %v16825_v52  ;;  %4794 = vmatmul.mubr.bf16.gmra.mrb[104].mxu1 %v16825_v52  ;;  %v2717_v52 = vld [vmem:[%s21246_s10 + $0x5f0] sm:$0xff] }
 0x47d   : > { %4637 = vmatpush1.bf16.msra.mxu0 %v12146_v30  ;;  %4863 = vmatpush1.bf16.msra.mxu1 %v12148_v13  ;;  %v12171_v8 = vcombine.high %v2713_v39, %v2717_v52  ;;  %v12170_v40 = vcombine.low %v2713_v39, %v2717_v52  ;;  %v2754_v39 = vld [vmem:[%s21246_s10 + $0x718] sm:$0xff] }
 0x47e   : > { %4577 = vmatprep.mubr.bf16.mxu0 %v16831_v4  ;;  %4803 = vmatprep.mubr.bf16.mxu1 %v16831_v4  ;;  %v2718_v4 = vld [vmem:[%s21246_s10 + $0x5f8] sm:$0xff] }
 0x47f   : > { %4638 = vmatprep.subr.bf16.mxu0 %v12155_v18  ;;  %4864 = vmatprep.subr.bf16.mxu1 %v12157_v47  ;;  %v12173_v59 = vcombine.high %v2714_v32, %v2718_v4  ;;  %v12172_v46 = vcombine.low %v2714_v32, %v2718_v4  ;;  %v12197_v18 = vcombine.high %v2738_v45, %v2742_v20  ;;  %v2745_v47 = vld [vmem:[%s21246_s10 + $0x6d0] sm:$0xff]  ;;  %v2758_v52 = vld [vmem:[%s21246_s10 + $0x738] sm:$0xff] }
 0x480   : > { %v12212_v51 = vcombine.low %v2754_v39, %v2758_v52 }
 0x481   : > { %4639 = vmatpush1.bf16.msra.mxu0 %v12154_v63  ;;  %4865 = vmatpush1.bf16.msra.mxu1 %v12156_v26  ;;  %v2753_v63 = vld [vmem:[%s21246_s10 + $0x710] sm:$0xff] }
 0x482   : > { %4640 = vmatprep.subr.bf16.mxu0 %v12163_v36  ;;  %4866 = vmatprep.subr.bf16.mxu1 %v12165_v24  ;;  %v2757_v24 = vld [vmem:[%s21246_s10 + $0x730] sm:$0xff] }
 0x484   : > { %4578 = vmatmul.mubr.bf16.gmra.mrb[92].mxu0 %v16841_v37  ;;  %4804 = vmatmul.mubr.bf16.gmra.mrb[108].mxu1 %v16841_v37  ;;  %v2733_v37 = vld [vmem:[%s21246_s10 + $0x670] sm:$0xff] }
 0x485   : > { %4641 = vmatpush1.bf16.msra.mxu0 %v12162_v21  ;;  %4867 = vmatpush1.bf16.msra.mxu1 %v12164_v43  ;;  %v12187_v19 = vcombine.high %v2729_v44, %v2733_v37  ;;  %v12186_v30 = vcombine.low %v2729_v44, %v2733_v37  ;;  %v12211_v21 = vcombine.high %v2753_v63, %v2757_v24 }
 0x486   : > { %4587 = vmatprep.mubr.bf16.mxu0 %v16851_v54  ;;  %4813 = vmatprep.mubr.bf16.mxu1 %v16851_v54  ;;  %v2734_v54 = vld [vmem:[%s21246_s10 + $0x678] sm:$0xff]  ;;  %v12213_v43 = vcombine.high %v2754_v39, %v2758_v52 }
 0x487   : > { %4642 = vmatprep.subr.bf16.mxu0 %v12171_v8  ;;  %4868 = vmatprep.subr.bf16.mxu1 %v12173_v59  ;;  %v12189_v62 = vcombine.high %v2730_v31, %v2734_v54  ;;  %v12188_v13 = vcombine.low %v2730_v31, %v2734_v54  ;;  %v2762_v8 = vld [vmem:[%s21246_s10 + $0x758] sm:$0xff]  ;;  %v12210_v59 = vcombine.low %v2753_v63, %v2757_v24 }
 0x489   : > { %4643 = vmatpush1.bf16.msra.mxu0 %v12170_v40  ;;  %4869 = vmatpush1.bf16.msra.mxu1 %v12172_v46  ;;  %v2773_v46 = vld [vmem:[%s21246_s10 + $0x7b0] sm:$0xff] }
 0x48a   : > { %4644 = vmatprep.subr.bf16.mxu0 %v12179_v3  ;;  %4870 = vmatprep.subr.bf16.mxu1 %v12181_v0  ;;  %v2770_v3 = vld [vmem:[%s21246_s10 + $0x798] sm:$0xff]  ;;  %v12227_v31 = vcombine.high %v2769_v61, %v2773_v46  ;;  %v12226_v38 = vcombine.low %v2769_v61, %v2773_v46 }
 0x48b   : > { %v2774_v0 = vld [vmem:[%s21246_s10 + $0x7b8] sm:$0xff] }
 0x48c   : > { %4588 = vmatmul.mubr.bf16.gmra.mrb[96].mxu0 %v16857_v16  ;;  %4814 = vmatmul.mubr.bf16.gmra.mrb[112].mxu1 %v16857_v16  ;;  %v2749_v16 = vld [vmem:[%s21246_s10 + $0x6f0] sm:$0xff]  ;;  %v12229_v54 = vcombine.high %v2770_v3, %v2774_v0 }
 0x48d   : > { %4645 = vmatpush1.bf16.msra.mxu0 %v12178_v53  ;;  %4871 = vmatpush1.bf16.msra.mxu1 %v12180_v22  ;;  %v12203_v26 = vcombine.high %v2745_v47, %v2749_v16  ;;  %v12202_v32 = vcombine.low %v2745_v47, %v2749_v16  ;;  %v2777_v53 = vld [vmem:[%s21246_s10 + $0x7d0] sm:$0xff]  ;;  %v2778_v22 = vld [vmem:[%s21246_s10 + $0x7d8] sm:$0xff] }
 0x48e   : > { %4597 = vmatprep.mubr.bf16.mxu0 %v16875_v11  ;;  %4823 = vmatprep.mubr.bf16.mxu1 %v16875_v11  ;;  %v2750_v11 = vld [vmem:[%s21246_s10 + $0x6f8] sm:$0xff] }
 0x48f   : > { %4646 = vmatprep.subr.bf16.mxu0 %v12187_v19  ;;  %4872 = vmatprep.subr.bf16.mxu1 %v12189_v62  ;;  %v12205_v36 = vcombine.high %v2746_v42, %v2750_v11  ;;  %v12204_v4 = vcombine.low %v2746_v42, %v2750_v11  ;;  %v12228_v19 = vcombine.low %v2770_v3, %v2774_v0 }
 0x491   : > { %4647 = vmatpush1.bf16.msra.mxu0 %v12186_v30  ;;  %4873 = vmatpush1.bf16.msra.mxu1 %v12188_v13 }
 0x492   : > { %4648 = vmatprep.subr.bf16.mxu0 %v12195_v58  ;;  %4874 = vmatprep.subr.bf16.mxu1 %v12197_v18 }
 0x494   : > { %4598 = vmatmul.mubr.bf16.gmra.mrb[100].mxu0 %v16881_v50  ;;  %4824 = vmatmul.mubr.bf16.gmra.mrb[116].mxu1 %v16881_v50  ;;  %v2765_v50 = vld [vmem:[%s21246_s10 + $0x770] sm:$0xff] }
 0x495   : > { %4649 = vmatpush1.bf16.msra.mxu0 %v12194_v60  ;;  %4875 = vmatpush1.bf16.msra.mxu1 %v12196_v2  ;;  %v12219_v15 = vcombine.high %v2761_v49, %v2765_v50  ;;  %v12218_v44 = vcombine.low %v2761_v49, %v2765_v50 }
 0x496   : > { %4607 = vmatprep.mubr.bf16.mxu0 %v16891_v6  ;;  %4833 = vmatprep.mubr.bf16.mxu1 %v16891_v6  ;;  %v2766_v6 = vld [vmem:[%s21246_s10 + $0x778] sm:$0xff] }
 0x497   : > { %4650 = vmatprep.subr.bf16.mxu0 %v12203_v26  ;;  %4876 = vmatprep.subr.bf16.mxu1 %v12205_v36  ;;  %v12221_v40 = vcombine.high %v2762_v8, %v2766_v6  ;;  %v12220_v37 = vcombine.low %v2762_v8, %v2766_v6 }
 0x499   : > { %4651 = vmatpush1.bf16.msra.mxu0 %v12202_v32  ;;  %4877 = vmatpush1.bf16.msra.mxu1 %v12204_v4 }
 0x49a   : > { %4652 = vmatprep.subr.bf16.mxu0 %v12211_v21  ;;  %4878 = vmatprep.subr.bf16.mxu1 %v12213_v43 }
 0x49c   : > { %4608 = vmatmul.mubr.bf16.gmra.mrb[104].mxu0 %v16897_v29  ;;  %4834 = vmatmul.mubr.bf16.gmra.mrb[120].mxu1 %v16897_v29  ;;  %v2781_v29 = vld [vmem:[%s21246_s10 + $0x7f0] sm:$0xff] }
 0x49d   : > { %4653 = vmatpush1.bf16.msra.mxu0 %v12210_v59  ;;  %4879 = vmatpush1.bf16.msra.mxu1 %v12212_v51  ;;  %v12235_v62 = vcombine.high %v2777_v53, %v2781_v29  ;;  %v12234_v45 = vcombine.low %v2777_v53, %v2781_v29 }
 0x49e   : > { %4617 = vmatprep.mubr.bf16.mxu0 %v16919_v10  ;;  %4843 = vmatprep.mubr.bf16.mxu1 %v16919_v10  ;;  %v2782_v10 = vld [vmem:[%s21246_s10 + $0x7f8] sm:$0xff] }
 0x49f   : > { %4654 = vmatprep.subr.bf16.mxu0 %v12219_v15  ;;  %4880 = vmatprep.subr.bf16.mxu1 %v12221_v40  ;;  %v12237_v27 = vcombine.high %v2778_v22, %v2782_v10  ;;  %v12236_v20 = vcombine.low %v2778_v22, %v2782_v10 }
 0x4a1   : > { %4655 = vmatpush1.bf16.msra.mxu0 %v12218_v44  ;;  %4881 = vmatpush1.bf16.msra.mxu1 %v12220_v37 }
 0x4a2   : > { %4656 = vmatprep.subr.bf16.mxu0 %v12227_v31  ;;  %4882 = vmatprep.subr.bf16.mxu1 %v12229_v54 }
 0x4a4   : > { %4618 = vmatmul.mubr.bf16.gmra.mrb[108].mxu0 %v16923_v12  ;;  %4844 = vmatmul.mubr.bf16.gmra.mrb[124].mxu1 %v16923_v12 }
 0x4a5   : > { %4657 = vmatpush1.bf16.msra.mxu0 %v12226_v38  ;;  %4883 = vmatpush1.bf16.msra.mxu1 %v12228_v19 }
 0x4a6   : > { %4660 = vmatprep.mubr.bf16.mxu0 %v16929_v56  ;;  %4886 = vmatprep.mubr.bf16.mxu1 %v16929_v56 }
 0x4a7   : > { %4658 = vmatprep.subr.bf16.mxu0 %v12235_v62  ;;  %4884 = vmatprep.subr.bf16.mxu1 %v12237_v27 }
 0x4a9   : > { %4659 = vmatpush1.bf16.msra.mxu0 %v12234_v45  ;;  %4885 = vmatpush1.bf16.msra.mxu1 %v12236_v20 }
 0x4ac   : > { %4661 = vmatmul.mubr.bf16.vlgmr.msra.gmra.mrb[80].mxu0 %v16941_v33  ;;  %4887 = vmatmul.mubr.bf16.vlgmr.msra.gmra.mrb[96].mxu1 %v16941_v33 }
 0x4ad   : > { %4670 = vmatprep.mubr.bf16.mxu0 %v16959_v41  ;;  %4896 = vmatprep.mubr.bf16.mxu1 %v16959_v41 }
 0x4b4   : > { %4671 = vmatmul.mubr.bf16.gmra.mrb[84].mxu0 %v16963_v7  ;;  %4897 = vmatmul.mubr.bf16.gmra.mrb[100].mxu1 %v16963_v7 }
 0x4b5   : > { %4680 = vmatprep.mubr.bf16.mxu0 %v16988_v48  ;;  %4906 = vmatprep.mubr.bf16.mxu1 %v16988_v48 }
 0x4bc   : > { %4681 = vmatmul.mubr.bf16.gmra.mrb[88].mxu0 %v16996_v14  ;;  %4907 = vmatmul.mubr.bf16.gmra.mrb[104].mxu1 %v16996_v14 }
 0x4bd   : > { %4690 = vmatprep.mubr.bf16.mxu0 %v17023_v25  ;;  %4916 = vmatprep.mubr.bf16.mxu1 %v17023_v25 }
 0x4c4   : > { %4691 = vmatmul.mubr.bf16.gmra.mrb[92].mxu0 %v17028_v5  ;;  %4917 = vmatmul.mubr.bf16.gmra.mrb[108].mxu1 %v17028_v5 }
 0x4c5   : > { %4700 = vmatprep.mubr.bf16.mxu0 %v17052_v35  ;;  %4926 = vmatprep.mubr.bf16.mxu1 %v17052_v35 }
 0x4cc   : > { %4701 = vmatmul.mubr.bf16.gmra.mrb[96].mxu0 %v17073_v23  ;;  %4927 = vmatmul.mubr.bf16.gmra.mrb[112].mxu1 %v17073_v23 }
 0x4cd   : > { %4710 = vmatprep.mubr.bf16.mxu0 %v17082_v9  ;;  %4936 = vmatprep.mubr.bf16.mxu1 %v17082_v9 }
 0x4d4   : > { %4711 = vmatmul.mubr.bf16.gmra.mrb[100].mxu0 %v17096_v28  ;;  %4937 = vmatmul.mubr.bf16.gmra.mrb[116].mxu1 %v17096_v28 }
 0x4d5   : > { %4720 = vmatprep.mubr.bf16.mxu0 %v17114_v1  ;;  %4946 = vmatprep.mubr.bf16.mxu1 %v17114_v1 }
 0x4dc   : > { %4721 = vmatmul.mubr.bf16.gmra.mrb[104].mxu0 %v17142_v55  ;;  %4947 = vmatmul.mubr.bf16.gmra.mrb[120].mxu1 %v17142_v55 }
 0x4dd   : > { %4730 = vmatprep.mubr.bf16.mxu0 %v17147_v17  ;;  %4956 = vmatprep.mubr.bf16.mxu1 %v17147_v17 }
 0x4e4   : > { %4731 = vmatmul.mubr.bf16.gmra.mrb[108].mxu0 %v17172_v57  ;;  %4957 = vmatmul.mubr.bf16.gmra.mrb[124].mxu1 %v17172_v57 }
 0x4ff   : > { %v17672_v12 = vpop.f32.mrb[48].mxu0  ;;  %v17674_v56 = vpop.f32.mrb[64].mxu1 }
 0x500   : > { %21718 = vst [vmem:[#allocation46_spill] sm:$0xff] %v17674_v56  ;;  %v17676_v33 = vpop.f32.mrb[49].mxu0  ;;  %v17678_v41 = vpop.f32.mrb[65].mxu1  ;;  %v5143_v7 = vmul.f32 %v17672_v12, %v17672_v12  ;;  %v5145_v48 = vmul.f32 %v17674_v56, %v17674_v56 }
 0x501   : > { %21719 = vst [vmem:[#allocation40_spill] sm:$0xff] %v17678_v41  ;;  %v5144_v14 = vmul.f32 %v17676_v33, %v17676_v33  ;;  %v5146_v25 = vmul.f32 %v17678_v41, %v17678_v41  ;;  %v17688_v5 = vpop.f32.mrb[50].mxu0  ;;  %v17690_v35 = vpop.f32.mrb[66].mxu1 }
 0x502   : > { %21720 = vst [vmem:[#allocation44_spill] sm:$0xff] %v17690_v35  ;;  %v4967_v23 = vadd.f32 %v17688_v5, %v17672_v12  ;;  %v5151_v9 = vmul.f32 %v17688_v5, %v17688_v5  ;;  %v5009_v28 = vadd.f32 %v17690_v35, %v17674_v56  ;;  %v5153_v1 = vmul.f32 %v17690_v35, %v17690_v35  ;;  %v17700_v55 = vpop.f32.mrb[51].mxu0  ;;  %v17702_v17 = vpop.f32.mrb[67].mxu1 }
 0x503   : > { %21721 = vst [vmem:[#allocation8_spill] sm:$0xff] %v17702_v17  ;;  %v4988_v57 = vadd.f32 %v17700_v55, %v17676_v33  ;;  %v5152_v30 = vmul.f32 %v17700_v55, %v17700_v55  ;;  %v5030_v13 = vadd.f32 %v17702_v17, %v17678_v41  ;;  %v5154_v58 = vmul.f32 %v17702_v17, %v17702_v17 }
 0x504   : > { %v5271_v18 = vadd.f32 %v5151_v9, %v5143_v7  ;;  %v5313_v47 = vadd.f32 %v5153_v1, %v5145_v48 }
 0x505   : > { %v5292_v16 = vadd.f32 %v5152_v30, %v5144_v14  ;;  %v5334_v42 = vadd.f32 %v5154_v58, %v5146_v25 }
 0x507   : > { %v17712_v11 = vpop.f32.mrb[52].mxu0  ;;  %v17714_v60 = vpop.f32.mrb[68].mxu1 }
 0x508   : > { %21722 = vst [vmem:[#allocation13_spill] sm:$0xff] %v17714_v60  ;;  %v4968_v2 = vadd.f32 %v4967_v23, %v17712_v11  ;;  %v5159_v63 = vmul.f32 %v17712_v11, %v17712_v11  ;;  %v5010_v26 = vadd.f32 %v5009_v28, %v17714_v60  ;;  %v5161_v36 = vmul.f32 %v17714_v60, %v17714_v60  ;;  %v17722_v24 = vpop.f32.mrb[53].mxu0  ;;  %v17724_v39 = vpop.f32.mrb[69].mxu1 }
 0x509   : > { %21723 = vst [vmem:[#allocation6_spill] sm:$0xff] %v17724_v39  ;;  %v4989_v52 = vadd.f32 %v4988_v57, %v17722_v24  ;;  %v5160_v32 = vmul.f32 %v17722_v24, %v17722_v24  ;;  %v5031_v4 = vadd.f32 %v5030_v13, %v17724_v39  ;;  %v5162_v21 = vmul.f32 %v17724_v39, %v17724_v39  ;;  %v17732_v43 = vpop.f32.mrb[54].mxu0  ;;  %v17734_v49 = vpop.f32.mrb[70].mxu1 }
 0x50a   : > { %21724 = vst [vmem:[#allocation10_spill] sm:$0xff] %v17734_v49  ;;  %v5272_v50 = vadd.f32 %v5271_v18, %v5159_v63  ;;  %v5314_v8 = vadd.f32 %v5313_v47, %v5161_v36  ;;  %v4969_v6 = vadd.f32 %v4968_v2, %v17732_v43  ;;  %v5167_v59 = vmul.f32 %v17732_v43, %v17732_v43  ;;  %v17739_v51 = vpop.f32.mrb[55].mxu0  ;;  %v17741_v61 = vpop.f32.mrb[71].mxu1 }
 0x50b   : > { %21725 = vst [vmem:[#allocation15_spill] sm:$0xff] %v17741_v61  ;;  %v5293_v15 = vadd.f32 %v5292_v16, %v5160_v32  ;;  %v5335_v40 = vadd.f32 %v5334_v42, %v5162_v21  ;;  %v5011_v46 = vadd.f32 %v5010_v26, %v17734_v49  ;;  %v5169_v3 = vmul.f32 %v17734_v49, %v17734_v49 }
 0x50c   : > { %v5273_v0 = vadd.f32 %v5272_v50, %v5167_v59  ;;  %v4990_v44 = vadd.f32 %v4989_v52, %v17739_v51  ;;  %v5168_v37 = vmul.f32 %v17739_v51, %v17739_v51  ;;  %v5032_v31 = vadd.f32 %v5031_v4, %v17741_v61 }
 0x50d   : > { %v5315_v54 = vadd.f32 %v5314_v8, %v5169_v3  ;;  %v5170_v53 = vmul.f32 %v17741_v61, %v17741_v61 }
 0x50e   : > { %v5294_v29 = vadd.f32 %v5293_v15, %v5168_v37 }
 0x50f   : > { %v5336_v22 = vadd.f32 %v5335_v40, %v5170_v53  ;;  %v17752_v10 = vpop.f32.mrb[56].mxu0  ;;  %v17754_v38 = vpop.f32.mrb[72].mxu1 }
 0x510   : > { %21726 = vst [vmem:[#allocation17_spill] sm:$0xff] %v17754_v38  ;;  %v4970_v19 = vadd.f32 %v4969_v6, %v17752_v10  ;;  %v5175_v62 = vmul.f32 %v17752_v10, %v17752_v10  ;;  %v5012_v27 = vadd.f32 %v5011_v46, %v17754_v38  ;;  %v5177_v45 = vmul.f32 %v17754_v38, %v17754_v38  ;;  %v17762_v20 = vpop.f32.mrb[57].mxu0  ;;  %v17764_v7 = vpop.f32.mrb[73].mxu1 }
 0x511   : > { %21727 = vst [vmem:[#allocation14_spill] sm:$0xff] %v17764_v7  ;;  %v4991_v48 = vadd.f32 %v4990_v44, %v17762_v20  ;;  %v5176_v14 = vmul.f32 %v17762_v20, %v17762_v20  ;;  %v5033_v25 = vadd.f32 %v5032_v31, %v17764_v7  ;;  %v5178_v23 = vmul.f32 %v17764_v7, %v17764_v7  ;;  %v17772_v9 = vpop.f32.mrb[58].mxu0  ;;  %v17774_v28 = vpop.f32.mrb[74].mxu1 }
 0x512   : > { %21728 = vst [vmem:[#allocation16_spill] sm:$0xff] %v17774_v28  ;;  %v5274_v1 = vadd.f32 %v5273_v0, %v5175_v62  ;;  %v5316_v57 = vadd.f32 %v5315_v54, %v5177_v45  ;;  %v4971_v30 = vadd.f32 %v4970_v19, %v17772_v9  ;;  %v5183_v13 = vmul.f32 %v17772_v9, %v17772_v9  ;;  %v17779_v58 = vpop.f32.mrb[59].mxu0  ;;  %v17781_v18 = vpop.f32.mrb[75].mxu1 }
 0x513   : > { %21729 = vst [vmem:[#allocation7_spill] sm:$0xff] %v17781_v18  ;;  %v5295_v47 = vadd.f32 %v5294_v29, %v5176_v14  ;;  %v5337_v16 = vadd.f32 %v5336_v22, %v5178_v23  ;;  %v5013_v42 = vadd.f32 %v5012_v27, %v17774_v28  ;;  %v5185_v2 = vmul.f32 %v17774_v28, %v17774_v28 }
 0x514   : > { %v5275_v63 = vadd.f32 %v5274_v1, %v5183_v13  ;;  %v4992_v26 = vadd.f32 %v4991_v48, %v17779_v58  ;;  %v5184_v36 = vmul.f32 %v17779_v58, %v17779_v58  ;;  %v5034_v52 = vadd.f32 %v5033_v25, %v17781_v18 }
 0x515   : > { %v5317_v32 = vadd.f32 %v5316_v57, %v5185_v2  ;;  %v5186_v4 = vmul.f32 %v17781_v18, %v17781_v18 }
 0x516   : > { %v5296_v21 = vadd.f32 %v5295_v47, %v5184_v36 }
 0x517   : > { %v5338_v50 = vadd.f32 %v5337_v16, %v5186_v4  ;;  %v17792_v8 = vpop.f32.mrb[60].mxu0  ;;  %v17794_v6 = vpop.f32.mrb[76].mxu1 }
 0x518   : > { %21730 = vst [vmem:[#allocation9_spill] sm:$0xff] %v17794_v6  ;;  %v4972_v59 = vadd.f32 %v4971_v30, %v17792_v8  ;;  %v5191_v15 = vmul.f32 %v17792_v8, %v17792_v8  ;;  %v5014_v40 = vadd.f32 %v5013_v42, %v17794_v6  ;;  %v5193_v46 = vmul.f32 %v17794_v6, %v17794_v6  ;;  %v17802_v3 = vpop.f32.mrb[61].mxu0  ;;  %v17804_v0 = vpop.f32.mrb[77].mxu1 }
 0x519   : > { %21731 = vst [vmem:[#allocation11_spill] sm:$0xff] %v17804_v0  ;;  %v4993_v44 = vadd.f32 %v4992_v26, %v17802_v3  ;;  %v5192_v37 = vmul.f32 %v17802_v3, %v17802_v3  ;;  %v5035_v31 = vadd.f32 %v5034_v52, %v17804_v0  ;;  %v5194_v54 = vmul.f32 %v17804_v0, %v17804_v0  ;;  %v17812_v53 = vpop.f32.mrb[62].mxu0  ;;  %v17814_v29 = vpop.f32.mrb[78].mxu1 }
 0x51a   : > { %21732 = vst [vmem:[#allocation12_spill] sm:$0xff] %v17814_v29  ;;  %v5276_v22 = vadd.f32 %v5275_v63, %v5191_v15  ;;  %v5318_v19 = vadd.f32 %v5317_v32, %v5193_v46  ;;  %v4973_v62 = vadd.f32 %v4972_v59, %v17812_v53  ;;  %v5199_v27 = vmul.f32 %v17812_v53, %v17812_v53  ;;  %v17819_v45 = vpop.f32.mrb[63].mxu0  ;;  %v17821_v48 = vpop.f32.mrb[79].mxu1 }
 0x51b   : > { %21733 = vst [vmem:[#allocation47_spill] sm:$0xff] %v17821_v48  ;;  %v5297_v14 = vadd.f32 %v5296_v21, %v5192_v37  ;;  %v5339_v25 = vadd.f32 %v5338_v50, %v5194_v54  ;;  %v5015_v23 = vadd.f32 %v5014_v40, %v17814_v29  ;;  %v5201_v1 = vmul.f32 %v17814_v29, %v17814_v29 }
 0x51c   : > { %v5277_v57 = vadd.f32 %v5276_v22, %v5199_v27  ;;  %v4994_v30 = vadd.f32 %v4993_v44, %v17819_v45  ;;  %v5200_v13 = vmul.f32 %v17819_v45, %v17819_v45  ;;  %v5036_v47 = vadd.f32 %v5035_v31, %v17821_v48 }
 0x51d   : > { %v5319_v16 = vadd.f32 %v5318_v19, %v5201_v1  ;;  %v5202_v42 = vmul.f32 %v17821_v48, %v17821_v48 }
 0x51e   : > { %v5298_v2 = vadd.f32 %v5297_v14, %v5200_v13 }
 0x51f   : > { %v5340_v63 = vadd.f32 %v5339_v25, %v5202_v42  ;;  %v17832_v26 = vpop.f32.mrb[64].mxu0  ;;  %v17834_v36 = vpop.f32.mrb[80].mxu1 }
 0x520   : > { %21734 = vst [vmem:[#allocation48_spill] sm:$0xff] %v17834_v36  ;;  %v4974_v52 = vadd.f32 %v4973_v62, %v17832_v26  ;;  %v5207_v32 = vmul.f32 %v17832_v26, %v17832_v26  ;;  %v5016_v4 = vadd.f32 %v5015_v23, %v17834_v36  ;;  %v5209_v21 = vmul.f32 %v17834_v36, %v17834_v36  ;;  %v17842_v50 = vpop.f32.mrb[65].mxu0  ;;  %v17844_v59 = vpop.f32.mrb[81].mxu1 }
 0x521   : > { %21735 = vst [vmem:[#allocation50_spill] sm:$0xff] %v17844_v59  ;;  %v4995_v15 = vadd.f32 %v4994_v30, %v17842_v50  ;;  %v5208_v40 = vmul.f32 %v17842_v50, %v17842_v50  ;;  %v5037_v46 = vadd.f32 %v5036_v47, %v17844_v59  ;;  %v5210_v44 = vmul.f32 %v17844_v59, %v17844_v59  ;;  %v17852_v37 = vpop.f32.mrb[66].mxu0  ;;  %v17854_v31 = vpop.f32.mrb[82].mxu1 }
 0x522   : > { %21736 = vst [vmem:[#allocation51_spill] sm:$0xff] %v17854_v31  ;;  %v5278_v54 = vadd.f32 %v5277_v57, %v5207_v32  ;;  %v5320_v22 = vadd.f32 %v5319_v16, %v5209_v21  ;;  %v4975_v19 = vadd.f32 %v4974_v52, %v17852_v37  ;;  %v5215_v62 = vmul.f32 %v17852_v37, %v17852_v37  ;;  %v17859_v27 = vpop.f32.mrb[67].mxu0  ;;  %v17861_v14 = vpop.f32.mrb[83].mxu1 }
 0x523   : > { %21737 = vst [vmem:[#allocation52_spill] sm:$0xff] %v17861_v14  ;;  %v5299_v25 = vadd.f32 %v5298_v2, %v5208_v40  ;;  %v5341_v23 = vadd.f32 %v5340_v63, %v5210_v44  ;;  %v5017_v1 = vadd.f32 %v5016_v4, %v17854_v31  ;;  %v5217_v30 = vmul.f32 %v17854_v31, %v17854_v31 }
 0x524   : > { %v5279_v13 = vadd.f32 %v5278_v54, %v5215_v62  ;;  %v4996_v57 = vadd.f32 %v4995_v15, %v17859_v27  ;;  %v5216_v47 = vmul.f32 %v17859_v27, %v17859_v27  ;;  %v5038_v16 = vadd.f32 %v5037_v46, %v17861_v14 }
 0x525   : > { %v5321_v42 = vadd.f32 %v5320_v22, %v5217_v30  ;;  %v5218_v52 = vmul.f32 %v17861_v14, %v17861_v14 }
 0x526   : > { %v5300_v32 = vadd.f32 %v5299_v25, %v5216_v47 }
 0x527   : > { %v5342_v2 = vadd.f32 %v5341_v23, %v5218_v52  ;;  %v17872_v63 = vpop.f32.mrb[68].mxu0  ;;  %v17874_v4 = vpop.f32.mrb[84].mxu1 }
 0x528   : > { %21738 = vst [vmem:[#allocation54_spill] sm:$0xff] %v17874_v4  ;;  %v4976_v21 = vadd.f32 %v4975_v19, %v17872_v63  ;;  %v5223_v15 = vmul.f32 %v17872_v63, %v17872_v63  ;;  %v5018_v40 = vadd.f32 %v5017_v1, %v17874_v4  ;;  %v5225_v46 = vmul.f32 %v17874_v4, %v17874_v4  ;;  %v17882_v44 = vpop.f32.mrb[69].mxu0  ;;  %v17884_v54 = vpop.f32.mrb[85].mxu1 }
 0x529   : > { %21739 = vst [vmem:[#allocation55_spill] sm:$0xff] %v17884_v54  ;;  %v4997_v22 = vadd.f32 %v4996_v57, %v17882_v44  ;;  %v5224_v62 = vmul.f32 %v17882_v44, %v17882_v44  ;;  %v5039_v25 = vadd.f32 %v5038_v16, %v17884_v54  ;;  %v5226_v19 = vmul.f32 %v17884_v54, %v17884_v54  ;;  %v17892_v23 = vpop.f32.mrb[70].mxu0  ;;  %v17894_v1 = vpop.f32.mrb[86].mxu1 }
 0x52a   : > { %21740 = vst [vmem:[#allocation56_spill] sm:$0xff] %v17892_v23  ;;  %21741 = vst [vmem:[#allocation57_spill] sm:$0xff] %v17894_v1  ;;  %v5280_v30 = vadd.f32 %v5279_v13, %v5223_v15  ;;  %v5322_v47 = vadd.f32 %v5321_v42, %v5225_v46  ;;  %v4977_v52 = vadd.f32 %v4976_v21, %v17892_v23  ;;  %v17899_v57 = vpop.f32.mrb[71].mxu0  ;;  %v17901_v31 = vpop.f32.mrb[87].mxu1 }
 0x52b   : > { %v5231_v4 = vmul.f32 %v17892_v23, %v17892_v23  ;;  %21742 = vst [vmem:[#allocation34_spill] sm:$0xff] %v17901_v31  ;;  %v5301_v36 = vadd.f32 %v5300_v32, %v5224_v62  ;;  %v5343_v16 = vadd.f32 %v5342_v2, %v5226_v19  ;;  %v5019_v14 = vadd.f32 %v5018_v40, %v17894_v1 }
 0x52c   : > { %v5233_v54 = vmul.f32 %v17894_v1, %v17894_v1  ;;  %v4998_v13 = vadd.f32 %v4997_v22, %v17899_v57  ;;  %v5232_v42 = vmul.f32 %v17899_v57, %v17899_v57  ;;  %v5040_v21 = vadd.f32 %v5039_v25, %v17901_v31 }
 0x52d   : > { %v5281_v59 = vadd.f32 %v5280_v30, %v5231_v4  ;;  %v5234_v46 = vmul.f32 %v17901_v31, %v17901_v31 }
 0x52e   : > { %v5323_v15 = vadd.f32 %v5322_v47, %v5233_v54  ;;  %v5302_v29 = vadd.f32 %v5301_v36, %v5232_v42 }
 0x52f   : > { %v5344_v32 = vadd.f32 %v5343_v16, %v5234_v46  ;;  %v17912_v2 = vpop.f32.mrb[72].mxu0  ;;  %v17914_v40 = vpop.f32.mrb[88].mxu1 }
 0x530   : > { %21743 = vst [vmem:[#allocation37_spill] sm:$0xff] %v17912_v2  ;;  %21744 = vst [vmem:[#allocation19_spill] sm:$0xff] %v17914_v40  ;;  %v4978_v62 = vadd.f32 %v4977_v52, %v17912_v2  ;;  %v5239_v4 = vmul.f32 %v17912_v2, %v17912_v2  ;;  %v5020_v22 = vadd.f32 %v5019_v14, %v17914_v40  ;;  %v17922_v54 = vpop.f32.mrb[73].mxu0  ;;  %v17924_v19 = vpop.f32.mrb[89].mxu1 }
 0x531   : > { %v5241_v25 = vmul.f32 %v17914_v40, %v17914_v40  ;;  %21745 = vst [vmem:[#allocation77_spill] sm:$0xff] %v17922_v54  ;;  %21746 = vst [vmem:[#allocation21_spill] sm:$0xff] %v17924_v19  ;;  %v4999_v36 = vadd.f32 %v4998_v13, %v17922_v54  ;;  %v5240_v30 = vmul.f32 %v17922_v54, %v17922_v54  ;;  %v17932_v16 = vpop.f32.mrb[74].mxu0  ;;  %v17934_v14 = vpop.f32.mrb[90].mxu1 }
 0x532   : > { %v5041_v47 = vadd.f32 %v5040_v21, %v17924_v19  ;;  %v5242_v52 = vmul.f32 %v17924_v19, %v17924_v19  ;;  %21747 = vst [vmem:[#allocation18_spill] sm:$0xff] %v17932_v16  ;;  %21748 = vst [vmem:[#allocation76_spill] sm:$0xff] %v17934_v14  ;;  %v5282_v42 = vadd.f32 %v5281_v59, %v5239_v4  ;;  %v17939_v13 = vpop.f32.mrb[75].mxu0  ;;  %v17941_v31 = vpop.f32.mrb[91].mxu1 }
 0x533   : > { %v5324_v46 = vadd.f32 %v5323_v15, %v5241_v25  ;;  %v4979_v40 = vadd.f32 %v4978_v62, %v17932_v16  ;;  %v5247_v1 = vmul.f32 %v17932_v16, %v17932_v16  ;;  %21749 = vst [vmem:[#allocation20_spill] sm:$0xff] %v17939_v13  ;;  %21750 = vst [vmem:[#allocation58_spill] sm:$0xff] %v17941_v31 }
 0x534   : > { %v5303_v6 = vadd.f32 %v5302_v29, %v5240_v30  ;;  %v5345_v21 = vadd.f32 %v5344_v32, %v5242_v52  ;;  %v5021_v48 = vadd.f32 %v5020_v22, %v17934_v14  ;;  %v5249_v19 = vmul.f32 %v17934_v14, %v17934_v14 }
 0x535   : > { %v5283_v0 = vadd.f32 %v5282_v42, %v5247_v1  ;;  %v5000_v59 = vadd.f32 %v4999_v36, %v17939_v13  ;;  %v5248_v15 = vmul.f32 %v17939_v13, %v17939_v13  ;;  %v5042_v62 = vadd.f32 %v5041_v47, %v17941_v31 }
 0x536   : > { %v5325_v4 = vadd.f32 %v5324_v46, %v5249_v19  ;;  %v5250_v25 = vmul.f32 %v17941_v31, %v17941_v31 }
 0x537   : > { %v5304_v28 = vadd.f32 %v5303_v6, %v5248_v15  ;;  %v17952_v32 = vpop.f32.mrb[76].mxu0  ;;  %v17954_v22 = vpop.f32.mrb[92].mxu1 }
 0x538   : > { %v5346_v29 = vadd.f32 %v5345_v21, %v5250_v25  ;;  %21751 = vst [vmem:[#allocation59_spill] sm:$0xff] %v17952_v32  ;;  %21752 = vst [vmem:[#allocation60_spill] sm:$0xff] %v17954_v22  ;;  %v4980_v30 = vadd.f32 %v4979_v40, %v17952_v32  ;;  %v5255_v1 = vmul.f32 %v17952_v32, %v17952_v32  ;;  %v17962_v19 = vpop.f32.mrb[77].mxu0  ;;  %v17964_v52 = vpop.f32.mrb[93].mxu1 }
 0x539   : > { %v5022_v36 = vadd.f32 %v5021_v48, %v17954_v22  ;;  %v5257_v47 = vmul.f32 %v17954_v22, %v17954_v22  ;;  %21753 = vst [vmem:[#allocation61_spill] sm:$0xff] %v17962_v19  ;;  %21754 = vst [vmem:[#allocation23_spill] sm:$0xff] %v17964_v52  ;;  %v5001_v6 = vadd.f32 %v5000_v59, %v17962_v19  ;;  %v17972_v21 = vpop.f32.mrb[78].mxu0  ;;  %v17974_v48 = vpop.f32.mrb[94].mxu1 }
 0x53a   : > { %v5256_v42 = vmul.f32 %v17962_v19, %v17962_v19  ;;  %v5043_v46 = vadd.f32 %v5042_v62, %v17964_v52  ;;  %v5258_v40 = vmul.f32 %v17964_v52, %v17964_v52  ;;  %21755 = vst [vmem:[#allocation25_spill] sm:$0xff] %v17972_v21  ;;  %21756 = vst [vmem:[#allocation22_spill] sm:$0xff] %v17974_v48  ;;  %v17979_v59 = vpop.f32.mrb[79].mxu0  ;;  %v17981_v31 = vpop.f32.mrb[95].mxu1 }
 0x53b   : > { %v5284_v15 = vadd.f32 %v5283_v0, %v5255_v1  ;;  %v5326_v25 = vadd.f32 %v5325_v4, %v5257_v47  ;;  %v4981_v22 = vadd.f32 %v4980_v30, %v17972_v21  ;;  %v5263_v14 = vmul.f32 %v17972_v21, %v17972_v21  ;;  %21757 = vst [vmem:[#allocation62_spill] sm:$0xff] %v17979_v59 }
 0x53c   : > { %21758 = vst [vmem:[#allocation63_spill] sm:$0xff] %v17981_v31  ;;  %v5305_v38 = vadd.f32 %v5304_v28, %v5256_v42  ;;  %v5347_v62 = vadd.f32 %v5346_v29, %v5258_v40  ;;  %v5023_v18 = vadd.f32 %v5022_v36, %v17974_v48  ;;  %v5265_v52 = vmul.f32 %v17974_v48, %v17974_v48 }
 0x53d   : > { %v4982_v7 = vrot.slane %v4981_v22, 4  ;;  %v5285_v49 = vadd.f32 %v5284_v15, %v5263_v14  ;;  %v5002_v0 = vadd.f32 %v5001_v6, %v17979_v59  ;;  %v5264_v4 = vmul.f32 %v17979_v59, %v17979_v59 }
 0x53e   : > { %v5024_v30 = vrot.slane %v5023_v18, 4  ;;  %v5327_v1 = vadd.f32 %v5326_v25, %v5265_v52  ;;  %v5044_v47 = vadd.f32 %v5043_v46, %v17981_v31  ;;  %v5266_v28 = vmul.f32 %v17981_v31, %v17981_v31 }
 0x53f   : > { %v4983_v29 = vadd.f32 %v4982_v7, %v4981_v22  ;;  %v5286_v42 = vrot.slane %v5285_v49, 4  ;;  %v5003_v36 = vrot.slane %v5002_v0, 4  ;;  %v5306_v40 = vadd.f32 %v5305_v38, %v5264_v4 }
 0x540   : > { %v5025_v60 = vadd.f32 %v5024_v30, %v5023_v18  ;;  %v5328_v48 = vrot.slane %v5327_v1, 4  ;;  %v5045_v61 = vrot.slane %v5044_v47, 4  ;;  %v5348_v14 = vadd.f32 %v5347_v62, %v5266_v28 }
 0x541   : > { %v4984_v15 = vrot.slane %v4983_v29, 2  ;;  %v5287_v6 = vadd.f32 %v5286_v42, %v5285_v49  ;;  %v5004_v39 = vadd.f32 %v5003_v36, %v5002_v0  ;;  %v5307_v35 = vrot.slane %v5306_v40, 4 }
 0x542   : > { %v5026_v56 = vrot.slane %v5025_v60, 2  ;;  %v5329_v17 = vadd.f32 %v5328_v48, %v5327_v1  ;;  %v5046_v52 = vadd.f32 %v5045_v61, %v5044_v47  ;;  %v5349_v25 = vrot.slane %v5348_v14, 4 }
 0x543   : > { %v4985_v46 = vadd.f32 %v4984_v15, %v4983_v29  ;;  %v5288_v41 = vrot.slane %v5287_v6, 2  ;;  %v5005_v21 = vrot.slane %v5004_v39, 2  ;;  %v5308_v31 = vadd.f32 %v5307_v35, %v5306_v40 }
 0x544   : > { %v5027_v7 = vadd.f32 %v5026_v56, %v5025_v60  ;;  %v5330_v22 = vrot.slane %v5329_v17, 2  ;;  %v5047_v32 = vrot.slane %v5046_v52, 2  ;;  %v5350_v38 = vadd.f32 %v5349_v25, %v5348_v14 }
 0x545   : > { %v4986_v18 = vrot.slane %v4985_v46, 1  ;;  %v5289_v4 = vadd.f32 %v5288_v41, %v5287_v6  ;;  %v5006_v30 = vadd.f32 %v5005_v21, %v5004_v39  ;;  %v5309_v62 = vrot.slane %v5308_v31, 2 }
 0x546   : > { %v5028_v28 = vrot.slane %v5027_v7, 1  ;;  %v5331_v49 = vadd.f32 %v5330_v22, %v5329_v17  ;;  %v5048_v0 = vadd.f32 %v5047_v32, %v5046_v52  ;;  %v5351_v42 = vrot.slane %v5350_v38, 2 }
 0x547   : > { %v4987_v36 = vadd.f32 %v4986_v18, %v4985_v46  ;;  %v5290_v48 = vrot.slane %v5289_v4, 1  ;;  %v5007_v61 = vrot.slane %v5006_v30, 1  ;;  %v5310_v1 = vadd.f32 %v5309_v62, %v5308_v31 }
 0x548   : > { %v5029_v47 = vadd.f32 %v5028_v28, %v5027_v7  ;;  %v5332_v29 = vrot.slane %v5331_v49, 1  ;;  %v5049_v15 = vrot.slane %v5048_v0, 1  ;;  %v5352_v35 = vadd.f32 %v5351_v42, %v5350_v38 }
 0x549   : > { %v17992_v56 = vmul.f32 0.0078125, %v4987_v36  ;;  %v5291_v60 = vadd.f32 %v5290_v48, %v5289_v4  ;;  %v5008_v40 = vadd.f32 %v5007_v61, %v5006_v30  ;;  %v5311_v14 = vrot.slane %v5310_v1, 1 }
 0x54a   : > { %v17994_v41 = vmul.f32 0.0078125, %v5029_v47  ;;  %v5333_v39 = vadd.f32 %v5332_v29, %v5331_v49  ;;  %v5050_v21 = vadd.f32 %v5049_v15, %v5048_v0  ;;  %v5353_v17 = vrot.slane %v5352_v35, 1 }
 0x54b   : > { %v5439_v32 = vmul.f32 0.0078125, %v5291_v60  ;;  %v5447_v6 = vmul.f32 %v17992_v56, %v17992_v56  ;;  %v17998_v52 = vmul.f32 0.0078125, %v5008_v40  ;;  %v5312_v31 = vadd.f32 %v5311_v14, %v5310_v1  ;;  %v21759_v40 = vld [vmem:[#allocation4_spill] sm:$0xff] }
 0x54c   : > { %v5441_v25 = vmul.f32 0.0078125, %v5333_v39  ;;  %v5449_v46 = vmul.f32 %v17994_v41, %v17994_v41  ;;  %v18002_v7 = vmul.f32 0.0078125, %v5050_v21  ;;  %v5354_v22 = vadd.f32 %v5353_v17, %v5352_v35  ;;  %v13885_v17 = vld [vmem:[%s21249_s13 + $0x4] ss:$28 sps:$4 sm:$0xff]  }
 0x54d   : > { %v5455_v38 = vsub.f32 %v5439_v32, %v5447_v6  ;;  %v5440_v18 = vmul.f32 0.0078125, %v5312_v31  ;;  %v5448_v4 = vmul.f32 %v17998_v52, %v17998_v52  ;;  %v13888_v32 = vld [vmem:[%s21249_s13 + $0xc] ss:$28 sps:$4 sm:$0xff]   ;;  %v13883_v6 = vld [vmem:[%s21249_s13] ss:$28 sps:$4 sm:$0xff]   ;;  %8990 = vmatprep.subr.bf16.mxu0 %v13885_v17 }
 0x54e   : > { %v5457_v30 = vsub.f32 %v5441_v25, %v5449_v46  ;;  %v5442_v62 = vmul.f32 0.0078125, %v5354_v22  ;;  %v5450_v28 = vmul.f32 %v18002_v7, %v18002_v7  ;;  %v13886_v31 = vld [vmem:[%s21249_s13 + $0x8] ss:$28 sps:$4 sm:$0xff]   ;;  %9442 = vmatprep.subr.bf16.mxu1 %v13888_v32  ;;  %8991 = vmatpush1.bf16.msra.mxu0 %v13883_v6 }
 0x54f   : > { %v5464_v49 = vadd.f32 1e-05, %v5455_v38  ;;  %v5456_v0 = vsub.f32 %v5440_v18, %v5448_v4  ;;  %v13889_v18 = vld [vmem:[%s21249_s13 + $0x38] ss:$28 sps:$4 sm:$0xff]   ;;  %9443 = vmatpush1.bf16.msra.mxu1 %v13886_v31 }
 0x550   : > { %v5466_v42 = vadd.f32 1e-05, %v5457_v30  ;;  %v5458_v36 = vsub.f32 %v5442_v62, %v5450_v28  ;;  %v13891_v4 = vld [vmem:[%s21249_s13 + $0x3c] ss:$28 sps:$4 sm:$0xff]  }
 0x551   : > { %14537 = vrsqrt.f32 %v5464_v49  ;;  %v5465_v48 = vadd.f32 1e-05, %v5456_v0  ;;  %8992 = vmatprep.subr.bf16.mxu0 %v13891_v4  ;;  %v13900_v4 = vld [vmem:[%s21249_s13 + $0x7c] ss:$28 sps:$4 sm:$0xff]  }
 0x552   : > { %14539 = vrsqrt.f32 %v5466_v42  ;;  %v5467_v61 = vadd.f32 1e-05, %v5458_v36  ;;  %v13892_v36 = vld [vmem:[%s21249_s13 + $0x40] ss:$28 sps:$4 sm:$0xff]   ;;  %8993 = vmatpush1.bf16.msra.mxu0 %v13889_v18 }
 0x553   : > { %14541 = vrsqrt.f32 %v5465_v48  ;;  %v13894_v48 = vld [vmem:[%s21249_s13 + $0x44] ss:$28 sps:$4 sm:$0xff]  }
 0x554   : > { %14543 = vrsqrt.f32 %v5467_v61  ;;  %9444 = vmatprep.subr.bf16.mxu1 %v13894_v48  ;;  %v13903_v48 = vld [vmem:[%s21249_s13 + $0xac] ss:$28 sps:$4 sm:$0xff]  }
 0x555   : > { %9445 = vmatpush1.bf16.msra.mxu1 %v13892_v36 }
 0x556   : > { %9446 = vmatprep.subr.bf16.mxu1 %v13900_v4 }
 0x55b   : > { %v14538_v1 = vpop.eup %14537 }
 0x55c   : > { %v14540_v47 = vpop.eup %14539 }
 0x55d   : > { %v14542_v29 = vpop.eup %14541 }
 0x55e   : > { %v14544_v15 = vpop.eup %14543  ;;  %v5488_v35 = vcombine.low %v14538_v1, %v14542_v29 }
 0x55f   : > { %v5489_v60 = vcombine.low %v14540_v47, %v14544_v15 }
 0x560   : > { %v18009_v14 = vrot.slane %v5488_v35, %v21759_v40 }
 0x561   : > { %v18012_v39 = vrot.slane %v5489_v60, %v21759_v40  ;;  %v13897_v60 = vld [vmem:[%s21249_s13 + $0x74] ss:$28 sps:$4 sm:$0xff]  }
 0x562   : > { %8994 = vmatprep.subr.bf16.mxu0 %v13897_v60 }
 0x57f   : > { %v18028_v25 = vpop.f32.mrb[80].mxu0  ;;  %v18030_v46 = vpop.f32.mrb[96].mxu1 }
 0x580   : > { %21760 = vst [vmem:[#allocation64_spill] sm:$0xff] %v18028_v25  ;;  %21761 = vst [vmem:[#allocation65_spill] sm:$0xff] %v18030_v46  ;;  %v18032_v22 = vpop.f32.mrb[81].mxu0  ;;  %v18034_v38 = vpop.f32.mrb[97].mxu1  ;;  %v5147_v30 = vmul.f32 %v18028_v25, %v18028_v25  ;;  %v5149_v62 = vmul.f32 %v18030_v46, %v18030_v46 }
 0x581   : > { %21762 = vst [vmem:[#allocation24_spill] sm:$0xff] %v18032_v22  ;;  %21763 = vst [vmem:[#allocation27_spill] sm:$0xff] %v18034_v38  ;;  %v5148_v28 = vmul.f32 %v18032_v22, %v18032_v22  ;;  %v5150_v49 = vmul.f32 %v18034_v38, %v18034_v38  ;;  %v18050_v0 = vpop.f32.mrb[82].mxu0  ;;  %v18052_v42 = vpop.f32.mrb[98].mxu1 }
 0x582   : > { %21764 = vst [vmem:[#allocation29_spill] sm:$0xff] %v18050_v0  ;;  %21765 = vst [vmem:[#allocation26_spill] sm:$0xff] %v18052_v42  ;;  %v5051_v61 = vadd.f32 %v18050_v0, %v18028_v25  ;;  %v5155_v1 = vmul.f32 %v18050_v0, %v18050_v0  ;;  %v5093_v47 = vadd.f32 %v18052_v42, %v18030_v46  ;;  %v18068_v15 = vpop.f32.mrb[83].mxu0  ;;  %v18070_v35 = vpop.f32.mrb[99].mxu1  ;;  %v13895_v46 = vld [vmem:[%s21249_s13 + $0x70] ss:$28 sps:$4 sm:$0xff]  }
 0x583   : > { %v5157_v29 = vmul.f32 %v18052_v42, %v18052_v42  ;;  %21766 = vst [vmem:[#allocation28_spill] sm:$0xff] %v18068_v15  ;;  %21767 = vst [vmem:[#allocation31_spill] sm:$0xff] %v18070_v35  ;;  %v5072_v17 = vadd.f32 %v18068_v15, %v18032_v22  ;;  %v5156_v32 = vmul.f32 %v18068_v15, %v18068_v15  ;;  %8995 = vmatpush1.bf16.msra.mxu0 %v13895_v46  ;;  %v13904_v46 = vld [vmem:[%s21249_s13 + $0xb0] ss:$28 sps:$4 sm:$0xff]  }
 0x584   : > { %v5114_v6 = vadd.f32 %v18070_v35, %v18034_v38  ;;  %v5158_v31 = vmul.f32 %v18070_v35, %v18070_v35  ;;  %v5355_v21 = vadd.f32 %v5155_v1, %v5147_v30  ;;  %v13898_v35 = vld [vmem:[%s21249_s13 + $0x78] ss:$28 sps:$4 sm:$0xff]   ;;  %8996 = vmatprep.subr.bf16.mxu0 %v13903_v48 }
 0x585   : > { %v5397_v42 = vadd.f32 %v5157_v29, %v5149_v62  ;;  %v5376_v0 = vadd.f32 %v5156_v32, %v5148_v28  ;;  %v13906_v62 = vld [vmem:[%s21249_s13 + $0xb4] ss:$28 sps:$4 sm:$0xff]   ;;  %v13901_v32 = vld [vmem:[%s21249_s13 + $0xa8] ss:$28 sps:$4 sm:$0xff]   ;;  %9447 = vmatpush1.bf16.msra.mxu1 %v13898_v35 }
 0x586   : > { %v5418_v25 = vadd.f32 %v5158_v31, %v5150_v49  ;;  %v13912_v35 = vld [vmem:[%s21249_s13 + $0xec] ss:$28 sps:$4 sm:$0xff]   ;;  %9448 = vmatprep.subr.bf16.mxu1 %v13906_v62 }
 0x587   : > { %v18095_v30 = vpop.f32.mrb[84].mxu0  ;;  %v18097_v18 = vpop.f32.mrb[100].mxu1  ;;  %8997 = vmatpush1.bf16.msra.mxu0 %v13901_v32 }
 0x588   : > { %21768 = vst [vmem:[#allocation66_spill] sm:$0xff] %v18095_v30  ;;  %21769 = vst [vmem:[#allocation67_spill] sm:$0xff] %v18097_v18  ;;  %v5052_v28 = vadd.f32 %v5051_v61, %v18095_v30  ;;  %v5163_v49 = vmul.f32 %v18095_v30, %v18095_v30  ;;  %v5094_v36 = vadd.f32 %v5093_v47, %v18097_v18  ;;  %v18108_v29 = vpop.f32.mrb[85].mxu0  ;;  %v18110_v60 = vpop.f32.mrb[101].mxu1 }
 0x589   : > { %v5165_v1 = vmul.f32 %v18097_v18, %v18097_v18  ;;  %21770 = vst [vmem:[#allocation68_spill] sm:$0xff] %v18108_v29  ;;  %21771 = vst [vmem:[#allocation69_spill] sm:$0xff] %v18110_v60  ;;  %v5073_v31 = vadd.f32 %v5072_v17, %v18108_v29  ;;  %v5164_v61 = vmul.f32 %v18108_v29, %v18108_v29  ;;  %v18121_v18 = vpop.f32.mrb[86].mxu0  ;;  %v18123_v38 = vpop.f32.mrb[102].mxu1  ;;  %v13909_v17 = vld [vmem:[%s21249_s13 + $0xe4] ss:$28 sps:$4 sm:$0xff]   ;;  %9449 = vmatpush1.bf16.msra.mxu1 %v13904_v46 }
 0x58a   : > { %v5115_v4 = vadd.f32 %v5114_v6, %v18110_v60  ;;  %v5166_v47 = vmul.f32 %v18110_v60, %v18110_v60  ;;  %21772 = vst [vmem:[#allocation33_spill] sm:$0xff] %v18121_v18  ;;  %21773 = vst [vmem:[#allocation30_spill] sm:$0xff] %v18123_v38  ;;  %v5356_v30 = vadd.f32 %v5355_v21, %v5163_v49  ;;  %v18134_v15 = vpop.f32.mrb[87].mxu0  ;;  %v18136_v22 = vpop.f32.mrb[103].mxu1  ;;  %8998 = vmatprep.subr.bf16.mxu0 %v13909_v17  ;;  %v13913_v17 = vld [vmem:[%s21249_s13 + $0x118] ss:$28 sps:$4 sm:$0xff]  }
 0x58b   : > { %v5398_v29 = vadd.f32 %v5397_v42, %v5165_v1  ;;  %v5053_v6 = vadd.f32 %v5052_v28, %v18121_v18  ;;  %v5171_v60 = vmul.f32 %v18121_v18, %v18121_v18  ;;  %21774 = vst [vmem:[#allocation32_spill] sm:$0xff] %v18134_v15  ;;  %21775 = vst [vmem:[#allocation70_spill] sm:$0xff] %v18136_v22  ;;  %9450 = vmatprep.subr.bf16.mxu1 %v13912_v35  ;;  %v13915_v1 = vld [vmem:[%s21249_s13 + $0x11c] ss:$28 sps:$4 sm:$0xff]  }
 0x58c   : > { %v5377_v59 = vadd.f32 %v5376_v0, %v5164_v61  ;;  %v5419_v19 = vadd.f32 %v5418_v25, %v5166_v47  ;;  %v5095_v16 = vadd.f32 %v5094_v36, %v18123_v38  ;;  %v5173_v21 = vmul.f32 %v18123_v38, %v18123_v38  ;;  %v13907_v0 = vld [vmem:[%s21249_s13 + $0xe0] ss:$28 sps:$4 sm:$0xff]  }
 0x58d   : > { %v5357_v42 = vadd.f32 %v5356_v30, %v5171_v60  ;;  %v5074_v28 = vadd.f32 %v5073_v31, %v18134_v15  ;;  %v5172_v49 = vmul.f32 %v18134_v15, %v18134_v15  ;;  %v5116_v48 = vadd.f32 %v5115_v4, %v18136_v22  ;;  %v13910_v30 = vld [vmem:[%s21249_s13 + $0xe8] ss:$28 sps:$4 sm:$0xff]   ;;  %8999 = vmatpush1.bf16.msra.mxu0 %v13907_v0  ;;  %v13916_v0 = vld [vmem:[%s21249_s13 + $0x120] ss:$28 sps:$4 sm:$0xff]  }
 0x58e   : > { %v5399_v25 = vadd.f32 %v5398_v29, %v5173_v21  ;;  %v5174_v36 = vmul.f32 %v18136_v22, %v18136_v22  ;;  %v13918_v29 = vld [vmem:[%s21249_s13 + $0x124] ss:$28 sps:$4 sm:$0xff]   ;;  %9451 = vmatpush1.bf16.msra.mxu1 %v13910_v30  ;;  %9000 = vmatprep.subr.bf16.mxu0 %v13915_v1  ;;  %v13924_v30 = vld [vmem:[%s21249_s13 + $0x15c] ss:$28 sps:$4 sm:$0xff]  }
 0x58f   : > { %v5378_v62 = vadd.f32 %v5377_v59, %v5172_v49  ;;  %v18159_v32 = vpop.f32.mrb[88].mxu0  ;;  %v18161_v31 = vpop.f32.mrb[104].mxu1  ;;  %9452 = vmatprep.subr.bf16.mxu1 %v13918_v29 }
 0x590   : > { %v5420_v60 = vadd.f32 %v5419_v19, %v5174_v36  ;;  %21776 = vst [vmem:[#allocation71_spill] sm:$0xff] %v18159_v32  ;;  %21777 = vst [vmem:[#allocation72_spill] sm:$0xff] %v18161_v31  ;;  %v5054_v61 = vadd.f32 %v5053_v6, %v18159_v32  ;;  %v5179_v4 = vmul.f32 %v18159_v32, %v18159_v32  ;;  %v18172_v46 = vpop.f32.mrb[89].mxu0  ;;  %v18174_v19 = vpop.f32.mrb[105].mxu1 }
 0x591   : > { %v5096_v59 = vadd.f32 %v5095_v16, %v18161_v31  ;;  %v5181_v47 = vmul.f32 %v18161_v31, %v18161_v31  ;;  %21778 = vst [vmem:[#allocation73_spill] sm:$0xff] %v18172_v46  ;;  %21779 = vst [vmem:[#allocation36_spill] sm:$0xff] %v18174_v19  ;;  %v5075_v35 = vadd.f32 %v5074_v28, %v18172_v46  ;;  %v18185_v49 = vpop.f32.mrb[90].mxu0  ;;  %v18187_v36 = vpop.f32.mrb[106].mxu1  ;;  %v13921_v28 = vld [vmem:[%s21249_s13 + $0x154] ss:$28 sps:$4 sm:$0xff]   ;;  %9001 = vmatpush1.bf16.msra.mxu0 %v13913_v17 }
 0x592   : > { %v5180_v6 = vmul.f32 %v18172_v46, %v18172_v46  ;;  %v5117_v21 = vadd.f32 %v5116_v48, %v18174_v19  ;;  %v5182_v16 = vmul.f32 %v18174_v19, %v18174_v19  ;;  %21780 = vst [vmem:[#allocation39_spill] sm:$0xff] %v18185_v49  ;;  %21781 = vst [vmem:[#allocation79_spill] sm:$0xff] %v18187_v36  ;;  %v18198_v22 = vpop.f32.mrb[91].mxu0  ;;  %v18200_v32 = vpop.f32.mrb[107].mxu1  ;;  %9453 = vmatpush1.bf16.msra.mxu1 %v13916_v0 }
 0x593   : > { %v5358_v31 = vadd.f32 %v5357_v42, %v5179_v4  ;;  %v5400_v38 = vadd.f32 %v5399_v25, %v5181_v47  ;;  %v5055_v48 = vadd.f32 %v5054_v61, %v18185_v49  ;;  %v5187_v19 = vmul.f32 %v18185_v49, %v18185_v49  ;;  %21782 = vst [vmem:[#allocation78_spill] sm:$0xff] %v18198_v22  ;;  %v13927_v47 = vld [vmem:[%s21249_s13 + $0x18c] ss:$28 sps:$4 sm:$0xff]  }
 0x594   : > { %21783 = vst [vmem:[#allocation74_spill] sm:$0xff] %v18200_v32  ;;  %v5379_v46 = vadd.f32 %v5378_v62, %v5180_v6  ;;  %v5421_v18 = vadd.f32 %v5420_v60, %v5182_v16  ;;  %v5097_v15 = vadd.f32 %v5096_v59, %v18187_v36  ;;  %v5189_v42 = vmul.f32 %v18187_v36, %v18187_v36  ;;  %v13919_v62 = vld [vmem:[%s21249_s13 + $0x150] ss:$28 sps:$4 sm:$0xff]  }
 0x595   : > { %v5359_v25 = vadd.f32 %v5358_v31, %v5187_v19  ;;  %v5076_v61 = vadd.f32 %v5075_v35, %v18198_v22  ;;  %v5188_v4 = vmul.f32 %v18198_v22, %v18198_v22  ;;  %v5118_v1 = vadd.f32 %v5117_v21, %v18200_v32  ;;  %9002 = vmatprep.subr.bf16.mxu0 %v13921_v28  ;;  %v13922_v31 = vld [vmem:[%s21249_s13 + $0x158] ss:$28 sps:$4 sm:$0xff]   ;;  %v13925_v28 = vld [vmem:[%s21249_s13 + $0x188] ss:$28 sps:$4 sm:$0xff]  }
 0x596   : > { %v5401_v60 = vadd.f32 %v5400_v38, %v5189_v42  ;;  %v5190_v59 = vmul.f32 %v18200_v32, %v18200_v32  ;;  %9454 = vmatprep.subr.bf16.mxu1 %v13924_v30  ;;  %v13930_v38 = vld [vmem:[%s21249_s13 + $0x194] ss:$28 sps:$4 sm:$0xff]   ;;  %9003 = vmatpush1.bf16.msra.mxu0 %v13919_v62 }
 0x597   : > { %v5380_v29 = vadd.f32 %v5379_v46, %v5188_v4  ;;  %v18223_v17 = vpop.f32.mrb[92].mxu0  ;;  %v18225_v35 = vpop.f32.mrb[108].mxu1  ;;  %9455 = vmatpush1.bf16.msra.mxu1 %v13922_v31  ;;  %v13928_v62 = vld [vmem:[%s21249_s13 + $0x190] ss:$28 sps:$4 sm:$0xff]   ;;  %9004 = vmatprep.subr.bf16.mxu0 %v13927_v47 }
 0x598   : > { %v5422_v19 = vadd.f32 %v5421_v18, %v5190_v59  ;;  %21784 = vst [vmem:[#allocation75_spill] sm:$0xff] %v18223_v17  ;;  %21785 = vst [vmem:[#allocation35_spill] sm:$0xff] %v18225_v35  ;;  %v5056_v6 = vadd.f32 %v5055_v48, %v18223_v17  ;;  %v5195_v21 = vmul.f32 %v18223_v17, %v18223_v17  ;;  %v18236_v0 = vpop.f32.mrb[93].mxu0  ;;  %v18238_v18 = vpop.f32.mrb[109].mxu1  ;;  %v13936_v31 = vld [vmem:[%s21249_s13 + $0x1cc] ss:$28 sps:$4 sm:$0xff]   ;;  %9456 = vmatprep.subr.bf16.mxu1 %v13930_v38 }
 0x599   : > { %v5098_v46 = vadd.f32 %v5097_v15, %v18225_v35  ;;  %v5197_v16 = vmul.f32 %v18225_v35, %v18225_v35  ;;  %21786 = vst [vmem:[#allocation38_spill] sm:$0xff] %v18236_v0  ;;  %21787 = vst [vmem:[#allocation43_spill] sm:$0xff] %v18238_v18  ;;  %v5077_v30 = vadd.f32 %v5076_v61, %v18236_v0  ;;  %v18249_v4 = vpop.f32.mrb[94].mxu0  ;;  %v18251_v59 = vpop.f32.mrb[110].mxu1  ;;  %v13933_v61 = vld [vmem:[%s21249_s13 + $0x1c4] ss:$28 sps:$4 sm:$0xff]  }
 0x59a   : > { %v5196_v48 = vmul.f32 %v18236_v0, %v18236_v0  ;;  %v5119_v42 = vadd.f32 %v5118_v1, %v18238_v18  ;;  %v5198_v15 = vmul.f32 %v18238_v18, %v18238_v18  ;;  %21788 = vst [vmem:[#allocation42_spill] sm:$0xff] %v18249_v4  ;;  %21789 = vst [vmem:[#allocation41_spill] sm:$0xff] %v18251_v59  ;;  %v18262_v32 = vpop.f32.mrb[95].mxu0  ;;  %v18264_v17 = vpop.f32.mrb[111].mxu1  ;;  %9005 = vmatpush1.bf16.msra.mxu0 %v13925_v28 }
 0x59b   : > { %v5360_v35 = vadd.f32 %v5359_v25, %v5195_v21  ;;  %v5402_v36 = vadd.f32 %v5401_v60, %v5197_v16  ;;  %v5057_v1 = vadd.f32 %v5056_v6, %v18249_v4  ;;  %v5203_v18 = vmul.f32 %v18249_v4, %v18249_v4  ;;  %21790 = vst [vmem:[#allocation45_spill] sm:$0xff] %v18262_v32  ;;  %v13939_v16 = vld [vmem:[%s21249_s13 + $0x1fc] ss:$28 sps:$4 sm:$0xff]  }
 0x59c   : > { %21791 = vst [vmem:[#allocation4_spill] sm:$0xff] %v18264_v17  ;;  %v5381_v0 = vadd.f32 %v5380_v29, %v5196_v48  ;;  %v5423_v49 = vadd.f32 %v5422_v19, %v5198_v15  ;;  %v5099_v22 = vadd.f32 %v5098_v46, %v18251_v59  ;;  %v5205_v25 = vmul.f32 %v18251_v59, %v18251_v59  ;;  %v13931_v29 = vld [vmem:[%s21249_s13 + $0x1c0] ss:$28 sps:$4 sm:$0xff]  }
 0x59d   : > { %v5361_v60 = vadd.f32 %v5360_v35, %v5203_v18  ;;  %v5078_v6 = vadd.f32 %v5077_v30, %v18262_v32  ;;  %v5204_v21 = vmul.f32 %v18262_v32, %v18262_v32  ;;  %v5120_v47 = vadd.f32 %v5119_v42, %v18264_v17  ;;  %9457 = vmatpush1.bf16.msra.mxu1 %v13928_v62  ;;  %v13934_v35 = vld [vmem:[%s21249_s13 + $0x1c8] ss:$28 sps:$4 sm:$0xff]  }
 0x59e   : > { %v5403_v19 = vadd.f32 %v5402_v36, %v5205_v25  ;;  %v5206_v46 = vmul.f32 %v18264_v17, %v18264_v17  ;;  %9006 = vmatprep.subr.bf16.mxu0 %v13933_v61  ;;  %9458 = vmatprep.subr.bf16.mxu1 %v13936_v31  ;;  %v13942_v36 = vld [vmem:[%s21249_s13 + $0x204] ss:$28 sps:$4 sm:$0xff]   ;;  %v13937_v61 = vld [vmem:[%s21249_s13 + $0x1f8] ss:$28 sps:$4 sm:$0xff]  }
 0x59f   : > { %v5382_v38 = vadd.f32 %v5381_v0, %v5204_v21  ;;  %v18287_v28 = vpop.f32.mrb[96].mxu0  ;;  %v18289_v30 = vpop.f32.mrb[112].mxu1  ;;  %9007 = vmatpush1.bf16.msra.mxu0 %v13931_v29  ;;  %v13940_v29 = vld [vmem:[%s21249_s13 + $0x200] ss:$28 sps:$4 sm:$0xff]  }
 0x5a0   : > { %v5424_v18 = vadd.f32 %v5423_v49, %v5206_v46  ;;  %21792 = vst [vmem:[#allocation80_spill] sm:$0xff] %v18287_v28  ;;  %21793 = vst [vmem:[#allocation81_spill] sm:$0xff] %v18289_v30  ;;  %v5058_v48 = vadd.f32 %v5057_v1, %v18287_v28  ;;  %v5211_v42 = vmul.f32 %v18287_v28, %v18287_v28  ;;  %v18300_v62 = vpop.f32.mrb[97].mxu0  ;;  %v18302_v49 = vpop.f32.mrb[113].mxu1  ;;  %9008 = vmatprep.subr.bf16.mxu0 %v13939_v16 }
 0x5a1   : > { %v5100_v0 = vadd.f32 %v5099_v22, %v18289_v30  ;;  %v5213_v15 = vmul.f32 %v18289_v30, %v18289_v30  ;;  %21794 = vst [vmem:[#allocation82_spill] sm:$0xff] %v18300_v62  ;;  %21795 = vst [vmem:[#allocation83_spill] sm:$0xff] %v18302_v49  ;;  %v5079_v31 = vadd.f32 %v5078_v6, %v18300_v62  ;;  %v18313_v21 = vpop.f32.mrb[98].mxu0  ;;  %v18315_v46 = vpop.f32.mrb[114].mxu1  ;;  %9459 = vmatpush1.bf16.msra.mxu1 %v13934_v35  ;;  %v13945_v6 = vld [vmem:[%s21249_s13 + $0x234] ss:$28 sps:$4 sm:$0xff]  }
 0x5a2   : > { %v5212_v1 = vmul.f32 %v18300_v62, %v18300_v62  ;;  %v5121_v25 = vadd.f32 %v5120_v47, %v18302_v49  ;;  %v5214_v22 = vmul.f32 %v18302_v49, %v18302_v49  ;;  %21796 = vst [vmem:[#allocation84_spill] sm:$0xff] %v18313_v21  ;;  %21797 = vst [vmem:[#allocation85_spill] sm:$0xff] %v18315_v46  ;;  %v18326_v17 = vpop.f32.mrb[99].mxu0  ;;  %v18328_v28 = vpop.f32.mrb[115].mxu1  ;;  %v13948_v35 = vld [vmem:[%s21249_s13 + $0x23c] ss:$28 sps:$4 sm:$0xff]   ;;  %9460 = vmatprep.subr.bf16.mxu1 %v13942_v36 }
 0x5a3   : > { %v5362_v30 = vadd.f32 %v5361_v60, %v5211_v42  ;;  %v5404_v59 = vadd.f32 %v5403_v19, %v5213_v15  ;;  %v5059_v47 = vadd.f32 %v5058_v48, %v18313_v21  ;;  %v5219_v49 = vmul.f32 %v18313_v21, %v18313_v21  ;;  %21798 = vst [vmem:[#allocation86_spill] sm:$0xff] %v18326_v17  ;;  %v13951_v15 = vld [vmem:[%s21249_s13 + $0x26c] ss:$28 sps:$4 sm:$0xff]  }
 0x5a4   : > { %21799 = vst [vmem:[#allocation87_spill] sm:$0xff] %v18328_v28  ;;  %v5383_v62 = vadd.f32 %v5382_v38, %v5212_v1  ;;  %v5425_v4 = vadd.f32 %v5424_v18, %v5214_v22  ;;  %v5101_v32 = vadd.f32 %v5100_v0, %v18315_v46  ;;  %v5221_v60 = vmul.f32 %v18315_v46, %v18315_v46  ;;  %v13943_v38 = vld [vmem:[%s21249_s13 + $0x230] ss:$28 sps:$4 sm:$0xff]  }
 0x5a5   : > { %v5363_v19 = vadd.f32 %v5362_v30, %v5219_v49  ;;  %v5080_v48 = vadd.f32 %v5079_v31, %v18326_v17  ;;  %v5220_v42 = vmul.f32 %v18326_v17, %v18326_v17  ;;  %v5122_v16 = vadd.f32 %v5121_v25, %v18328_v28  ;;  %9009 = vmatpush1.bf16.msra.mxu0 %v13937_v61  ;;  %v13946_v30 = vld [vmem:[%s21249_s13 + $0x238] ss:$28 sps:$4 sm:$0xff]  }
 0x5a6   : > { %v5405_v18 = vadd.f32 %v5404_v59, %v5221_v60  ;;  %v5222_v0 = vmul.f32 %v18328_v28, %v18328_v28  ;;  %9461 = vmatpush1.bf16.msra.mxu1 %v13940_v29  ;;  %9010 = vmatprep.subr.bf16.mxu0 %v13945_v6  ;;  %v13954_v59 = vld [vmem:[%s21249_s13 + $0x274] ss:$28 sps:$4 sm:$0xff]   ;;  %v13949_v6 = vld [vmem:[%s21249_s13 + $0x268] ss:$28 sps:$4 sm:$0xff]  }
 0x5a7   : > { %v5384_v36 = vadd.f32 %v5383_v62, %v5220_v42  ;;  %9462 = vmatprep.subr.bf16.mxu1 %v13948_v35  ;;  %v18351_v61 = vpop.f32.mrb[100].mxu0  ;;  %v18353_v31 = vpop.f32.mrb[116].mxu1 }
 0x5a8   : > { %v5426_v49 = vadd.f32 %v5425_v4, %v5222_v0  ;;  %21800 = vst [vmem:[#allocation88_spill] sm:$0xff] %v18351_v61  ;;  %21801 = vst [vmem:[#allocation89_spill] sm:$0xff] %v18353_v31  ;;  %v5060_v1 = vadd.f32 %v5059_v47, %v18351_v61  ;;  %v5227_v25 = vmul.f32 %v18351_v61, %v18351_v61  ;;  %v18364_v29 = vpop.f32.mrb[101].mxu0  ;;  %v18366_v4 = vpop.f32.mrb[117].mxu1 }
 0x5a9   : > { %v5102_v62 = vadd.f32 %v5101_v32, %v18353_v31  ;;  %v5229_v22 = vmul.f32 %v18353_v31, %v18353_v31  ;;  %21802 = vst [vmem:[#allocation90_spill] sm:$0xff] %v18364_v29  ;;  %21803 = vst [vmem:[#allocation91_spill] sm:$0xff] %v18366_v4  ;;  %9011 = vmatpush1.bf16.msra.mxu0 %v13943_v38  ;;  %v5081_v35 = vadd.f32 %v5080_v48, %v18364_v29  ;;  %v18377_v42 = vpop.f32.mrb[102].mxu0  ;;  %v18379_v0 = vpop.f32.mrb[118].mxu1  ;;  %v13952_v38 = vld [vmem:[%s21249_s13 + $0x270] ss:$28 sps:$4 sm:$0xff]  }
 0x5aa   : > { %v5228_v47 = vmul.f32 %v18364_v29, %v18364_v29  ;;  %v5123_v60 = vadd.f32 %v5122_v16, %v18366_v4  ;;  %v5230_v32 = vmul.f32 %v18366_v4, %v18366_v4  ;;  %21804 = vst [vmem:[#allocation92_spill] sm:$0xff] %v18377_v42  ;;  %21805 = vst [vmem:[#allocation93_spill] sm:$0xff] %v18379_v0  ;;  %9463 = vmatpush1.bf16.msra.mxu1 %v13946_v30  ;;  %v13957_v48 = vld [vmem:[%s21249_s13 + $0x2a4] ss:$28 sps:$4 sm:$0xff]   ;;  %v18390_v28 = vpop.f32.mrb[103].mxu0  ;;  %v18392_v61 = vpop.f32.mrb[119].mxu1 }
 0x5ab   : > { %v5364_v31 = vadd.f32 %v5363_v19, %v5227_v25  ;;  %v5406_v46 = vadd.f32 %v5405_v18, %v5229_v22  ;;  %v5061_v16 = vadd.f32 %v5060_v1, %v18377_v42  ;;  %v5235_v4 = vmul.f32 %v18377_v42, %v18377_v42  ;;  %21806 = vst [vmem:[#allocation94_spill] sm:$0xff] %v18390_v28  ;;  %v13960_v30 = vld [vmem:[%s21249_s13 + $0x2ac] ss:$28 sps:$4 sm:$0xff]   ;;  %v13963_v22 = vld [vmem:[%s21249_s13 + $0x2dc] ss:$28 sps:$4 sm:$0xff]  }
 0x5ac   : > { %21807 = vst [vmem:[#allocation95_spill] sm:$0xff] %v18392_v61  ;;  %9012 = vmatprep.subr.bf16.mxu0 %v13951_v15  ;;  %v5385_v29 = vadd.f32 %v5384_v36, %v5228_v47  ;;  %v5427_v21 = vadd.f32 %v5426_v49, %v5230_v32  ;;  %v5103_v17 = vadd.f32 %v5102_v62, %v18379_v0  ;;  %v13955_v36 = vld [vmem:[%s21249_s13 + $0x2a0] ss:$28 sps:$4 sm:$0xff]  }
 0x5ad   : > { %v5237_v19 = vmul.f32 %v18379_v0, %v18379_v0  ;;  %9464 = vmatprep.subr.bf16.mxu1 %v13954_v59  ;;  %v5365_v18 = vadd.f32 %v5364_v31, %v5235_v4  ;;  %v5082_v1 = vadd.f32 %v5081_v35, %v18390_v28  ;;  %v5236_v25 = vmul.f32 %v18390_v28, %v18390_v28  ;;  %v13958_v31 = vld [vmem:[%s21249_s13 + $0x2a8] ss:$28 sps:$4 sm:$0xff]  }
 0x5ae   : > { %v5124_v15 = vadd.f32 %v5123_v60, %v18392_v61  ;;  %9013 = vmatpush1.bf16.msra.mxu0 %v13949_v6  ;;  %v5238_v62 = vmul.f32 %v18392_v61, %v18392_v61  ;;  %9465 = vmatpush1.bf16.msra.mxu1 %v13952_v38 }
 0x5af   : > { %v5407_v49 = vadd.f32 %v5406_v46, %v5237_v19  ;;  %9014 = vmatprep.subr.bf16.mxu0 %v13957_v48  ;;  %v5386_v59 = vadd.f32 %v5385_v29, %v5236_v25  ;;  %9466 = vmatprep.subr.bf16.mxu1 %v13960_v30  ;;  %v18415_v6 = vpop.f32.mrb[104].mxu0  ;;  %v18417_v35 = vpop.f32.mrb[120].mxu1  ;;  %v13966_v46 = vld [vmem:[%s21249_s13 + $0x2e4] ss:$28 sps:$4 sm:$0xff]   ;;  %v13961_v48 = vld [vmem:[%s21249_s13 + $0x2d8] ss:$28 sps:$4 sm:$0xff]  }
 0x5b0   : > { %v5428_v4 = vadd.f32 %v5427_v21, %v5238_v62  ;;  %21808 = vst [vmem:[#allocation96_spill] sm:$0xff] %v18415_v6  ;;  %21809 = vst [vmem:[#allocation97_spill] sm:$0xff] %v18417_v35  ;;  %v5062_v47 = vadd.f32 %v5061_v16, %v18415_v6  ;;  %v5243_v60 = vmul.f32 %v18415_v6, %v18415_v6  ;;  %v18428_v38 = vpop.f32.mrb[105].mxu0  ;;  %v18430_v21 = vpop.f32.mrb[121].mxu1 }
 0x5b1   : > { %v5104_v29 = vadd.f32 %v5103_v17, %v18417_v35  ;;  %v5245_v32 = vmul.f32 %v18417_v35, %v18417_v35  ;;  %21810 = vst [vmem:[#allocation98_spill] sm:$0xff] %v18428_v38  ;;  %21811 = vst [vmem:[#allocation99_spill] sm:$0xff] %v18430_v21  ;;  %v5083_v30 = vadd.f32 %v5082_v1, %v18428_v38  ;;  %v18441_v25 = vpop.f32.mrb[106].mxu0  ;;  %v18443_v62 = vpop.f32.mrb[122].mxu1  ;;  %v13969_v1 = vld [vmem:[%s21249_s13 + $0x314] ss:$28 sps:$4 sm:$0xff]  }
 0x5b2   : > { %9015 = vmatpush1.bf16.msra.mxu0 %v13955_v36  ;;  %v5244_v16 = vmul.f32 %v18428_v38, %v18428_v38  ;;  %v5125_v19 = vadd.f32 %v5124_v15, %v18430_v21  ;;  %v5246_v17 = vmul.f32 %v18430_v21, %v18430_v21  ;;  %21812 = vst [vmem:[#allocation100_spill] sm:$0xff] %v18441_v25  ;;  %21813 = vst [vmem:[#allocation101_spill] sm:$0xff] %v18443_v62  ;;  %v13964_v36 = vld [vmem:[%s21249_s13 + $0x2e0] ss:$28 sps:$4 sm:$0xff]   ;;  %v18454_v61 = vpop.f32.mrb[107].mxu0  ;;  %v18456_v6 = vpop.f32.mrb[123].mxu1 }
 0x5b3   : > { %9467 = vmatpush1.bf16.msra.mxu1 %v13958_v31  ;;  %v5366_v35 = vadd.f32 %v5365_v18, %v5243_v60  ;;  %v5408_v0 = vadd.f32 %v5407_v49, %v5245_v32  ;;  %v5063_v15 = vadd.f32 %v5062_v47, %v18441_v25  ;;  %v5251_v21 = vmul.f32 %v18441_v25, %v18441_v25  ;;  %v13972_v31 = vld [vmem:[%s21249_s13 + $0x31c] ss:$28 sps:$4 sm:$0xff]   ;;  %v13975_v32 = vld [vmem:[%s21249_s13 + $0x34c] ss:$28 sps:$4 sm:$0xff]  }
 0x5b4   : > { %21814 = vst [vmem:[#allocation102_spill] sm:$0xff] %v18454_v61  ;;  %21815 = vst [vmem:[#allocation103_spill] sm:$0xff] %v18456_v6  ;;  %9016 = vmatprep.subr.bf16.mxu0 %v13963_v22  ;;  %v5387_v38 = vadd.f32 %v5386_v59, %v5244_v16  ;;  %v5429_v42 = vadd.f32 %v5428_v4, %v5246_v17  ;;  %v5105_v28 = vadd.f32 %v5104_v29, %v18443_v62  ;;  %v13967_v59 = vld [vmem:[%s21249_s13 + $0x310] ss:$28 sps:$4 sm:$0xff]  }
 0x5b5   : > { %v5253_v18 = vmul.f32 %v18443_v62, %v18443_v62  ;;  %9468 = vmatprep.subr.bf16.mxu1 %v13966_v46  ;;  %v5367_v49 = vadd.f32 %v5366_v35, %v5251_v21  ;;  %v5084_v47 = vadd.f32 %v5083_v30, %v18454_v61  ;;  %v5252_v60 = vmul.f32 %v18454_v61, %v18454_v61  ;;  %v13970_v35 = vld [vmem:[%s21249_s13 + $0x318] ss:$28 sps:$4 sm:$0xff]  }
 0x5b6   : > { %v5126_v22 = vadd.f32 %v5125_v19, %v18456_v6  ;;  %9017 = vmatpush1.bf16.msra.mxu0 %v13961_v48  ;;  %v5254_v29 = vmul.f32 %v18456_v6, %v18456_v6 }
 0x5b7   : > { %v5409_v4 = vadd.f32 %v5408_v0, %v5253_v18  ;;  %9469 = vmatpush1.bf16.msra.mxu1 %v13964_v36  ;;  %9018 = vmatprep.subr.bf16.mxu0 %v13969_v1  ;;  %v5388_v46 = vadd.f32 %v5387_v38, %v5252_v60  ;;  %v18479_v48 = vpop.f32.mrb[108].mxu0  ;;  %v18481_v30 = vpop.f32.mrb[124].mxu1  ;;  %v13978_v0 = vld [vmem:[%s21249_s13 + $0x354] ss:$28 sps:$4 sm:$0xff]   ;;  %v13973_v1 = vld [vmem:[%s21249_s13 + $0x348] ss:$28 sps:$4 sm:$0xff]  }
 0x5b8   : > { %9470 = vmatprep.subr.bf16.mxu1 %v13972_v31  ;;  %v5430_v21 = vadd.f32 %v5429_v42, %v5254_v29  ;;  %21816 = vst [vmem:[#allocation104_spill] sm:$0xff] %v18479_v48  ;;  %21817 = vst [vmem:[#allocation105_spill] sm:$0xff] %v18481_v30  ;;  %v5064_v16 = vadd.f32 %v5063_v15, %v18479_v48  ;;  %v5259_v19 = vmul.f32 %v18479_v48, %v18479_v48  ;;  %v18492_v36 = vpop.f32.mrb[109].mxu0  ;;  %v18494_v42 = vpop.f32.mrb[125].mxu1 }
 0x5b9   : > { %v5106_v38 = vadd.f32 %v5105_v28, %v18481_v30  ;;  %v5261_v17 = vmul.f32 %v18481_v30, %v18481_v30  ;;  %21818 = vst [vmem:[#allocation106_spill] sm:$0xff] %v18492_v36  ;;  %21819 = vst [vmem:[#allocation107_spill] sm:$0xff] %v18494_v42  ;;  %v5085_v31 = vadd.f32 %v5084_v47, %v18492_v36  ;;  %v18505_v60 = vpop.f32.mrb[110].mxu0  ;;  %v18507_v29 = vpop.f32.mrb[126].mxu1  ;;  %v13981_v47 = vld [vmem:[%s21249_s13 + $0x384] ss:$28 sps:$4 sm:$0xff]  }
 0x5ba   : > { %9019 = vmatpush1.bf16.msra.mxu0 %v13967_v59  ;;  %v5260_v15 = vmul.f32 %v18492_v36, %v18492_v36  ;;  %v5127_v18 = vadd.f32 %v5126_v22, %v18494_v42  ;;  %v5262_v28 = vmul.f32 %v18494_v42, %v18494_v42  ;;  %21820 = vst [vmem:[#allocation108_spill] sm:$0xff] %v18505_v60  ;;  %21821 = vst [vmem:[#allocation109_spill] sm:$0xff] %v18507_v29  ;;  %v13976_v59 = vld [vmem:[%s21249_s13 + $0x350] ss:$28 sps:$4 sm:$0xff]   ;;  %v18518_v6 = vpop.f32.mrb[111].mxu0  ;;  %v18520_v48 = vpop.f32.mrb[127].mxu1 }
 0x5bb   : > { %9471 = vmatpush1.bf16.msra.mxu1 %v13970_v35  ;;  %v5368_v30 = vadd.f32 %v5367_v49, %v5259_v19  ;;  %v5410_v62 = vadd.f32 %v5409_v4, %v5261_v17  ;;  %v5065_v22 = vadd.f32 %v5064_v16, %v18505_v60  ;;  %v5267_v42 = vmul.f32 %v18505_v60, %v18505_v60  ;;  %v13984_v35 = vld [vmem:[%s21249_s13 + $0x38c] ss:$28 sps:$4 sm:$0xff]  }
 0x5bc   : > { %21822 = vst [vmem:[#allocation110_spill] sm:$0xff] %v18518_v6  ;;  %21823 = vst [vmem:[#allocation111_spill] sm:$0xff] %v18520_v48  ;;  %9020 = vmatprep.subr.bf16.mxu0 %v13975_v32  ;;  %v5389_v36 = vadd.f32 %v5388_v46, %v5260_v15  ;;  %v5431_v25 = vadd.f32 %v5430_v21, %v5262_v28  ;;  %v5107_v61 = vadd.f32 %v5106_v38, %v18507_v29 }
 0x5bd   : > { %v5269_v49 = vmul.f32 %v18507_v29, %v18507_v29  ;;  %9472 = vmatprep.subr.bf16.mxu1 %v13978_v0  ;;  %v5066_v4 = vrot.slane %v5065_v22, 4  ;;  %v5369_v16 = vadd.f32 %v5368_v30, %v5267_v42  ;;  %v5086_v19 = vadd.f32 %v5085_v31, %v18518_v6 }
 0x5be   : > { %v5268_v17 = vmul.f32 %v18518_v6, %v18518_v6  ;;  %9021 = vmatpush1.bf16.msra.mxu0 %v13973_v1  ;;  %v5108_v32 = vrot.slane %v5107_v61, 4  ;;  %v5128_v2 = vadd.f32 %v5127_v18, %v18520_v48  ;;  %v5270_v46 = vmul.f32 %v18520_v48, %v18520_v48 }
 0x5bf   : > { %v5411_v60 = vadd.f32 %v5410_v62, %v5269_v49  ;;  %9473 = vmatpush1.bf16.msra.mxu1 %v13976_v59  ;;  %9103 = vmatprep.subr.bf16.mxu0 %v13981_v47  ;;  %v5067_v21 = vadd.f32 %v5066_v4, %v5065_v22  ;;  %v5370_v38 = vrot.slane %v5369_v16, 4  ;;  %v5087_v0 = vrot.slane %v5086_v19, 4 }
 0x5c0   : > { %v5390_v15 = vadd.f32 %v5389_v36, %v5268_v17  ;;  %9555 = vmatprep.subr.bf16.mxu1 %v13984_v35  ;;  %v5109_v30 = vadd.f32 %v5108_v32, %v5107_v61  ;;  %v5129_v31 = vrot.slane %v5128_v2, 4  ;;  %v5432_v28 = vadd.f32 %v5431_v25, %v5270_v46 }
 0x5c1   : > { %v5412_v42 = vrot.slane %v5411_v60, 4  ;;  %v5068_v29 = vrot.slane %v5067_v21, 2  ;;  %v5371_v1 = vadd.f32 %v5370_v38, %v5369_v16  ;;  %v5088_v6 = vadd.f32 %v5087_v0, %v5086_v19 }
 0x5c2   : > { %v5391_v62 = vrot.slane %v5390_v15, 4  ;;  %v5110_v49 = vrot.slane %v5109_v30, 2  ;;  %v5130_v13 = vadd.f32 %v5129_v31, %v5128_v2  ;;  %v5433_v54 = vrot.slane %v5432_v28, 4 }
 0x5c3   : > { %v5413_v18 = vadd.f32 %v5412_v42, %v5411_v60  ;;  %v5069_v48 = vadd.f32 %v5068_v29, %v5067_v21  ;;  %v5372_v59 = vrot.slane %v5371_v1, 2  ;;  %v5089_v47 = vrot.slane %v5088_v6, 2 }
 0x5c4   : > { %v5392_v22 = vadd.f32 %v5391_v62, %v5390_v15  ;;  %v5111_v4 = vadd.f32 %v5110_v49, %v5109_v30  ;;  %v5131_v36 = vrot.slane %v5130_v13, 2  ;;  %v5434_v35 = vadd.f32 %v5433_v54, %v5432_v28 }
 0x5c5   : > { %v5414_v23 = vrot.slane %v5413_v18, 2  ;;  %v5070_v61 = vrot.slane %v5069_v48, 1  ;;  %v5373_v17 = vadd.f32 %v5372_v59, %v5371_v1  ;;  %v5090_v32 = vadd.f32 %v5089_v47, %v5088_v6 }
 0x5c6   : > { %v5393_v25 = vrot.slane %v5392_v22, 2  ;;  %v5112_v46 = vrot.slane %v5111_v4, 1  ;;  %v5132_v19 = vadd.f32 %v5131_v36, %v5130_v13  ;;  %v5435_v38 = vrot.slane %v5434_v35, 2 }
 0x5c7   : > { %v5415_v16 = vadd.f32 %v5414_v23, %v5413_v18  ;;  %v5071_v0 = vadd.f32 %v5070_v61, %v5069_v48  ;;  %v5374_v60 = vrot.slane %v5373_v17, 1  ;;  %v5091_v2 = vrot.slane %v5090_v32, 1 }
 0x5c8   : > { %v5394_v42 = vadd.f32 %v5393_v25, %v5392_v22  ;;  %v5113_v29 = vadd.f32 %v5112_v46, %v5111_v4  ;;  %v5133_v31 = vrot.slane %v5132_v19, 1  ;;  %v5436_v15 = vadd.f32 %v5435_v38, %v5434_v35 }
 0x5c9   : > { %v5416_v21 = vrot.slane %v5415_v16, 1  ;;  %v5139_v30 = vmul.f32 0.0078125, %v5071_v0  ;;  %v5375_v62 = vadd.f32 %v5374_v60, %v5373_v17  ;;  %v5092_v49 = vadd.f32 %v5091_v2, %v5090_v32 }
 0x5ca   : > { %v5395_v54 = vrot.slane %v5394_v42, 1  ;;  %v5141_v28 = vmul.f32 0.0078125, %v5113_v29  ;;  %v5134_v6 = vadd.f32 %v5133_v31, %v5132_v19  ;;  %v5437_v59 = vrot.slane %v5436_v15, 1 }
 0x5cb   : > { %v5417_v1 = vadd.f32 %v5416_v21, %v5415_v16  ;;  %v5443_v47 = vmul.f32 0.0078125, %v5375_v62  ;;  %v5451_v23 = vmul.f32 %v5139_v30, %v5139_v30  ;;  %v5140_v13 = vmul.f32 0.0078125, %v5092_v49 }
 0x5cc   : > { %v5396_v18 = vadd.f32 %v5395_v54, %v5394_v42  ;;  %v5453_v36 = vmul.f32 %v5141_v28, %v5141_v28  ;;  %v5142_v61 = vmul.f32 0.0078125, %v5134_v6  ;;  %v5438_v22 = vadd.f32 %v5437_v59, %v5436_v15 }
 0x5cd   : > { %v5445_v48 = vmul.f32 0.0078125, %v5417_v1  ;;  %v5459_v4 = vsub.f32 %v5443_v47, %v5451_v23  ;;  %v5452_v46 = vmul.f32 %v5140_v13, %v5140_v13  ;;  %v21824_v6 = vcombine.low %v18009_v14, %v18012_v39  ;;  %v5463_v23 = vld [vmem:[%s21247_s11] sm:$0xff]  ;;  %v21829_v39 = vld [vmem:[#allocation3_spill] sm:$0xff] }
 0x5ce   : > { %v5444_v25 = vmul.f32 0.0078125, %v5396_v18  ;;  %v5446_v38 = vmul.f32 0.0078125, %v5438_v22  ;;  %v5454_v17 = vmul.f32 %v5142_v61, %v5142_v61 }
 0x5cf   : > { %v5461_v35 = vsub.f32 %v5445_v48, %v5453_v36  ;;  %v5468_v32 = vadd.f32 1e-05, %v5459_v4  ;;  %v5528_v59 = vrot.slane %v21824_v6, %v21759_v40  ;;  %v21825_v48 = vld [vmem:[#allocation2_spill] sm:$0xff] }
 0x5d0   : > { %v5460_v0 = vsub.f32 %v5444_v25, %v5452_v46  ;;  %v5462_v16 = vsub.f32 %v5446_v38, %v5454_v17  ;;  %v18545_v36 = vsub.s32 4, %v21825_v48  ;;  %v18548_v22 = vsub.s32 5, %v21825_v48 }
 0x5d1   : > { %v5470_v60 = vadd.f32 1e-05, %v5461_v35  ;;  %14545 = vrsqrt.f32 %v5468_v32  ;;  %v18551_v4 = vsub.s32 6, %v21825_v48  ;;  %v5571_v25 = vsub.s32 7, %v21825_v48  ;;  %v21830_v35 = vld [vmem:[#allocation5_spill] sm:$0xff] }
 0x5d2   : > { %v5469_v19 = vadd.f32 1e-05, %v5460_v0  ;;  %v5471_v2 = vadd.f32 1e-05, %v5462_v16  ;;  %21826 = vst [vmem:[#allocation2_spill] sm:$0xff] %v18545_v36  ;;  %21827 = vst [vmem:[#allocation112_spill] sm:$0xff] %v18548_v22 }
 0x5d3   : > { %14547 = vrsqrt.f32 %v5470_v60  ;;  %21828 = vst [vmem:[#allocation113_spill] sm:$0xff] %v18551_v4  ;;  %v21831_v32 = vld [vmem:[#allocation53_spill] sm:$0xff] }
 0x5d4   : > { %14549 = vrsqrt.f32 %v5469_v19 }
 0x5d5   : > { %14551 = vrsqrt.f32 %v5471_v2 }
 0x5db   : > { %v14546_v42 = vpop.eup %14545 }
 0x5dd   : > { %v14548_v29 = vpop.eup %14547 }
 0x5de   : > { %v14550_v21 = vpop.eup %14549 }
 0x5df   : > { %v14552_v31 = vpop.eup %14551  ;;  %v5490_v15 = vcombine.low %v14546_v42, %v14550_v21 }
 0x5e0   : > { %v5491_v62 = vcombine.low %v14548_v29, %v14552_v31 }
 0x5e1   : > { %v5512_v49 = vrot.slane %v5490_v15, %v21759_v40 }
 0x5e2   : > { %v5519_v54 = vrot.slane %v5491_v62, %v21759_v40 }
 0x5e4   : > { %v5521_v1 = vcombine.low %v5512_v49, %v5519_v54 }
 0x5e6   : > { %v5535_v47 = vrot.slane %v5521_v1, %v21759_v40 }
 0x5e8   : > { %v5536_v18 = vcombine.low %v5528_v59, %v5535_v47 }
 0x5ea   : > { %v5538_v14 = vmul.f32 %v5536_v18, %v5463_v23 }
 0x5ec   : > { %v5544_v46 = vrot.slane %v5538_v14, %v21829_v39  ;;  %v5548_v38 = vrot.slane %v5538_v14, %v21830_v35  ;;  %v18557_v17 = vrot.slane %v5538_v14, %v16410_v34  ;;  %v18560_v0 = vrot.slane %v5538_v14, %v21831_v32 }
 0x5ed   : > { %v18563_v60 = vrot.slane %v5538_v14, %v18545_v36  ;;  %v18566_v16 = vrot.slane %v5538_v14, %v18548_v22  ;;  %v18569_v19 = vrot.slane %v5538_v14, %v18551_v4  ;;  %v18573_v2 = vrot.slane %v5538_v14, %v5571_v25 }
 0x5ee   : > { %v5581_v42 = vmul.f32 %v5544_v46, %v17992_v56  ;;  %v5582_v29 = vmul.f32 %v5548_v38, %v17998_v52  ;;  %v5583_v21 = vmul.f32 %v18557_v17, %v17994_v41  ;;  %v5584_v31 = vmul.f32 %v18560_v0, %v18002_v7 }
 0x5ef   : > { %21832 = vst [vmem:[#allocation114_spill] sm:$0xff] %v18569_v19  ;;  %21833 = vst [vmem:[#allocation115_spill] sm:$0xff] %v18573_v2  ;;  %v5585_v15 = vmul.f32 %v18563_v60, %v5139_v30  ;;  %v5586_v62 = vmul.f32 %v18566_v16, %v5140_v13  ;;  %v5587_v49 = vmul.f32 %v18569_v19, %v5141_v28 }
 0x5f0   : > { %v5588_v54 = vmul.f32 %v18573_v2, %v5142_v61  ;;  %v5597_v1 = vcombine.low %v5581_v42, %v5582_v29  ;;  %v5598_v6 = vcombine.low %v5583_v21, %v5584_v31  ;;  %v5649_v56 = vmul.f32 %v5548_v38, %v17676_v33  ;;  %v21834_v31 = vld [vmem:[#allocation56_spill] sm:$0xff] }
 0x5f1   : > { %v5599_v59 = vcombine.low %v5585_v15, %v5586_v62  ;;  %v5657_v47 = vmul.f32 %v5548_v38, %v17700_v55  ;;  %v5648_v41 = vmul.f32 %v5544_v46, %v17672_v12  ;;  %v5656_v13 = vmul.f32 %v5544_v46, %v17688_v5  ;;  %v21835_v15 = vld [vmem:[#allocation77_spill] sm:$0xff] }
 0x5f2   : > { %v5600_v52 = vcombine.low %v5587_v49, %v5588_v54  ;;  %v5607_v7 = vrot.slane %v5597_v1, %v21759_v40  ;;  %v5614_v30 = vrot.slane %v5598_v6, %v21759_v40  ;;  %v5665_v28 = vmul.f32 %v5548_v38, %v17722_v24  ;;  %v21836_v49 = vld [vmem:[#allocation20_spill] sm:$0xff] }
 0x5f3   : > { %v5621_v61 = vrot.slane %v5599_v59, %v21759_v40  ;;  %v5673_v33 = vmul.f32 %v5548_v38, %v17739_v51  ;;  %v5664_v18 = vmul.f32 %v5544_v46, %v17712_v11  ;;  %v5672_v55 = vmul.f32 %v5544_v46, %v17732_v43 }
 0x5f4   : > { %v5628_v23 = vrot.slane %v5600_v52, %v21759_v40  ;;  %v5629_v14 = vcombine.low %v5607_v7, %v5614_v30  ;;  %v18598_v12 = vmul.f32 %v5548_v38, %v17762_v20  ;;  %v18601_v42 = vmul.f32 %v5548_v38, %v17779_v58  ;;  %v21841_v30 = vld [vmem:[#allocation59_spill] sm:$0xff] }
 0x5f5   : > { %v18604_v24 = vmul.f32 %v5544_v46, %v17752_v10  ;;  %v18607_v29 = vmul.f32 %v5544_v46, %v17772_v9  ;;  %v18610_v51 = vmul.f32 %v5548_v38, %v17802_v3  ;;  %v18614_v43 = vmul.f32 %v5548_v38, %v17819_v45  ;;  %v5539_v45 = vld [vmem:[%s21248_s12] sm:$0xff] }
 0x5f6   : > { %v5630_v5 = vcombine.low %v5621_v61, %v5628_v23  ;;  %v5637_v11 = vrot.slane %v5629_v14, %v21759_v40  ;;  %v18617_v20 = vmul.f32 %v5544_v46, %v17792_v8  ;;  %v18620_v58 = vmul.f32 %v5544_v46, %v17812_v53  ;;  %v21842_v23 = vld [vmem:[#allocation25_spill] sm:$0xff] }
 0x5f7   : > { %v18624_v21 = vmul.f32 %v5548_v38, %v17842_v50  ;;  %v18627_v9 = vmul.f32 %v5548_v38, %v17859_v27  ;;  %v18630_v3 = vmul.f32 %v5544_v46, %v17832_v26  ;;  %v18636_v8 = vmul.f32 %v5544_v46, %v17852_v37  ;;  %v21837_v37 = vld [vmem:[#allocation37_spill] sm:$0xff] }
 0x5f8   : > { %v5644_v10 = vrot.slane %v5630_v5, %v21759_v40  ;;  %v18639_v53 = vmul.f32 %v5548_v38, %v17882_v44  ;;  %v18642_v40 = vmul.f32 %v5548_v38, %v17899_v57  ;;  %v18645_v50 = vmul.f32 %v5544_v46, %v17872_v63  ;;  %v21838_v44 = vld [vmem:[#allocation18_spill] sm:$0xff]  ;;  %v21839_v57 = vld [vmem:[#allocation61_spill] sm:$0xff]  ;;  %v21843_v5 = vld [vmem:[#allocation40_spill] sm:$0xff] }
 0x5f9   : > { %v18648_v26 = vmul.f32 %v5544_v46, %v21834_v31  ;;  %v18651_v62 = vmul.f32 %v5548_v38, %v21835_v15  ;;  %v18654_v54 = vmul.f32 %v5548_v38, %v21836_v49  ;;  %v18657_v1 = vmul.f32 %v5544_v46, %v21837_v37  ;;  %v21840_v63 = vld [vmem:[#allocation62_spill] sm:$0xff]  ;;  %v21848_v37 = vld [vmem:[#allocation111_spill] sm:$0xff] }
 0x5fa   : > { %v5645_v27 = vcombine.low %v5637_v11, %v5644_v10  ;;  %v18660_v6 = vmul.f32 %v5544_v46, %v21838_v44  ;;  %v18663_v59 = vmul.f32 %v5548_v38, %v21839_v57  ;;  %v18666_v52 = vmul.f32 %v5548_v38, %v21840_v63  ;;  %v21844_v10 = vld [vmem:[#allocation8_spill] sm:$0xff]  ;;  %v21845_v15 = vld [vmem:[#allocation46_spill] sm:$0xff] }
 0x5fb   : > { %v18669_v61 = vmul.f32 %v5544_v46, %v21841_v30  ;;  %v18672_v14 = vmul.f32 %v5544_v46, %v21842_v23  ;;  %v18676_v11 = vmul.f32 %v18560_v0, %v21843_v5  ;;  %v18680_v31 = vmul.f32 %v18560_v0, %v21844_v10  ;;  %v21846_v38 = vld [vmem:[#allocation44_spill] sm:$0xff] }
 0x5fc   : > { %v5647_v7 = vsub.f32 %v5539_v45, %v5645_v27  ;;  %v18684_v49 = vmul.f32 %v18557_v17, %v21845_v15  ;;  %v18688_v45 = vmul.f32 %v18557_v17, %v21846_v38  ;;  %v21847_v27 = vld [vmem:[#allocation6_spill] sm:$0xff]  ;;  %v5775_v44 = vmul.f32 %v18573_v2, %v21848_v37 }
 0x5fd   : > { %v18692_v46 = vmul.f32 %v18560_v0, %v21847_v27 }
 0x5fe   : > { %v18697_v57 = vrot.slane %v5647_v7, %v21829_v39  ;;  %v18700_v63 = vrot.slane %v5647_v7, %v21830_v35  ;;  %v18703_v30 = vrot.slane %v5647_v7, %v16410_v34  ;;  %v18706_v23 = vrot.slane %v5647_v7, %v21831_v32 }
 0x5ff   : > { %v18709_v5 = vrot.slane %v5647_v7, %v18545_v36  ;;  %v18712_v10 = vrot.slane %v5647_v7, %v18548_v22  ;;  %v18716_v15 = vrot.slane %v5647_v7, %v5571_v25 }
 0x600   : > { %v5818_v38 = vadd.f32 %v18700_v63, %v5649_v56  ;;  %v5826_v27 = vadd.f32 %v18700_v63, %v5657_v47  ;;  %v5817_v37 = vadd.f32 %v18697_v57, %v5648_v41  ;;  %v5825_v34 = vadd.f32 %v18697_v57, %v5656_v13 }
 0x601   : > { %v18723_v32 = vadd.f32 %v18716_v15, %v5775_v44  ;;  %v5834_v36 = vadd.f32 %v18700_v63, %v5665_v28  ;;  %v5842_v22 = vadd.f32 %v18700_v63, %v5673_v33  ;;  %v5833_v35 = vadd.f32 %v18697_v57, %v5664_v18  ;;  %v13979_v28 = vld [vmem:[%s21249_s13 + $0x380] ss:$28 sps:$4 sm:$0xff]  }
 0x602   : > { %v5946_v48 = vmax.f32 %v5818_v38, 0.0  ;;  %v5954_v25 = vmax.f32 %v5826_v27, 0.0  ;;  %v5945_v39 = vmax.f32 %v5817_v37, 0.0  ;;  %v5953_v19 = vmax.f32 %v5825_v34, 0.0  ;;  %v13982_v34 = vld [vmem:[%s21249_s13 + $0x388] ss:$28 sps:$4 sm:$0xff]  }
 0x603   : > { %v18729_v56 = vrot.slane %v5647_v7, %v18551_v4  ;;  %v5962_v47 = vmax.f32 %v5834_v36, 0.0  ;;  %v5970_v41 = vmax.f32 %v5842_v22, 0.0  ;;  %v5841_v13 = vadd.f32 %v18697_v57, %v5672_v55 }
 0x604   : > { %v18732_v2 = vpack.c.bf16 %v5954_v25, %v5946_v48  ;;  %v18737_v33 = vpack.c.bf16 %v5953_v19, %v5945_v39  ;;  %v5961_v18 = vmax.f32 %v5833_v35, 0.0  ;;  %v5850_v44 = vadd.f32 %v18700_v63, %v18598_v12  ;;  %v13987_v39 = vld [vmem:[%s21249_s13 + $0x3bc] ss:$28 sps:$4 sm:$0xff]   ;;  %v13990_v35 = vld [vmem:[%s21249_s13 + $0x3c4] ss:$28 sps:$4 sm:$0xff]  }
 0x605   : > { %v18744_v36 = vpack.c.bf16 %v5970_v41, %v5962_v47  ;;  %v5969_v22 = vmax.f32 %v5841_v13, 0.0  ;;  %v5858_v55 = vadd.f32 %v18700_v63, %v18601_v42  ;;  %v5849_v7 = vadd.f32 %v18697_v57, %v18604_v24  ;;  %v13993_v41 = vld [vmem:[%s21249_s13 + $0x3f4] ss:$28 sps:$4 sm:$0xff]  }
 0x606   : > { %9022 = vmatprep.mubr.bf16.mxu0 %v18732_v2  ;;  %9474 = vmatprep.mubr.bf16.mxu1 %v18732_v2  ;;  %v5978_v19 = vmax.f32 %v5850_v44, 0.0  ;;  %v5857_v12 = vadd.f32 %v18697_v57, %v18607_v29  ;;  %v5866_v42 = vadd.f32 %v18700_v63, %v18610_v51  ;;  %v5874_v24 = vadd.f32 %v18700_v63, %v18614_v43  ;;  %v13985_v29 = vld [vmem:[%s21249_s13 + $0x3b8] ss:$28 sps:$4 sm:$0xff]  }
 0x607   : > { %9023 = vmatmul.mubr.bf16.vlgmr.msra.gmra.mrb[112].mxu0 %v18737_v33  ;;  %9475 = vmatmul.mubr.bf16.vlgmr.msra.gmra.mrb[128].mxu1 %v18737_v33  ;;  %v18766_v38 = vpack.c.bf16 %v5969_v22, %v5961_v18  ;;  %v5986_v27 = vmax.f32 %v5858_v55, 0.0  ;;  %v5977_v37 = vmax.f32 %v5849_v7, 0.0  ;;  %v5865_v48 = vadd.f32 %v18697_v57, %v18617_v20  ;;  %v13988_v20 = vld [vmem:[%s21249_s13 + $0x3c0] ss:$28 sps:$4 sm:$0xff]  }
 0x608   : > { %9104 = vmatpush1.bf16.msra.mxu0 %v13979_v28  ;;  %9032 = vmatprep.mubr.bf16.mxu0 %v18744_v36  ;;  %v5985_v51 = vmax.f32 %v5857_v12, 0.0  ;;  %v5994_v43 = vmax.f32 %v5866_v42, 0.0  ;;  %v6002_v25 = vmax.f32 %v5874_v24, 0.0  ;;  %v5873_v47 = vadd.f32 %v18697_v57, %v18620_v58  ;;  %v13996_v44 = vld [vmem:[%s21249_s13 + $0x3fc] ss:$28 sps:$4 sm:$0xff]  }
 0x609   : > { %21849 = vst [vmem:[#allocation56_spill] sm:$0xff] %v18766_v38  ;;  %9484 = vmatprep.mubr.bf16.mxu1 %v18744_v36  ;;  %9556 = vmatpush1.bf16.msra.mxu1 %v13982_v34  ;;  %v18783_v13 = vpack.c.bf16 %v5986_v27, %v5978_v19  ;;  %v5993_v28 = vmax.f32 %v5865_v48, 0.0  ;;  %v5882_v18 = vadd.f32 %v18700_v63, %v18624_v21 }
 0x60a   : > { %v5890_v58 = vadd.f32 %v18700_v63, %v18627_v9  ;;  %9105 = vmatprep.subr.bf16.mxu0 %v13987_v39  ;;  %9557 = vmatprep.subr.bf16.mxu1 %v13990_v35  ;;  %v18792_v34 = vpack.c.bf16 %v5985_v51, %v5977_v37  ;;  %v18794_v22 = vpack.c.bf16 %v6002_v25, %v5994_v43  ;;  %v6001_v55 = vmax.f32 %v5873_v47, 0.0  ;;  %v13991_v39 = vld [vmem:[%s21249_s13 + $0x3f0] ss:$28 sps:$4 sm:$0xff]  }
 0x60b   : > { %21850 = vst [vmem:[#allocation77_spill] sm:$0xff] %v18783_v13  ;;  %v5881_v7 = vadd.f32 %v18697_v57, %v18630_v3  ;;  %v6010_v19 = vmax.f32 %v5882_v18, 0.0  ;;  %v5889_v21 = vadd.f32 %v18697_v57, %v18636_v8  ;;  %v5898_v9 = vadd.f32 %v18700_v63, %v18639_v53  ;;  %v13994_v8 = vld [vmem:[%s21249_s13 + $0x3f8] ss:$28 sps:$4 sm:$0xff]  }
 0x60c   : > { %21851 = vst [vmem:[#allocation20_spill] sm:$0xff] %v18792_v34  ;;  %21852 = vst [vmem:[#allocation37_spill] sm:$0xff] %v18794_v22  ;;  %v6018_v12 = vmax.f32 %v5890_v58, 0.0  ;;  %9106 = vmatpush1.bf16.msra.mxu0 %v13985_v29  ;;  %v18805_v35 = vpack.c.bf16 %v6001_v55, %v5993_v28  ;;  %v5906_v24 = vadd.f32 %v18700_v63, %v18642_v40  ;;  %v13999_v40 = vld [vmem:[%s21249_s13 + $0x42c] ss:$28 sps:$4 sm:$0xff]  }
 0x60d   : > { %v6009_v42 = vmax.f32 %v5881_v7, 0.0  ;;  %v5897_v3 = vadd.f32 %v18697_v57, %v18645_v50  ;;  %9558 = vmatpush1.bf16.msra.mxu1 %v13988_v20  ;;  %9107 = vmatprep.subr.bf16.mxu0 %v13993_v41  ;;  %v6017_v27 = vmax.f32 %v5889_v21, 0.0  ;;  %v6026_v37 = vmax.f32 %v5898_v9, 0.0  ;;  %v14002_v50 = vld [vmem:[%s21249_s13 + $0x434] ss:$28 sps:$4 sm:$0xff]  }
 0x60e   : > { %21853 = vst [vmem:[#allocation18_spill] sm:$0xff] %v18805_v35  ;;  %v18814_v53 = vpack.c.bf16 %v6018_v12, %v6010_v19  ;;  %v5905_v48 = vadd.f32 %v18697_v57, %v18648_v26  ;;  %9559 = vmatprep.subr.bf16.mxu1 %v13996_v44  ;;  %v6034_v29 = vmax.f32 %v5906_v24, 0.0  ;;  %v5914_v43 = vadd.f32 %v18700_v63, %v18651_v62  ;;  %v13997_v62 = vld [vmem:[%s21249_s13 + $0x428] ss:$28 sps:$4 sm:$0xff]  }
 0x60f   : > { %v6025_v51 = vmax.f32 %v5897_v3, 0.0  ;;  %v5922_v25 = vadd.f32 %v18700_v63, %v18654_v54  ;;  %9033 = vmatmul.mubr.bf16.gmra.mrb[116].mxu0 %v18766_v38  ;;  %9485 = vmatmul.mubr.bf16.gmra.mrb[132].mxu1 %v18766_v38  ;;  %v18830_v26 = vpack.c.bf16 %v6017_v27, %v6009_v42  ;;  %v5913_v20 = vadd.f32 %v18697_v57, %v18657_v1  ;;  %v14000_v1 = vld [vmem:[%s21249_s13 + $0x430] ss:$28 sps:$4 sm:$0xff]   ;;  %v14003_v3 = vld [vmem:[%s21249_s13 + $0x460] ss:$28 sps:$4 sm:$0xff]  }
 0x610   : > { %21854 = vst [vmem:[#allocation61_spill] sm:$0xff] %v18814_v53  ;;  %v6033_v47 = vmax.f32 %v5905_v48, 0.0  ;;  %v5921_v41 = vadd.f32 %v18697_v57, %v18660_v6  ;;  %9108 = vmatpush1.bf16.msra.mxu0 %v13991_v39  ;;  %9042 = vmatprep.mubr.bf16.mxu0 %v18783_v13  ;;  %v18840_v54 = vpack.c.bf16 %v6034_v29, %v6026_v37  ;;  %v6042_v28 = vmax.f32 %v5914_v43, 0.0  ;;  %v14005_v6 = vld [vmem:[%s21249_s13 + $0x464] ss:$28 sps:$4 sm:$0xff]   ;;  %v21861_v48 = vld [vmem:[#allocation15_spill] sm:$0xff] }
 0x611   : > { %21855 = vst [vmem:[#allocation62_spill] sm:$0xff] %v18830_v26  ;;  %v6050_v18 = vmax.f32 %v5922_v25, 0.0  ;;  %v5930_v58 = vadd.f32 %v18700_v63, %v18663_v59  ;;  %9494 = vmatprep.mubr.bf16.mxu1 %v18783_v13  ;;  %9560 = vmatpush1.bf16.msra.mxu1 %v13994_v8  ;;  %v6041_v55 = vmax.f32 %v5913_v20, 0.0  ;;  %v5938_v19 = vadd.f32 %v18700_v63, %v18666_v52  ;;  %v14008_v59 = vld [vmem:[%s21249_s13 + $0x46c] ss:$28 sps:$4 sm:$0xff]   ;;  %v21864_v20 = vld [vmem:[#allocation13_spill] sm:$0xff] }
 0x612   : > { %21856 = vst [vmem:[#allocation59_spill] sm:$0xff] %v18840_v54  ;;  %v18851_v44 = vpack.c.bf16 %v6033_v47, %v6025_v51  ;;  %v6049_v7 = vmax.f32 %v5921_v41, 0.0  ;;  %9109 = vmatprep.subr.bf16.mxu0 %v13999_v40  ;;  %9561 = vmatprep.subr.bf16.mxu1 %v14002_v50  ;;  %v5929_v9 = vadd.f32 %v18697_v57, %v18669_v61 }
 0x613   : > { %v18858_v12 = vpack.c.bf16 %v6050_v18, %v6042_v28  ;;  %v6058_v21 = vmax.f32 %v5930_v58, 0.0  ;;  %v5937_v39 = vadd.f32 %v18697_v57, %v18672_v14  ;;  %v6066_v24 = vmax.f32 %v5938_v19, 0.0  ;;  %v21866_v18 = vld [vmem:[#allocation10_spill] sm:$0xff] }
 0x614   : > { %21857 = vst [vmem:[#allocation25_spill] sm:$0xff] %v18851_v44  ;;  %v18864_v42 = vpack.c.bf16 %v6049_v7, %v6041_v55  ;;  %v5820_v52 = vadd.f32 %v18706_v23, %v18676_v11  ;;  %v5828_v63 = vadd.f32 %v18706_v23, %v18680_v31  ;;  %9110 = vmatpush1.bf16.msra.mxu0 %v13997_v62  ;;  %v6057_v8 = vmax.f32 %v5929_v9, 0.0  ;;  %v14006_v11 = vld [vmem:[%s21249_s13 + $0x468] ss:$28 sps:$4 sm:$0xff]   ;;  %v14009_v62 = vld [vmem:[%s21249_s13 + $0x498] ss:$28 sps:$4 sm:$0xff]  }
 0x615   : > { %21858 = vst [vmem:[#allocation40_spill] sm:$0xff] %v18858_v12  ;;  %v6065_v27 = vmax.f32 %v5937_v39, 0.0  ;;  %v5819_v61 = vadd.f32 %v18703_v30, %v18684_v49  ;;  %v5827_v14 = vadd.f32 %v18703_v30, %v18688_v45  ;;  %9562 = vmatpush1.bf16.msra.mxu1 %v14000_v1  ;;  %9111 = vmatprep.subr.bf16.mxu0 %v14005_v6  ;;  %v14011_v49 = vld [vmem:[%s21249_s13 + $0x49c] ss:$28 sps:$4 sm:$0xff]   ;;  %v14014_v45 = vld [vmem:[%s21249_s13 + $0x4a4] ss:$28 sps:$4 sm:$0xff]  }
 0x616   : > { %21859 = vst [vmem:[#allocation8_spill] sm:$0xff] %v18864_v42  ;;  %v18880_v31 = vpack.c.bf16 %v6066_v24, %v6058_v21  ;;  %v5948_v57 = vmax.f32 %v5820_v52, 0.0  ;;  %v5956_v37 = vmax.f32 %v5828_v63, 0.0  ;;  %v5675_v40 = vmul.f32 %v18560_v0, %v21861_v48  ;;  %9563 = vmatprep.subr.bf16.mxu1 %v14008_v59  ;;  %v21867_v1 = vld [vmem:[#allocation14_spill] sm:$0xff]  ;;  %v14017_v7 = vld [vmem:[%s21249_s13 + $0x4d4] ss:$28 sps:$4 sm:$0xff]  }
 0x617   : > { %v18890_v50 = vpack.c.bf16 %v6065_v27, %v6057_v8  ;;  %v5947_v29 = vmax.f32 %v5819_v61, 0.0  ;;  %v5955_v51 = vmax.f32 %v5827_v14, 0.0  ;;  %v5836_v43 = vadd.f32 %v18706_v23, %v18692_v46  ;;  %9043 = vmatmul.mubr.bf16.gmra.mrb[120].mxu0 %v18792_v34  ;;  %9495 = vmatmul.mubr.bf16.gmra.mrb[136].mxu1 %v18792_v34  ;;  %v14012_v55 = vld [vmem:[%s21249_s13 + $0x4a0] ss:$28 sps:$4 sm:$0xff]   ;;  %v21868_v21 = vld [vmem:[#allocation7_spill] sm:$0xff]  ;;  %v21870_v8 = vld [vmem:[#allocation16_spill] sm:$0xff] }
 0x618   : > { %21860 = vst [vmem:[#allocation46_spill] sm:$0xff] %v18880_v31  ;;  %v18896_v25 = vpack.c.bf16 %v5956_v37, %v5948_v57  ;;  %v5844_v47 = vadd.f32 %v18706_v23, %v5675_v40  ;;  %v5666_v41 = vmul.f32 %v18557_v17, %v21864_v20  ;;  %9112 = vmatpush1.bf16.msra.mxu0 %v14003_v3  ;;  %v21869_v39 = vld [vmem:[#allocation17_spill] sm:$0xff]  ;;  %v14015_v37 = vld [vmem:[%s21249_s13 + $0x4d0] ss:$28 sps:$4 sm:$0xff]  }
 0x619   : > { %21862 = vst [vmem:[#allocation44_spill] sm:$0xff] %v18890_v50  ;;  %9052 = vmatprep.mubr.bf16.mxu0 %v18794_v22  ;;  %v18905_v28 = vpack.c.bf16 %v5955_v51, %v5947_v29  ;;  %v5964_v46 = vmax.f32 %v5836_v43, 0.0  ;;  %v5674_v58 = vmul.f32 %v18557_v17, %v21866_v18  ;;  %v5683_v6 = vmul.f32 %v18560_v0, %v21867_v1  ;;  %v14020_v52 = vld [vmem:[%s21249_s13 + $0x4dc] ss:$28 sps:$4 sm:$0xff]   ;;  %v21873_v20 = vld [vmem:[#allocation47_spill] sm:$0xff] }
 0x61a   : > { %21863 = vst [vmem:[#allocation6_spill] sm:$0xff] %v18896_v25  ;;  %9504 = vmatprep.mubr.bf16.mxu1 %v18794_v22  ;;  %9564 = vmatpush1.bf16.msra.mxu1 %v14006_v11  ;;  %v5972_v19 = vmax.f32 %v5844_v47, 0.0  ;;  %v5835_v59 = vadd.f32 %v18703_v30, %v5666_v41  ;;  %v5691_v9 = vmul.f32 %v18560_v0, %v21868_v21  ;;  %v14018_v51 = vld [vmem:[%s21249_s13 + $0x4d8] ss:$28 sps:$4 sm:$0xff]   ;;  %v14023_v18 = vld [vmem:[%s21249_s13 + $0x50c] ss:$28 sps:$4 sm:$0xff]  }
 0x61b   : > { %21865 = vst [vmem:[#allocation111_spill] sm:$0xff] %v18905_v28  ;;  %v5682_v24 = vmul.f32 %v18557_v17, %v21869_v39  ;;  %9113 = vmatprep.subr.bf16.mxu0 %v14011_v49  ;;  %9565 = vmatprep.subr.bf16.mxu1 %v14014_v45  ;;  %v5843_v63 = vadd.f32 %v18703_v30, %v5674_v58  ;;  %v21872_v45 = vld [vmem:[#allocation11_spill] sm:$0xff]  ;;  %v14026_v58 = vld [vmem:[%s21249_s13 + $0x514] ss:$28 sps:$4 sm:$0xff]  }
 0x61c   : > { %v5852_v3 = vadd.f32 %v18706_v23, %v5683_v6  ;;  %v5690_v27 = vmul.f32 %v18557_v17, %v21870_v8  ;;  %v18930_v61 = vpack.c.bf16 %v5972_v19, %v5964_v46  ;;  %v5963_v14 = vmax.f32 %v5835_v59, 0.0  ;;  %9114 = vmatpush1.bf16.msra.mxu0 %v14009_v62  ;;  %v21874_v62 = vld [vmem:[#allocation9_spill] sm:$0xff]  ;;  %v14021_v39 = vld [vmem:[%s21249_s13 + $0x508] ss:$28 sps:$4 sm:$0xff]  }
 0x61d   : > { %v5860_v11 = vadd.f32 %v18706_v23, %v5691_v9  ;;  %v5851_v57 = vadd.f32 %v18703_v30, %v5682_v24  ;;  %v5971_v48 = vmax.f32 %v5843_v63, 0.0  ;;  %v5699_v29 = vmul.f32 %v18560_v0, %v21872_v45  ;;  %9115 = vmatprep.subr.bf16.mxu0 %v14017_v7  ;;  %v21876_v7 = vld [vmem:[#allocation12_spill] sm:$0xff]  ;;  %v14032_v45 = vld [vmem:[%s21249_s13 + $0x54c] ss:$28 sps:$4 sm:$0xff]  }
 0x61e   : > { %21871 = vst [vmem:[#allocation15_spill] sm:$0xff] %v18930_v61  ;;  %v5980_v40 = vmax.f32 %v5852_v3, 0.0  ;;  %v5859_v49 = vadd.f32 %v18703_v30, %v5690_v27  ;;  %9566 = vmatpush1.bf16.msra.mxu1 %v14012_v55  ;;  %v5707_v41 = vmul.f32 %v18560_v0, %v21873_v20  ;;  %v5698_v46 = vmul.f32 %v18557_v17, %v21874_v62  ;;  %v21879_v3 = vld [vmem:[#allocation50_spill] sm:$0xff]  ;;  %v14024_v27 = vld [vmem:[%s21249_s13 + $0x510] ss:$28 sps:$4 sm:$0xff]  }
 0x61f   : > { %v5988_v43 = vmax.f32 %v5860_v11, 0.0  ;;  %v5979_v47 = vmax.f32 %v5851_v57, 0.0  ;;  %9567 = vmatprep.subr.bf16.mxu1 %v14020_v52  ;;  %v18953_v1 = vpack.c.bf16 %v5971_v48, %v5963_v14  ;;  %v5868_v55 = vadd.f32 %v18706_v23, %v5699_v29  ;;  %9053 = vmatmul.mubr.bf16.gmra.mrb[124].mxu0 %v18805_v35  ;;  %v14029_v14 = vld [vmem:[%s21249_s13 + $0x544] ss:$28 sps:$4 sm:$0xff]   ;;  %v21883_v20 = vld [vmem:[#allocation55_spill] sm:$0xff] }
 0x620   : > { %v5987_v6 = vmax.f32 %v5859_v49, 0.0  ;;  %v5706_v19 = vmul.f32 %v18557_v17, %v21876_v7  ;;  %9505 = vmatmul.mubr.bf16.gmra.mrb[140].mxu1 %v18805_v35  ;;  %v5876_v21 = vadd.f32 %v18706_v23, %v5707_v41  ;;  %v5867_v9 = vadd.f32 %v18703_v30, %v5698_v46  ;;  %9116 = vmatpush1.bf16.msra.mxu0 %v14015_v37  ;;  %v21880_v37 = vld [vmem:[#allocation52_spill] sm:$0xff]  ;;  %v21948_v35 = vld [vmem:[#allocation83_spill] sm:$0xff] }
 0x621   : > { %21875 = vst [vmem:[#allocation13_spill] sm:$0xff] %v18953_v1  ;;  %v18960_v59 = vpack.c.bf16 %v5988_v43, %v5980_v40  ;;  %9062 = vmatprep.mubr.bf16.mxu0 %v18814_v53  ;;  %v5996_v52 = vmax.f32 %v5868_v55, 0.0  ;;  %v5715_v8 = vmul.f32 %v18560_v0, %v21879_v3  ;;  %9514 = vmatprep.mubr.bf16.mxu1 %v18814_v53  ;;  %v21881_v40 = vld [vmem:[#allocation48_spill] sm:$0xff]  ;;  %v21882_v43 = vld [vmem:[#allocation51_spill] sm:$0xff]  ;;  %v14027_v55 = vld [vmem:[%s21249_s13 + $0x540] ss:$28 sps:$4 sm:$0xff]  }
 0x622   : > { %v18968_v24 = vpack.c.bf16 %v5987_v6, %v5979_v47  ;;  %v5875_v63 = vadd.f32 %v18703_v30, %v5706_v19  ;;  %9568 = vmatpush1.bf16.msra.mxu1 %v14018_v51  ;;  %v6004_v11 = vmax.f32 %v5876_v21, 0.0  ;;  %v5995_v57 = vmax.f32 %v5867_v9, 0.0  ;;  %9117 = vmatprep.subr.bf16.mxu0 %v14023_v18 }
 0x623   : > { %21877 = vst [vmem:[#allocation10_spill] sm:$0xff] %v18960_v59  ;;  %v5723_v48 = vmul.f32 %v18560_v0, %v21880_v37  ;;  %v5714_v49 = vmul.f32 %v18557_v17, %v21881_v40  ;;  %9569 = vmatprep.subr.bf16.mxu1 %v14026_v58  ;;  %v5884_v51 = vadd.f32 %v18706_v23, %v5715_v8  ;;  %v21885_v58 = vld [vmem:[#allocation34_spill] sm:$0xff] }
 0x624   : > { %21878 = vst [vmem:[#allocation14_spill] sm:$0xff] %v18968_v24  ;;  %v6003_v29 = vmax.f32 %v5875_v63, 0.0  ;;  %v5722_v47 = vmul.f32 %v18557_v17, %v21882_v43  ;;  %v5731_v41 = vmul.f32 %v18560_v0, %v21883_v20  ;;  %v18992_v62 = vpack.c.bf16 %v6004_v11, %v5996_v52  ;;  %9118 = vmatpush1.bf16.msra.mxu0 %v14021_v39  ;;  %v14030_v52 = vld [vmem:[%s21249_s13 + $0x548] ss:$28 sps:$4 sm:$0xff]  }
 0x625   : > { %v5892_v46 = vadd.f32 %v18706_v23, %v5723_v48  ;;  %v5883_v18 = vadd.f32 %v18703_v30, %v5714_v49  ;;  %v5739_v6 = vmul.f32 %v18560_v0, %v21885_v58  ;;  %v6012_v19 = vmax.f32 %v5884_v51, 0.0  ;;  %9119 = vmatprep.subr.bf16.mxu0 %v14029_v14  ;;  %v21887_v8 = vld [vmem:[#allocation54_spill] sm:$0xff]  ;;  %v21888_v48 = vld [vmem:[#allocation57_spill] sm:$0xff] }
 0x626   : > { %21884 = vst [vmem:[#allocation7_spill] sm:$0xff] %v18992_v62  ;;  %v19001_v7 = vpack.c.bf16 %v6003_v29, %v5995_v57  ;;  %v5891_v21 = vadd.f32 %v18703_v30, %v5722_v47  ;;  %v5900_v9 = vadd.f32 %v18706_v23, %v5731_v41  ;;  %9570 = vmatpush1.bf16.msra.mxu1 %v14024_v27  ;;  %v14035_v57 = vld [vmem:[%s21249_s13 + $0x57c] ss:$28 sps:$4 sm:$0xff]   ;;  %v14038_v27 = vld [vmem:[%s21249_s13 + $0x584] ss:$28 sps:$4 sm:$0xff]  }
 0x627   : > { %v6020_v63 = vmax.f32 %v5892_v46, 0.0  ;;  %v6011_v3 = vmax.f32 %v5883_v18, 0.0  ;;  %v5908_v39 = vadd.f32 %v18706_v23, %v5739_v6  ;;  %v5730_v11 = vmul.f32 %v18557_v17, %v21887_v8  ;;  %9571 = vmatprep.subr.bf16.mxu1 %v14032_v45  ;;  %v21889_v49 = vld [vmem:[#allocation21_spill] sm:$0xff]  ;;  %9063 = vmatmul.mubr.bf16.gmra.mrb[128].mxu0 %v18830_v26  ;;  %v21891_v47 = vld [vmem:[#allocation58_spill] sm:$0xff] }
 0x628   : > { %21886 = vst [vmem:[#allocation17_spill] sm:$0xff] %v19001_v7  ;;  %v6019_v14 = vmax.f32 %v5891_v21, 0.0  ;;  %v6028_v37 = vmax.f32 %v5900_v9, 0.0  ;;  %v5738_v40 = vmul.f32 %v18557_v17, %v21888_v48  ;;  %v5747_v29 = vmul.f32 %v18560_v0, %v21889_v49  ;;  %9515 = vmatmul.mubr.bf16.gmra.mrb[144].mxu1 %v18830_v26  ;;  %9120 = vmatpush1.bf16.msra.mxu0 %v14027_v55  ;;  %v14033_v41 = vld [vmem:[%s21249_s13 + $0x578] ss:$28 sps:$4 sm:$0xff]   ;;  %v21894_v48 = vld [vmem:[#allocation23_spill] sm:$0xff] }
 0x629   : > { %v19023_v45 = vpack.c.bf16 %v6020_v63, %v6012_v19  ;;  %v6036_v51 = vmax.f32 %v5908_v39, 0.0  ;;  %v5899_v43 = vadd.f32 %v18703_v30, %v5730_v11  ;;  %v5755_v20 = vmul.f32 %v18560_v0, %v21891_v47  ;;  %9072 = vmatprep.mubr.bf16.mxu0 %v18840_v54  ;;  %9524 = vmatprep.mubr.bf16.mxu1 %v18840_v54  ;;  %v14036_v6 = vld [vmem:[%s21249_s13 + $0x580] ss:$28 sps:$4 sm:$0xff]   ;;  %v14041_v55 = vld [vmem:[%s21249_s13 + $0x5b4] ss:$28 sps:$4 sm:$0xff]   ;;  %v21892_v63 = vld [vmem:[#allocation19_spill] sm:$0xff] }
 0x62a   : > { %v19032_v46 = vpack.c.bf16 %v6019_v14, %v6011_v3  ;;  %v5907_v18 = vadd.f32 %v18703_v30, %v5738_v40  ;;  %v5916_v58 = vadd.f32 %v18706_v23, %v5747_v29  ;;  %9572 = vmatpush1.bf16.msra.mxu1 %v14030_v52  ;;  %v5746_v3 = vmul.f32 %v18557_v17, %v21892_v63  ;;  %v14044_v52 = vld [vmem:[%s21249_s13 + $0x5bc] ss:$28 sps:$4 sm:$0xff]   ;;  %v21893_v11 = vld [vmem:[#allocation76_spill] sm:$0xff]  ;;  %v21895_v29 = vld [vmem:[#allocation63_spill] sm:$0xff] }
 0x62b   : > { %21890 = vst [vmem:[#allocation16_spill] sm:$0xff] %v19023_v45  ;;  %v19043_v19 = vpack.c.bf16 %v6036_v51, %v6028_v37  ;;  %v6027_v21 = vmax.f32 %v5899_v43, 0.0  ;;  %v5924_v9 = vadd.f32 %v18706_v23, %v5755_v20  ;;  %9121 = vmatprep.subr.bf16.mxu0 %v14035_v57  ;;  %9573 = vmatprep.subr.bf16.mxu1 %v14038_v27  ;;  %v21896_v57 = vld [vmem:[#allocation60_spill] sm:$0xff]  ;;  %v21944_v26 = vld [vmem:[#allocation43_spill] sm:$0xff] }
 0x62c   : > { %v6035_v39 = vmax.f32 %v5907_v18, 0.0  ;;  %v6044_v8 = vmax.f32 %v5916_v58, 0.0  ;;  %v5754_v14 = vmul.f32 %v18557_v17, %v21893_v11  ;;  %v5763_v37 = vmul.f32 %v18560_v0, %v21894_v48  ;;  %9122 = vmatpush1.bf16.msra.mxu0 %v14033_v41  ;;  %v14039_v43 = vld [vmem:[%s21249_s13 + $0x5b0] ss:$28 sps:$4 sm:$0xff]   ;;  %v21897_v58 = vld [vmem:[#allocation22_spill] sm:$0xff] }
 0x62d   : > { %v6052_v40 = vmax.f32 %v5924_v9, 0.0  ;;  %v5915_v49 = vadd.f32 %v18703_v30, %v5746_v3  ;;  %v5771_v51 = vmul.f32 %v18560_v0, %v21895_v29  ;;  %v5762_v27 = vmul.f32 %v18557_v17, %v21896_v57  ;;  %9123 = vmatprep.subr.bf16.mxu0 %v14041_v55  ;;  %v14042_v0 = vld [vmem:[%s21249_s13 + $0x5b8] ss:$28 sps:$4 sm:$0xff]  }
 0x62e   : > { %v19063_v47 = vpack.c.bf16 %v6035_v39, %v6027_v21  ;;  %v5923_v20 = vadd.f32 %v18703_v30, %v5754_v14  ;;  %v5932_v18 = vadd.f32 %v18706_v23, %v5763_v37  ;;  %v5770_v9 = vmul.f32 %v18557_v17, %v21897_v58  ;;  %9574 = vmatpush1.bf16.msra.mxu1 %v14036_v6  ;;  %v14047_v39 = vld [vmem:[%s21249_s13 + $0x5ec] ss:$28 sps:$4 sm:$0xff]   ;;  %v14050_v17 = vld [vmem:[%s21249_s13 + $0x5f4] ss:$28 sps:$4 sm:$0xff]  }
 0x62f   : > { %v19072_v41 = vpack.c.bf16 %v6052_v40, %v6044_v8  ;;  %v6043_v63 = vmax.f32 %v5915_v49, 0.0  ;;  %v5940_v3 = vadd.f32 %v18706_v23, %v5771_v51  ;;  %v5931_v21 = vadd.f32 %v18703_v30, %v5762_v27  ;;  %9575 = vmatprep.subr.bf16.mxu1 %v14044_v52  ;;  %v21898_v8 = vld [vmem:[#allocation24_spill] sm:$0xff]  ;;  %9073 = vmatmul.mubr.bf16.gmra.mrb[132].mxu0 %v18851_v44  ;;  %v21901_v27 = vld [vmem:[#allocation29_spill] sm:$0xff] }
 0x630   : > { %v6051_v6 = vmax.f32 %v5923_v20, 0.0  ;;  %v6060_v55 = vmax.f32 %v5932_v18, 0.0  ;;  %v5939_v11 = vadd.f32 %v18703_v30, %v5770_v9  ;;  %v5653_v14 = vmul.f32 %v18566_v16, %v21898_v8  ;;  %9525 = vmatmul.mubr.bf16.gmra.mrb[148].mxu1 %v18851_v44  ;;  %v21899_v48 = vld [vmem:[#allocation28_spill] sm:$0xff]  ;;  %9124 = vmatpush1.bf16.msra.mxu0 %v14039_v43  ;;  %v14045_v30 = vld [vmem:[%s21249_s13 + $0x5e8] ss:$28 sps:$4 sm:$0xff]  }
 0x631   : > { %v6068_v23 = vmax.f32 %v5940_v3, 0.0  ;;  %v6059_v52 = vmax.f32 %v5931_v21, 0.0  ;;  %v5661_v37 = vmul.f32 %v18566_v16, %v21899_v48  ;;  %v21900_v40 = vld [vmem:[#allocation64_spill] sm:$0xff]  ;;  %9082 = vmatprep.mubr.bf16.mxu0 %v18858_v12  ;;  %v5660_v20 = vmul.f32 %v18563_v60, %v21901_v27  ;;  %9534 = vmatprep.mubr.bf16.mxu1 %v18858_v12  ;;  %v14053_v18 = vld [vmem:[%s21249_s13 + $0x624] ss:$28 sps:$4 sm:$0xff]  }
 0x632   : > { %v5652_v49 = vmul.f32 %v18563_v60, %v21900_v40  ;;  %v19095_v29 = vpack.c.bf16 %v6051_v6, %v6043_v63  ;;  %v6067_v51 = vmax.f32 %v5939_v11, 0.0  ;;  %v5822_v57 = vadd.f32 %v18712_v10, %v5653_v14  ;;  %9576 = vmatpush1.bf16.msra.mxu1 %v14042_v0  ;;  %v14048_v43 = vld [vmem:[%s21249_s13 + $0x5f0] ss:$28 sps:$4 sm:$0xff]   ;;  %9125 = vmatprep.subr.bf16.mxu0 %v14047_v39 }
 0x633   : > { %v19107_v58 = vpack.c.bf16 %v6068_v23, %v6060_v55  ;;  %v5830_v9 = vadd.f32 %v18712_v10, %v5661_v37  ;;  %9577 = vmatprep.subr.bf16.mxu1 %v14050_v17  ;;  %v14056_v0 = vld [vmem:[%s21249_s13 + $0x62c] ss:$28 sps:$4 sm:$0xff]   ;;  %v5829_v6 = vadd.f32 %v18709_v5, %v5660_v20  ;;  %v21902_v11 = vld [vmem:[#allocation68_spill] sm:$0xff]  ;;  %v21904_v37 = vld [vmem:[#allocation66_spill] sm:$0xff] }
 0x634   : > { %v5821_v63 = vadd.f32 %v18709_v5, %v5652_v49  ;;  %v19114_v3 = vpack.c.bf16 %v6067_v51, %v6059_v52  ;;  %v5950_v21 = vmax.f32 %v5822_v57, 0.0  ;;  %v5669_v8 = vmul.f32 %v18566_v16, %v21902_v11  ;;  %v21903_v23 = vld [vmem:[#allocation32_spill] sm:$0xff]  ;;  %9126 = vmatpush1.bf16.msra.mxu0 %v14045_v30  ;;  %v14051_v17 = vld [vmem:[%s21249_s13 + $0x620] ss:$28 sps:$4 sm:$0xff]   ;;  %v14054_v20 = vld [vmem:[%s21249_s13 + $0x628] ss:$28 sps:$4 sm:$0xff]  }
 0x635   : > { %v5958_v55 = vmax.f32 %v5830_v9, 0.0  ;;  %v5677_v48 = vmul.f32 %v18566_v16, %v21903_v23  ;;  %v5668_v39 = vmul.f32 %v18563_v60, %v21904_v37  ;;  %v5957_v52 = vmax.f32 %v5829_v6, 0.0  ;;  %v21905_v49 = vld [vmem:[#allocation33_spill] sm:$0xff]  ;;  %9127 = vmatprep.subr.bf16.mxu0 %v14053_v18  ;;  %v21908_v37 = vld [vmem:[#allocation71_spill] sm:$0xff]  ;;  %v21921_v12 = vld [vmem:[#allocation92_spill] sm:$0xff] }
 0x636   : > { %v5949_v14 = vmax.f32 %v5821_v63, 0.0  ;;  %v5838_v40 = vadd.f32 %v18712_v10, %v5669_v8  ;;  %v5676_v51 = vmul.f32 %v18563_v60, %v21905_v49  ;;  %v21906_v57 = vld [vmem:[#allocation73_spill] sm:$0xff]  ;;  %9578 = vmatpush1.bf16.msra.mxu1 %v14048_v43  ;;  %v14062_v43 = vld [vmem:[%s21249_s13 + $0x664] ss:$28 sps:$4 sm:$0xff]   ;;  %v21909_v49 = vld [vmem:[#allocation39_spill] sm:$0xff] }
 0x637   : > { %v5685_v27 = vmul.f32 %v18566_v16, %v21906_v57  ;;  %v19134_v30 = vpack.c.bf16 %v5958_v55, %v5950_v21  ;;  %v5846_v9 = vadd.f32 %v18712_v10, %v5677_v48  ;;  %v5837_v63 = vadd.f32 %v18709_v5, %v5668_v39  ;;  %9579 = vmatprep.subr.bf16.mxu1 %v14056_v0  ;;  %v14059_v6 = vld [vmem:[%s21249_s13 + $0x65c] ss:$28 sps:$4 sm:$0xff]   ;;  %v21907_v21 = vld [vmem:[#allocation78_spill] sm:$0xff] }
 0x638   : > { %v19144_v18 = vpack.c.bf16 %v5957_v52, %v5949_v14  ;;  %v5966_v11 = vmax.f32 %v5838_v40, 0.0  ;;  %v5845_v8 = vadd.f32 %v18709_v5, %v5676_v51  ;;  %v5693_v55 = vmul.f32 %v18566_v16, %v21907_v21  ;;  %9083 = vmatmul.mubr.bf16.gmra.mrb[136].mxu0 %v18864_v42  ;;  %9535 = vmatmul.mubr.bf16.gmra.mrb[152].mxu1 %v18864_v42  ;;  %v14057_v14 = vld [vmem:[%s21249_s13 + $0x658] ss:$28 sps:$4 sm:$0xff]   ;;  %v21910_v57 = vld [vmem:[#allocation38_spill] sm:$0xff] }
 0x639   : > { %v5974_v0 = vmax.f32 %v5846_v9, 0.0  ;;  %v5965_v23 = vmax.f32 %v5837_v63, 0.0  ;;  %v5854_v48 = vadd.f32 %v18712_v10, %v5685_v27  ;;  %v5684_v39 = vmul.f32 %v18563_v60, %v21908_v37  ;;  %9128 = vmatpush1.bf16.msra.mxu0 %v14051_v17  ;;  %9092 = vmatprep.mubr.bf16.mxu0 %v18880_v31  ;;  %v14060_v17 = vld [vmem:[%s21249_s13 + $0x660] ss:$28 sps:$4 sm:$0xff]   ;;  %v14065_v27 = vld [vmem:[%s21249_s13 + $0x694] ss:$28 sps:$4 sm:$0xff]  }
 0x63a   : > { %v5973_v52 = vmax.f32 %v5845_v8, 0.0  ;;  %v5862_v40 = vadd.f32 %v18712_v10, %v5693_v55  ;;  %v5692_v51 = vmul.f32 %v18563_v60, %v21909_v49  ;;  %v5701_v9 = vmul.f32 %v18566_v16, %v21910_v57  ;;  %9544 = vmatprep.mubr.bf16.mxu1 %v18880_v31  ;;  %9580 = vmatpush1.bf16.msra.mxu1 %v14054_v20  ;;  %v21911_v55 = vld [vmem:[#allocation45_spill] sm:$0xff] }
 0x63b   : > { %v19170_v63 = vpack.c.bf16 %v5974_v0, %v5966_v11  ;;  %v5982_v8 = vmax.f32 %v5854_v48, 0.0  ;;  %v5853_v21 = vadd.f32 %v18709_v5, %v5684_v39  ;;  %v5709_v37 = vmul.f32 %v18566_v16, %v21911_v55  ;;  %9129 = vmatprep.subr.bf16.mxu0 %v14059_v6  ;;  %9581 = vmatprep.subr.bf16.mxu1 %v14062_v43  ;;  %v14068_v20 = vld [vmem:[%s21249_s13 + $0x69c] ss:$28 sps:$4 sm:$0xff]   ;;  %v21912_v39 = vld [vmem:[#allocation75_spill] sm:$0xff]  ;;  %v21913_v55 = vld [vmem:[#allocation42_spill] sm:$0xff] }
 0x63c   : > { %v19178_v49 = vpack.c.bf16 %v5973_v52, %v5965_v23  ;;  %v5990_v57 = vmax.f32 %v5862_v40, 0.0  ;;  %v5861_v4 = vadd.f32 %v18709_v5, %v5692_v51  ;;  %v5870_v11 = vadd.f32 %v18712_v10, %v5701_v9  ;;  %v14063_v43 = vld [vmem:[%s21249_s13 + $0x690] ss:$28 sps:$4 sm:$0xff]   ;;  %v21914_v51 = vld [vmem:[#allocation82_spill] sm:$0xff] }
 0x63d   : > { %v5981_v0 = vmax.f32 %v5853_v21, 0.0  ;;  %v5878_v48 = vadd.f32 %v18712_v10, %v5709_v37  ;;  %v5700_v31 = vmul.f32 %v18563_v60, %v21912_v39  ;;  %v5708_v6 = vmul.f32 %v18563_v60, %v21913_v55  ;;  %9130 = vmatpush1.bf16.msra.mxu0 %v14057_v14  ;;  %v14066_v21 = vld [vmem:[%s21249_s13 + $0x698] ss:$28 sps:$4 sm:$0xff]   ;;  %v21915_v55 = vld [vmem:[#allocation86_spill] sm:$0xff] }
 0x63e   : > { %v19190_v23 = vpack.c.bf16 %v5990_v57, %v5982_v8  ;;  %v5989_v52 = vmax.f32 %v5861_v4, 0.0  ;;  %v5998_v40 = vmax.f32 %v5870_v11, 0.0  ;;  %v5717_v9 = vmul.f32 %v18566_v16, %v21914_v51  ;;  %9582 = vmatpush1.bf16.msra.mxu1 %v14060_v17  ;;  %9131 = vmatprep.subr.bf16.mxu0 %v14065_v27  ;;  %v14071_v4 = vld [vmem:[%s21249_s13 + $0x6cc] ss:$28 sps:$4 sm:$0xff]   ;;  %v14074_v17 = vld [vmem:[%s21249_s13 + $0x6d4] ss:$28 sps:$4 sm:$0xff]  }
 0x63f   : > { %v6006_v37 = vmax.f32 %v5878_v48, 0.0  ;;  %v5869_v14 = vadd.f32 %v18709_v5, %v5700_v31  ;;  %v5877_v39 = vadd.f32 %v18709_v5, %v5708_v6  ;;  %v5725_v8 = vmul.f32 %v18566_v16, %v21915_v55  ;;  %9583 = vmatprep.subr.bf16.mxu1 %v14068_v20  ;;  %v21916_v11 = vld [vmem:[#allocation80_spill] sm:$0xff] }
 0x640   : > { %v19207_v27 = vpack.c.bf16 %v5989_v52, %v5981_v0  ;;  %v5886_v57 = vadd.f32 %v18712_v10, %v5717_v9  ;;  %v5716_v31 = vmul.f32 %v18563_v60, %v21916_v11  ;;  %v21917_v48 = vld [vmem:[#allocation84_spill] sm:$0xff]  ;;  %9093 = vmatmul.mubr.bf16.gmra.mrb[140].mxu0 %v18890_v50  ;;  %9545 = vmatmul.mubr.bf16.gmra.mrb[156].mxu1 %v18890_v50  ;;  %v14069_v0 = vld [vmem:[%s21249_s13 + $0x6c8] ss:$28 sps:$4 sm:$0xff]  }
 0x641   : > { %v5724_v6 = vmul.f32 %v18563_v60, %v21917_v48  ;;  %v19216_v20 = vpack.c.bf16 %v6006_v37, %v5998_v40  ;;  %v5997_v51 = vmax.f32 %v5869_v14, 0.0  ;;  %v6005_v55 = vmax.f32 %v5877_v39, 0.0  ;;  %9132 = vmatpush1.bf16.msra.mxu0 %v14063_v43  ;;  %9135 = vmatprep.mubr.bf16.mxu0 %v18896_v25  ;;  %v21918_v48 = vld [vmem:[#allocation90_spill] sm:$0xff]  ;;  %v14072_v43 = vld [vmem:[%s21249_s13 + $0x6d0] ss:$28 sps:$4 sm:$0xff]  }
 0x642   : > { %v5894_v42 = vadd.f32 %v18712_v10, %v5725_v8  ;;  %v6014_v52 = vmax.f32 %v5886_v57, 0.0  ;;  %v5885_v9 = vadd.f32 %v18709_v5, %v5716_v31  ;;  %v5733_v40 = vmul.f32 %v18566_v16, %v21918_v48  ;;  %9584 = vmatpush1.bf16.msra.mxu1 %v14066_v21  ;;  %9587 = vmatprep.mubr.bf16.mxu1 %v18896_v25  ;;  %v14077_v37 = vld [vmem:[%s21249_s13 + $0x704] ss:$28 sps:$4 sm:$0xff]   ;;  %v21920_v31 = vld [vmem:[#allocation88_spill] sm:$0xff]  ;;  %v14080_v21 = vld [vmem:[%s21249_s13 + $0x70c] ss:$28 sps:$4 sm:$0xff]  }
 0x643   : > { %v5893_v11 = vadd.f32 %v18709_v5, %v5724_v6  ;;  %v19234_v14 = vpack.c.bf16 %v6005_v55, %v5997_v51  ;;  %v21919_v8 = vld [vmem:[#allocation94_spill] sm:$0xff]  ;;  %v5732_v6 = vmul.f32 %v18563_v60, %v21920_v31  ;;  %9133 = vmatprep.subr.bf16.mxu0 %v14071_v4  ;;  %9585 = vmatprep.subr.bf16.mxu1 %v14074_v17 }
 0x644   : > { %v6022_v39 = vmax.f32 %v5894_v42, 0.0  ;;  %v5741_v57 = vmul.f32 %v18566_v16, %v21919_v8  ;;  %v6013_v48 = vmax.f32 %v5885_v9, 0.0  ;;  %v5902_v50 = vadd.f32 %v18712_v10, %v5733_v40  ;;  %v21922_v31 = vld [vmem:[#allocation98_spill] sm:$0xff] }
 0x645   : > { %v6021_v25 = vmax.f32 %v5893_v11, 0.0  ;;  %v5740_v51 = vmul.f32 %v18563_v60, %v21921_v12  ;;  %v5901_v8 = vadd.f32 %v18709_v5, %v5732_v6  ;;  %v5749_v4 = vmul.f32 %v18566_v16, %v21922_v31  ;;  %9134 = vmatpush1.bf16.msra.mxu0 %v14069_v0  ;;  %v14075_v17 = vld [vmem:[%s21249_s13 + $0x700] ss:$28 sps:$4 sm:$0xff]   ;;  %v21924_v31 = vld [vmem:[#allocation96_spill] sm:$0xff] }
 0x646   : > { %v19246_v42 = vpack.c.bf16 %v6022_v39, %v6014_v52  ;;  %v5910_v55 = vadd.f32 %v18712_v10, %v5741_v57  ;;  %v6030_v11 = vmax.f32 %v5902_v50, 0.0  ;;  %v21923_v12 = vld [vmem:[#allocation102_spill] sm:$0xff]  ;;  %9586 = vmatpush1.bf16.msra.mxu1 %v14072_v43  ;;  %9216 = vmatprep.subr.bf16.mxu0 %v14077_v37  ;;  %v5748_v0 = vmul.f32 %v18563_v60, %v21924_v31  ;;  %v14083_v50 = vld [vmem:[%s21249_s13 + $0x73c] ss:$28 sps:$4 sm:$0xff]   ;;  %v21925_v37 = vld [vmem:[#allocation100_spill] sm:$0xff] }
 0x647   : > { %v19255_v9 = vpack.c.bf16 %v6021_v25, %v6013_v48  ;;  %v5909_v40 = vadd.f32 %v18709_v5, %v5740_v51  ;;  %v5757_v52 = vmul.f32 %v18566_v16, %v21923_v12  ;;  %v6029_v57 = vmax.f32 %v5901_v8, 0.0  ;;  %v14078_v25 = vld [vmem:[%s21249_s13 + $0x708] ss:$28 sps:$4 sm:$0xff]   ;;  %9668 = vmatprep.subr.bf16.mxu1 %v14080_v21 }
 0x648   : > { %v6038_v39 = vmax.f32 %v5910_v55, 0.0  ;;  %v5918_v6 = vadd.f32 %v18712_v10, %v5749_v4  ;;  %v5756_v51 = vmul.f32 %v18563_v60, %v21925_v37  ;;  %v21926_v55 = vld [vmem:[#allocation106_spill] sm:$0xff]  ;;  %9136 = vmatmul.mubr.bf16.vlgmr.msra.gmra.mrb[112].mxu0 %v18905_v28  ;;  %v5917_v31 = vadd.f32 %v18709_v5, %v5748_v0  ;;  %v14081_v37 = vld [vmem:[%s21249_s13 + $0x738] ss:$28 sps:$4 sm:$0xff]  }
 0x649   : > { %v6037_v48 = vmax.f32 %v5909_v40, 0.0  ;;  %v5926_v43 = vadd.f32 %v18712_v10, %v5757_v52  ;;  %v5765_v8 = vmul.f32 %v18566_v16, %v21926_v55  ;;  %v14086_v4 = vld [vmem:[%s21249_s13 + $0x744] ss:$28 sps:$4 sm:$0xff]   ;;  %9217 = vmatpush1.bf16.msra.mxu0 %v14075_v17  ;;  %9588 = vmatmul.mubr.bf16.vlgmr.msra.gmra.mrb[128].mxu1 %v18905_v28  ;;  %v21929_v0 = vld [vmem:[#allocation108_spill] sm:$0xff] }
 0x64a   : > { %v19278_v21 = vpack.c.bf16 %v6038_v39, %v6030_v11  ;;  %v6046_v12 = vmax.f32 %v5918_v6, 0.0  ;;  %v21927_v40 = vld [vmem:[#allocation110_spill] sm:$0xff]  ;;  %v5925_v54 = vadd.f32 %v18709_v5, %v5756_v51  ;;  %9145 = vmatprep.mubr.bf16.mxu0 %v18930_v61  ;;  %9597 = vmatprep.mubr.bf16.mxu1 %v18930_v61  ;;  %v6045_v17 = vmax.f32 %v5917_v31, 0.0  ;;  %v21928_v6 = vld [vmem:[#allocation104_spill] sm:$0xff]  ;;  %v21930_v61 = vld [vmem:[#allocation27_spill] sm:$0xff] }
 0x64b   : > { %v5773_v52 = vmul.f32 %v18566_v16, %v21927_v40  ;;  %v19287_v55 = vpack.c.bf16 %v6037_v48, %v6029_v57  ;;  %v6054_v44 = vmax.f32 %v5926_v43, 0.0  ;;  %v5934_v11 = vadd.f32 %v18712_v10, %v5765_v8  ;;  %v14089_v16 = vld [vmem:[%s21249_s13 + $0x774] ss:$28 sps:$4 sm:$0xff]   ;;  %9669 = vmatpush1.bf16.msra.mxu1 %v14078_v25  ;;  %9218 = vmatprep.subr.bf16.mxu0 %v14083_v50  ;;  %v14084_v43 = vld [vmem:[%s21249_s13 + $0x740] ss:$28 sps:$4 sm:$0xff]   ;;  %v21931_v31 = vld [vmem:[#allocation115_spill] sm:$0xff] }
 0x64c   : > { %v5764_v57 = vmul.f32 %v18563_v60, %v21928_v6  ;;  %v5772_v48 = vmul.f32 %v18563_v60, %v21929_v0  ;;  %v6053_v8 = vmax.f32 %v5925_v54, 0.0  ;;  %v5655_v28 = vmul.f32 %v21931_v31, %v21930_v61  ;;  %9670 = vmatprep.subr.bf16.mxu1 %v14086_v4  ;;  %v21932_v50 = vld [vmem:[#allocation31_spill] sm:$0xff]  ;;  %v21933_v4 = vld [vmem:[#allocation65_spill] sm:$0xff] }
 0x64d   : > { %v5942_v39 = vadd.f32 %v18712_v10, %v5773_v52  ;;  %v19304_v51 = vpack.c.bf16 %v6054_v44, %v6046_v12  ;;  %v6062_v40 = vmax.f32 %v5934_v11, 0.0  ;;  %v14092_v10 = vld [vmem:[%s21249_s13 + $0x77c] ss:$28 sps:$4 sm:$0xff]   ;;  %v5663_v6 = vmul.f32 %v21931_v31, %v21932_v50  ;;  %9219 = vmatpush1.bf16.msra.mxu0 %v14081_v37  ;;  %v14087_v54 = vld [vmem:[%s21249_s13 + $0x770] ss:$28 sps:$4 sm:$0xff]   ;;  %v21934_v12 = vld [vmem:[#allocation114_spill] sm:$0xff] }
 0x64e   : > { %v5933_v60 = vadd.f32 %v18709_v5, %v5764_v57  ;;  %v5941_v25 = vadd.f32 %v18709_v5, %v5772_v48  ;;  %v19318_v44 = vpack.c.bf16 %v6053_v8, %v6045_v17  ;;  %v5824_v61 = vadd.f32 %v18716_v15, %v5655_v28  ;;  %9220 = vmatprep.subr.bf16.mxu0 %v14089_v16  ;;  %v14090_v17 = vld [vmem:[%s21249_s13 + $0x778] ss:$28 sps:$4 sm:$0xff]   ;;  %v14095_v28 = vld [vmem:[%s21249_s13 + $0x7ac] ss:$28 sps:$4 sm:$0xff]  }
 0x64f   : > { %v6070_v52 = vmax.f32 %v5942_v39, 0.0  ;;  %v5654_v11 = vmul.f32 %v21934_v12, %v21933_v4  ;;  %v21935_v39 = vld [vmem:[#allocation26_spill] sm:$0xff]  ;;  %v5832_v37 = vadd.f32 %v18716_v15, %v5663_v6  ;;  %9671 = vmatpush1.bf16.msra.mxu1 %v14084_v43  ;;  %v14098_v43 = vld [vmem:[%s21249_s13 + $0x7b4] ss:$28 sps:$4 sm:$0xff]   ;;  %v21938_v4 = vld [vmem:[#allocation67_spill] sm:$0xff] }
 0x650   : > { %v5662_v57 = vmul.f32 %v21934_v12, %v21935_v39  ;;  %v6061_v0 = vmax.f32 %v5933_v60, 0.0  ;;  %v6069_v48 = vmax.f32 %v5941_v25, 0.0  ;;  %v5952_v8 = vmax.f32 %v5824_v61, 0.0  ;;  %9146 = vmatmul.mubr.bf16.gmra.mrb[116].mxu0 %v18953_v1  ;;  %9672 = vmatprep.subr.bf16.mxu1 %v14092_v10  ;;  %v21937_v6 = vld [vmem:[#allocation70_spill] sm:$0xff] }
 0x651   : > { %v19325_v5 = vpack.c.bf16 %v6070_v52, %v6062_v40  ;;  %v5823_v50 = vadd.f32 %v18729_v56, %v5654_v11  ;;  %v21936_v40 = vld [vmem:[#allocation69_spill] sm:$0xff]  ;;  %v5960_v25 = vmax.f32 %v5832_v37, 0.0  ;;  %v5679_v61 = vmul.f32 %v21931_v31, %v21937_v6  ;;  %9221 = vmatpush1.bf16.msra.mxu0 %v14087_v54  ;;  %9598 = vmatmul.mubr.bf16.gmra.mrb[132].mxu1 %v18953_v1  ;;  %v14093_v10 = vld [vmem:[%s21249_s13 + $0x7a8] ss:$28 sps:$4 sm:$0xff]  }
 0x652   : > { %v5831_v16 = vadd.f32 %v18729_v56, %v5662_v57  ;;  %v5671_v52 = vmul.f32 %v21931_v31, %v21936_v40  ;;  %v19342_v60 = vpack.c.bf16 %v6069_v48, %v6061_v0  ;;  %v5670_v11 = vmul.f32 %v21934_v12, %v21938_v4  ;;  %v21939_v0 = vld [vmem:[#allocation30_spill] sm:$0xff]  ;;  %9155 = vmatprep.mubr.bf16.mxu0 %v18960_v59 }
 0x653   : > { %v5951_v39 = vmax.f32 %v5823_v50, 0.0  ;;  %v5678_v48 = vmul.f32 %v21934_v12, %v21939_v0  ;;  %9607 = vmatprep.mubr.bf16.mxu1 %v18960_v59  ;;  %v14101_v54 = vld [vmem:[%s21249_s13 + $0x7e4] ss:$28 sps:$4 sm:$0xff]   ;;  %v19360_v37 = vpack.c.bf16 %v5960_v25, %v5952_v8  ;;  %v5848_v6 = vadd.f32 %v18716_v15, %v5679_v61  ;;  %9673 = vmatpush1.bf16.msra.mxu1 %v14090_v17  ;;  %v21940_v59 = vld [vmem:[#allocation36_spill] sm:$0xff]  ;;  %v14104_v8 = vld [vmem:[%s21249_s13 + $0x7ec] ss:$28 sps:$4 sm:$0xff]  }
 0x654   : > { %v5959_v57 = vmax.f32 %v5831_v16, 0.0  ;;  %v5840_v40 = vadd.f32 %v18716_v15, %v5671_v52  ;;  %v5839_v50 = vadd.f32 %v18729_v56, %v5670_v11  ;;  %9222 = vmatprep.subr.bf16.mxu0 %v14095_v28  ;;  %v14096_v16 = vld [vmem:[%s21249_s13 + $0x7b0] ss:$28 sps:$4 sm:$0xff]   ;;  %v5687_v1 = vmul.f32 %v21931_v31, %v21940_v59  ;;  %9674 = vmatprep.subr.bf16.mxu1 %v14098_v43  ;;  %v21941_v28 = vld [vmem:[#allocation74_spill] sm:$0xff] }
 0x655   : > { %v5847_v0 = vadd.f32 %v18729_v56, %v5678_v48  ;;  %v5976_v25 = vmax.f32 %v5848_v6, 0.0  ;;  %v5695_v61 = vmul.f32 %v21931_v31, %v21941_v28  ;;  %v21942_v11 = vld [vmem:[#allocation72_spill] sm:$0xff]  ;;  %9223 = vmatpush1.bf16.msra.mxu0 %v14093_v10  ;;  %v21943_v43 = vld [vmem:[#allocation79_spill] sm:$0xff]  ;;  %v5703_v6 = vmul.f32 %v21931_v31, %v21944_v26 }
 0x656   : > { %v19367_v52 = vpack.c.bf16 %v5959_v57, %v5951_v39  ;;  %v5968_v4 = vmax.f32 %v5840_v40, 0.0  ;;  %v5967_v17 = vmax.f32 %v5839_v50, 0.0  ;;  %v5686_v39 = vmul.f32 %v21934_v12, %v21942_v11  ;;  %v14099_v57 = vld [vmem:[%s21249_s13 + $0x7e0] ss:$28 sps:$4 sm:$0xff]   ;;  %9224 = vmatprep.subr.bf16.mxu0 %v14101_v54  ;;  %v21945_v11 = vld [vmem:[#allocation4_spill] sm:$0xff] }
 0x657   : > { %v5975_v40 = vmax.f32 %v5847_v0, 0.0  ;;  %v5856_v59 = vadd.f32 %v18716_v15, %v5687_v1  ;;  %v5694_v48 = vmul.f32 %v21934_v12, %v21943_v43  ;;  %v5864_v28 = vadd.f32 %v18716_v15, %v5695_v61  ;;  %9675 = vmatpush1.bf16.msra.mxu1 %v14096_v16  ;;  %v14102_v1 = vld [vmem:[%s21249_s13 + $0x7e8] ss:$28 sps:$4 sm:$0xff]   ;;  %v14107_v0 = vld [vmem:[%s21249_s13 + $0x81c] ss:$28 sps:$4 sm:$0xff]  }
 0x658   : > { %v19387_v50 = vpack.c.bf16 %v5976_v25, %v5968_v4  ;;  %v5855_v10 = vadd.f32 %v18729_v56, %v5686_v39  ;;  %v5711_v53 = vmul.f32 %v21931_v31, %v21945_v11  ;;  %v5872_v25 = vadd.f32 %v18716_v15, %v5703_v6  ;;  %9156 = vmatmul.mubr.bf16.gmra.mrb[120].mxu0 %v18968_v24  ;;  %v14110_v16 = vld [vmem:[%s21249_s13 + $0x824] ss:$28 sps:$4 sm:$0xff]   ;;  %v21946_v11 = vld [vmem:[#allocation35_spill] sm:$0xff] }
 0x659   : > { %v19399_v26 = vpack.c.bf16 %v5975_v40, %v5967_v17  ;;  %v5984_v54 = vmax.f32 %v5856_v59, 0.0  ;;  %v5863_v4 = vadd.f32 %v18729_v56, %v5694_v48  ;;  %9676 = vmatprep.subr.bf16.mxu1 %v14104_v8  ;;  %v5992_v61 = vmax.f32 %v5864_v28, 0.0  ;;  %9225 = vmatpush1.bf16.msra.mxu0 %v14099_v57  ;;  %v14105_v40 = vld [vmem:[%s21249_s13 + $0x818] ss:$28 sps:$4 sm:$0xff]  }
 0x65a   : > { %v5983_v39 = vmax.f32 %v5855_v10, 0.0  ;;  %v5880_v43 = vadd.f32 %v18716_v15, %v5711_v53  ;;  %v5702_v17 = vmul.f32 %v21934_v12, %v21946_v11  ;;  %9608 = vmatmul.mubr.bf16.gmra.mrb[136].mxu1 %v18968_v24  ;;  %v6000_v8 = vmax.f32 %v5872_v25, 0.0  ;;  %v21947_v48 = vld [vmem:[#allocation41_spill] sm:$0xff]  ;;  %9165 = vmatprep.mubr.bf16.mxu0 %v18992_v62  ;;  %v14113_v53 = vld [vmem:[%s21249_s13 + $0x854] ss:$28 sps:$4 sm:$0xff]   ;;  %v21949_v25 = vld [vmem:[#allocation87_spill] sm:$0xff] }
 0x65b   : > { %v5991_v59 = vmax.f32 %v5863_v4, 0.0  ;;  %v5710_v6 = vmul.f32 %v21934_v12, %v21947_v48  ;;  %v5719_v28 = vmul.f32 %v21931_v31, %v21948_v35  ;;  %9617 = vmatprep.mubr.bf16.mxu1 %v18992_v62  ;;  %v19423_v57 = vpack.c.bf16 %v5992_v61, %v5984_v54  ;;  %9677 = vmatpush1.bf16.msra.mxu1 %v14102_v1  ;;  %v14108_v35 = vld [vmem:[%s21249_s13 + $0x820] ss:$28 sps:$4 sm:$0xff]   ;;  %v21953_v48 = vld [vmem:[#allocation95_spill] sm:$0xff] }
 0x65c   : > { %v6008_v10 = vmax.f32 %v5880_v43, 0.0  ;;  %v5871_v4 = vadd.f32 %v18729_v56, %v5702_v17  ;;  %v5727_v11 = vmul.f32 %v21931_v31, %v21949_v25  ;;  %9226 = vmatprep.subr.bf16.mxu0 %v14107_v0  ;;  %9678 = vmatprep.subr.bf16.mxu1 %v14110_v16  ;;  %v14116_v61 = vld [vmem:[%s21249_s13 + $0x85c] ss:$28 sps:$4 sm:$0xff]  }
 0x65d   : > { %v19432_v62 = vpack.c.bf16 %v5991_v59, %v5983_v39  ;;  %v5879_v24 = vadd.f32 %v18729_v56, %v5710_v6  ;;  %v5888_v54 = vadd.f32 %v18716_v15, %v5719_v28  ;;  %v21950_v0 = vld [vmem:[#allocation81_spill] sm:$0xff]  ;;  %9227 = vmatpush1.bf16.msra.mxu0 %v14105_v40  ;;  %v14111_v39 = vld [vmem:[%s21249_s13 + $0x850] ss:$28 sps:$4 sm:$0xff]  }
 0x65e   : > { %v19439_v43 = vpack.c.bf16 %v6008_v10, %v6000_v8  ;;  %v5999_v17 = vmax.f32 %v5871_v4, 0.0  ;;  %v5896_v1 = vadd.f32 %v18716_v15, %v5727_v11  ;;  %v5718_v25 = vmul.f32 %v21934_v12, %v21950_v0  ;;  %v21951_v59 = vld [vmem:[#allocation85_spill] sm:$0xff]  ;;  %v21952_v6 = vld [vmem:[#allocation91_spill] sm:$0xff]  ;;  %9228 = vmatprep.subr.bf16.mxu0 %v14113_v53 }
 0x65f   : > { %v5726_v16 = vmul.f32 %v21934_v12, %v21951_v59  ;;  %v5735_v28 = vmul.f32 %v21931_v31, %v21952_v6  ;;  %v5743_v8 = vmul.f32 %v21931_v31, %v21953_v48  ;;  %v21954_v10 = vld [vmem:[#allocation89_spill] sm:$0xff]  ;;  %v6007_v11 = vmax.f32 %v5879_v24, 0.0  ;;  %9679 = vmatpush1.bf16.msra.mxu1 %v14108_v35  ;;  %v14119_v6 = vld [vmem:[%s21249_s13 + $0x88c] ss:$28 sps:$4 sm:$0xff]   ;;  %v14122_v35 = vld [vmem:[%s21249_s13 + $0x894] ss:$28 sps:$4 sm:$0xff]  }
 0x660   : > { %v5734_v4 = vmul.f32 %v21934_v12, %v21954_v10  ;;  %v6016_v0 = vmax.f32 %v5888_v54, 0.0  ;;  %v6024_v40 = vmax.f32 %v5896_v1, 0.0  ;;  %v5887_v22 = vadd.f32 %v18729_v56, %v5718_v25  ;;  %v14114_v59 = vld [vmem:[%s21249_s13 + $0x858] ss:$28 sps:$4 sm:$0xff]   ;;  %9166 = vmatmul.mubr.bf16.gmra.mrb[124].mxu0 %v19001_v7  ;;  %9680 = vmatprep.subr.bf16.mxu1 %v14116_v61 }
 0x661   : > { %v5895_v48 = vadd.f32 %v18729_v56, %v5726_v16  ;;  %v5904_v34 = vadd.f32 %v18716_v15, %v5735_v28  ;;  %v5912_v53 = vadd.f32 %v18716_v15, %v5743_v8  ;;  %v21955_v24 = vld [vmem:[#allocation93_spill] sm:$0xff]  ;;  %v19471_v1 = vpack.c.bf16 %v6007_v11, %v5999_v17  ;;  %9229 = vmatpush1.bf16.msra.mxu0 %v14111_v39  ;;  %v14117_v28 = vld [vmem:[%s21249_s13 + $0x888] ss:$28 sps:$4 sm:$0xff]  }
 0x662   : > { %v5742_v54 = vmul.f32 %v21934_v12, %v21955_v24  ;;  %v19473_v25 = vpack.c.bf16 %v6024_v40, %v6016_v0  ;;  %v6015_v10 = vmax.f32 %v5887_v22, 0.0  ;;  %v5903_v16 = vadd.f32 %v18729_v56, %v5734_v4  ;;  %9618 = vmatmul.mubr.bf16.gmra.mrb[140].mxu1 %v19001_v7  ;;  %9175 = vmatprep.mubr.bf16.mxu0 %v19023_v45  ;;  %v14125_v22 = vld [vmem:[%s21249_s13 + $0x8c4] ss:$28 sps:$4 sm:$0xff]   ;;  %v21956_v39 = vld [vmem:[#allocation99_spill] sm:$0xff]  ;;  %v21958_v40 = vld [vmem:[#allocation97_spill] sm:$0xff] }
 0x663   : > { %v6023_v8 = vmax.f32 %v5895_v48, 0.0  ;;  %v6032_v61 = vmax.f32 %v5904_v34, 0.0  ;;  %v6040_v24 = vmax.f32 %v5912_v53, 0.0  ;;  %9627 = vmatprep.mubr.bf16.mxu1 %v19023_v45  ;;  %v5751_v4 = vmul.f32 %v21931_v31, %v21956_v39  ;;  %v21957_v11 = vld [vmem:[#allocation103_spill] sm:$0xff]  ;;  %9681 = vmatpush1.bf16.msra.mxu1 %v14114_v59  ;;  %v21959_v45 = vld [vmem:[#allocation101_spill] sm:$0xff] }
 0x664   : > { %v5911_v13 = vadd.f32 %v18729_v56, %v5742_v54  ;;  %v6031_v17 = vmax.f32 %v5903_v16, 0.0  ;;  %v5759_v0 = vmul.f32 %v21931_v31, %v21957_v11  ;;  %v5750_v34 = vmul.f32 %v21934_v12, %v21958_v40  ;;  %9230 = vmatprep.subr.bf16.mxu0 %v14119_v6  ;;  %v14120_v48 = vld [vmem:[%s21249_s13 + $0x890] ss:$28 sps:$4 sm:$0xff]   ;;  %9682 = vmatprep.subr.bf16.mxu1 %v14122_v35 }
 0x665   : > { %v19495_v53 = vpack.c.bf16 %v6023_v8, %v6015_v10  ;;  %v19497_v54 = vpack.c.bf16 %v6040_v24, %v6032_v61  ;;  %v5758_v39 = vmul.f32 %v21934_v12, %v21959_v45  ;;  %v14128_v11 = vld [vmem:[%s21249_s13 + $0x8cc] ss:$28 sps:$4 sm:$0xff]   ;;  %v5920_v59 = vadd.f32 %v18716_v15, %v5751_v4  ;;  %9231 = vmatpush1.bf16.msra.mxu0 %v14117_v28  ;;  %v21961_v8 = vld [vmem:[#allocation105_spill] sm:$0xff] }
 0x666   : > { %v6039_v16 = vmax.f32 %v5911_v13, 0.0  ;;  %v5928_v6 = vadd.f32 %v18716_v15, %v5759_v0  ;;  %v5919_v40 = vadd.f32 %v18729_v56, %v5750_v34  ;;  %v21960_v7 = vld [vmem:[#allocation107_spill] sm:$0xff]  ;;  %v14123_v13 = vld [vmem:[%s21249_s13 + $0x8c0] ss:$28 sps:$4 sm:$0xff]   ;;  %v5766_v61 = vmul.f32 %v21934_v12, %v21961_v8  ;;  %9232 = vmatprep.subr.bf16.mxu0 %v14125_v22  ;;  %v14138_v8 = vld [vmem:[%s21249_s13 + $0x938] ss:$28 sps:$4 sm:$0xff]  }
 0x667   : > { %v5767_v10 = vmul.f32 %v21931_v31, %v21960_v7  ;;  %v5927_v35 = vadd.f32 %v18729_v56, %v5758_v39  ;;  %v21962_v24 = vld [vmem:[#allocation109_spill] sm:$0xff]  ;;  %v6048_v0 = vmax.f32 %v5920_v59, 0.0  ;;  %9683 = vmatpush1.bf16.msra.mxu1 %v14120_v48  ;;  %v14126_v31 = vld [vmem:[%s21249_s13 + $0x8c8] ss:$28 sps:$4 sm:$0xff]  }
 0x668   : > { %v19512_v45 = vpack.c.bf16 %v6039_v16, %v6031_v17  ;;  %v5774_v4 = vmul.f32 %v21934_v12, %v21962_v24  ;;  %v6056_v34 = vmax.f32 %v5928_v6, 0.0  ;;  %v6047_v38 = vmax.f32 %v5919_v40, 0.0  ;;  %v14131_v28 = vld [vmem:[%s21249_s13 + $0x8fc] ss:$28 sps:$4 sm:$0xff]   ;;  %9176 = vmatmul.mubr.bf16.gmra.mrb[128].mxu0 %v19032_v46  ;;  %9684 = vmatprep.subr.bf16.mxu1 %v14128_v11  ;;  %v14137_v11 = vld [vmem:[%s21249_s13 + $0x934] ss:$28 sps:$4 sm:$0xff]  }
 0x669   : > { %v5936_v7 = vadd.f32 %v18716_v15, %v5767_v10  ;;  %v6055_v17 = vmax.f32 %v5927_v35, 0.0  ;;  %v5935_v16 = vadd.f32 %v18729_v56, %v5766_v61  ;;  %v14134_v15 = vld [vmem:[%s21249_s13 + $0x904] ss:$28 sps:$4 sm:$0xff]   ;;  %9233 = vmatpush1.bf16.msra.mxu0 %v14123_v13  ;;  %v14129_v39 = vld [vmem:[%s21249_s13 + $0x8f8] ss:$28 sps:$4 sm:$0xff]   ;;  %9185 = vmatprep.mubr.bf16.mxu0 %v19043_v19  ;;  %v21963_v40 = vmax.f32 %v18723_v32, 0.0 }
 0x66a   : > { %v5943_v12 = vadd.f32 %v18729_v56, %v5774_v4  ;;  %v19532_v22 = vpack.c.bf16 %v6056_v34, %v6048_v0  ;;  %9628 = vmatmul.mubr.bf16.gmra.mrb[144].mxu1 %v19032_v46  ;;  %9234 = vmatprep.subr.bf16.mxu0 %v14131_v28  ;;  %v14140_v35 = vld [vmem:[%s21249_s13 + $0x93c] ss:$28 sps:$4 sm:$0xff]   ;;  %v14135_v32 = vld [vmem:[%s21249_s13 + $0x930] ss:$28 sps:$4 sm:$0xff]   ;;  %v14141_v4 = vld [vmem:[%s21249_s13 + $0x968] ss:$28 sps:$4 sm:$0xff]  }
 0x66b   : > { %v6064_v48 = vmax.f32 %v5936_v7, 0.0  ;;  %v19538_v59 = vpack.c.bf16 %v6055_v17, %v6047_v38  ;;  %v6063_v56 = vmax.f32 %v5935_v16, 0.0  ;;  %9637 = vmatprep.mubr.bf16.mxu1 %v19043_v19  ;;  %9685 = vmatpush1.bf16.msra.mxu1 %v14126_v31  ;;  %v14132_v38 = vld [vmem:[%s21249_s13 + $0x900] ss:$28 sps:$4 sm:$0xff]   ;;  %v14143_v61 = vld [vmem:[%s21249_s13 + $0x96c] ss:$28 sps:$4 sm:$0xff]  }
 0x66c   : > { %v6071_v6 = vmax.f32 %v5943_v12, 0.0  ;;  %9686 = vmatprep.subr.bf16.mxu1 %v14134_v15  ;;  %v14146_v24 = vld [vmem:[%s21249_s13 + $0x974] ss:$28 sps:$4 sm:$0xff]   ;;  %v14149_v0 = vld [vmem:[%s21249_s13 + $0x9a4] ss:$28 sps:$4 sm:$0xff]  }
 0x66d   : > { %v19547_v10 = vpack.c.bf16 %v21963_v40, %v6064_v48  ;;  %9235 = vmatpush1.bf16.msra.mxu0 %v14129_v39  ;;  %v14144_v34 = vld [vmem:[%s21249_s13 + $0x970] ss:$28 sps:$4 sm:$0xff]   ;;  %v14147_v31 = vld [vmem:[%s21249_s13 + $0x9a0] ss:$28 sps:$4 sm:$0xff]   ;;  %v14150_v28 = vld [vmem:[%s21249_s13 + $0x9a8] ss:$28 sps:$4 sm:$0xff]  }
 0x66e   : > { %v19552_v13 = vpack.c.bf16 %v6071_v6, %v6063_v56  ;;  %9236 = vmatprep.subr.bf16.mxu0 %v14137_v11  ;;  %v14152_v7 = vld [vmem:[%s21249_s13 + $0x9ac] ss:$28 sps:$4 sm:$0xff]   ;;  %v14155_v17 = vld [vmem:[%s21249_s13 + $0x9dc] ss:$28 sps:$4 sm:$0xff]   ;;  %v14158_v16 = vld [vmem:[%s21249_s13 + $0x9e4] ss:$28 sps:$4 sm:$0xff]  }
 0x66f   : > { %9687 = vmatpush1.bf16.msra.mxu1 %v14132_v38  ;;  %v14153_v12 = vld [vmem:[%s21249_s13 + $0x9d8] ss:$28 sps:$4 sm:$0xff]   ;;  %v14156_v48 = vld [vmem:[%s21249_s13 + $0x9e0] ss:$28 sps:$4 sm:$0xff]   ;;  %v14159_v56 = vld [vmem:[%s21249_s13 + $0xa10] ss:$28 sps:$4 sm:$0xff]  }
 0x670   : > { %9186 = vmatmul.mubr.bf16.gmra.mrb[132].mxu0 %v19063_v47  ;;  %9688 = vmatprep.subr.bf16.mxu1 %v14140_v35  ;;  %v14161_v15 = vld [vmem:[%s21249_s13 + $0xa14] ss:$28 sps:$4 sm:$0xff]   ;;  %v14164_v39 = vld [vmem:[%s21249_s13 + $0xa1c] ss:$28 sps:$4 sm:$0xff]   ;;  %v14167_v11 = vld [vmem:[%s21249_s13 + $0xa4c] ss:$28 sps:$4 sm:$0xff]  }
 0x671   : > { %9237 = vmatpush1.bf16.msra.mxu0 %v14135_v32  ;;  %9195 = vmatprep.mubr.bf16.mxu0 %v19072_v41  ;;  %v14162_v6 = vld [vmem:[%s21249_s13 + $0xa18] ss:$28 sps:$4 sm:$0xff]   ;;  %v14165_v38 = vld [vmem:[%s21249_s13 + $0xa48] ss:$28 sps:$4 sm:$0xff]   ;;  %v14168_v32 = vld [vmem:[%s21249_s13 + $0xa50] ss:$28 sps:$4 sm:$0xff]  }
 0x672   : > { %9638 = vmatmul.mubr.bf16.gmra.mrb[148].mxu1 %v19063_v47  ;;  %9238 = vmatprep.subr.bf16.mxu0 %v14143_v61  ;;  %v14170_v40 = vld [vmem:[%s21249_s13 + $0xa54] ss:$28 sps:$4 sm:$0xff]   ;;  %v14173_v35 = vld [vmem:[%s21249_s13 + $0xa84] ss:$28 sps:$4 sm:$0xff]  }
 0x673   : > { %9647 = vmatprep.mubr.bf16.mxu1 %v19072_v41  ;;  %9689 = vmatpush1.bf16.msra.mxu1 %v14138_v8  ;;  %v14176_v8 = vld [vmem:[%s21249_s13 + $0xa8c] ss:$28 sps:$4 sm:$0xff]   ;;  %v14171_v61 = vld [vmem:[%s21249_s13 + $0xa80] ss:$28 sps:$4 sm:$0xff]  }
 0x674   : > { %9690 = vmatprep.subr.bf16.mxu1 %v14146_v24  ;;  %v14179_v24 = vld [vmem:[%s21249_s13 + $0xabc] ss:$28 sps:$4 sm:$0xff]  }
 0x675   : > { %9239 = vmatpush1.bf16.msra.mxu0 %v14141_v4  ;;  %v14174_v4 = vld [vmem:[%s21249_s13 + $0xa88] ss:$28 sps:$4 sm:$0xff]  }
 0x676   : > { %9240 = vmatprep.subr.bf16.mxu0 %v14149_v0  ;;  %v14182_v0 = vld [vmem:[%s21249_s13 + $0xac4] ss:$28 sps:$4 sm:$0xff]  }
 0x677   : > { %9691 = vmatpush1.bf16.msra.mxu1 %v14144_v34  ;;  %v14177_v34 = vld [vmem:[%s21249_s13 + $0xab8] ss:$28 sps:$4 sm:$0xff]  }
 0x678   : > { %9196 = vmatmul.mubr.bf16.gmra.mrb[136].mxu0 %v19095_v29  ;;  %9692 = vmatprep.subr.bf16.mxu1 %v14152_v7  ;;  %v14185_v7 = vld [vmem:[%s21249_s13 + $0xaf4] ss:$28 sps:$4 sm:$0xff]  }
 0x679   : > { %9241 = vmatpush1.bf16.msra.mxu0 %v14147_v31  ;;  %9205 = vmatprep.mubr.bf16.mxu0 %v19107_v58  ;;  %v14180_v31 = vld [vmem:[%s21249_s13 + $0xac0] ss:$28 sps:$4 sm:$0xff]  }
 0x67a   : > { %9648 = vmatmul.mubr.bf16.gmra.mrb[152].mxu1 %v19095_v29  ;;  %9242 = vmatprep.subr.bf16.mxu0 %v14155_v17  ;;  %v14183_v17 = vld [vmem:[%s21249_s13 + $0xaf0] ss:$28 sps:$4 sm:$0xff]  }
 0x67b   : > { %9657 = vmatprep.mubr.bf16.mxu1 %v19107_v58  ;;  %9693 = vmatpush1.bf16.msra.mxu1 %v14150_v28  ;;  %v14188_v28 = vld [vmem:[%s21249_s13 + $0xafc] ss:$28 sps:$4 sm:$0xff]  }
 0x67c   : > { %9694 = vmatprep.subr.bf16.mxu1 %v14158_v16  ;;  %v14191_v16 = vld [vmem:[%s21249_s13 + $0xb2c] ss:$28 sps:$4 sm:$0xff]  }
 0x67d   : > { %9243 = vmatpush1.bf16.msra.mxu0 %v14153_v12  ;;  %v14186_v12 = vld [vmem:[%s21249_s13 + $0xaf8] ss:$28 sps:$4 sm:$0xff]  }
 0x67e   : > { %9244 = vmatprep.subr.bf16.mxu0 %v14161_v15  ;;  %v14194_v15 = vld [vmem:[%s21249_s13 + $0xb34] ss:$28 sps:$4 sm:$0xff]  }
 0x67f   : > { %9695 = vmatpush1.bf16.msra.mxu1 %v14156_v48  ;;  %v14189_v48 = vld [vmem:[%s21249_s13 + $0xb28] ss:$28 sps:$4 sm:$0xff]  }
 0x680   : > { %9206 = vmatmul.mubr.bf16.gmra.mrb[140].mxu0 %v19114_v3  ;;  %9696 = vmatprep.subr.bf16.mxu1 %v14164_v39  ;;  %v14197_v39 = vld [vmem:[%s21249_s13 + $0xb64] ss:$28 sps:$4 sm:$0xff]  }
 0x681   : > { %9245 = vmatpush1.bf16.msra.mxu0 %v14159_v56  ;;  %9248 = vmatprep.mubr.bf16.mxu0 %v19134_v30  ;;  %v14192_v56 = vld [vmem:[%s21249_s13 + $0xb30] ss:$28 sps:$4 sm:$0xff]  }
 0x682   : > { %9658 = vmatmul.mubr.bf16.gmra.mrb[156].mxu1 %v19114_v3  ;;  %9246 = vmatprep.subr.bf16.mxu0 %v14167_v11  ;;  %v14195_v11 = vld [vmem:[%s21249_s13 + $0xb60] ss:$28 sps:$4 sm:$0xff]  }
 0x683   : > { %9700 = vmatprep.mubr.bf16.mxu1 %v19134_v30  ;;  %9697 = vmatpush1.bf16.msra.mxu1 %v14162_v6  ;;  %v14200_v6 = vld [vmem:[%s21249_s13 + $0xb6c] ss:$28 sps:$4 sm:$0xff]  }
 0x684   : > { %9698 = vmatprep.subr.bf16.mxu1 %v14170_v40  ;;  %v14203_v40 = vld [vmem:[%s21249_s13 + $0xb9c] ss:$28 sps:$4 sm:$0xff]  }
 0x685   : > { %9247 = vmatpush1.bf16.msra.mxu0 %v14165_v38  ;;  %v14198_v38 = vld [vmem:[%s21249_s13 + $0xb68] ss:$28 sps:$4 sm:$0xff]  }
 0x686   : > { %9329 = vmatprep.subr.bf16.mxu0 %v14173_v35  ;;  %v14206_v35 = vld [vmem:[%s21249_s13 + $0xba4] ss:$28 sps:$4 sm:$0xff]  }
 0x687   : > { %9699 = vmatpush1.bf16.msra.mxu1 %v14168_v32  ;;  %v14201_v32 = vld [vmem:[%s21249_s13 + $0xb98] ss:$28 sps:$4 sm:$0xff]  }
 0x688   : > { %9249 = vmatmul.mubr.bf16.vlgmr.msra.gmra.mrb[112].mxu0 %v19144_v18  ;;  %9781 = vmatprep.subr.bf16.mxu1 %v14176_v8  ;;  %v14209_v8 = vld [vmem:[%s21249_s13 + $0xbd4] ss:$28 sps:$4 sm:$0xff]  }
 0x689   : > { %9330 = vmatpush1.bf16.msra.mxu0 %v14171_v61  ;;  %9258 = vmatprep.mubr.bf16.mxu0 %v19170_v63  ;;  %v14204_v61 = vld [vmem:[%s21249_s13 + $0xba0] ss:$28 sps:$4 sm:$0xff]  }
 0x68a   : > { %9701 = vmatmul.mubr.bf16.vlgmr.msra.gmra.mrb[128].mxu1 %v19144_v18  ;;  %9331 = vmatprep.subr.bf16.mxu0 %v14179_v24  ;;  %v14212_v24 = vld [vmem:[%s21249_s13 + $0xbdc] ss:$28 sps:$4 sm:$0xff]  }
 0x68b   : > { %9710 = vmatprep.mubr.bf16.mxu1 %v19170_v63  ;;  %9782 = vmatpush1.bf16.msra.mxu1 %v14174_v4  ;;  %v14207_v4 = vld [vmem:[%s21249_s13 + $0xbd0] ss:$28 sps:$4 sm:$0xff]  }
 0x68c   : > { %9783 = vmatprep.subr.bf16.mxu1 %v14182_v0  ;;  %v14215_v0 = vld [vmem:[%s21249_s13 + $0xc0c] ss:$28 sps:$4 sm:$0xff]  }
 0x68d   : > { %9332 = vmatpush1.bf16.msra.mxu0 %v14177_v34  ;;  %v14210_v34 = vld [vmem:[%s21249_s13 + $0xbd8] ss:$28 sps:$4 sm:$0xff]  }
 0x68e   : > { %9333 = vmatprep.subr.bf16.mxu0 %v14185_v7  ;;  %v14218_v7 = vld [vmem:[%s21249_s13 + $0xc14] ss:$28 sps:$4 sm:$0xff]  }
 0x68f   : > { %9784 = vmatpush1.bf16.msra.mxu1 %v14180_v31  ;;  %v14213_v31 = vld [vmem:[%s21249_s13 + $0xc08] ss:$28 sps:$4 sm:$0xff]  }
 0x690   : > { %9259 = vmatmul.mubr.bf16.gmra.mrb[116].mxu0 %v19178_v49  ;;  %9785 = vmatprep.subr.bf16.mxu1 %v14188_v28  ;;  %v14221_v28 = vld [vmem:[%s21249_s13 + $0xc44] ss:$28 sps:$4 sm:$0xff]  }
 0x691   : > { %9334 = vmatpush1.bf16.msra.mxu0 %v14183_v17  ;;  %9268 = vmatprep.mubr.bf16.mxu0 %v19190_v23  ;;  %v14216_v17 = vld [vmem:[%s21249_s13 + $0xc10] ss:$28 sps:$4 sm:$0xff]  }
 0x692   : > { %9711 = vmatmul.mubr.bf16.gmra.mrb[132].mxu1 %v19178_v49  ;;  %9335 = vmatprep.subr.bf16.mxu0 %v14191_v16  ;;  %v14224_v16 = vld [vmem:[%s21249_s13 + $0xc4c] ss:$28 sps:$4 sm:$0xff]  }
 0x693   : > { %9720 = vmatprep.mubr.bf16.mxu1 %v19190_v23  ;;  %9786 = vmatpush1.bf16.msra.mxu1 %v14186_v12  ;;  %v14219_v12 = vld [vmem:[%s21249_s13 + $0xc40] ss:$28 sps:$4 sm:$0xff]  }
 0x694   : > { %9787 = vmatprep.subr.bf16.mxu1 %v14194_v15  ;;  %v14227_v15 = vld [vmem:[%s21249_s13 + $0xc7c] ss:$28 sps:$4 sm:$0xff]  }
 0x695   : > { %9336 = vmatpush1.bf16.msra.mxu0 %v14189_v48  ;;  %v14222_v48 = vld [vmem:[%s21249_s13 + $0xc48] ss:$28 sps:$4 sm:$0xff]  }
 0x696   : > { %9337 = vmatprep.subr.bf16.mxu0 %v14197_v39  ;;  %v14230_v39 = vld [vmem:[%s21249_s13 + $0xc84] ss:$28 sps:$4 sm:$0xff]  }
 0x697   : > { %9788 = vmatpush1.bf16.msra.mxu1 %v14192_v56  ;;  %v14225_v56 = vld [vmem:[%s21249_s13 + $0xc78] ss:$28 sps:$4 sm:$0xff]  }
 0x698   : > { %9269 = vmatmul.mubr.bf16.gmra.mrb[120].mxu0 %v19207_v27  ;;  %9789 = vmatprep.subr.bf16.mxu1 %v14200_v6  ;;  %v14233_v6 = vld [vmem:[%s21249_s13 + $0xcb4] ss:$28 sps:$4 sm:$0xff]  }
 0x699   : > { %9338 = vmatpush1.bf16.msra.mxu0 %v14195_v11  ;;  %9278 = vmatprep.mubr.bf16.mxu0 %v19216_v20  ;;  %v14228_v11 = vld [vmem:[%s21249_s13 + $0xc80] ss:$28 sps:$4 sm:$0xff]  }
 0x69a   : > { %9721 = vmatmul.mubr.bf16.gmra.mrb[136].mxu1 %v19207_v27  ;;  %9339 = vmatprep.subr.bf16.mxu0 %v14203_v40  ;;  %v14236_v40 = vld [vmem:[%s21249_s13 + $0xcbc] ss:$28 sps:$4 sm:$0xff]  }
 0x69b   : > { %9730 = vmatprep.mubr.bf16.mxu1 %v19216_v20  ;;  %9790 = vmatpush1.bf16.msra.mxu1 %v14198_v38  ;;  %v14231_v38 = vld [vmem:[%s21249_s13 + $0xcb0] ss:$28 sps:$4 sm:$0xff]  }
 0x69c   : > { %9791 = vmatprep.subr.bf16.mxu1 %v14206_v35  ;;  %v14239_v35 = vld [vmem:[%s21249_s13 + $0xcec] ss:$28 sps:$4 sm:$0xff]  }
 0x69d   : > { %9340 = vmatpush1.bf16.msra.mxu0 %v14201_v32  ;;  %v14234_v32 = vld [vmem:[%s21249_s13 + $0xcb8] ss:$28 sps:$4 sm:$0xff]  }
 0x69e   : > { %9341 = vmatprep.subr.bf16.mxu0 %v14209_v8  ;;  %v14242_v8 = vld [vmem:[%s21249_s13 + $0xcf4] ss:$28 sps:$4 sm:$0xff]  }
 0x69f   : > { %9792 = vmatpush1.bf16.msra.mxu1 %v14204_v61  ;;  %v14237_v61 = vld [vmem:[%s21249_s13 + $0xce8] ss:$28 sps:$4 sm:$0xff]  }
 0x6a0   : > { %9279 = vmatmul.mubr.bf16.gmra.mrb[124].mxu0 %v19234_v14  ;;  %9793 = vmatprep.subr.bf16.mxu1 %v14212_v24  ;;  %v14245_v24 = vld [vmem:[%s21249_s13 + $0xd24] ss:$28 sps:$4 sm:$0xff]  }
 0x6a1   : > { %9342 = vmatpush1.bf16.msra.mxu0 %v14207_v4  ;;  %9288 = vmatprep.mubr.bf16.mxu0 %v19246_v42  ;;  %v14240_v4 = vld [vmem:[%s21249_s13 + $0xcf0] ss:$28 sps:$4 sm:$0xff]  }
 0x6a2   : > { %9731 = vmatmul.mubr.bf16.gmra.mrb[140].mxu1 %v19234_v14  ;;  %9343 = vmatprep.subr.bf16.mxu0 %v14215_v0  ;;  %v14248_v0 = vld [vmem:[%s21249_s13 + $0xd2c] ss:$28 sps:$4 sm:$0xff]  }
 0x6a3   : > { %9740 = vmatprep.mubr.bf16.mxu1 %v19246_v42  ;;  %9794 = vmatpush1.bf16.msra.mxu1 %v14210_v34  ;;  %v14243_v34 = vld [vmem:[%s21249_s13 + $0xd20] ss:$28 sps:$4 sm:$0xff]  }
 0x6a4   : > { %9795 = vmatprep.subr.bf16.mxu1 %v14218_v7  ;;  %v14251_v7 = vld [vmem:[%s21249_s13 + $0xd5c] ss:$28 sps:$4 sm:$0xff]  }
 0x6a5   : > { %9344 = vmatpush1.bf16.msra.mxu0 %v14213_v31  ;;  %v14246_v31 = vld [vmem:[%s21249_s13 + $0xd28] ss:$28 sps:$4 sm:$0xff]  }
 0x6a6   : > { %9345 = vmatprep.subr.bf16.mxu0 %v14221_v28  ;;  %v14254_v28 = vld [vmem:[%s21249_s13 + $0xd64] ss:$28 sps:$4 sm:$0xff]  }
 0x6a7   : > { %9796 = vmatpush1.bf16.msra.mxu1 %v14216_v17  ;;  %v14249_v17 = vld [vmem:[%s21249_s13 + $0xd58] ss:$28 sps:$4 sm:$0xff]  }
 0x6a8   : > { %9289 = vmatmul.mubr.bf16.gmra.mrb[128].mxu0 %v19255_v9  ;;  %9797 = vmatprep.subr.bf16.mxu1 %v14224_v16  ;;  %v14257_v16 = vld [vmem:[%s21249_s13 + $0xd94] ss:$28 sps:$4 sm:$0xff]  }
 0x6a9   : > { %9346 = vmatpush1.bf16.msra.mxu0 %v14219_v12  ;;  %9298 = vmatprep.mubr.bf16.mxu0 %v19278_v21  ;;  %v14252_v12 = vld [vmem:[%s21249_s13 + $0xd60] ss:$28 sps:$4 sm:$0xff]  }
 0x6aa   : > { %9741 = vmatmul.mubr.bf16.gmra.mrb[144].mxu1 %v19255_v9  ;;  %9347 = vmatprep.subr.bf16.mxu0 %v14227_v15  ;;  %v14260_v15 = vld [vmem:[%s21249_s13 + $0xd9c] ss:$28 sps:$4 sm:$0xff]  }
 0x6ab   : > { %9750 = vmatprep.mubr.bf16.mxu1 %v19278_v21  ;;  %9798 = vmatpush1.bf16.msra.mxu1 %v14222_v48  ;;  %v14255_v48 = vld [vmem:[%s21249_s13 + $0xd90] ss:$28 sps:$4 sm:$0xff]  }
 0x6ac   : > { %9799 = vmatprep.subr.bf16.mxu1 %v14230_v39  ;;  %v14263_v39 = vld [vmem:[%s21249_s13 + $0xdcc] ss:$28 sps:$4 sm:$0xff]  }
 0x6ad   : > { %9348 = vmatpush1.bf16.msra.mxu0 %v14225_v56  ;;  %v14258_v56 = vld [vmem:[%s21249_s13 + $0xd98] ss:$28 sps:$4 sm:$0xff]  }
 0x6ae   : > { %9349 = vmatprep.subr.bf16.mxu0 %v14233_v6  ;;  %v14266_v6 = vld [vmem:[%s21249_s13 + $0xdd4] ss:$28 sps:$4 sm:$0xff]  }
 0x6af   : > { %9800 = vmatpush1.bf16.msra.mxu1 %v14228_v11  ;;  %v14261_v11 = vld [vmem:[%s21249_s13 + $0xdc8] ss:$28 sps:$4 sm:$0xff]  }
 0x6b0   : > { %9299 = vmatmul.mubr.bf16.gmra.mrb[132].mxu0 %v19287_v55  ;;  %9801 = vmatprep.subr.bf16.mxu1 %v14236_v40  ;;  %v14269_v40 = vld [vmem:[%s21249_s13 + $0x14] ss:$28 sps:$4 sm:$0xff]  }
 0x6b1   : > { %9350 = vmatpush1.bf16.msra.mxu0 %v14231_v38  ;;  %9308 = vmatprep.mubr.bf16.mxu0 %v19304_v51  ;;  %v14264_v38 = vld [vmem:[%s21249_s13 + $0xdd0] ss:$28 sps:$4 sm:$0xff]  }
 0x6b2   : > { %9751 = vmatmul.mubr.bf16.gmra.mrb[148].mxu1 %v19287_v55  ;;  %9351 = vmatprep.subr.bf16.mxu0 %v14239_v35  ;;  %v14285_v35 = vld [vmem:[%s21249_s13 + $0x1d8] ss:$28 sps:$4 sm:$0xff]  }
 0x6b3   : > { %9760 = vmatprep.mubr.bf16.mxu1 %v19304_v51  ;;  %9802 = vmatpush1.bf16.msra.mxu1 %v14234_v32  ;;  %v14267_v32 = vld [vmem:[%s21249_s13 + $0x10] ss:$28 sps:$4 sm:$0xff]  }
 0x6b4   : > { %9803 = vmatprep.subr.bf16.mxu1 %v14242_v8  ;;  %v14272_v8 = vld [vmem:[%s21249_s13 + $0x4c] ss:$28 sps:$4 sm:$0xff]  }
 0x6b5   : > { %9352 = vmatpush1.bf16.msra.mxu0 %v14237_v61  ;;  %v14286_v61 = vld [vmem:[%s21249_s13 + $0x18] ss:$28 sps:$4 sm:$0xff]  }
 0x6b6   : > { %9353 = vmatprep.subr.bf16.mxu0 %v14245_v24  ;;  %v14293_v24 = vld [vmem:[%s21249_s13 + $0x210] ss:$28 sps:$4 sm:$0xff]  }
 0x6b7   : > { %9804 = vmatpush1.bf16.msra.mxu1 %v14240_v4  ;;  %v14270_v4 = vld [vmem:[%s21249_s13 + $0x48] ss:$28 sps:$4 sm:$0xff]  }
 0x6b8   : > { %9309 = vmatmul.mubr.bf16.gmra.mrb[136].mxu0 %v19318_v44  ;;  %9805 = vmatprep.subr.bf16.mxu1 %v14248_v0  ;;  %v14275_v0 = vld [vmem:[%s21249_s13 + $0x84] ss:$28 sps:$4 sm:$0xff]  }
 0x6b9   : > { %9354 = vmatpush1.bf16.msra.mxu0 %v14243_v34  ;;  %9318 = vmatprep.mubr.bf16.mxu0 %v19325_v5  ;;  %v14294_v34 = vld [vmem:[%s21249_s13 + $0x50] ss:$28 sps:$4 sm:$0xff]  }
 0x6ba   : > { %9761 = vmatmul.mubr.bf16.gmra.mrb[152].mxu1 %v19318_v44  ;;  %9355 = vmatprep.subr.bf16.mxu0 %v14251_v7  ;;  %v14301_v7 = vld [vmem:[%s21249_s13 + $0x248] ss:$28 sps:$4 sm:$0xff]  }
 0x6bb   : > { %9770 = vmatprep.mubr.bf16.mxu1 %v19325_v5  ;;  %9806 = vmatpush1.bf16.msra.mxu1 %v14246_v31  ;;  %v14273_v31 = vld [vmem:[%s21249_s13 + $0x80] ss:$28 sps:$4 sm:$0xff]  }
 0x6bc   : > { %9807 = vmatprep.subr.bf16.mxu1 %v14254_v28  ;;  %v14278_v28 = vld [vmem:[%s21249_s13 + $0xbc] ss:$28 sps:$4 sm:$0xff]  }
 0x6bd   : > { %9356 = vmatpush1.bf16.msra.mxu0 %v14249_v17  ;;  %v14302_v17 = vld [vmem:[%s21249_s13 + $0x88] ss:$28 sps:$4 sm:$0xff]  }
 0x6be   : > { %9357 = vmatprep.subr.bf16.mxu0 %v14257_v16  ;;  %v14309_v16 = vld [vmem:[%s21249_s13 + $0x280] ss:$28 sps:$4 sm:$0xff]  }
 0x6bf   : > { %9808 = vmatpush1.bf16.msra.mxu1 %v14252_v12  ;;  %v14276_v12 = vld [vmem:[%s21249_s13 + $0xb8] ss:$28 sps:$4 sm:$0xff]  }
 0x6c0   : > { %9319 = vmatmul.mubr.bf16.gmra.mrb[140].mxu0 %v19342_v60  ;;  %9809 = vmatprep.subr.bf16.mxu1 %v14260_v15  ;;  %v14281_v15 = vld [vmem:[%s21249_s13 + $0xf4] ss:$28 sps:$4 sm:$0xff]  }
 0x6c1   : > { %9358 = vmatpush1.bf16.msra.mxu0 %v14255_v48  ;;  %9361 = vmatprep.mubr.bf16.mxu0 %v19360_v37  ;;  %v14310_v48 = vld [vmem:[%s21249_s13 + $0xc0] ss:$28 sps:$4 sm:$0xff]  }
 0x6c2   : > { %9771 = vmatmul.mubr.bf16.gmra.mrb[156].mxu1 %v19342_v60  ;;  %9359 = vmatprep.subr.bf16.mxu0 %v14263_v39  ;;  %v14314_v39 = vld [vmem:[%s21249_s13 + $0x2b8] ss:$28 sps:$4 sm:$0xff]  }
 0x6c3   : > { %9810 = vmatpush1.bf16.msra.mxu1 %v14258_v56  ;;  %9813 = vmatprep.mubr.bf16.mxu1 %v19360_v37  ;;  %v14279_v56 = vld [vmem:[%s21249_s13 + $0xf0] ss:$28 sps:$4 sm:$0xff]  }
 0x6c4   : > { %9811 = vmatprep.subr.bf16.mxu1 %v14266_v6  ;;  %v14284_v6 = vld [vmem:[%s21249_s13 + $0x12c] ss:$28 sps:$4 sm:$0xff]  }
 0x6c5   : > { %9360 = vmatpush1.bf16.msra.mxu0 %v14261_v11  ;;  %v14315_v11 = vld [vmem:[%s21249_s13 + $0xf8] ss:$28 sps:$4 sm:$0xff]  }
 0x6c6   : > { %9894 = vmatprep.subr.bf16.mxu0 %v14269_v40  ;;  %v14319_v40 = vld [vmem:[%s21249_s13 + $0x2f0] ss:$28 sps:$4 sm:$0xff]  }
 0x6c7   : > { %9812 = vmatpush1.bf16.msra.mxu1 %v14264_v38  ;;  %v14282_v38 = vld [vmem:[%s21249_s13 + $0x128] ss:$28 sps:$4 sm:$0xff]  }
 0x6c8   : > { %9362 = vmatmul.mubr.bf16.vlgmr.msra.gmra.mrb[112].mxu0 %v19367_v52  ;;  %13220 = vmatprep.subr.bf16.mxu1 %v14285_v35  ;;  %v14289_v35 = vld [vmem:[%s21249_s13 + $0x164] ss:$28 sps:$4 sm:$0xff]  }
 0x6c9   : > { %9895 = vmatpush1.bf16.msra.mxu0 %v14267_v32  ;;  %9371 = vmatprep.mubr.bf16.mxu0 %v19387_v50  ;;  %v14320_v32 = vld [vmem:[%s21249_s13 + $0x130] ss:$28 sps:$4 sm:$0xff]  }
 0x6ca   : > { %9814 = vmatmul.mubr.bf16.vlgmr.msra.gmra.mrb[128].mxu1 %v19367_v52  ;;  %9896 = vmatprep.subr.bf16.mxu0 %v14272_v8  ;;  %v14324_v8 = vld [vmem:[%s21249_s13 + $0x328] ss:$28 sps:$4 sm:$0xff]  }
 0x6cb   : > { %9823 = vmatprep.mubr.bf16.mxu1 %v19387_v50  ;;  %13228 = vmatpush3.bf16.msra.mxu1 %v14286_v61  ;;  %v14287_v61 = vld [vmem:[%s21249_s13 + $0x160] ss:$28 sps:$4 sm:$0xff]  }
 0x6cc   : > { %13221 = vmatprep.subr.bf16.mxu1 %v14293_v24  ;;  %v14292_v24 = vld [vmem:[%s21249_s13 + $0x19c] ss:$28 sps:$4 sm:$0xff]  }
 0x6cd   : > { %9897 = vmatpush1.bf16.msra.mxu0 %v14270_v4  ;;  %v14325_v4 = vld [vmem:[%s21249_s13 + $0x168] ss:$28 sps:$4 sm:$0xff]  }
 0x6ce   : > { %9898 = vmatprep.subr.bf16.mxu0 %v14275_v0  ;;  %v14329_v0 = vld [vmem:[%s21249_s13 + $0x360] ss:$28 sps:$4 sm:$0xff]  }
 0x6cf   : > { %13229 = vmatpush3.bf16.msra.mxu1 %v14294_v34  ;;  %v14290_v34 = vld [vmem:[%s21249_s13 + $0x198] ss:$28 sps:$4 sm:$0xff]  }
 0x6d0   : > { %9372 = vmatmul.mubr.bf16.gmra.mrb[116].mxu0 %v19399_v26  ;;  %13222 = vmatprep.subr.bf16.mxu1 %v14301_v7  ;;  %v14297_v7 = vld [vmem:[%s21249_s13 + $0x1d4] ss:$28 sps:$4 sm:$0xff]  }
 0x6d1   : > { %9899 = vmatpush1.bf16.msra.mxu0 %v14273_v31  ;;  %9381 = vmatprep.mubr.bf16.mxu0 %v19423_v57  ;;  %v14330_v31 = vld [vmem:[%s21249_s13 + $0x1a0] ss:$28 sps:$4 sm:$0xff]  }
 0x6d2   : > { %9824 = vmatmul.mubr.bf16.gmra.mrb[132].mxu1 %v19399_v26  ;;  %9900 = vmatprep.subr.bf16.mxu0 %v14278_v28  ;;  %v14349_v28 = vld [vmem:[%s21249_s13 + $0x558] ss:$28 sps:$4 sm:$0xff]  }
 0x6d3   : > { %9833 = vmatprep.mubr.bf16.mxu1 %v19423_v57  ;;  %13230 = vmatpush3.bf16.msra.mxu1 %v14302_v17  ;;  %v14295_v17 = vld [vmem:[%s21249_s13 + $0x1d0] ss:$28 sps:$4 sm:$0xff]  }
 0x6d4   : > { %13223 = vmatprep.subr.bf16.mxu1 %v14309_v16  ;;  %v14300_v16 = vld [vmem:[%s21249_s13 + $0x20c] ss:$28 sps:$4 sm:$0xff]  }
 0x6d5   : > { %9901 = vmatpush1.bf16.msra.mxu0 %v14276_v12  ;;  %v14298_v12 = vld [vmem:[%s21249_s13 + $0x208] ss:$28 sps:$4 sm:$0xff]  }
 0x6d6   : > { %9902 = vmatprep.subr.bf16.mxu0 %v14281_v15  ;;  %v14305_v15 = vld [vmem:[%s21249_s13 + $0x244] ss:$28 sps:$4 sm:$0xff]  }
 0x6d7   : > { %13231 = vmatpush3.bf16.msra.mxu1 %v14310_v48  ;;  %v14303_v48 = vld [vmem:[%s21249_s13 + $0x240] ss:$28 sps:$4 sm:$0xff]  }
 0x6d8   : > { %9382 = vmatmul.mubr.bf16.gmra.mrb[120].mxu0 %v19432_v62  ;;  %13224 = vmatprep.subr.bf16.mxu1 %v14314_v39  ;;  %v14308_v39 = vld [vmem:[%s21249_s13 + $0x27c] ss:$28 sps:$4 sm:$0xff]  }
 0x6d9   : > { %9903 = vmatpush1.bf16.msra.mxu0 %v14279_v56  ;;  %9391 = vmatprep.mubr.bf16.mxu0 %v19439_v43  ;;  %v14306_v56 = vld [vmem:[%s21249_s13 + $0x278] ss:$28 sps:$4 sm:$0xff]  }
 0x6da   : > { %9834 = vmatmul.mubr.bf16.gmra.mrb[136].mxu1 %v19432_v62  ;;  %9904 = vmatprep.subr.bf16.mxu0 %v14284_v6  ;;  %v14313_v6 = vld [vmem:[%s21249_s13 + $0x2b4] ss:$28 sps:$4 sm:$0xff]  }
 0x6db   : > { %9843 = vmatprep.mubr.bf16.mxu1 %v19439_v43  ;;  %13232 = vmatpush3.bf16.msra.mxu1 %v14315_v11  ;;  %v14311_v11 = vld [vmem:[%s21249_s13 + $0x2b0] ss:$28 sps:$4 sm:$0xff]  }
 0x6dc   : > { %13225 = vmatprep.subr.bf16.mxu1 %v14319_v40  ;;  %v14318_v40 = vld [vmem:[%s21249_s13 + $0x2ec] ss:$28 sps:$4 sm:$0xff]  }
 0x6dd   : > { %9905 = vmatpush1.bf16.msra.mxu0 %v14282_v38  ;;  %v14316_v38 = vld [vmem:[%s21249_s13 + $0x2e8] ss:$28 sps:$4 sm:$0xff]  }
 0x6de   : > { %9906 = vmatprep.subr.bf16.mxu0 %v14289_v35  ;;  %v14323_v35 = vld [vmem:[%s21249_s13 + $0x324] ss:$28 sps:$4 sm:$0xff]  }
 0x6df   : > { %13233 = vmatpush3.bf16.msra.mxu1 %v14320_v32  ;;  %v14321_v32 = vld [vmem:[%s21249_s13 + $0x320] ss:$28 sps:$4 sm:$0xff]  }
 0x6e0   : > { %9392 = vmatmul.mubr.bf16.gmra.mrb[124].mxu0 %v19471_v1  ;;  %13226 = vmatprep.subr.bf16.mxu1 %v14324_v8  ;;  %v14328_v8 = vld [vmem:[%s21249_s13 + $0x35c] ss:$28 sps:$4 sm:$0xff]  }
 0x6e1   : > { %9907 = vmatpush1.bf16.msra.mxu0 %v14287_v61  ;;  %9401 = vmatprep.mubr.bf16.mxu0 %v19473_v25  ;;  %v14326_v61 = vld [vmem:[%s21249_s13 + $0x358] ss:$28 sps:$4 sm:$0xff]  }
 0x6e2   : > { %9844 = vmatmul.mubr.bf16.gmra.mrb[140].mxu1 %v19471_v1  ;;  %9908 = vmatprep.subr.bf16.mxu0 %v14292_v24  ;;  %v14333_v24 = vld [vmem:[%s21249_s13 + $0x394] ss:$28 sps:$4 sm:$0xff]  }
 0x6e3   : > { %9853 = vmatprep.mubr.bf16.mxu1 %v19473_v25  ;;  %13234 = vmatpush3.bf16.msra.mxu1 %v14325_v4  ;;  %v14331_v4 = vld [vmem:[%s21249_s13 + $0x390] ss:$28 sps:$4 sm:$0xff]  }
 0x6e4   : > { %13227 = vmatprep.subr.bf16.mxu1 %v14329_v0  ;;  %v14336_v0 = vld [vmem:[%s21249_s13 + $0x3cc] ss:$28 sps:$4 sm:$0xff]  }
 0x6e5   : > { %9909 = vmatpush1.bf16.msra.mxu0 %v14290_v34  ;;  %v14350_v34 = vld [vmem:[%s21249_s13 + $0x398] ss:$28 sps:$4 sm:$0xff]  }
 0x6e6   : > { %9910 = vmatprep.subr.bf16.mxu0 %v14297_v7  ;;  %v14357_v7 = vld [vmem:[%s21249_s13 + $0x590] ss:$28 sps:$4 sm:$0xff]  }
 0x6e7   : > { %13235 = vmatpush3.bf16.msra.mxu1 %v14330_v31  ;;  %v14334_v31 = vld [vmem:[%s21249_s13 + $0x3c8] ss:$28 sps:$4 sm:$0xff]  }
 0x6e8   : > { %9402 = vmatmul.mubr.bf16.gmra.mrb[128].mxu0 %v19495_v53  ;;  %13004 = vmatprep.subr.bf16.mxu1 %v14349_v28  ;;  %v21964_v28 = vld [vmem:[#allocation56_spill] sm:$0xff] }
 0x6e9   : > { %9911 = vmatpush1.bf16.msra.mxu0 %v14295_v17  ;;  %9411 = vmatprep.mubr.bf16.mxu0 %v19497_v54  ;;  %v14339_v17 = vld [vmem:[%s21249_s13 + $0x404] ss:$28 sps:$4 sm:$0xff]  }
 0x6ea   : > { %9854 = vmatmul.mubr.bf16.gmra.mrb[144].mxu1 %v19495_v53  ;;  %9912 = vmatprep.subr.bf16.mxu0 %v14300_v16  ;;  %v21965_v16 = vld [vmem:[#allocation77_spill] sm:$0xff] }
 0x6eb   : > { %9863 = vmatprep.mubr.bf16.mxu1 %v19497_v54 }
 0x6ed   : > { %9913 = vmatpush1.bf16.msra.mxu0 %v14298_v12  ;;  %v14358_v12 = vld [vmem:[%s21249_s13 + $0x3d0] ss:$28 sps:$4 sm:$0xff]  }
 0x6ee   : > { %9914 = vmatprep.subr.bf16.mxu0 %v14305_v15  ;;  %v14337_v15 = vld [vmem:[%s21249_s13 + $0x400] ss:$28 sps:$4 sm:$0xff]  }
 0x6f0   : > { %9412 = vmatmul.mubr.bf16.gmra.mrb[132].mxu0 %v19512_v45 }
 0x6f1   : > { %9915 = vmatpush1.bf16.msra.mxu0 %v14303_v48  ;;  %9421 = vmatprep.mubr.bf16.mxu0 %v19532_v22  ;;  %v14342_v48 = vld [vmem:[%s21249_s13 + $0x43c] ss:$28 sps:$4 sm:$0xff]  }
 0x6f2   : > { %9864 = vmatmul.mubr.bf16.gmra.mrb[148].mxu1 %v19512_v45  ;;  %9916 = vmatprep.subr.bf16.mxu0 %v14308_v39  ;;  %v14363_v39 = vld [vmem:[%s21249_s13 + $0x408] ss:$28 sps:$4 sm:$0xff]  }
 0x6f3   : > { %9873 = vmatprep.mubr.bf16.mxu1 %v19532_v22 }
 0x6f5   : > { %9917 = vmatpush1.bf16.msra.mxu0 %v14306_v56  ;;  %v14367_v56 = vld [vmem:[%s21249_s13 + $0x600] ss:$28 sps:$4 sm:$0xff]  }
 0x6f6   : > { %9918 = vmatprep.subr.bf16.mxu0 %v14313_v6  ;;  %v14340_v6 = vld [vmem:[%s21249_s13 + $0x438] ss:$28 sps:$4 sm:$0xff]  }
 0x6f8   : > { %9422 = vmatmul.mubr.bf16.gmra.mrb[136].mxu0 %v19538_v59 }
 0x6f9   : > { %9919 = vmatpush1.bf16.msra.mxu0 %v14311_v11  ;;  %9431 = vmatprep.mubr.bf16.mxu0 %v19547_v10  ;;  %v21966_v11 = vld [vmem:[#allocation20_spill] sm:$0xff] }
 0x6fa   : > { %9874 = vmatmul.mubr.bf16.gmra.mrb[152].mxu1 %v19538_v59  ;;  %9920 = vmatprep.subr.bf16.mxu0 %v14318_v40  ;;  %v14345_v40 = vld [vmem:[%s21249_s13 + $0x474] ss:$28 sps:$4 sm:$0xff]  }
 0x6fb   : > { %9883 = vmatprep.mubr.bf16.mxu1 %v19547_v10 }
 0x6fd   : > { %9921 = vmatpush1.bf16.msra.mxu0 %v14316_v38  ;;  %v21967_v38 = vld [vmem:[#allocation37_spill] sm:$0xff] }
 0x6fe   : > { %9922 = vmatprep.subr.bf16.mxu0 %v14323_v35  ;;  %v14368_v35 = vld [vmem:[%s21249_s13 + $0x440] ss:$28 sps:$4 sm:$0xff]  }
 0x700   : > { %9432 = vmatmul.mubr.bf16.gmra.mrb[140].mxu0 %v19552_v13 }
 0x701   : > { %9923 = vmatpush1.bf16.msra.mxu0 %v14321_v32  ;;  %9926 = vmatprep.mubr.bf16.mxu0 %v18732_v2  ;;  %v14372_v32 = vld [vmem:[%s21249_s13 + $0x638] ss:$28 sps:$4 sm:$0xff]  }
 0x702   : > { %9884 = vmatmul.mubr.bf16.gmra.mrb[156].mxu1 %v19552_v13  ;;  %9924 = vmatprep.subr.bf16.mxu0 %v14328_v8  ;;  %v14343_v8 = vld [vmem:[%s21249_s13 + $0x470] ss:$28 sps:$4 sm:$0xff]  }
 0x703   : > { %10386 = vmatprep.mubr.bf16.mxu1 %v18744_v36 }
 0x705   : > { %9925 = vmatpush1.bf16.msra.mxu0 %v14326_v61  ;;  %v14348_v61 = vld [vmem:[%s21249_s13 + $0x4ac] ss:$28 sps:$4 sm:$0xff]  }
 0x706   : > { %10007 = vmatprep.subr.bf16.mxu0 %v14333_v24  ;;  %v14373_v24 = vld [vmem:[%s21249_s13 + $0x478] ss:$28 sps:$4 sm:$0xff]  }
 0x708   : > { %9927 = vmatmul.mubr.bf16.vlgmr.msra.gmra.mrb[144].mxu0 %v18737_v33 }
 0x709   : > { %10008 = vmatpush1.bf16.msra.mxu0 %v14331_v4  ;;  %9936 = vmatprep.mubr.bf16.mxu0 %v18744_v36  ;;  %v14362_v36 = vld [vmem:[%s21249_s13 + $0x5c8] ss:$28 sps:$4 sm:$0xff]   ;;  %v14377_v4 = vld [vmem:[%s21249_s13 + $0x670] ss:$28 sps:$4 sm:$0xff]  }
 0x70a   : > { %10387 = vmatmul.mubr.bf16.vlgmr.msra.gmra.mrb[160].mxu1 %v21964_v28  ;;  %10009 = vmatprep.subr.bf16.mxu0 %v14336_v0  ;;  %v14346_v0 = vld [vmem:[%s21249_s13 + $0x4a8] ss:$28 sps:$4 sm:$0xff]  }
 0x70b   : > { %10394 = vmatprep.mubr.bf16.mxu1 %v21965_v16  ;;  %13005 = vmatpush3.bf16.msra.mxu1 %v14350_v34  ;;  %v21968_v34 = vld [vmem:[#allocation18_spill] sm:$0xff] }
 0x70c   : > { %13006 = vmatprep.subr.bf16.mxu1 %v14357_v7  ;;  %v14353_v7 = vld [vmem:[%s21249_s13 + $0x4e4] ss:$28 sps:$4 sm:$0xff]  }
 0x70d   : > { %10010 = vmatpush1.bf16.msra.mxu0 %v14334_v31  ;;  %v21969_v31 = vld [vmem:[#allocation61_spill] sm:$0xff] }
 0x70e   : > { %10011 = vmatprep.subr.bf16.mxu0 %v14339_v17  ;;  %v14382_v17 = vld [vmem:[%s21249_s13 + $0x6a8] ss:$28 sps:$4 sm:$0xff]  }
 0x70f   : > { %13007 = vmatpush3.bf16.msra.mxu1 %v14358_v12  ;;  %v14356_v12 = vld [vmem:[%s21249_s13 + $0x51c] ss:$28 sps:$4 sm:$0xff]  }
 0x710   : > { %9937 = vmatmul.mubr.bf16.gmra.mrb[148].mxu0 %v21964_v28  ;;  %13008 = vmatprep.subr.bf16.mxu1 %v14362_v36  ;;  %v14378_v28 = vld [vmem:[%s21249_s13 + $0x4b0] ss:$28 sps:$4 sm:$0xff]   ;;  %v14383_v36 = vld [vmem:[%s21249_s13 + $0x4e8] ss:$28 sps:$4 sm:$0xff]  }
 0x711   : > { %10012 = vmatpush1.bf16.msra.mxu0 %v14337_v15  ;;  %9946 = vmatprep.mubr.bf16.mxu0 %v21965_v16  ;;  %v14351_v16 = vld [vmem:[%s21249_s13 + $0x4e0] ss:$28 sps:$4 sm:$0xff]  }
 0x712   : > { %10395 = vmatmul.mubr.bf16.gmra.mrb[164].mxu1 %v21966_v11  ;;  %10013 = vmatprep.subr.bf16.mxu0 %v14342_v48  ;;  %v14387_v15 = vld [vmem:[%s21249_s13 + $0x6e0] ss:$28 sps:$4 sm:$0xff]   ;;  %v14354_v48 = vld [vmem:[%s21249_s13 + $0x518] ss:$28 sps:$4 sm:$0xff]  }
 0x713   : > { %10402 = vmatprep.mubr.bf16.mxu1 %v21967_v38  ;;  %13009 = vmatpush3.bf16.msra.mxu1 %v14363_v39  ;;  %v21970_v39 = vld [vmem:[#allocation62_spill] sm:$0xff] }
 0x714   : > { %13010 = vmatprep.subr.bf16.mxu1 %v14367_v56  ;;  %v14361_v56 = vld [vmem:[%s21249_s13 + $0x554] ss:$28 sps:$4 sm:$0xff]  }
 0x715   : > { %10014 = vmatpush1.bf16.msra.mxu0 %v14340_v6  ;;  %v21971_v6 = vld [vmem:[#allocation59_spill] sm:$0xff] }
 0x716   : > { %10015 = vmatprep.subr.bf16.mxu0 %v14345_v40  ;;  %v14407_v40 = vld [vmem:[%s21249_s13 + $0x8d8] ss:$28 sps:$4 sm:$0xff]  }
 0x717   : > { %13011 = vmatpush3.bf16.msra.mxu1 %v14368_v35  ;;  %v14366_v35 = vld [vmem:[%s21249_s13 + $0x58c] ss:$28 sps:$4 sm:$0xff]  }
 0x718   : > { %9947 = vmatmul.mubr.bf16.gmra.mrb[152].mxu0 %v21966_v11  ;;  %13012 = vmatprep.subr.bf16.mxu1 %v14372_v32  ;;  %v14388_v11 = vld [vmem:[%s21249_s13 + $0x520] ss:$28 sps:$4 sm:$0xff]   ;;  %v14364_v32 = vld [vmem:[%s21249_s13 + $0x588] ss:$28 sps:$4 sm:$0xff]  }
 0x719   : > { %10016 = vmatpush1.bf16.msra.mxu0 %v14343_v8  ;;  %9956 = vmatprep.mubr.bf16.mxu0 %v21967_v38  ;;  %v14359_v38 = vld [vmem:[%s21249_s13 + $0x550] ss:$28 sps:$4 sm:$0xff]   ;;  %v21972_v8 = vld [vmem:[#allocation25_spill] sm:$0xff] }
 0x71a   : > { %10403 = vmatmul.mubr.bf16.gmra.mrb[168].mxu1 %v21968_v34  ;;  %10017 = vmatprep.subr.bf16.mxu0 %v14348_v61  ;;  %v14371_v61 = vld [vmem:[%s21249_s13 + $0x5c4] ss:$28 sps:$4 sm:$0xff]  }
 0x71b   : > { %10410 = vmatprep.mubr.bf16.mxu1 %v21969_v31  ;;  %13013 = vmatpush3.bf16.msra.mxu1 %v14373_v24  ;;  %v21973_v24 = vld [vmem:[#allocation40_spill] sm:$0xff] }
 0x71c   : > { %13014 = vmatprep.subr.bf16.mxu1 %v14377_v4  ;;  %v14369_v4 = vld [vmem:[%s21249_s13 + $0x5c0] ss:$28 sps:$4 sm:$0xff]  }
 0x71d   : > { %10018 = vmatpush1.bf16.msra.mxu0 %v14346_v0  ;;  %v14376_v0 = vld [vmem:[%s21249_s13 + $0x5fc] ss:$28 sps:$4 sm:$0xff]  }
 0x71e   : > { %10019 = vmatprep.subr.bf16.mxu0 %v14353_v7  ;;  %v21974_v7 = vld [vmem:[#allocation8_spill] sm:$0xff] }
 0x71f   : > { %13015 = vmatpush3.bf16.msra.mxu1 %v14378_v28  ;;  %v21975_v28 = vld [vmem:[#allocation46_spill] sm:$0xff] }
 0x720   : > { %9957 = vmatmul.mubr.bf16.gmra.mrb[156].mxu0 %v21968_v34  ;;  %13016 = vmatprep.subr.bf16.mxu1 %v14382_v17  ;;  %v14374_v34 = vld [vmem:[%s21249_s13 + $0x5f8] ss:$28 sps:$4 sm:$0xff]   ;;  %v14379_v17 = vld [vmem:[%s21249_s13 + $0x630] ss:$28 sps:$4 sm:$0xff]  }
 0x721   : > { %10020 = vmatpush1.bf16.msra.mxu0 %v14351_v16  ;;  %9966 = vmatprep.mubr.bf16.mxu0 %v21969_v31  ;;  %v14381_v31 = vld [vmem:[%s21249_s13 + $0x634] ss:$28 sps:$4 sm:$0xff]   ;;  %v14386_v16 = vld [vmem:[%s21249_s13 + $0x66c] ss:$28 sps:$4 sm:$0xff]  }
 0x722   : > { %10411 = vmatmul.mubr.bf16.gmra.mrb[172].mxu1 %v21970_v39  ;;  %10021 = vmatprep.subr.bf16.mxu0 %v14356_v12  ;;  %v14384_v12 = vld [vmem:[%s21249_s13 + $0x668] ss:$28 sps:$4 sm:$0xff]  }
 0x723   : > { %10418 = vmatprep.mubr.bf16.mxu1 %v21971_v6  ;;  %13017 = vmatpush3.bf16.msra.mxu1 %v14383_v36  ;;  %v21976_v36 = vld [vmem:[#allocation44_spill] sm:$0xff] }
 0x724   : > { %13018 = vmatprep.subr.bf16.mxu1 %v14387_v15  ;;  %v14391_v15 = vld [vmem:[%s21249_s13 + $0x6a4] ss:$28 sps:$4 sm:$0xff]  }
 0x725   : > { %10022 = vmatpush1.bf16.msra.mxu0 %v14354_v48  ;;  %v21977_v48 = vld [vmem:[#allocation6_spill] sm:$0xff] }
 0x726   : > { %10023 = vmatprep.subr.bf16.mxu0 %v14361_v56  ;;  %v14394_v56 = vld [vmem:[%s21249_s13 + $0x6dc] ss:$28 sps:$4 sm:$0xff]  }
 0x727   : > { %13019 = vmatpush3.bf16.msra.mxu1 %v14388_v11  ;;  %v14415_v11 = vld [vmem:[%s21249_s13 + $0x910] ss:$28 sps:$4 sm:$0xff]  }
 0x728   : > { %9967 = vmatmul.mubr.bf16.gmra.mrb[160].mxu0 %v21970_v39  ;;  %13068 = vmatprep.subr.bf16.mxu1 %v14407_v40  ;;  %v14389_v39 = vld [vmem:[%s21249_s13 + $0x6a0] ss:$28 sps:$4 sm:$0xff]   ;;  %v14392_v40 = vld [vmem:[%s21249_s13 + $0x6d8] ss:$28 sps:$4 sm:$0xff]  }
 0x729   : > { %10024 = vmatpush1.bf16.msra.mxu0 %v14359_v38  ;;  %9976 = vmatprep.mubr.bf16.mxu0 %v21971_v6  ;;  %v14408_v6 = vld [vmem:[%s21249_s13 + $0x718] ss:$28 sps:$4 sm:$0xff]   ;;  %v21978_v38 = vld [vmem:[#allocation111_spill] sm:$0xff] }
 0x72a   : > { %10419 = vmatmul.mubr.bf16.gmra.mrb[176].mxu1 %v21972_v8  ;;  %10025 = vmatprep.subr.bf16.mxu0 %v14366_v35  ;;  %v14397_v35 = vld [vmem:[%s21249_s13 + $0x714] ss:$28 sps:$4 sm:$0xff]  }
 0x72b   : > { %10426 = vmatprep.mubr.bf16.mxu1 %v21973_v24 }
 0x72d   : > { %10026 = vmatpush1.bf16.msra.mxu0 %v14364_v32  ;;  %v21979_v32 = vld [vmem:[#allocation15_spill] sm:$0xff] }
 0x72e   : > { %10027 = vmatprep.subr.bf16.mxu0 %v14371_v61  ;;  %v14423_v61 = vld [vmem:[%s21249_s13 + $0x948] ss:$28 sps:$4 sm:$0xff]  }
 0x730   : > { %9977 = vmatmul.mubr.bf16.gmra.mrb[164].mxu0 %v21972_v8  ;;  %v14416_v8 = vld [vmem:[%s21249_s13 + $0x750] ss:$28 sps:$4 sm:$0xff]  }
 0x731   : > { %10028 = vmatpush1.bf16.msra.mxu0 %v14369_v4  ;;  %9986 = vmatprep.mubr.bf16.mxu0 %v21973_v24  ;;  %v14395_v24 = vld [vmem:[%s21249_s13 + $0x710] ss:$28 sps:$4 sm:$0xff]  }
 0x732   : > { %10427 = vmatmul.mubr.bf16.gmra.mrb[180].mxu1 %v21974_v7  ;;  %10029 = vmatprep.subr.bf16.mxu0 %v14376_v0  ;;  %v14400_v4 = vld [vmem:[%s21249_s13 + $0x74c] ss:$28 sps:$4 sm:$0xff]  }
 0x733   : > { %10434 = vmatprep.mubr.bf16.mxu1 %v21975_v28  ;;  %v14424_v0 = vld [vmem:[%s21249_s13 + $0x788] ss:$28 sps:$4 sm:$0xff]  }
 0x735   : > { %10030 = vmatpush1.bf16.msra.mxu0 %v14374_v34  ;;  %v14431_v34 = vld [vmem:[%s21249_s13 + $0x980] ss:$28 sps:$4 sm:$0xff]  }
 0x736   : > { %10031 = vmatprep.subr.bf16.mxu0 %v14381_v31  ;;  %v21980_v31 = vld [vmem:[#allocation13_spill] sm:$0xff] }
 0x738   : > { %9987 = vmatmul.mubr.bf16.gmra.mrb[168].mxu0 %v21974_v7  ;;  %v14398_v7 = vld [vmem:[%s21249_s13 + $0x748] ss:$28 sps:$4 sm:$0xff]  }
 0x739   : > { %10032 = vmatpush1.bf16.msra.mxu0 %v14379_v17  ;;  %9996 = vmatprep.mubr.bf16.mxu0 %v21975_v28  ;;  %v14403_v28 = vld [vmem:[%s21249_s13 + $0x784] ss:$28 sps:$4 sm:$0xff]  }
 0x73a   : > { %10435 = vmatmul.mubr.bf16.gmra.mrb[184].mxu1 %v21976_v36  ;;  %10033 = vmatprep.subr.bf16.mxu0 %v14386_v16  ;;  %v21981_v17 = vld [vmem:[#allocation10_spill] sm:$0xff] }
 0x73b   : > { %10475 = vmatprep.mubr.bf16.mxu1 %v21977_v48  ;;  %v14432_v16 = vld [vmem:[%s21249_s13 + $0x7c0] ss:$28 sps:$4 sm:$0xff]  }
 0x73d   : > { %10034 = vmatpush1.bf16.msra.mxu0 %v14384_v12  ;;  %v14436_v12 = vld [vmem:[%s21249_s13 + $0x9b8] ss:$28 sps:$4 sm:$0xff]  }
 0x73e   : > { %10035 = vmatprep.subr.bf16.mxu0 %v14391_v15  ;;  %v14406_v15 = vld [vmem:[%s21249_s13 + $0x7bc] ss:$28 sps:$4 sm:$0xff]  }
 0x740   : > { %9997 = vmatmul.mubr.bf16.gmra.mrb[172].mxu0 %v21976_v36  ;;  %v14401_v36 = vld [vmem:[%s21249_s13 + $0x780] ss:$28 sps:$4 sm:$0xff]  }
 0x741   : > { %10036 = vmatpush1.bf16.msra.mxu0 %v14389_v39  ;;  %10039 = vmatprep.mubr.bf16.mxu0 %v21977_v48  ;;  %v14437_v48 = vld [vmem:[%s21249_s13 + $0x7f8] ss:$28 sps:$4 sm:$0xff]   ;;  %v14441_v39 = vld [vmem:[%s21249_s13 + $0x9f0] ss:$28 sps:$4 sm:$0xff]  }
 0x742   : > { %10476 = vmatmul.mubr.bf16.vlgmr.msra.gmra.mrb[188].mxu1 %v21978_v38  ;;  %10037 = vmatprep.subr.bf16.mxu0 %v14394_v56  ;;  %v14404_v56 = vld [vmem:[%s21249_s13 + $0x7b8] ss:$28 sps:$4 sm:$0xff]  }
 0x743   : > { %10483 = vmatprep.mubr.bf16.mxu1 %v21979_v32  ;;  %13069 = vmatpush3.bf16.msra.mxu1 %v14408_v6  ;;  %v21982_v6 = vld [vmem:[#allocation14_spill] sm:$0xff] }
 0x744   : > { %13070 = vmatprep.subr.bf16.mxu1 %v14415_v11  ;;  %v14411_v11 = vld [vmem:[%s21249_s13 + $0x7f4] ss:$28 sps:$4 sm:$0xff]  }
 0x745   : > { %10038 = vmatpush1.bf16.msra.mxu0 %v14392_v40  ;;  %v21983_v40 = vld [vmem:[#allocation7_spill] sm:$0xff] }
 0x746   : > { %10120 = vmatprep.subr.bf16.mxu0 %v14397_v35  ;;  %v14446_v35 = vld [vmem:[%s21249_s13 + $0xa28] ss:$28 sps:$4 sm:$0xff]  }
 0x747   : > { %13071 = vmatpush3.bf16.msra.mxu1 %v14416_v8  ;;  %v14414_v8 = vld [vmem:[%s21249_s13 + $0x82c] ss:$28 sps:$4 sm:$0xff]  }
 0x748   : > { %10040 = vmatmul.mubr.bf16.vlgmr.msra.gmra.mrb[144].mxu0 %v21978_v38  ;;  %13072 = vmatprep.subr.bf16.mxu1 %v14423_v61  ;;  %v14442_v38 = vld [vmem:[%s21249_s13 + $0x830] ss:$28 sps:$4 sm:$0xff]   ;;  %v14447_v61 = vld [vmem:[%s21249_s13 + $0x868] ss:$28 sps:$4 sm:$0xff]  }
 0x749   : > { %10121 = vmatpush1.bf16.msra.mxu0 %v14395_v24  ;;  %10049 = vmatprep.mubr.bf16.mxu0 %v21979_v32  ;;  %v14409_v32 = vld [vmem:[%s21249_s13 + $0x7f0] ss:$28 sps:$4 sm:$0xff]   ;;  %v14451_v24 = vld [vmem:[%s21249_s13 + $0xa60] ss:$28 sps:$4 sm:$0xff]  }
 0x74a   : > { %10484 = vmatmul.mubr.bf16.gmra.mrb[192].mxu1 %v21980_v31  ;;  %10122 = vmatprep.subr.bf16.mxu0 %v14400_v4  ;;  %v14412_v4 = vld [vmem:[%s21249_s13 + $0x828] ss:$28 sps:$4 sm:$0xff]  }
 0x74b   : > { %10491 = vmatprep.mubr.bf16.mxu1 %v21981_v17  ;;  %13073 = vmatpush3.bf16.msra.mxu1 %v14424_v0  ;;  %v21984_v0 = vld [vmem:[#allocation17_spill] sm:$0xff] }
 0x74c   : > { %13074 = vmatprep.subr.bf16.mxu1 %v14431_v34  ;;  %v14419_v34 = vld [vmem:[%s21249_s13 + $0x864] ss:$28 sps:$4 sm:$0xff]  }
 0x74d   : > { %10123 = vmatpush1.bf16.msra.mxu0 %v14398_v7  ;;  %v21985_v7 = vld [vmem:[#allocation16_spill] sm:$0xff] }
 0x74e   : > { %10124 = vmatprep.subr.bf16.mxu0 %v14403_v28  ;;  %v14471_v28 = vld [vmem:[%s21249_s13 + $0xc58] ss:$28 sps:$4 sm:$0xff]  }
 0x74f   : > { %13075 = vmatpush3.bf16.msra.mxu1 %v14432_v16  ;;  %v14422_v16 = vld [vmem:[%s21249_s13 + $0x89c] ss:$28 sps:$4 sm:$0xff]  }
 0x750   : > { %10050 = vmatmul.mubr.bf16.gmra.mrb[148].mxu0 %v21980_v31  ;;  %13076 = vmatprep.subr.bf16.mxu1 %v14436_v12  ;;  %v14452_v31 = vld [vmem:[%s21249_s13 + $0x8a0] ss:$28 sps:$4 sm:$0xff]   ;;  %v14420_v12 = vld [vmem:[%s21249_s13 + $0x898] ss:$28 sps:$4 sm:$0xff]  }
 0x751   : > { %10125 = vmatpush1.bf16.msra.mxu0 %v14401_v36  ;;  %10059 = vmatprep.mubr.bf16.mxu0 %v21981_v17  ;;  %v14417_v17 = vld [vmem:[%s21249_s13 + $0x860] ss:$28 sps:$4 sm:$0xff]   ;;  %v14427_v36 = vld [vmem:[%s21249_s13 + $0x8d4] ss:$28 sps:$4 sm:$0xff]  }
 0x752   : > { %10492 = vmatmul.mubr.bf16.gmra.mrb[196].mxu1 %v21982_v6  ;;  %10126 = vmatprep.subr.bf16.mxu0 %v14406_v15  ;;  %v14425_v15 = vld [vmem:[%s21249_s13 + $0x8d0] ss:$28 sps:$4 sm:$0xff]  }
 0x753   : > { %10499 = vmatprep.mubr.bf16.mxu1 %v21983_v40  ;;  %13077 = vmatpush3.bf16.msra.mxu1 %v14437_v48  ;;  %v14430_v48 = vld [vmem:[%s21249_s13 + $0x90c] ss:$28 sps:$4 sm:$0xff]  }
 0x754   : > { %13078 = vmatprep.subr.bf16.mxu1 %v14441_v39  ;;  %v14428_v39 = vld [vmem:[%s21249_s13 + $0x908] ss:$28 sps:$4 sm:$0xff]  }
 0x755   : > { %10127 = vmatpush1.bf16.msra.mxu0 %v14404_v56  ;;  %v14435_v56 = vld [vmem:[%s21249_s13 + $0x944] ss:$28 sps:$4 sm:$0xff]  }
 0x756   : > { %10128 = vmatprep.subr.bf16.mxu0 %v14411_v11  ;;  %v14445_v11 = vld [vmem:[%s21249_s13 + $0x9b4] ss:$28 sps:$4 sm:$0xff]  }
 0x757   : > { %13079 = vmatpush3.bf16.msra.mxu1 %v14442_v38  ;;  %v14455_v38 = vld [vmem:[%s21249_s13 + $0xa24] ss:$28 sps:$4 sm:$0xff]  }
 0x758   : > { %10060 = vmatmul.mubr.bf16.gmra.mrb[152].mxu0 %v21982_v6  ;;  %13080 = vmatprep.subr.bf16.mxu1 %v14446_v35  ;;  %v14438_v6 = vld [vmem:[%s21249_s13 + $0x978] ss:$28 sps:$4 sm:$0xff]  }
 0x759   : > { %10129 = vmatpush1.bf16.msra.mxu0 %v14409_v32  ;;  %10069 = vmatprep.mubr.bf16.mxu0 %v21983_v40  ;;  %v14448_v40 = vld [vmem:[%s21249_s13 + $0x9e8] ss:$28 sps:$4 sm:$0xff]   ;;  %v14472_v35 = vld [vmem:[%s21249_s13 + $0xa98] ss:$28 sps:$4 sm:$0xff]   ;;  %v14479_v32 = vld [vmem:[%s21249_s13 + $0xc90] ss:$28 sps:$4 sm:$0xff]  }
 0x75a   : > { %10500 = vmatmul.mubr.bf16.gmra.mrb[200].mxu1 %v21984_v0  ;;  %10130 = vmatprep.subr.bf16.mxu0 %v14414_v8  ;;  %v14456_v8 = vld [vmem:[%s21249_s13 + $0xa58] ss:$28 sps:$4 sm:$0xff]  }
 0x75b   : > { %10507 = vmatprep.mubr.bf16.mxu1 %v21985_v7  ;;  %13081 = vmatpush3.bf16.msra.mxu1 %v14447_v61  ;;  %v14461_v61 = vld [vmem:[%s21249_s13 + $0xa94] ss:$28 sps:$4 sm:$0xff]  }
 0x75c   : > { %13082 = vmatprep.subr.bf16.mxu1 %v14451_v24  ;;  %v14459_v24 = vld [vmem:[%s21249_s13 + $0xa90] ss:$28 sps:$4 sm:$0xff]  }
 0x75d   : > { %10131 = vmatpush1.bf16.msra.mxu0 %v14412_v4  ;;  %v14464_v4 = vld [vmem:[%s21249_s13 + $0xacc] ss:$28 sps:$4 sm:$0xff]  }
 0x75e   : > { %10132 = vmatprep.subr.bf16.mxu0 %v14419_v34  ;;  %v14495_v34 = vld [vmem:[%s21249_s13 + $0xd00] ss:$28 sps:$4 sm:$0xff]  }
 0x75f   : > { %13083 = vmatpush3.bf16.msra.mxu1 %v14452_v31  ;;  %v14467_v31 = vld [vmem:[%s21249_s13 + $0xb04] ss:$28 sps:$4 sm:$0xff]  }
 0x760   : > { %10070 = vmatmul.mubr.bf16.gmra.mrb[156].mxu0 %v21984_v0  ;;  %13132 = vmatprep.subr.bf16.mxu1 %v14471_v28  ;;  %v14488_v0 = vld [vmem:[%s21249_s13 + $0xb08] ss:$28 sps:$4 sm:$0xff]   ;;  %v14465_v28 = vld [vmem:[%s21249_s13 + $0xb00] ss:$28 sps:$4 sm:$0xff]  }
 0x761   : > { %10133 = vmatpush1.bf16.msra.mxu0 %v14417_v17  ;;  %10079 = vmatprep.mubr.bf16.mxu0 %v21985_v7  ;;  %v14462_v7 = vld [vmem:[%s21249_s13 + $0xac8] ss:$28 sps:$4 sm:$0xff]   ;;  %v14470_v17 = vld [vmem:[%s21249_s13 + $0xb3c] ss:$28 sps:$4 sm:$0xff]  }
 0x762   : > { %10508 = vmatmul.mubr.bf16.gmra.mrb[204].mxu1 %v19032_v46  ;;  %10134 = vmatprep.subr.bf16.mxu0 %v14422_v16  ;;  %v14501_v16 = vld [vmem:[%s21249_s13 + $0xb78] ss:$28 sps:$4 sm:$0xff]  }
 0x763   : > { %10515 = vmatprep.mubr.bf16.mxu1 %v19043_v19 }
 0x765   : > { %10135 = vmatpush1.bf16.msra.mxu0 %v14420_v12  ;;  %v14505_v12 = vld [vmem:[%s21249_s13 + $0xd70] ss:$28 sps:$4 sm:$0xff]  }
 0x766   : > { %10136 = vmatprep.subr.bf16.mxu0 %v14427_v36  ;;  %v14468_v36 = vld [vmem:[%s21249_s13 + $0xb38] ss:$28 sps:$4 sm:$0xff]  }
 0x768   : > { %10080 = vmatmul.mubr.bf16.gmra.mrb[160].mxu0 %v19032_v46  ;;  %v14433_v46 = vld [vmem:[%s21249_s13 + $0x940] ss:$28 sps:$4 sm:$0xff]  }
 0x769   : > { %10137 = vmatpush1.bf16.msra.mxu0 %v14425_v15  ;;  %10089 = vmatprep.mubr.bf16.mxu0 %v19043_v19  ;;  %v14440_v19 = vld [vmem:[%s21249_s13 + $0x97c] ss:$28 sps:$4 sm:$0xff]   ;;  %v14475_v15 = vld [vmem:[%s21249_s13 + $0xb74] ss:$28 sps:$4 sm:$0xff]  }
 0x76a   : > { %10516 = vmatmul.mubr.bf16.gmra.mrb[208].mxu1 %v19063_v47  ;;  %10138 = vmatprep.subr.bf16.mxu0 %v14430_v48  ;;  %v6649_v48 = vld [vmem:[%s21250_s14] sm:$0x7f] }
 0x76b   : > { %10523 = vmatprep.mubr.bf16.mxu1 %v19072_v41 }
 0x76d   : > { %10139 = vmatpush1.bf16.msra.mxu0 %v14428_v39  ;;  %v14473_v39 = vld [vmem:[%s21249_s13 + $0xb70] ss:$28 sps:$4 sm:$0xff]  }
 0x76e   : > { %10140 = vmatprep.subr.bf16.mxu0 %v14435_v56  ;;  %v14478_v56 = vld [vmem:[%s21249_s13 + $0xbac] ss:$28 sps:$4 sm:$0xff]  }
 0x770   : > { %10090 = vmatmul.mubr.bf16.gmra.mrb[164].mxu0 %v19063_v47  ;;  %v14443_v47 = vld [vmem:[%s21249_s13 + $0x9b0] ss:$28 sps:$4 sm:$0xff]  }
 0x771   : > { %10141 = vmatpush1.bf16.msra.mxu0 %v14433_v46  ;;  %10099 = vmatprep.mubr.bf16.mxu0 %v19072_v41  ;;  %v14450_v41 = vld [vmem:[%s21249_s13 + $0x9ec] ss:$28 sps:$4 sm:$0xff]  }
 0x772   : > { %10524 = vmatmul.mubr.bf16.gmra.mrb[212].mxu1 %v19095_v29  ;;  %10142 = vmatprep.subr.bf16.mxu0 %v14440_v19  ;;  %v14511_v46 = vld [vmem:[%s21249_s13 + $0xbe8] ss:$28 sps:$4 sm:$0xff]  }
 0x773   : > { %10531 = vmatprep.mubr.bf16.mxu1 %v19107_v58  ;;  %v21986_v19 = vld [vmem:[#allocation3_spill] sm:$0xff] }
 0x775   : > { %10143 = vmatpush1.bf16.msra.mxu0 %v14438_v6  ;;  %v20475_v6 = vrot.slane %v6649_v48, %v21986_v19 }
 0x776   : > { %10144 = vmatprep.subr.bf16.mxu0 %v14445_v11  ;;  %v14515_v11 = vld [vmem:[%s21249_s13 + $0xde0] ss:$28 sps:$4 sm:$0xff]  }
 0x778   : > { %10100 = vmatmul.mubr.bf16.gmra.mrb[168].mxu0 %v19095_v29  ;;  %v14453_v29 = vld [vmem:[%s21249_s13 + $0xa20] ss:$28 sps:$4 sm:$0xff]  }
 0x779   : > { %10145 = vmatpush1.bf16.msra.mxu0 %v14443_v47  ;;  %10109 = vmatprep.mubr.bf16.mxu0 %v19107_v58  ;;  %v14458_v58 = vld [vmem:[%s21249_s13 + $0xa5c] ss:$28 sps:$4 sm:$0xff]   ;;  %v14476_v47 = vld [vmem:[%s21249_s13 + $0xba8] ss:$28 sps:$4 sm:$0xff]  }
 0x77a   : > { %10532 = vmatmul.mubr.bf16.gmra.mrb[216].mxu1 %v19114_v3  ;;  %10146 = vmatprep.subr.bf16.mxu0 %v14450_v41  ;;  %v21987_v41 = vld [vmem:[#allocation5_spill] sm:$0xff] }
 0x77b   : > { %10572 = vmatprep.mubr.bf16.mxu1 %v19134_v30 }
 0x77d   : > { %10147 = vmatpush1.bf16.msra.mxu0 %v14448_v40  ;;  %v20485_v40 = vrot.slane %v6649_v48, %v21987_v41 }
 0x77e   : > { %10148 = vmatprep.subr.bf16.mxu0 %v14455_v38  ;;  %v21988_v38 = vld [vmem:[#allocation49_spill] sm:$0xff] }
 0x780   : > { %10110 = vmatmul.mubr.bf16.gmra.mrb[172].mxu0 %v19114_v3  ;;  %v14480_v3 = vld [vmem:[%s21249_s13 + $0xad0] ss:$28 sps:$4 sm:$0xff]  }
 0x781   : > { %10149 = vmatpush1.bf16.msra.mxu0 %v14453_v29  ;;  %10152 = vmatprep.mubr.bf16.mxu0 %v19134_v30  ;;  %v14487_v30 = vld [vmem:[%s21249_s13 + $0xcc8] ss:$28 sps:$4 sm:$0xff]  }
 0x782   : > { %10573 = vmatmul.mubr.bf16.vlgmr.msra.gmra.mrb[220].mxu1 %v19144_v18  ;;  %10150 = vmatprep.subr.bf16.mxu0 %v14458_v58  ;;  %v14483_v29 = vld [vmem:[%s21249_s13 + $0xbe4] ss:$28 sps:$4 sm:$0xff]   ;;  %v21989_v58 = vld [vmem:[#allocation53_spill] sm:$0xff] }
 0x783   : > { %10580 = vmatprep.mubr.bf16.mxu1 %v19170_v63  ;;  %13133 = vmatpush3.bf16.msra.mxu1 %v14472_v35  ;;  %v20495_v35 = vrot.slane %v6649_v48, %v21989_v58 }
 0x784   : > { %13134 = vmatprep.subr.bf16.mxu1 %v14479_v32  ;;  %v14516_v32 = vld [vmem:[%s21249_s13 + $0xc20] ss:$28 sps:$4 sm:$0xff]  }
 0x785   : > { %10151 = vmatpush1.bf16.msra.mxu0 %v14456_v8 }
 0x786   : > { %10233 = vmatprep.subr.bf16.mxu0 %v14461_v61 }
 0x787   : > { %13135 = vmatpush3.bf16.msra.mxu1 %v14480_v3 }
 0x788   : > { %10153 = vmatmul.mubr.bf16.vlgmr.msra.gmra.mrb[144].mxu0 %v19144_v18  ;;  %13136 = vmatprep.subr.bf16.mxu1 %v14487_v30  ;;  %v14496_v18 = vld [vmem:[%s21249_s13 + $0xb40] ss:$28 sps:$4 sm:$0xff]  }
 0x789   : > { %10234 = vmatpush1.bf16.msra.mxu0 %v14459_v24  ;;  %10162 = vmatprep.mubr.bf16.mxu0 %v19170_v63  ;;  %v14500_v63 = vld [vmem:[%s21249_s13 + $0xd38] ss:$28 sps:$4 sm:$0xff]  }
 0x78a   : > { %10581 = vmatmul.mubr.bf16.gmra.mrb[224].mxu1 %v19178_v49  ;;  %10235 = vmatprep.subr.bf16.mxu0 %v14464_v4  ;;  %v14481_v4 = vld [vmem:[%s21249_s13 + $0xbe0] ss:$28 sps:$4 sm:$0xff]  }
 0x78b   : > { %10588 = vmatprep.mubr.bf16.mxu1 %v19190_v23  ;;  %13137 = vmatpush3.bf16.msra.mxu1 %v14488_v0 }
 0x78c   : > { %13138 = vmatprep.subr.bf16.mxu1 %v14495_v34 }
 0x78d   : > { %10236 = vmatpush1.bf16.msra.mxu0 %v14462_v7 }
 0x78e   : > { %10237 = vmatprep.subr.bf16.mxu0 %v14467_v31 }
 0x78f   : > { %13139 = vmatpush3.bf16.msra.mxu1 %v14496_v18 }
 0x790   : > { %10163 = vmatmul.mubr.bf16.gmra.mrb[148].mxu0 %v19178_v49  ;;  %13140 = vmatprep.subr.bf16.mxu1 %v14500_v63  ;;  %v14506_v49 = vld [vmem:[%s21249_s13 + $0xbb0] ss:$28 sps:$4 sm:$0xff]   ;;  %v14486_v63 = vld [vmem:[%s21249_s13 + $0xc1c] ss:$28 sps:$4 sm:$0xff]  }
 0x791   : > { %10238 = vmatpush1.bf16.msra.mxu0 %v14465_v28  ;;  %10172 = vmatprep.mubr.bf16.mxu0 %v19190_v23  ;;  %v14510_v23 = vld [vmem:[%s21249_s13 + $0xda8] ss:$28 sps:$4 sm:$0xff]  }
 0x792   : > { %10589 = vmatmul.mubr.bf16.gmra.mrb[228].mxu1 %v19207_v27  ;;  %10239 = vmatprep.subr.bf16.mxu0 %v14470_v17 }
 0x793   : > { %10596 = vmatprep.mubr.bf16.mxu1 %v19216_v20  ;;  %13141 = vmatpush3.bf16.msra.mxu1 %v14501_v16 }
 0x794   : > { %13142 = vmatprep.subr.bf16.mxu1 %v14505_v12 }
 0x795   : > { %10240 = vmatpush1.bf16.msra.mxu0 %v14468_v36 }
 0x796   : > { %10241 = vmatprep.subr.bf16.mxu0 %v14475_v15 }
 0x797   : > { %13143 = vmatpush3.bf16.msra.mxu1 %v14506_v49 }
 0x798   : > { %10173 = vmatmul.mubr.bf16.gmra.mrb[152].mxu0 %v19207_v27  ;;  %13144 = vmatprep.subr.bf16.mxu1 %v14510_v23  ;;  %v20488_v27 = vrot.slane %v6649_v48, %v21988_v38 }
 0x799   : > { %10242 = vmatpush1.bf16.msra.mxu0 %v14473_v39  ;;  %10182 = vmatprep.mubr.bf16.mxu0 %v19216_v20 }
 0x79a   : > { %10597 = vmatmul.mubr.bf16.gmra.mrb[232].mxu1 %v19234_v14  ;;  %10243 = vmatprep.subr.bf16.mxu0 %v14478_v56  ;;  %v14484_v56 = vld [vmem:[%s21249_s13 + $0xc18] ss:$28 sps:$4 sm:$0xff]  }
 0x79b   : > { %10604 = vmatprep.mubr.bf16.mxu1 %v19246_v42  ;;  %v9363_v20 = vpop.f32.mrb[112].mxu0  ;;  %13145 = vmatpush3.bf16.msra.mxu1 %v14511_v46 }
 0x79c   : > { %v13236_v8 = vadd.f32 %v9363_v20, %v20475_v6  ;;  %v9365_v61 = vpop.f32.mrb[113].mxu0  ;;  %13146 = vmatprep.subr.bf16.mxu1 %v14515_v11  ;;  %v14489_v20 = vld [vmem:[%s21249_s13 + $0xc50] ss:$28 sps:$4 sm:$0xff]  }
 0x79d   : > { %v9815_v3 = vpop.f32.mrb[128].mxu1  ;;  %v13237_v30 = vadd.f32 %v9365_v61, %v20485_v40  ;;  %10244 = vmatpush1.bf16.msra.mxu0 %v14476_v47  ;;  %v9367_v24 = vpop.f32.mrb[114].mxu0 }
 0x79e   : > { %v12686_v0 = vmul.f32 -1.442695, %v13236_v8  ;;  %v13268_v34 = vadd.f32 %v9815_v3, %v20488_v27  ;;  %v9817_v7 = vpop.f32.mrb[129].mxu1  ;;  %v13238_v31 = vadd.f32 %v9367_v24, %v20475_v6  ;;  %v9369_v18 = vpop.f32.mrb[115].mxu0  ;;  %10245 = vmatprep.subr.bf16.mxu0 %v14483_v29  ;;  %v14494_v24 = vld [vmem:[%s21249_s13 + $0xc8c] ss:$28 sps:$4 sm:$0xff]  }
 0x79f   : > { %v12687_v28 = vmul.f32 -1.442695, %v13237_v30  ;;  %v13269_v17 = vadd.f32 %v9817_v7, %v20495_v35  ;;  %v9819_v16 = vpop.f32.mrb[130].mxu1  ;;  %v13239_v12 = vadd.f32 %v9369_v18, %v20485_v40  ;;  %13147 = vmatpush3.bf16.msra.mxu1 %v14516_v32 }
 0x7a0   : > { %14553 = vpow2.f32 %v12686_v0  ;;  %v12688_v36 = vmul.f32 -1.442695, %v13268_v34  ;;  %v12693_v15 = vmul.f32 -1.442695, %v13238_v31  ;;  %v13270_v49 = vadd.f32 %v9819_v16, %v20488_v27  ;;  %v9821_v23 = vpop.f32.mrb[131].mxu1  ;;  %10183 = vmatmul.mubr.bf16.gmra.mrb[156].mxu0 %v19234_v14 }
 0x7a1   : > { %14555 = vpow2.f32 %v12687_v28  ;;  %v12689_v48 = vmul.f32 -1.442695, %v13269_v17  ;;  %v13271_v39 = vadd.f32 %v9821_v23, %v20495_v35  ;;  %10246 = vmatpush1.bf16.msra.mxu0 %v14481_v4  ;;  %10192 = vmatprep.mubr.bf16.mxu0 %v19246_v42  ;;  %v12694_v19 = vmul.f32 -1.442695, %v13239_v12  ;;  %v14491_v14 = vld [vmem:[%s21249_s13 + $0xc54] ss:$28 sps:$4 sm:$0xff]  }
 0x7a2   : > { %14557 = vpow2.f32 %v12688_v36  ;;  %v12695_v46 = vmul.f32 -1.442695, %v13270_v49  ;;  %10605 = vmatmul.mubr.bf16.gmra.mrb[236].mxu1 %v19255_v9  ;;  %10247 = vmatprep.subr.bf16.mxu0 %v14486_v63  ;;  %v14492_v28 = vld [vmem:[%s21249_s13 + $0xc88] ss:$28 sps:$4 sm:$0xff]  }
 0x7a3   : > { %14559 = vpow2.f32 %v12689_v48  ;;  %v12696_v11 = vmul.f32 -1.442695, %v13271_v39  ;;  %10612 = vmatprep.mubr.bf16.mxu1 %v19278_v21  ;;  %v9373_v47 = vpop.f32.mrb[116].mxu0  ;;  %v14499_v16 = vld [vmem:[%s21249_s13 + $0xcc4] ss:$28 sps:$4 sm:$0xff]  }
 0x7a4   : > { %14561 = vpow2.f32 %v12693_v15  ;;  %v13240_v42 = vadd.f32 %v9373_v47, %v20475_v6  ;;  %v9375_v41 = vpop.f32.mrb[117].mxu0 }
 0x7a5   : > { %14563 = vpow2.f32 %v12695_v46  ;;  %v9825_v38 = vpop.f32.mrb[132].mxu1  ;;  %v13241_v29 = vadd.f32 %v9375_v41, %v20485_v40  ;;  %10248 = vmatpush1.bf16.msra.mxu0 %v14484_v56  ;;  %v9377_v58 = vpop.f32.mrb[118].mxu0  ;;  %v14497_v46 = vld [vmem:[%s21249_s13 + $0xcc0] ss:$28 sps:$4 sm:$0xff]  }
 0x7a6   : > { %14565 = vpow2.f32 %v12694_v19  ;;  %v12700_v32 = vmul.f32 -1.442695, %v13240_v42  ;;  %v13272_v8 = vadd.f32 %v9825_v38, %v20488_v27  ;;  %v9827_v61 = vpop.f32.mrb[133].mxu1  ;;  %v13242_v3 = vadd.f32 %v9377_v58, %v20475_v6  ;;  %v20532_v30 = vpop.f32.mrb[119].mxu0  ;;  %10249 = vmatprep.subr.bf16.mxu0 %v14491_v14  ;;  %v14504_v42 = vld [vmem:[%s21249_s13 + $0xcfc] ss:$28 sps:$4 sm:$0xff]  }
 0x7a7   : > { %14567 = vpow2.f32 %v12696_v11  ;;  %v12701_v4 = vmul.f32 -1.442695, %v13241_v29  ;;  %v13273_v0 = vadd.f32 %v9827_v61, %v20495_v35  ;;  %v9829_v34 = vpop.f32.mrb[134].mxu1 }
 0x7a8   : > { %14569 = vpow2.f32 %v12700_v32  ;;  %v12702_v7 = vmul.f32 -1.442695, %v13272_v8  ;;  %v12707_v31 = vmul.f32 -1.442695, %v13242_v3  ;;  %v20538_v18 = vpop.f32.mrb[135].mxu1  ;;  %10193 = vmatmul.mubr.bf16.gmra.mrb[160].mxu0 %v19255_v9 }
 0x7a9   : > { %14571 = vpow2.f32 %v12701_v4  ;;  %v12703_v63 = vmul.f32 -1.442695, %v13273_v0  ;;  %10250 = vmatpush1.bf16.msra.mxu0 %v14489_v20  ;;  %10202 = vmatprep.mubr.bf16.mxu0 %v19278_v21  ;;  %v14502_v3 = vld [vmem:[%s21249_s13 + $0xcf8] ss:$28 sps:$4 sm:$0xff]   ;;  %v13274_v0 = vadd.f32 %v9829_v34, %v20488_v27 }
 0x7aa   : > { %v14554_v17 = vpop.eup %14553  ;;  %14573 = vpow2.f32 %v12702_v7  ;;  %10613 = vmatmul.mubr.bf16.gmra.mrb[240].mxu1 %v19287_v55  ;;  %10251 = vmatprep.subr.bf16.mxu0 %v14494_v24 }
 0x7ab   : > { %v14556_v12 = vpop.eup %14555  ;;  %v11070_v9 = vadd.f32 1.0, %v14554_v17  ;;  %14575 = vpow2.f32 %v12703_v63  ;;  %10620 = vmatprep.mubr.bf16.mxu1 %v19304_v51  ;;  %v9383_v36 = vpop.f32.mrb[120].mxu0  ;;  %v13275_v17 = vadd.f32 %v20538_v18, %v20495_v35  ;;  %v14514_v18 = vld [vmem:[%s21249_s13 + $0xd6c] ss:$28 sps:$4 sm:$0xff]  }
 0x7ac   : > { %v14558_v21 = vpop.eup %14557  ;;  %v11071_v15 = vadd.f32 1.0, %v14556_v12  ;;  %14577 = vpow2.f32 %v12707_v31  ;;  %v20550_v49 = vpop.f32.mrb[121].mxu0  ;;  %v13243_v31 = vadd.f32 %v20532_v30, %v20485_v40  ;;  %v14507_v12 = vld [vmem:[%s21249_s13 + $0xd30] ss:$28 sps:$4 sm:$0xff]  }
 0x7ad   : > { %v14560_v23 = vpop.eup %14559  ;;  %14579 = vrcp.f32 %v11070_v9  ;;  %v11072_v48 = vadd.f32 1.0, %v14558_v21  ;;  %v9835_v39 = vpop.f32.mrb[136].mxu1  ;;  %10252 = vmatpush1.bf16.msra.mxu0 %v14492_v28  ;;  %v13244_v21 = vadd.f32 %v9383_v36, %v20475_v6 }
 0x7ae   : > { %v20552_v56 = vpop.f32.mrb[122].mxu0  ;;  %v14562_v19 = vpop.eup %14561  ;;  %14581 = vrcp.f32 %v11071_v15  ;;  %v11073_v14 = vadd.f32 1.0, %v14560_v23  ;;  %10253 = vmatprep.subr.bf16.mxu0 %v14499_v16 }
 0x7af   : > { %v20557_v11 = vpop.f32.mrb[137].mxu1  ;;  %v20559_v47 = vpop.f32.mrb[123].mxu0  ;;  %14583 = vrcp.f32 %v11072_v48  ;;  %v11077_v38 = vadd.f32 1.0, %v14562_v19  ;;  %v12709_v19 = vmul.f32 -1.442695, %v13274_v0 }
 0x7b0   : > { %v14564_v41 = vpop.eup %14563  ;;  %v20564_v29 = vpop.f32.mrb[138].mxu1  ;;  %14585 = vrcp.f32 %v11073_v14  ;;  %10203 = vmatmul.mubr.bf16.gmra.mrb[164].mxu0 %v19287_v55  ;;  %v14509_v55 = vld [vmem:[%s21249_s13 + $0xd34] ss:$28 sps:$4 sm:$0xff]   ;;  %v13276_v14 = vadd.f32 %v9835_v39, %v20488_v27  ;;  %v12710_v39 = vmul.f32 -1.442695, %v13275_v17 }
 0x7b1   : > { %v14566_v58 = vpop.eup %14565  ;;  %v11079_v20 = vadd.f32 1.0, %v14564_v41  ;;  %v20566_v32 = vpop.f32.mrb[139].mxu1  ;;  %14587 = vrcp.f32 %v11077_v38  ;;  %10254 = vmatpush1.bf16.msra.mxu0 %v14497_v46  ;;  %10212 = vmatprep.mubr.bf16.mxu0 %v19304_v51  ;;  %v12714_v0 = vmul.f32 -1.442695, %v13244_v21 }
 0x7b2   : > { %v14568_v8 = vpop.eup %14567  ;;  %v11078_v61 = vadd.f32 1.0, %v14566_v58  ;;  %10621 = vmatmul.mubr.bf16.gmra.mrb[244].mxu1 %v19318_v44  ;;  %10255 = vmatprep.subr.bf16.mxu0 %v14504_v42  ;;  %v12708_v58 = vmul.f32 -1.442695, %v13243_v31 }
 0x7b3   : > { %v14570_v24 = vpop.eup %14569  ;;  %14589 = vrcp.f32 %v11079_v20  ;;  %v11080_v4 = vadd.f32 1.0, %v14568_v8  ;;  %10628 = vmatprep.mubr.bf16.mxu1 %v19325_v5  ;;  %v20581_v63 = vpop.f32.mrb[124].mxu0  ;;  %v13245_v20 = vadd.f32 %v20550_v49, %v20485_v40 }
 0x7b4   : > { %v14572_v7 = vpop.eup %14571  ;;  %14591 = vrcp.f32 %v11078_v61  ;;  %v11084_v51 = vadd.f32 1.0, %v14570_v24  ;;  %v20586_v16 = vpop.f32.mrb[125].mxu0 }
 0x7b5   : > { %v14574_v28 = vpop.eup %14573  ;;  %14593 = vrcp.f32 %v11080_v4  ;;  %v11085_v34 = vadd.f32 1.0, %v14572_v7  ;;  %v20592_v15 = vpop.f32.mrb[140].mxu1  ;;  %10256 = vmatpush1.bf16.msra.mxu0 %v14502_v3  ;;  %v13277_v3 = vadd.f32 %v20557_v11, %v20495_v35  ;;  %v14512_v7 = vld [vmem:[%s21249_s13 + $0xd68] ss:$28 sps:$4 sm:$0xff]  }
 0x7b6   : > { %v14576_v9 = vpop.eup %14575  ;;  %14595 = vrcp.f32 %v11084_v51  ;;  %v11086_v30 = vadd.f32 1.0, %v14574_v28  ;;  %v20594_v23 = vpop.f32.mrb[126].mxu0  ;;  %10257 = vmatprep.subr.bf16.mxu0 %v14509_v55  ;;  %v13246_v55 = vadd.f32 %v20552_v56, %v20475_v6  ;;  %v12716_v51 = vmul.f32 -1.442695, %v13276_v14  ;;  %v14519_v56 = vld [vmem:[%s21249_s13 + $0xda4] ss:$28 sps:$4 sm:$0xff]  }
 0x7b7   : > { %v14578_v48 = vpop.eup %14577  ;;  %14597 = vrcp.f32 %v11085_v34  ;;  %v11087_v46 = vadd.f32 1.0, %v14576_v9  ;;  %v20600_v42 = vpop.f32.mrb[141].mxu1  ;;  %v12715_v28 = vmul.f32 -1.442695, %v13245_v20  ;;  %v13247_v34 = vadd.f32 %v20559_v47, %v20485_v40 }
 0x7b8   : > { %v20602_v41 = vpop.f32.mrb[127].mxu0  ;;  %v14580_v36 = vpop.eup %14579  ;;  %14599 = vrcp.f32 %v11086_v30  ;;  %v11091_v38 = vadd.f32 1.0, %v14578_v48  ;;  %10213 = vmatmul.mubr.bf16.gmra.mrb[168].mxu0 %v19318_v44  ;;  %v13278_v44 = vadd.f32 %v20564_v29, %v20488_v27  ;;  %v13279_v9 = vadd.f32 %v20566_v32, %v20495_v35 }
 0x7b9   : > { %v20606_v8 = vpop.f32.mrb[142].mxu1  ;;  %v14582_v61 = vpop.eup %14581  ;;  %14601 = vrcp.f32 %v11087_v46  ;;  %10258 = vmatpush1.bf16.msra.mxu0 %v14507_v12  ;;  %10222 = vmatprep.mubr.bf16.mxu0 %v19325_v5  ;;  %v12717_v12 = vmul.f32 -1.442695, %v13277_v3  ;;  %v13248_v48 = vadd.f32 %v20581_v63, %v20475_v6  ;;  %v14522_v63 = vld [vmem:[%s21249_s13 + $0xddc] ss:$28 sps:$4 sm:$0xff]  }
 0x7ba   : > { %v20617_v24 = vpop.f32.mrb[143].mxu1  ;;  %v14584_v4 = vpop.eup %14583  ;;  %v12864_v49 = vpack.c.bf16 %v14582_v61, %v14580_v36  ;;  %14603 = vrcp.f32 %v11091_v38  ;;  %10629 = vmatmul.mubr.bf16.gmra.mrb[248].mxu1 %v19342_v60  ;;  %10259 = vmatprep.subr.bf16.mxu0 %v14514_v18  ;;  %v12721_v18 = vmul.f32 -1.442695, %v13246_v55  ;;  %v12723_v36 = vmul.f32 -1.442695, %v13278_v44 }
 0x7bb   : > { %v14586_v11 = vpop.eup %14585  ;;  %14605 = vpow2.f32 %v12709_v19  ;;  %10669 = vmatprep.mubr.bf16.mxu1 %v19360_v37  ;;  %v20636_v17 = vpop.f32.mrb[128].mxu0  ;;  %v14517_v19 = vld [vmem:[%s21249_s13 + $0xda0] ss:$28 sps:$4 sm:$0xff]   ;;  %v13280_v38 = vadd.f32 %v20592_v15, %v20488_v27  ;;  %v12722_v3 = vmul.f32 -1.442695, %v13247_v34 }
 0x7bc   : > { %v14588_v31 = vpop.eup %14587  ;;  %11758 = vst [vmem:[%s20613_s26] sm:$0xff] %v12864_v49  ;;  %v12865_v5 = vpack.c.bf16 %v14586_v11, %v14584_v4  ;;  %14607 = vpow2.f32 %v12708_v58  ;;  %v20640_v30 = vpop.f32.mrb[129].mxu0  ;;  %v12728_v44 = vmul.f32 -1.442695, %v13248_v48 }
 0x7bd   : > { %v14590_v29 = vpop.eup %14589  ;;  %14609 = vpow2.f32 %v12710_v39  ;;  %v20645_v47 = vpop.f32.mrb[144].mxu1  ;;  %10260 = vmatpush1.bf16.msra.mxu0 %v14512_v7 }
 0x7be   : > { %v14592_v21 = vpop.eup %14591  ;;  %11759 = vst [vmem:[%s20613_s26 + $0x8] sm:$0xff] %v12865_v5  ;;  %14611 = vpow2.f32 %v12714_v0  ;;  %v9407_v46 = vpop.f32.mrb[130].mxu0  ;;  %10261 = vmatprep.subr.bf16.mxu0 %v14519_v56  ;;  %v12724_v0 = vmul.f32 -1.442695, %v13279_v9 }
 0x7bf   : > { %v14594_v14 = vpop.eup %14593  ;;  %v12868_v32 = vpack.c.bf16 %v14592_v21, %v14588_v31  ;;  %14613 = vpow2.f32 %v12716_v51  ;;  %v20652_v58 = vpop.f32.mrb[145].mxu1  ;;  %v20659_v15 = vadd.f32 %v9407_v46, %v20475_v6  ;;  %v14520_v31 = vld [vmem:[%s21249_s13 + $0xdd8] ss:$28 sps:$4 sm:$0xff]  }
 0x7c0   : > { %v9409_v20 = vpop.f32.mrb[131].mxu0  ;;  %v14596_v61 = vpop.eup %14595  ;;  %v12869_v39 = vpack.c.bf16 %v14594_v14, %v14590_v29  ;;  %14615 = vpow2.f32 %v12715_v28  ;;  %10223 = vmatmul.mubr.bf16.gmra.mrb[172].mxu0 %v19342_v60  ;;  %v12730_v60 = vmul.f32 -1.442695, %v13280_v38  ;;  %v13249_v38 = vadd.f32 %v20586_v16, %v20485_v40 }
 0x7c1   : > { %v9859_v4 = vpop.f32.mrb[146].mxu1  ;;  %v14598_v49 = vpop.eup %14597  ;;  %11763 = vst [vmem:[%s20613_s26 + $0x1c] sm:$0xff] %v12868_v32  ;;  %14617 = vpow2.f32 %v12717_v12  ;;  %v20667_v56 = vadd.f32 %v9409_v20, %v20485_v40  ;;  %10262 = vmatpush1.bf16.msra.mxu0 %v14517_v19  ;;  %10265 = vmatprep.mubr.bf16.mxu0 %v19360_v37 }
 0x7c2   : > { %v20662_v55 = vadd.f32 %v9859_v4, %v20488_v27  ;;  %v9861_v7 = vpop.f32.mrb[147].mxu1  ;;  %v14600_v11 = vpop.eup %14599  ;;  %11764 = vst [vmem:[%s20613_s26 + $0x24] sm:$0xff] %v12869_v39  ;;  %v12872_v51 = vpack.c.bf16 %v14598_v49, %v14596_v61  ;;  %14619 = vpow2.f32 %v12721_v18  ;;  %10670 = vmatmul.mubr.bf16.vlgmr.msra.gmra.mrb[252].mxu1 %v19367_v52  ;;  %10263 = vmatprep.subr.bf16.mxu0 %v14522_v63  ;;  %v15001_v39 = vld [vmem:[%s21249_s13 + $0x1d8] ss:$28 sps:$4 sm:$0xff]  }
 0x7c3   : > { %v14602_v5 = vpop.eup %14601  ;;  %14621 = vpow2.f32 %v12723_v36  ;;  %v20674_v28 = vadd.f32 %v9861_v7, %v20495_v35  ;;  %10677 = vmatprep.mubr.bf16.mxu1 %v19387_v50  ;;  %v9413_v37 = vpop.f32.mrb[132].mxu0 }
 0x7c4   : > { %v20677_v34 = vpop.eup %14603  ;;  %11767 = vst [vmem:[%s20613_s26 + $0x38] sm:$0xff] %v12872_v51  ;;  %v12873_v29 = vpack.c.bf16 %v14602_v5, %v14600_v11  ;;  %14623 = vpow2.f32 %v12722_v3  ;;  %v20682_v9 = vadd.f32 %v9413_v37, %v20475_v6  ;;  %v9415_v21 = vpop.f32.mrb[133].mxu0  ;;  %v13281_v5 = vadd.f32 %v20600_v42, %v20495_v35  ;;  %v15003_v42 = vld [vmem:[%s21249_s13 + $0x210] ss:$28 sps:$4 sm:$0xff]  }
 0x7c5   : > { %v14606_v12 = vpop.eup %14605  ;;  %14625 = vpow2.f32 %v12724_v0  ;;  %v9865_v46 = vpop.f32.mrb[148].mxu1  ;;  %v20686_v19 = vadd.f32 %v9415_v21, %v20485_v40  ;;  %10264 = vmatpush1.bf16.msra.mxu0 %v14520_v31 }
 0x7c6   : > { %v14608_v18 = vpop.eup %14607  ;;  %11768 = vst [vmem:[%s20613_s26 + $0x40] sm:$0xff] %v12873_v29  ;;  %v11093_v48 = vadd.f32 1.0, %v14606_v12  ;;  %14627 = vpow2.f32 %v12728_v44  ;;  %v9417_v14 = vpop.f32.mrb[134].mxu0  ;;  %v20691_v20 = vadd.f32 %v9865_v46, %v20488_v27  ;;  %12940 = vmatprep.subr.bf16.mxu0 %v15001_v39  ;;  %v15002_v29 = vld [vmem:[%s21249_s13 + $0x18] ss:$28 sps:$4 sm:$0xff]  }
 0x7c7   : > { %v14610_v32 = vpop.eup %14609  ;;  %v11092_v36 = vadd.f32 1.0, %v14608_v18  ;;  %14629 = vpow2.f32 %v12730_v60  ;;  %v9867_v63 = vpop.f32.mrb[149].mxu1  ;;  %v20700_v11 = vadd.f32 %v9417_v14, %v20475_v6 }
 0x7c8   : > { %v9419_v61 = vpop.f32.mrb[135].mxu0  ;;  %v14612_v3 = vpop.eup %14611  ;;  %14631 = vrcp.f32 %v11093_v48  ;;  %v11094_v4 = vadd.f32 1.0, %v14610_v32  ;;  %v20697_v49 = vadd.f32 %v9867_v63, %v20495_v35  ;;  %10266 = vmatmul.mubr.bf16.vlgmr.msra.gmra.mrb[144].mxu0 %v19367_v52  ;;  %v20712_v52 = vmul.f32 -1.442695, %v13249_v38 }
 0x7c9   : > { %v9869_v0 = vpop.f32.mrb[150].mxu1  ;;  %v14614_v7 = vpop.eup %14613  ;;  %14633 = vrcp.f32 %v11092_v36  ;;  %v11098_v16 = vadd.f32 1.0, %v14612_v3  ;;  %12941 = vmatpush3.bf16.msra.mxu0 %v15002_v29  ;;  %10275 = vmatprep.mubr.bf16.mxu0 %v19387_v50  ;;  %v20715_v21 = vadd.f32 %v9419_v61, %v20485_v40  ;;  %v13250_v50 = vadd.f32 %v20594_v23, %v20475_v6 }
 0x7ca   : > { %v9871_v51 = vpop.f32.mrb[151].mxu1  ;;  %v14616_v44 = vpop.eup %14615  ;;  %14635 = vrcp.f32 %v11094_v4  ;;  %v11100_v31 = vadd.f32 1.0, %v14614_v7  ;;  %v20706_v60 = vadd.f32 %v9869_v0, %v20488_v27  ;;  %10678 = vmatmul.mubr.bf16.gmra.mrb[0].mxu1 %v19399_v26  ;;  %12942 = vmatprep.subr.bf16.mxu0 %v15003_v42  ;;  %v13282_v38 = vadd.f32 %v20606_v8, %v20488_v27 }
 0x7cb   : > { %v14618_v37 = vpop.eup %14617  ;;  %14637 = vrcp.f32 %v11098_v16  ;;  %v11099_v12 = vadd.f32 1.0, %v14616_v44  ;;  %v20724_v46 = vadd.f32 %v9871_v51, %v20495_v35  ;;  %10685 = vmatprep.mubr.bf16.mxu1 %v19423_v57  ;;  %v9423_v14 = vpop.f32.mrb[136].mxu0  ;;  %v12731_v23 = vmul.f32 -1.442695, %v13281_v5  ;;  %v15004_v16 = vld [vmem:[%s21249_s13 + $0x50] ss:$28 sps:$4 sm:$0xff]  }
 0x7cc   : > { %v14620_v18 = vpop.eup %14619  ;;  %14639 = vrcp.f32 %v11100_v31  ;;  %v11101_v48 = vadd.f32 1.0, %v14618_v37  ;;  %v20730_v63 = vadd.f32 %v9423_v14, %v20475_v6  ;;  %v9425_v61 = vpop.f32.mrb[137].mxu0  ;;  %v13251_v44 = vadd.f32 %v20602_v41, %v20485_v40  ;;  %v15005_v37 = vld [vmem:[%s21249_s13 + $0x248] ss:$28 sps:$4 sm:$0xff]  }
 0x7cd   : > { %v14622_v32 = vpop.eup %14621  ;;  %14641 = vrcp.f32 %v11099_v12  ;;  %v11105_v36 = vadd.f32 1.0, %v14620_v18  ;;  %v9875_v4 = vpop.f32.mrb[152].mxu1  ;;  %v20733_v0 = vadd.f32 %v9425_v61, %v20485_v40  ;;  %12943 = vmatpush3.bf16.msra.mxu0 %v15004_v16  ;;  %v12735_v18 = vmul.f32 -1.442695, %v13250_v50 }
 0x7ce   : > { %v14624_v39 = vpop.eup %14623  ;;  %14643 = vrcp.f32 %v11101_v48  ;;  %v11107_v3 = vadd.f32 1.0, %v14622_v32  ;;  %v9427_v7 = vpop.f32.mrb[138].mxu0  ;;  %v20741_v31 = vadd.f32 %v9875_v4, %v20488_v27  ;;  %12944 = vmatprep.subr.bf16.mxu0 %v15005_v37  ;;  %v12737_v50 = vmul.f32 -1.442695, %v13282_v38 }
 0x7cf   : > { %v14626_v51 = vpop.eup %14625  ;;  %14645 = vrcp.f32 %v11105_v36  ;;  %v11106_v8 = vadd.f32 1.0, %v14624_v39  ;;  %v9877_v5 = vpop.f32.mrb[153].mxu1  ;;  %v13283_v36 = vadd.f32 %v20617_v24, %v20495_v35  ;;  %v20752_v61 = vadd.f32 %v9427_v7, %v20475_v6 }
 0x7d0   : > { %v9429_v29 = vpop.f32.mrb[139].mxu0  ;;  %v14628_v12 = vpop.eup %14627  ;;  %14647 = vrcp.f32 %v11107_v3  ;;  %v11108_v42 = vadd.f32 1.0, %v14626_v51  ;;  %v20747_v48 = vadd.f32 %v9877_v5, %v20495_v35  ;;  %10276 = vmatmul.mubr.bf16.gmra.mrb[148].mxu0 %v19399_v26  ;;  %v15006_v51 = vld [vmem:[%s21249_s13 + $0x88] ss:$28 sps:$4 sm:$0xff]   ;;  %v13252_v7 = vadd.f32 %v20636_v17, %v20475_v6 }
 0x7d1   : > { %v9879_v14 = vpop.f32.mrb[154].mxu1  ;;  %v14630_v32 = vpop.eup %14629  ;;  %14649 = vrcp.f32 %v11106_v8  ;;  %v11112_v41 = vadd.f32 1.0, %v14628_v12  ;;  %10285 = vmatprep.mubr.bf16.mxu0 %v19423_v57  ;;  %12945 = vmatpush3.bf16.msra.mxu0 %v15006_v51  ;;  %v20765_v26 = vadd.f32 %v9429_v29, %v20485_v40  ;;  %v15007_v57 = vld [vmem:[%s21249_s13 + $0x280] ss:$28 sps:$4 sm:$0xff]   ;;  %v12736_v37 = vmul.f32 -1.442695, %v13251_v44 }
 0x7d2   : > { %v9881_v39 = vpop.f32.mrb[155].mxu1  ;;  %v14632_v4 = vpop.eup %14631  ;;  %14651 = vrcp.f32 %v11108_v42  ;;  %v11114_v3 = vadd.f32 1.0, %v14630_v32  ;;  %v20756_v16 = vadd.f32 %v9879_v14, %v20488_v27  ;;  %10686 = vmatmul.mubr.bf16.gmra.mrb[4].mxu1 %v19432_v62  ;;  %12946 = vmatprep.subr.bf16.mxu0 %v15007_v57  ;;  %v13284_v17 = vadd.f32 %v20645_v47, %v20488_v27  ;;  %v15009_v57 = vld [vmem:[%s21249_s13 + $0x2b8] ss:$28 sps:$4 sm:$0xff]  }
 0x7d3   : > { %v14634_v24 = vpop.eup %14633  ;;  %14653 = vrcp.f32 %v11112_v41  ;;  %v20768_v38 = vadd.f32 %v9881_v39, %v20495_v35  ;;  %10693 = vmatprep.mubr.bf16.mxu1 %v19439_v43  ;;  %v9433_v29 = vpop.f32.mrb[140].mxu0  ;;  %v12738_v14 = vmul.f32 -1.442695, %v13283_v36  ;;  %v13253_v32 = vadd.f32 %v20640_v30, %v20485_v40 }
 0x7d4   : > { %v14636_v8 = vpop.eup %14635  ;;  %v12876_v5 = vpack.c.bf16 %v14634_v24, %v20677_v34  ;;  %14655 = vrcp.f32 %v11114_v3  ;;  %v9435_v41 = vpop.f32.mrb[141].mxu0  ;;  %v13285_v34 = vadd.f32 %v20652_v58, %v20495_v35  ;;  %v20785_v47 = vadd.f32 %v9433_v29, %v20475_v6 }
 0x7d5   : > { %v14638_v12 = vpop.eup %14637  ;;  %v12877_v42 = vpack.c.bf16 %v14636_v8, %v14632_v4  ;;  %14657 = vpow2.f32 %v20712_v52  ;;  %v9885_v44 = vpop.f32.mrb[156].mxu1  ;;  %v20788_v4 = vadd.f32 %v9435_v41, %v20485_v40  ;;  %v15008_v52 = vld [vmem:[%s21249_s13 + $0xc0] ss:$28 sps:$4 sm:$0xff]   ;;  %v12744_v29 = vmul.f32 -1.442695, %v13284_v17 }
 0x7d6   : > { %v14640_v39 = vpop.eup %14639  ;;  %11771 = vst [vmem:[%s20613_s26 + $0x54] sm:$0xff] %v12876_v5  ;;  %14659 = vpow2.f32 %v12731_v23  ;;  %v9437_v3 = vpop.f32.mrb[142].mxu0  ;;  %12947 = vmatpush3.bf16.msra.mxu0 %v15008_v52  ;;  %v12742_v23 = vmul.f32 -1.442695, %v13252_v7  ;;  %v20795_v36 = vadd.f32 %v9885_v44, %v20488_v27  ;;  %v12743_v41 = vmul.f32 -1.442695, %v13253_v32 }
 0x7d7   : > { %v14642_v30 = vpop.eup %14641  ;;  %11772 = vst [vmem:[%s20613_s26 + $0x5c] sm:$0xff] %v12877_v42  ;;  %14661 = vpow2.f32 %v12735_v18  ;;  %v9887_v58 = vpop.f32.mrb[157].mxu1  ;;  %v20798_v51 = vadd.f32 %v9437_v3, %v20475_v6  ;;  %12948 = vmatprep.subr.bf16.mxu0 %v15009_v57  ;;  %v12745_v52 = vmul.f32 -1.442695, %v13285_v34  ;;  %v12751_v32 = vmul.f32 -1.442695, %v20662_v55 }
 0x7d8   : > { %v9439_v24 = vpop.f32.mrb[143].mxu0  ;;  %v14644_v8 = vpop.eup %14643  ;;  %v12880_v5 = vpack.c.bf16 %v14642_v30, %v14638_v12  ;;  %14663 = vpow2.f32 %v12737_v50  ;;  %v20804_v6 = vadd.f32 %v9887_v58, %v20495_v35  ;;  %10286 = vmatmul.mubr.bf16.gmra.mrb[152].mxu0 %v19432_v62  ;;  %v12749_v62 = vmul.f32 -1.442695, %v20659_v15 }
 0x7d9   : > { %v9889_v18 = vpop.f32.mrb[158].mxu1  ;;  %v14646_v7 = vpop.eup %14645  ;;  %v12881_v42 = vpack.c.bf16 %v14644_v8, %v14640_v39  ;;  %14665 = vpow2.f32 %v12736_v37  ;;  %v20812_v50 = vadd.f32 %v9439_v24, %v20485_v40  ;;  %10295 = vmatprep.mubr.bf16.mxu0 %v19439_v43  ;;  %v15010_v37 = vld [vmem:[%s21249_s13 + $0xf8] ss:$28 sps:$4 sm:$0xff]   ;;  %v15011_v43 = vld [vmem:[%s21249_s13 + $0x2f0] ss:$28 sps:$4 sm:$0xff]  }
 0x7da   : > { %v9891_v44 = vpop.f32.mrb[159].mxu1  ;;  %v14648_v3 = vpop.eup %14647  ;;  %11775 = vst [vmem:[%s20613_s26 + $0x70] sm:$0xff] %v12880_v5  ;;  %14667 = vpow2.f32 %v12738_v14  ;;  %v20809_v12 = vadd.f32 %v9889_v18, %v20488_v27  ;;  %12949 = vmatpush3.bf16.msra.mxu0 %v15010_v37  ;;  %10694 = vmatmul.mubr.bf16.gmra.mrb[8].mxu1 %v19471_v1  ;;  %v15013_v24 = vld [vmem:[%s21249_s13 + $0x328] ss:$28 sps:$4 sm:$0xff]  }
 0x7db   : > { %v14650_v17 = vpop.eup %14649  ;;  %11776 = vst [vmem:[%s20613_s26 + $0x78] sm:$0xff] %v12881_v42  ;;  %14669 = vpow2.f32 %v12742_v23  ;;  %v20821_v14 = vadd.f32 %v9891_v44, %v20495_v35  ;;  %12950 = vmatprep.subr.bf16.mxu0 %v15011_v43  ;;  %10701 = vmatprep.mubr.bf16.mxu1 %v19473_v25  ;;  %v12750_v35 = vmul.f32 -1.442695, %v20667_v56  ;;  %v15012_v23 = vld [vmem:[%s21249_s13 + $0x130] ss:$28 sps:$4 sm:$0xff]  }
 0x7dc   : > { %v14652_v40 = vpop.eup %14651  ;;  %v12884_v27 = vpack.c.bf16 %v14650_v17, %v14646_v7  ;;  %14671 = vpow2.f32 %v12744_v29 }
 0x7dd   : > { %v20829_v39 = vpop.eup %14653  ;;  %v12885_v15 = vpack.c.bf16 %v14652_v40, %v14648_v3  ;;  %14673 = vpow2.f32 %v12743_v41  ;;  %v12962_v30 = vpop.f32.mrb[160].mxu1  ;;  %v15014_v3 = vld [vmem:[%s21249_s13 + $0x168] ss:$28 sps:$4 sm:$0xff]  }
 0x7de   : > { %v20832_v34 = vpop.eup %14655  ;;  %11779 = vst [vmem:[%s20613_s26 + $0x8c] sm:$0xff] %v12884_v27  ;;  %14675 = vpow2.f32 %v12745_v52  ;;  %12951 = vmatpush3.bf16.msra.mxu0 %v15012_v23  ;;  %v12963_v55 = vpop.f32.mrb[161].mxu1 }
 0x7df   : > { %v14658_v58 = vpop.eup %14657  ;;  %11780 = vst [vmem:[%s20613_s26 + $0x94] sm:$0xff] %v12885_v15  ;;  %14677 = vpow2.f32 %v12749_v62  ;;  %12952 = vmatprep.subr.bf16.mxu0 %v15013_v24  ;;  %v20842_v8 = vadd.f32 %v12963_v55, %v12962_v30  ;;  %v12965_v5 = vpop.f32.mrb[162].mxu1  ;;  %v15016_v15 = vld [vmem:[%s21249_s13 + $0x1a0] ss:$28 sps:$4 sm:$0xff]  }
 0x7e0   : > { %v14660_v56 = vpop.eup %14659  ;;  %v11113_v57 = vadd.f32 1.0, %v14658_v58  ;;  %14679 = vpow2.f32 %v12751_v32  ;;  %v12966_v7 = vpop.f32.mrb[163].mxu1  ;;  %10296 = vmatmul.mubr.bf16.gmra.mrb[156].mxu0 %v19471_v1  ;;  %v15015_v1 = vld [vmem:[%s21249_s13 + $0x360] ss:$28 sps:$4 sm:$0xff]  }
 0x7e1   : > { %v14662_v29 = vpop.eup %14661  ;;  %v11115_v18 = vadd.f32 1.0, %v14660_v56  ;;  %14681 = vpow2.f32 %v12750_v35  ;;  %v20845_v44 = vadd.f32 %v12966_v7, %v12965_v5  ;;  %10305 = vmatprep.mubr.bf16.mxu0 %v19473_v25 }
 0x7e2   : > { %v14664_v42 = vpop.eup %14663  ;;  %14683 = vrcp.f32 %v11113_v57  ;;  %v11119_v41 = vadd.f32 1.0, %v14662_v29  ;;  %12953 = vmatpush3.bf16.msra.mxu0 %v15014_v3  ;;  %10702 = vmatmul.mubr.bf16.gmra.mrb[12].mxu1 %v19495_v53 }
 0x7e3   : > { %v14666_v52 = vpop.eup %14665  ;;  %14685 = vrcp.f32 %v11115_v18  ;;  %v11121_v37 = vadd.f32 1.0, %v14664_v42  ;;  %12954 = vmatprep.subr.bf16.mxu0 %v15015_v1  ;;  %10709 = vmatprep.mubr.bf16.mxu1 %v19497_v54 }
 0x7e4   : > { %v14668_v17 = vpop.eup %14667  ;;  %14687 = vrcp.f32 %v11119_v41  ;;  %v11120_v62 = vadd.f32 1.0, %v14666_v52  ;;  %v12752_v52 = vmul.f32 -1.442695, %v20674_v28 }
 0x7e5   : > { %v14670_v25 = vpop.eup %14669  ;;  %14689 = vrcp.f32 %v11121_v37  ;;  %v11122_v43 = vadd.f32 1.0, %v14668_v17  ;;  %v12968_v32 = vpop.f32.mrb[164].mxu1 }
 0x7e6   : > { %v14672_v40 = vpop.eup %14671  ;;  %14691 = vrcp.f32 %v11120_v62  ;;  %v11126_v27 = vadd.f32 1.0, %v14670_v25  ;;  %12955 = vmatpush3.bf16.msra.mxu0 %v15016_v15  ;;  %v12969_v23 = vpop.f32.mrb[165].mxu1 }
 0x7e7   : > { %v14674_v35 = vpop.eup %14673  ;;  %14693 = vrcp.f32 %v11122_v43  ;;  %v11128_v30 = vadd.f32 1.0, %v14672_v40  ;;  %v20859_v24 = vadd.f32 %v12969_v23, %v12968_v32  ;;  %v12971_v56 = vpop.f32.mrb[166].mxu1  ;;  %v12757_v43 = vmul.f32 -1.442695, %v20686_v19 }
 0x7e8   : > { %v14676_v58 = vpop.eup %14675  ;;  %14695 = vrcp.f32 %v11126_v27  ;;  %v11127_v55 = vadd.f32 1.0, %v14674_v35  ;;  %v12972_v29 = vpop.f32.mrb[167].mxu1  ;;  %10306 = vmatmul.mubr.bf16.gmra.mrb[160].mxu0 %v19495_v53  ;;  %v12756_v53 = vmul.f32 -1.442695, %v20682_v9  ;;  %v12759_v9 = vmul.f32 -1.442695, %v20697_v49 }
 0x7e9   : > { %v14678_v57 = vpop.eup %14677  ;;  %14697 = vrcp.f32 %v11128_v30  ;;  %v11129_v5 = vadd.f32 1.0, %v14676_v58  ;;  %v20862_v42 = vadd.f32 %v12972_v29, %v12971_v56  ;;  %10315 = vmatprep.mubr.bf16.mxu0 %v19497_v54  ;;  %v12758_v54 = vmul.f32 -1.442695, %v20691_v20 }
 0x7ea   : > { %v14680_v18 = vpop.eup %14679  ;;  %14699 = vrcp.f32 %v11127_v55  ;;  %v11133_v7 = vadd.f32 1.0, %v14678_v57  ;;  %10710 = vmatmul.mubr.bf16.gmra.mrb[16].mxu1 %v19512_v45  ;;  %v12765_v19 = vmul.f32 -1.442695, %v20706_v60  ;;  %v12764_v55 = vmul.f32 -1.442695, %v20715_v21 }
 0x7eb   : > { %v14682_v41 = vpop.eup %14681  ;;  %14701 = vrcp.f32 %v11129_v5  ;;  %v11135_v3 = vadd.f32 1.0, %v14680_v18  ;;  %10717 = vmatprep.mubr.bf16.mxu1 %v19532_v22  ;;  %v12766_v57 = vmul.f32 -1.442695, %v20724_v46  ;;  %v12771_v46 = vmul.f32 -1.442695, %v20733_v0 }
 0x7ec   : > { %v14684_v37 = vpop.eup %14683  ;;  %14703 = vrcp.f32 %v11133_v7  ;;  %v11134_v1 = vadd.f32 1.0, %v14682_v41 }
 0x7ed   : > { %v14686_v17 = vpop.eup %14685  ;;  %v12888_v62 = vpack.c.bf16 %v14684_v37, %v20829_v39  ;;  %14705 = vrcp.f32 %v11135_v3  ;;  %v12974_v40 = vpop.f32.mrb[168].mxu1  ;;  %v12763_v39 = vmul.f32 -1.442695, %v20700_v11 }
 0x7ee   : > { %v14688_v25 = vpop.eup %14687  ;;  %v12889_v28 = vpack.c.bf16 %v14686_v17, %v20832_v34  ;;  %14707 = vrcp.f32 %v11134_v1  ;;  %v12975_v32 = vpop.f32.mrb[169].mxu1 }
 0x7ef   : > { %v14690_v27 = vpop.eup %14689  ;;  %11783 = vst [vmem:[%s20613_s26 + $0xa8] sm:$0xff] %v12888_v62  ;;  %14709 = vpow2.f32 %v12752_v52  ;;  %v20877_v20 = vadd.f32 %v12975_v32, %v12974_v40  ;;  %v12977_v35 = vpop.f32.mrb[170].mxu1 }
 0x7f0   : > { %v14692_v15 = vpop.eup %14691  ;;  %11784 = vst [vmem:[%s20613_s26 + $0xb0] sm:$0xff] %v12889_v28  ;;  %14711 = vpow2.f32 %v12756_v53  ;;  %v12978_v23 = vpop.f32.mrb[171].mxu1  ;;  %10316 = vmatmul.mubr.bf16.gmra.mrb[164].mxu0 %v19512_v45  ;;  %v12770_v45 = vmul.f32 -1.442695, %v20730_v63  ;;  %v12773_v63 = vmul.f32 -1.442695, %v20747_v48 }
 0x7f1   : > { %v14694_v34 = vpop.eup %14693  ;;  %v12892_v30 = vpack.c.bf16 %v14692_v15, %v14688_v25  ;;  %14713 = vpow2.f32 %v12758_v54  ;;  %v20882_v56 = vadd.f32 %v12978_v23, %v12977_v35  ;;  %10325 = vmatprep.mubr.bf16.mxu0 %v19532_v22  ;;  %v12772_v22 = vmul.f32 -1.442695, %v20741_v31 }
 0x7f2   : > { %v14696_v49 = vpop.eup %14695  ;;  %v12893_v58 = vpack.c.bf16 %v14694_v34, %v14690_v27  ;;  %14715 = vpow2.f32 %v12757_v43  ;;  %10718 = vmatmul.mubr.bf16.gmra.mrb[20].mxu1 %v19538_v59 }
 0x7f3   : > { %v14698_v11 = vpop.eup %14697  ;;  %11787 = vst [vmem:[%s20613_s26 + $0xc4] sm:$0xff] %v12892_v30  ;;  %14717 = vpow2.f32 %v12759_v9  ;;  %10725 = vmatprep.mubr.bf16.mxu1 %v19547_v10 }
 0x7f4   : > { %v14700_v60 = vpop.eup %14699  ;;  %11788 = vst [vmem:[%s20613_s26 + $0xcc] sm:$0xff] %v12893_v58  ;;  %14719 = vpow2.f32 %v12763_v39 }
 0x7f5   : > { %v14702_v21 = vpop.eup %14701  ;;  %v12896_v5 = vpack.c.bf16 %v14700_v60, %v14696_v49  ;;  %14721 = vpow2.f32 %v12765_v19  ;;  %v12980_v7 = vpop.f32.mrb[172].mxu1 }
 0x7f6   : > { %v14704_v29 = vpop.eup %14703  ;;  %v12897_v18 = vpack.c.bf16 %v14702_v21, %v14698_v11  ;;  %14723 = vpow2.f32 %v12764_v55  ;;  %v12981_v3 = vpop.f32.mrb[173].mxu1 }
 0x7f7   : > { %v20893_v41 = vpop.eup %14705  ;;  %11791 = vst [vmem:[%s20613_s26 + $0xe0] sm:$0xff] %v12896_v5  ;;  %14725 = vpow2.f32 %v12766_v57  ;;  %v20898_v37 = vadd.f32 %v12981_v3, %v12980_v7  ;;  %v12983_v31 = vpop.f32.mrb[174].mxu1  ;;  %v12779_v7 = vmul.f32 -1.442695, %v20756_v16  ;;  %v12784_v16 = vmul.f32 -1.442695, %v20785_v47 }
 0x7f8   : > { %v14708_v52 = vpop.eup %14707  ;;  %11792 = vst [vmem:[%s20613_s26 + $0xe8] sm:$0xff] %v12897_v18  ;;  %14727 = vpow2.f32 %v12770_v45  ;;  %v12984_v17 = vpop.f32.mrb[175].mxu1  ;;  %10326 = vmatmul.mubr.bf16.gmra.mrb[168].mxu0 %v19538_v59  ;;  %v12777_v18 = vmul.f32 -1.442695, %v20752_v61  ;;  %v12787_v47 = vmul.f32 -1.442695, %v20804_v6 }
 0x7f9   : > { %v14710_v1 = vpop.eup %14709  ;;  %v12900_v53 = vpack.c.bf16 %v14708_v52, %v14704_v29  ;;  %14729 = vpow2.f32 %v12772_v22  ;;  %v20901_v54 = vadd.f32 %v12984_v17, %v12983_v31  ;;  %10335 = vmatprep.mubr.bf16.mxu0 %v19547_v10  ;;  %v12778_v52 = vmul.f32 -1.442695, %v20765_v26 }
 0x7fa   : > { %v14712_v0 = vpop.eup %14711  ;;  %v11136_v62 = vadd.f32 1.0, %v14710_v1  ;;  %14731 = vpow2.f32 %v12771_v46  ;;  %10726 = vmatmul.mubr.bf16.gmra.mrb[24].mxu1 %v19552_v13 }
 0x7fb   : > { %v14714_v48 = vpop.eup %14713  ;;  %11795 = vst [vmem:[%s20613_s26 + $0xfc] sm:$0xff] %v12900_v53  ;;  %v11140_v25 = vadd.f32 1.0, %v14712_v0  ;;  %14733 = vpow2.f32 %v12773_v63  ;;  %v12780_v53 = vmul.f32 -1.442695, %v20768_v38 }
 0x7fc   : > { %v14716_v28 = vpop.eup %14715  ;;  %14735 = vrcp.f32 %v11136_v62  ;;  %v11142_v43 = vadd.f32 1.0, %v14714_v48  ;;  %v12786_v48 = vmul.f32 -1.442695, %v20795_v36 }
 0x7fd   : > { %v14718_v40 = vpop.eup %14717  ;;  %14737 = vrcp.f32 %v11140_v25  ;;  %v11141_v27 = vadd.f32 1.0, %v14716_v28  ;;  %v12986_v32 = vpop.f32.mrb[176].mxu1 }
 0x7fe   : > { %v14720_v59 = vpop.eup %14719  ;;  %14739 = vrcp.f32 %v11142_v43  ;;  %v11143_v9 = vadd.f32 1.0, %v14718_v40  ;;  %v12987_v10 = vpop.f32.mrb[177].mxu1  ;;  %v12785_v43 = vmul.f32 -1.442695, %v20788_v4 }
 0x7ff   : > { %v14722_v15 = vpop.eup %14721  ;;  %14741 = vrcp.f32 %v11141_v27  ;;  %v11147_v39 = vadd.f32 1.0, %v14720_v59  ;;  %v20906_v30 = vadd.f32 %v12987_v10, %v12986_v32  ;;  %v12989_v19 = vpop.f32.mrb[178].mxu1 }
 0x800   : > { %v14724_v35 = vpop.eup %14723  ;;  %14743 = vrcp.f32 %v11143_v9  ;;  %v11149_v34 = vadd.f32 1.0, %v14722_v15  ;;  %v12990_v58 = vpop.f32.mrb[179].mxu1  ;;  %10336 = vmatmul.mubr.bf16.gmra.mrb[172].mxu0 %v19552_v13  ;;  %v12793_v9 = vmul.f32 -1.442695, %v20809_v12 }
 0x801   : > { %v14726_v23 = vpop.eup %14725  ;;  %14745 = vrcp.f32 %v11147_v39  ;;  %v11148_v49 = vadd.f32 1.0, %v14724_v35  ;;  %v20909_v57 = vadd.f32 %v12990_v58, %v12989_v19  ;;  %10378 = vmatprep.mubr.bf16.mxu0 %v18732_v2  ;;  %v12792_v39 = vmul.f32 -1.442695, %v20812_v50 }
 0x802   : > { %v14728_v55 = vpop.eup %14727  ;;  %14747 = vrcp.f32 %v11149_v34  ;;  %v11150_v11 = vadd.f32 1.0, %v14726_v23  ;;  %v12794_v35 = vmul.f32 -1.442695, %v20821_v14 }
 0x803   : > { %v14730_v60 = vpop.eup %14729  ;;  %14749 = vrcp.f32 %v11148_v49  ;;  %v11154_v45 = vadd.f32 1.0, %v14728_v55 }
 0x804   : > { %v14732_v21 = vpop.eup %14731  ;;  %14751 = vrcp.f32 %v11150_v11  ;;  %v11156_v5 = vadd.f32 1.0, %v14730_v60 }
 0x805   : > { %v14734_v22 = vpop.eup %14733  ;;  %14753 = vrcp.f32 %v11154_v45  ;;  %v11155_v29 = vadd.f32 1.0, %v14732_v21  ;;  %v12992_v63 = vpop.f32.mrb[180].mxu1 }
 0x806   : > { %v14736_v46 = vpop.eup %14735  ;;  %14755 = vrcp.f32 %v11156_v5  ;;  %v11157_v13 = vadd.f32 1.0, %v14734_v22  ;;  %v12993_v31 = vpop.f32.mrb[181].mxu1 }
 0x807   : > { %v14738_v3 = vpop.eup %14737  ;;  %v12901_v2 = vpack.c.bf16 %v14736_v46, %v20893_v41  ;;  %14757 = vrcp.f32 %v11155_v29  ;;  %v20917_v17 = vadd.f32 %v12993_v31, %v12992_v63  ;;  %v12995_v61 = vpop.f32.mrb[182].mxu1 }
 0x808   : > { %v14740_v1 = vpop.eup %14739  ;;  %14759 = vrcp.f32 %v11157_v13  ;;  %v12996_v62 = vpop.f32.mrb[183].mxu1  ;;  %10379 = vmatmul.mubr.bf16.vlgmr.msra.gmra.mrb[176].mxu0 %v18737_v33  ;;  %v12791_v33 = vmul.f32 -1.442695, %v20798_v51 }
 0x809   : > { %v14742_v0 = vpop.eup %14741  ;;  %11796 = vst [vmem:[%s20613_s26 + $0x104] sm:$0xff] %v12901_v2  ;;  %14761 = vpow2.f32 %v12777_v18  ;;  %v20923_v25 = vadd.f32 %v12996_v62, %v12995_v61 }
 0x80a   : > { %v14744_v41 = vpop.eup %14743  ;;  %v12904_v26 = vpack.c.bf16 %v14742_v0, %v14738_v3  ;;  %14763 = vpow2.f32 %v12779_v7 }
 0x80b   : > { %v14746_v38 = vpop.eup %14745  ;;  %v12905_v28 = vpack.c.bf16 %v14744_v41, %v14740_v1  ;;  %14765 = vpow2.f32 %v12778_v52 }
 0x80c   : > { %v14748_v40 = vpop.eup %14747  ;;  %11799 = vst [vmem:[%s20613_s26 + $0x118] sm:$0xff] %v12904_v26  ;;  %14767 = vpow2.f32 %v12780_v53  ;;  %v20948_v26 = vld [vmem:[%s21250_s14] sm:$0x7f] }
 0x80d   : > { %v14750_v27 = vpop.eup %14749  ;;  %11800 = vst [vmem:[%s20613_s26 + $0x120] sm:$0xff] %v12905_v28  ;;  %14769 = vpow2.f32 %v12784_v16  ;;  %v12998_v32 = vpop.f32.mrb[184].mxu1 }
 0x80e   : > { %v14752_v59 = vpop.eup %14751  ;;  %v12908_v36 = vpack.c.bf16 %v14750_v27, %v14746_v38  ;;  %14771 = vpow2.f32 %v12786_v48  ;;  %v12999_v10 = vpop.f32.mrb[185].mxu1  ;;  %v21990_v48 = vld [vmem:[#allocation113_spill] sm:$0xff] }
 0x80f   : > { %v14754_v15 = vpop.eup %14753  ;;  %v12909_v4 = vpack.c.bf16 %v14752_v59, %v14748_v40  ;;  %14773 = vpow2.f32 %v12785_v43  ;;  %v20934_v51 = vadd.f32 %v12999_v10, %v12998_v32  ;;  %v13001_v34 = vpop.f32.mrb[186].mxu1  ;;  %v20952_v38 = vrot.slane %v20948_v26, %v21990_v48 }
 0x810   : > { %v14756_v6 = vpop.eup %14755  ;;  %11803 = vst [vmem:[%s20613_s26 + $0x134] sm:$0xff] %v12908_v36  ;;  %14775 = vpow2.f32 %v12787_v47  ;;  %v13002_v12 = vpop.f32.mrb[187].mxu1 }
 0x811   : > { %v14758_v19 = vpop.eup %14757  ;;  %11804 = vst [vmem:[%s20613_s26 + $0x13c] sm:$0xff] %v12909_v4  ;;  %14777 = vpow2.f32 %v12791_v33  ;;  %v20937_v58 = vadd.f32 %v13002_v12, %v13001_v34 }
 0x812   : > { %v14760_v23 = vpop.eup %14759  ;;  %v12912_v49 = vpack.c.bf16 %v14758_v19, %v14754_v15  ;;  %14779 = vpow2.f32 %v12793_v9  ;;  %v10389_v9 = vadd.f32 %v20842_v8, %v20952_v38 }
 0x813   : > { %v14762_v50 = vpop.eup %14761  ;;  %v12913_v55 = vpack.c.bf16 %v14760_v23, %v14756_v6  ;;  %14781 = vpow2.f32 %v12792_v39  ;;  %v10392_v6 = vadd.f32 %v20845_v44, %v20952_v38 }
 0x814   : > { %v14764_v11 = vpop.eup %14763  ;;  %11807 = vst [vmem:[%s20613_s26 + $0x150] sm:$0xff] %v12912_v49  ;;  %v11161_v60 = vadd.f32 1.0, %v14762_v50  ;;  %14783 = vpow2.f32 %v12794_v35 }
 0x815   : > { %v14766_v14 = vpop.eup %14765  ;;  %11808 = vst [vmem:[%s20613_s26 + $0x158] sm:$0xff] %v12913_v55  ;;  %v11163_v45 = vadd.f32 1.0, %v14764_v11  ;;  %v13020_v22 = vpop.f32.mrb[188].mxu1 }
 0x816   : > { %v14768_v21 = vpop.eup %14767  ;;  %14785 = vrcp.f32 %v11161_v60  ;;  %v11162_v5 = vadd.f32 1.0, %v14766_v14  ;;  %v13021_v46 = vpop.f32.mrb[189].mxu1 }
 0x817   : > { %v14770_v29 = vpop.eup %14769  ;;  %14787 = vrcp.f32 %v11163_v45  ;;  %v11164_v18 = vadd.f32 1.0, %v14768_v21  ;;  %v20941_v63 = vadd.f32 %v13021_v46, %v13020_v22  ;;  %v13023_v3 = vpop.f32.mrb[190].mxu1 }
 0x818   : > { %v14772_v13 = vpop.eup %14771  ;;  %14789 = vrcp.f32 %v11162_v5  ;;  %v11168_v7 = vadd.f32 1.0, %v14770_v29  ;;  %v13024_v31 = vpop.f32.mrb[191].mxu1  ;;  %v10397_v5 = vadd.f32 %v20859_v24, %v20952_v38 }
 0x819   : > { %v14774_v2 = vpop.eup %14773  ;;  %14791 = vrcp.f32 %v11164_v18  ;;  %v11170_v52 = vadd.f32 1.0, %v14772_v13  ;;  %v20943_v61 = vadd.f32 %v13024_v31, %v13023_v3 }
 0x81a   : > { %v14776_v1 = vpop.eup %14775  ;;  %14793 = vrcp.f32 %v11168_v7  ;;  %v11169_v53 = vadd.f32 1.0, %v14774_v2  ;;  %v10400_v7 = vadd.f32 %v20862_v42, %v20952_v38  ;;  %v10408_v42 = vadd.f32 %v20882_v56, %v20952_v38 }
 0x81b   : > { %v14778_v0 = vpop.eup %14777  ;;  %14795 = vrcp.f32 %v11170_v52  ;;  %v11171_v16 = vadd.f32 1.0, %v14776_v1 }
 0x81c   : > { %v14780_v62 = vpop.eup %14779  ;;  %14797 = vrcp.f32 %v11169_v53  ;;  %v11175_v41 = vadd.f32 1.0, %v14778_v0 }
 0x81d   : > { %v14782_v28 = vpop.eup %14781  ;;  %14799 = vrcp.f32 %v11171_v16  ;;  %v11177_v43 = vadd.f32 1.0, %v14780_v62  ;;  %v13026_v27 = vpop.f32.mrb[192].mxu1  ;;  %v10405_v16 = vadd.f32 %v20877_v20, %v20952_v38  ;;  %v10416_v20 = vadd.f32 %v20901_v54, %v20952_v38 }
 0x81e   : > { %v14784_v40 = vpop.eup %14783  ;;  %14801 = vrcp.f32 %v11175_v41  ;;  %v11176_v47 = vadd.f32 1.0, %v14782_v28  ;;  %v13027_v59 = vpop.f32.mrb[193].mxu1 }
 0x81f   : > { %14803 = vrcp.f32 %v11177_v43  ;;  %v11178_v33 = vadd.f32 1.0, %v14784_v40  ;;  %v13028_v32 = vadd.f32 %v13027_v59, %v13026_v27  ;;  %v13029_v15 = vpop.f32.mrb[194].mxu1 }
 0x820   : > { %v14786_v36 = vpop.eup %14785  ;;  %14805 = vrcp.f32 %v11176_v47  ;;  %v13030_v39 = vpop.f32.mrb[195].mxu1 }
 0x821   : > { %v14788_v4 = vpop.eup %14787  ;;  %14807 = vrcp.f32 %v11178_v33  ;;  %v20958_v35 = vadd.f32 %v13028_v32, %v10389_v9  ;;  %v13031_v34 = vadd.f32 %v13030_v39, %v13029_v15  ;;  %v10413_v33 = vadd.f32 %v20898_v37, %v20952_v38 }
 0x822   : > { %v14790_v10 = vpop.eup %14789  ;;  %v10424_v37 = vadd.f32 %v20909_v57, %v20952_v38 }
 0x823   : > { %v14792_v19 = vpop.eup %14791  ;;  %v12916_v12 = vpack.c.bf16 %v14790_v10, %v14786_v36  ;;  %v20960_v8 = vadd.f32 %v13031_v34, %v10392_v6  ;;  %v10421_v10 = vadd.f32 %v20906_v30, %v20952_v38  ;;  %v10432_v30 = vadd.f32 %v20923_v25, %v20952_v38 }
 0x824   : > { %v14794_v23 = vpop.eup %14793  ;;  %v12917_v49 = vpack.c.bf16 %v14792_v19, %v14788_v4 }
 0x825   : > { %v14796_v50 = vpop.eup %14795  ;;  %11811 = vst [vmem:[%s20613_s26 + $0x16c] sm:$0xff] %v12916_v12  ;;  %v13032_v11 = vpop.f32.mrb[196].mxu1 }
 0x826   : > { %v14798_v55 = vpop.eup %14797  ;;  %11812 = vst [vmem:[%s20613_s26 + $0x174] sm:$0xff] %v12917_v49  ;;  %v13033_v45 = vpop.f32.mrb[197].mxu1 }
 0x827   : > { %v14800_v60 = vpop.eup %14799  ;;  %v12920_v14 = vpack.c.bf16 %v14798_v55, %v14794_v23  ;;  %v13034_v22 = vadd.f32 %v13033_v45, %v13032_v11  ;;  %v13035_v29 = vpop.f32.mrb[198].mxu1  ;;  %v10429_v55 = vadd.f32 %v20917_v17, %v20952_v38  ;;  %v10440_v17 = vadd.f32 %v20937_v58, %v20952_v38 }
 0x828   : > { %v14802_v44 = vpop.eup %14801  ;;  %v12921_v21 = vpack.c.bf16 %v14800_v60, %v14796_v50  ;;  %v13036_v46 = vpop.f32.mrb[199].mxu1 }
 0x829   : > { %v14804_v18 = vpop.eup %14803  ;;  %11815 = vst [vmem:[%s20613_s26 + $0x188] sm:$0xff] %v12920_v14  ;;  %v20970_v3 = vadd.f32 %v13034_v22, %v10397_v5  ;;  %v13037_v2 = vadd.f32 %v13036_v46, %v13035_v29  ;;  %v10437_v22 = vadd.f32 %v20934_v51, %v20952_v38 }
 0x82a   : > { %v14806_v13 = vpop.eup %14805  ;;  %11816 = vst [vmem:[%s20613_s26 + $0x190] sm:$0xff] %v12921_v21 }
 0x82b   : > { %v14808_v52 = vpop.eup %14807  ;;  %v12924_v31 = vpack.c.bf16 %v14806_v13, %v14802_v44  ;;  %v20972_v53 = vadd.f32 %v13037_v2, %v10400_v7 }
 0x82c   : > { %v12925_v1 = vpack.c.bf16 %v14808_v52, %v14804_v18 }
 0x82d   : > { %11819 = vst [vmem:[%s20613_s26 + $0x1a4] sm:$0xff] %v12924_v31  ;;  %v13038_v24 = vpop.f32.mrb[200].mxu1 }
 0x82e   : > { %11820 = vst [vmem:[%s20613_s26 + $0x1ac] sm:$0xff] %v12925_v1  ;;  %v13039_v0 = vpop.f32.mrb[201].mxu1 }
 0x82f   : > { %v13040_v62 = vadd.f32 %v13039_v0, %v13038_v24  ;;  %v13041_v41 = vpop.f32.mrb[202].mxu1 }
 0x830   : > { %v13042_v48 = vpop.f32.mrb[203].mxu1 }
 0x831   : > { %v20980_v28 = vadd.f32 %v13040_v62, %v10405_v16  ;;  %v13043_v43 = vadd.f32 %v13042_v48, %v13041_v41 }
 0x833   : > { %v20982_v40 = vadd.f32 %v13043_v43, %v10408_v42 }
 0x835   : > { %v13044_v47 = vpop.f32.mrb[204].mxu1 }
 0x836   : > { %v13045_v27 = vpop.f32.mrb[205].mxu1 }
 0x837   : > { %v13046_v59 = vadd.f32 %v13045_v27, %v13044_v47  ;;  %v13047_v36 = vpop.f32.mrb[206].mxu1 }
 0x838   : > { %v13048_v9 = vpop.f32.mrb[207].mxu1 }
 0x839   : > { %v20988_v32 = vadd.f32 %v13046_v59, %v10413_v33  ;;  %v13049_v15 = vadd.f32 %v13048_v9, %v13047_v36 }
 0x83b   : > { %v20990_v56 = vadd.f32 %v13049_v15, %v10416_v20 }
 0x83d   : > { %v13050_v4 = vpop.f32.mrb[208].mxu1 }
 0x83e   : > { %v13051_v39 = vpop.f32.mrb[209].mxu1 }
 0x83f   : > { %v13052_v6 = vadd.f32 %v13051_v39, %v13050_v4  ;;  %v13053_v34 = vpop.f32.mrb[210].mxu1 }
 0x840   : > { %v13054_v19 = vpop.f32.mrb[211].mxu1 }
 0x841   : > { %v20996_v12 = vadd.f32 %v13052_v6, %v10421_v10  ;;  %v13055_v23 = vadd.f32 %v13054_v19, %v13053_v34 }
 0x843   : > { %v20998_v54 = vadd.f32 %v13055_v23, %v10424_v37 }
 0x845   : > { %v13056_v49 = vpop.f32.mrb[212].mxu1 }
 0x846   : > { %v13057_v50 = vpop.f32.mrb[213].mxu1 }
 0x847   : > { %v13058_v11 = vadd.f32 %v13057_v50, %v13056_v49  ;;  %v13059_v60 = vpop.f32.mrb[214].mxu1 }
 0x848   : > { %v13060_v14 = vpop.f32.mrb[215].mxu1 }
 0x849   : > { %v21004_v45 = vadd.f32 %v13058_v11, %v10429_v55  ;;  %v13061_v44 = vadd.f32 %v13060_v14, %v13059_v60 }
 0x84b   : > { %v21006_v57 = vadd.f32 %v13061_v44, %v10432_v30 }
 0x84d   : > { %v13062_v21 = vpop.f32.mrb[216].mxu1 }
 0x84e   : > { %v13063_v5 = vpop.f32.mrb[217].mxu1 }
 0x84f   : > { %v13064_v29 = vadd.f32 %v13063_v5, %v13062_v21  ;;  %v13065_v18 = vpop.f32.mrb[218].mxu1 }
 0x850   : > { %v13066_v46 = vpop.f32.mrb[219].mxu1 }
 0x851   : > { %v10534_v13 = vadd.f32 %v13064_v29, %v10437_v22  ;;  %v13067_v7 = vadd.f32 %v13066_v46, %v13065_v18 }
 0x853   : > { %v10537_v2 = vadd.f32 %v13067_v7, %v10440_v17 }
 0x855   : > { %v13084_v25 = vpop.f32.mrb[220].mxu1 }
 0x856   : > { %v13085_v52 = vpop.f32.mrb[221].mxu1 }
 0x857   : > { %v21012_v31 = vadd.f32 %v13085_v52, %v13084_v25  ;;  %v13087_v1 = vpop.f32.mrb[222].mxu1 }
 0x858   : > { %v13088_v24 = vpop.f32.mrb[223].mxu1 }
 0x859   : > { %v21014_v0 = vadd.f32 %v13088_v24, %v13087_v1 }
 0x85d   : > { %v13090_v16 = vpop.f32.mrb[224].mxu1 }
 0x85e   : > { %v13091_v62 = vpop.f32.mrb[225].mxu1 }
 0x85f   : > { %v13092_v51 = vadd.f32 %v13091_v62, %v13090_v16  ;;  %v13093_v41 = vpop.f32.mrb[226].mxu1 }
 0x860   : > { %v13094_v48 = vpop.f32.mrb[227].mxu1 }
 0x861   : > { %v21017_v42 = vadd.f32 %v13092_v51, %v20958_v35  ;;  %v13095_v58 = vadd.f32 %v13094_v48, %v13093_v41 }
 0x863   : > { %v21020_v43 = vadd.f32 %v13095_v58, %v20960_v8  ;;  %v21991_v58 = vld [vmem:[#allocation2_spill] sm:$0xff] }
 0x865   : > { %v13096_v47 = vpop.f32.mrb[228].mxu1 }
 0x866   : > { %v13097_v27 = vpop.f32.mrb[229].mxu1 }
 0x867   : > { %v13098_v33 = vadd.f32 %v13097_v27, %v13096_v47  ;;  %v13099_v59 = vpop.f32.mrb[230].mxu1  ;;  %v21060_v47 = vrot.slane %v20948_v26, %v21991_v58  ;;  %v21992_v27 = vld [vmem:[#allocation112_spill] sm:$0xff] }
 0x868   : > { %v13100_v36 = vpop.f32.mrb[231].mxu1 }
 0x869   : > { %v21023_v9 = vadd.f32 %v13098_v33, %v20970_v3  ;;  %v13101_v20 = vadd.f32 %v13100_v36, %v13099_v59  ;;  %v21064_v33 = vrot.slane %v20948_v26, %v21992_v27 }
 0x86b   : > { %v21026_v15 = vadd.f32 %v13101_v20, %v20972_v53 }
 0x86d   : > { %v13102_v4 = vpop.f32.mrb[232].mxu1 }
 0x86e   : > { %v13103_v39 = vpop.f32.mrb[233].mxu1 }
 0x86f   : > { %v13104_v35 = vadd.f32 %v13103_v39, %v13102_v4  ;;  %v13105_v10 = vpop.f32.mrb[234].mxu1 }
 0x870   : > { %v13106_v6 = vpop.f32.mrb[235].mxu1 }
 0x871   : > { %v21029_v8 = vadd.f32 %v13104_v35, %v20980_v28  ;;  %v13107_v34 = vadd.f32 %v13106_v6, %v13105_v10 }
 0x873   : > { %v21032_v19 = vadd.f32 %v13107_v34, %v20982_v40 }
 0x875   : > { %v13108_v37 = vpop.f32.mrb[236].mxu1 }
 0x876   : > { %v13109_v23 = vpop.f32.mrb[237].mxu1 }
 0x877   : > { %v13110_v3 = vadd.f32 %v13109_v23, %v13108_v37  ;;  %v13111_v49 = vpop.f32.mrb[238].mxu1 }
 0x878   : > { %v13112_v50 = vpop.f32.mrb[239].mxu1 }
 0x879   : > { %v21035_v53 = vadd.f32 %v13110_v3, %v20988_v32  ;;  %v13113_v55 = vadd.f32 %v13112_v50, %v13111_v49 }
 0x87b   : > { %v21038_v11 = vadd.f32 %v13113_v55, %v20990_v56 }
 0x87d   : > { %v13114_v60 = vpop.f32.mrb[240].mxu1 }
 0x87e   : > { %v13115_v14 = vpop.f32.mrb[241].mxu1 }
 0x87f   : > { %v13116_v28 = vadd.f32 %v13115_v14, %v13114_v60  ;;  %v13117_v30 = vpop.f32.mrb[242].mxu1 }
 0x880   : > { %v13118_v44 = vpop.f32.mrb[243].mxu1 }
 0x881   : > { %v21041_v40 = vadd.f32 %v13116_v28, %v20996_v12  ;;  %v13119_v21 = vadd.f32 %v13118_v44, %v13117_v30 }
 0x883   : > { %v21044_v5 = vadd.f32 %v13119_v21, %v20998_v54 }
 0x885   : > { %v13120_v22 = vpop.f32.mrb[244].mxu1 }
 0x886   : > { %v13121_v29 = vpop.f32.mrb[245].mxu1 }
 0x887   : > { %v13122_v32 = vadd.f32 %v13121_v29, %v13120_v22  ;;  %v13123_v18 = vpop.f32.mrb[246].mxu1 }
 0x888   : > { %v13124_v46 = vpop.f32.mrb[247].mxu1 }
 0x889   : > { %v21047_v56 = vadd.f32 %v13122_v32, %v21004_v45  ;;  %v13125_v17 = vadd.f32 %v13124_v46, %v13123_v18 }
 0x88b   : > { %v21050_v7 = vadd.f32 %v13125_v17, %v21006_v57 }
 0x88d   : > { %v13126_v25 = vpop.f32.mrb[248].mxu1 }
 0x88e   : > { %v13127_v52 = vpop.f32.mrb[249].mxu1 }
 0x88f   : > { %v13128_v12 = vadd.f32 %v13127_v52, %v13126_v25  ;;  %v13129_v1 = vpop.f32.mrb[250].mxu1 }
 0x890   : > { %v13130_v24 = vpop.f32.mrb[251].mxu1 }
 0x891   : > { %v21052_v16 = vadd.f32 %v13128_v12, %v10534_v13  ;;  %v13131_v54 = vadd.f32 %v13130_v24, %v13129_v1 }
 0x893   : > { %v21054_v62 = vadd.f32 %v13131_v54, %v10537_v2 }
 0x895   : > { %v13148_v51 = vpop.f32.mrb[252].mxu1 }
 0x896   : > { %v13149_v41 = vpop.f32.mrb[253].mxu1 }
 0x897   : > { %v21056_v48 = vadd.f32 %v13149_v41, %v13148_v51  ;;  %v13151_v45 = vpop.f32.mrb[254].mxu1 }
 0x898   : > { %v13152_v57 = vpop.f32.mrb[255].mxu1 }
 0x899   : > { %v21066_v59 = vadd.f32 %v13152_v57, %v13151_v45 }
 0x89b   : > { %v10267_v13 = vpop.f32.mrb[144].mxu0 }
 0x89c   : > { %v13300_v2 = vadd.f32 %v10267_v13, %v21060_v47  ;;  %v10269_v36 = vpop.f32.mrb[145].mxu0 }
 0x89d   : > { %v13154_v20 = vpop.f32.mrb[0].mxu1  ;;  %v13301_v4 = vadd.f32 %v10269_v36, %v21064_v33  ;;  %v10271_v39 = vpop.f32.mrb[146].mxu0 }
 0x89e   : > { %v12690_v35 = vmul.f32 -1.442695, %v13300_v2  ;;  %v13155_v10 = vpop.f32.mrb[1].mxu1  ;;  %v13302_v6 = vadd.f32 %v10271_v39, %v21060_v47  ;;  %v10273_v34 = vpop.f32.mrb[147].mxu0 }
 0x89f   : > { %v12691_v37 = vmul.f32 -1.442695, %v13301_v4  ;;  %v13156_v23 = vadd.f32 %v13155_v10, %v13154_v20  ;;  %v13157_v3 = vpop.f32.mrb[2].mxu1  ;;  %v13303_v26 = vadd.f32 %v10273_v34, %v21064_v33 }
 0x8a0   : > { %14809 = vpow2.f32 %v12690_v35  ;;  %v12697_v49 = vmul.f32 -1.442695, %v13302_v6  ;;  %v13158_v50 = vpop.f32.mrb[3].mxu1 }
 0x8a1   : > { %14811 = vpow2.f32 %v12691_v37  ;;  %v10680_v55 = vadd.f32 %v13156_v23, %v21017_v42  ;;  %v12698_v60 = vmul.f32 -1.442695, %v13303_v26  ;;  %v13159_v14 = vadd.f32 %v13158_v50, %v13157_v3 }
 0x8a2   : > { %14813 = vpow2.f32 %v12697_v49 }
 0x8a3   : > { %v12706_v28 = vmul.f32 -1.442695, %v10680_v55  ;;  %14815 = vpow2.f32 %v12698_v60  ;;  %v10683_v30 = vadd.f32 %v13159_v14, %v21020_v43  ;;  %v10277_v44 = vpop.f32.mrb[148].mxu0 }
 0x8a4   : > { %v13304_v21 = vadd.f32 %v10277_v44, %v21060_v47  ;;  %v10279_v22 = vpop.f32.mrb[149].mxu0 }
 0x8a5   : > { %14817 = vpow2.f32 %v12706_v28  ;;  %v12713_v29 = vmul.f32 -1.442695, %v10683_v30  ;;  %v13160_v32 = vpop.f32.mrb[4].mxu1  ;;  %v13305_v18 = vadd.f32 %v10279_v22, %v21064_v33  ;;  %v10281_v46 = vpop.f32.mrb[150].mxu0 }
 0x8a6   : > { %v12704_v17 = vmul.f32 -1.442695, %v13304_v21  ;;  %v13161_v25 = vpop.f32.mrb[5].mxu1  ;;  %v13306_v42 = vadd.f32 %v10281_v46, %v21060_v47  ;;  %v10283_v52 = vpop.f32.mrb[151].mxu0 }
 0x8a7   : > { %14819 = vpow2.f32 %v12713_v29  ;;  %v12705_v12 = vmul.f32 -1.442695, %v13305_v18  ;;  %v13162_v1 = vadd.f32 %v13161_v25, %v13160_v32  ;;  %v13163_v24 = vpop.f32.mrb[6].mxu1  ;;  %v13307_v43 = vadd.f32 %v10283_v52, %v21064_v33 }
 0x8a8   : > { %14821 = vpow2.f32 %v12704_v17  ;;  %v12711_v54 = vmul.f32 -1.442695, %v13306_v42  ;;  %v13164_v51 = vpop.f32.mrb[7].mxu1 }
 0x8a9   : > { %14823 = vpow2.f32 %v12705_v12  ;;  %v10688_v41 = vadd.f32 %v13162_v1, %v21023_v9  ;;  %v12712_v45 = vmul.f32 -1.442695, %v13307_v43  ;;  %v13165_v58 = vadd.f32 %v13164_v51, %v13163_v24 }
 0x8aa   : > { %v14810_v57 = vpop.eup %14809  ;;  %14825 = vpow2.f32 %v12711_v54 }
 0x8ab   : > { %v14812_v27 = vpop.eup %14811  ;;  %v11074_v13 = vadd.f32 1.0, %v14810_v57  ;;  %14827 = vpow2.f32 %v12712_v45  ;;  %v10691_v2 = vadd.f32 %v13165_v58, %v21026_v15  ;;  %v10287_v36 = vpop.f32.mrb[152].mxu0  ;;  %v12720_v6 = vmul.f32 -1.442695, %v10688_v41 }
 0x8ac   : > { %v14814_v20 = vpop.eup %14813  ;;  %v11075_v4 = vadd.f32 1.0, %v14812_v27  ;;  %v10289_v39 = vpop.f32.mrb[153].mxu0  ;;  %v13308_v28 = vadd.f32 %v10287_v36, %v21060_v47 }
 0x8ad   : > { %v14816_v35 = vpop.eup %14815  ;;  %14829 = vrcp.f32 %v11074_v13  ;;  %v11081_v10 = vadd.f32 1.0, %v14814_v20  ;;  %v13166_v34 = vpop.f32.mrb[8].mxu1  ;;  %v12727_v49 = vmul.f32 -1.442695, %v10691_v2  ;;  %v13309_v29 = vadd.f32 %v10289_v39, %v21064_v33 }
 0x8ae   : > { %v10291_v37 = vpop.f32.mrb[154].mxu0  ;;  %14831 = vrcp.f32 %v11075_v4  ;;  %v11082_v9 = vadd.f32 1.0, %v14816_v35  ;;  %v13167_v23 = vpop.f32.mrb[9].mxu1  ;;  %v12718_v43 = vmul.f32 -1.442695, %v13308_v28 }
 0x8af   : > { %v10293_v3 = vpop.f32.mrb[155].mxu0  ;;  %v14818_v26 = vpop.eup %14817  ;;  %14833 = vrcp.f32 %v11081_v10  ;;  %v13168_v50 = vadd.f32 %v13167_v23, %v13166_v34  ;;  %v13310_v52 = vadd.f32 %v10291_v37, %v21060_v47  ;;  %v12719_v45 = vmul.f32 -1.442695, %v13309_v29 }
 0x8b0   : > { %v13169_v55 = vpop.f32.mrb[10].mxu1  ;;  %v11090_v15 = vadd.f32 1.0, %v14818_v26  ;;  %14835 = vrcp.f32 %v11082_v9  ;;  %v13311_v12 = vadd.f32 %v10293_v3, %v21064_v33 }
 0x8b1   : > { %v13170_v60 = vpop.f32.mrb[11].mxu1  ;;  %v14820_v14 = vpop.eup %14819  ;;  %14837 = vpow2.f32 %v12720_v6  ;;  %v10696_v30 = vadd.f32 %v13168_v50, %v21029_v8  ;;  %v12725_v20 = vmul.f32 -1.442695, %v13310_v52 }
 0x8b2   : > { %v13171_v44 = vadd.f32 %v13170_v60, %v13169_v55  ;;  %v14822_v21 = vpop.eup %14821  ;;  %14839 = vrcp.f32 %v11090_v15  ;;  %v11097_v22 = vadd.f32 1.0, %v14820_v14  ;;  %v12726_v4 = vmul.f32 -1.442695, %v13311_v12 }
 0x8b3   : > { %v14824_v32 = vpop.eup %14823  ;;  %v11088_v18 = vadd.f32 1.0, %v14822_v21  ;;  %14841 = vpow2.f32 %v12727_v49  ;;  %v10297_v17 = vpop.f32.mrb[156].mxu0  ;;  %v12734_v27 = vmul.f32 -1.442695, %v10696_v30 }
 0x8b4   : > { %v10699_v46 = vadd.f32 %v13171_v44, %v21032_v19  ;;  %v14826_v25 = vpop.eup %14825  ;;  %14843 = vrcp.f32 %v11097_v22  ;;  %v11089_v42 = vadd.f32 1.0, %v14824_v32  ;;  %v10299_v8 = vpop.f32.mrb[157].mxu0  ;;  %v13312_v6 = vadd.f32 %v10297_v17, %v21060_v47 }
 0x8b5   : > { %v14828_v1 = vpop.eup %14827  ;;  %14845 = vrcp.f32 %v11088_v18  ;;  %v11095_v24 = vadd.f32 1.0, %v14826_v25  ;;  %v13172_v54 = vpop.f32.mrb[12].mxu1  ;;  %v13313_v9 = vadd.f32 %v10299_v8, %v21064_v33 }
 0x8b6   : > { %v10301_v51 = vpop.f32.mrb[158].mxu0  ;;  %14847 = vrcp.f32 %v11089_v42  ;;  %v11096_v41 = vadd.f32 1.0, %v14828_v1  ;;  %v13173_v58 = vpop.f32.mrb[13].mxu1  ;;  %v12741_v49 = vmul.f32 -1.442695, %v10699_v46 }
 0x8b7   : > { %v10303_v19 = vpop.f32.mrb[159].mxu0  ;;  %v14830_v57 = vpop.eup %14829  ;;  %14849 = vrcp.f32 %v11095_v24  ;;  %v13174_v13 = vadd.f32 %v13173_v58, %v13172_v54  ;;  %v13314_v50 = vadd.f32 %v10301_v51, %v21060_v47  ;;  %v12732_v21 = vmul.f32 -1.442695, %v13312_v6 }
 0x8b8   : > { %v13175_v2 = vpop.f32.mrb[14].mxu1  ;;  %v14832_v36 = vpop.eup %14831  ;;  %14851 = vrcp.f32 %v11096_v41  ;;  %v12733_v46 = vmul.f32 -1.442695, %v13313_v9 }
 0x8b9   : > { %v13176_v39 = vpop.f32.mrb[15].mxu1  ;;  %v14834_v35 = vpop.eup %14833  ;;  %v12866_v10 = vpack.c.bf16 %v14832_v36, %v14830_v57  ;;  %14853 = vpow2.f32 %v12718_v43  ;;  %v10704_v34 = vadd.f32 %v13174_v13, %v21035_v53  ;;  %v13315_v53 = vadd.f32 %v10303_v19, %v21064_v33 }
 0x8ba   : > { %v14836_v37 = vpop.eup %14835  ;;  %14855 = vpow2.f32 %v12719_v45  ;;  %v13177_v23 = vadd.f32 %v13176_v39, %v13175_v2  ;;  %v12739_v24 = vmul.f32 -1.442695, %v13314_v50 }
 0x8bb   : > { %v14838_v3 = vpop.eup %14837  ;;  %11760 = vst [vmem:[%s20613_s26 + $0x10] sm:$0xff] %v12866_v10  ;;  %v12870_v26 = vpack.c.bf16 %v14836_v37, %v14834_v35  ;;  %14857 = vpow2.f32 %v12734_v27  ;;  %v10307_v55 = vpop.f32.mrb[160].mxu0  ;;  %v12748_v42 = vmul.f32 -1.442695, %v10704_v34  ;;  %v12740_v43 = vmul.f32 -1.442695, %v13315_v53 }
 0x8bc   : > { %v14840_v15 = vpop.eup %14839  ;;  %v11104_v60 = vadd.f32 1.0, %v14838_v3  ;;  %14859 = vpow2.f32 %v12725_v20  ;;  %v10707_v14 = vadd.f32 %v13177_v23, %v21038_v11  ;;  %v21093_v28 = vpop.f32.mrb[161].mxu0 }
 0x8bd   : > { %v14842_v30 = vpop.eup %14841  ;;  %v12875_v44 = vpack.c.bf16 %v14840_v15, %v14840_v15  ;;  %11765 = vst [vmem:[%s20613_s26 + $0x2c] sm:$0xff] %v12870_v26  ;;  %14861 = vpow2.f32 %v12726_v4  ;;  %v13178_v22 = vpop.f32.mrb[16].mxu1  ;;  %v13316_v4 = vadd.f32 %v10307_v55, %v21060_v47  ;;  %v13317_v53 = vadd.f32 %v21093_v28, %v21064_v33 }
 0x8be   : > { %v21096_v29 = vpop.f32.mrb[162].mxu0  ;;  %v14844_v32 = vpop.eup %14843  ;;  %14863 = vrcp.f32 %v11104_v60  ;;  %v11111_v18 = vadd.f32 1.0, %v14842_v30  ;;  %v12755_v26 = vmul.f32 -1.442695, %v10707_v14 }
 0x8bf   : > { %v13179_v17 = vpop.f32.mrb[17].mxu1  ;;  %v14846_v25 = vpop.eup %14845  ;;  %11770 = vst.msk [vmem:[%s20613_s26 + $0x50] sm:$0xf] %vm11761_vm1, %v12875_v44  ;;  %v12879_v11 = vpack.c.bf16 %v14844_v32, %v14844_v32  ;;  %14865 = vpow2.f32 %v12741_v49  ;;  %v12746_v60 = vmul.f32 -1.442695, %v13316_v4 }
 0x8c0   : > { %v13180_v52 = vadd.f32 %v13179_v17, %v13178_v22  ;;  %v13181_v12 = vpop.f32.mrb[18].mxu1  ;;  %v21100_v8 = vpop.f32.mrb[163].mxu0  ;;  %14867 = vrcp.f32 %v11111_v18 }
 0x8c1   : > { %v14848_v1 = vpop.eup %14847  ;;  %v13182_v54 = vpop.f32.mrb[19].mxu1  ;;  %11774 = vst.msk [vmem:[%s20613_s26 + $0x6c] sm:$0xf] %vm11761_vm1, %v12879_v11  ;;  %14869 = vpow2.f32 %v12732_v21 }
 0x8c2   : > { %v14850_v51 = vpop.eup %14849  ;;  %v12874_v41 = vpack.c.bf16 %v14848_v1, %v14846_v25  ;;  %v21105_v45 = vadd.f32 %v13180_v52, %v21041_v40  ;;  %v13183_v58 = vadd.f32 %v13182_v54, %v13181_v12  ;;  %14871 = vpow2.f32 %v12733_v46 }
 0x8c3   : > { %v14852_v19 = vpop.eup %14851  ;;  %14873 = vpow2.f32 %v12748_v42  ;;  %v21111_v2 = vpop.f32.mrb[164].mxu0  ;;  %v12747_v52 = vmul.f32 -1.442695, %v13317_v53 }
 0x8c4   : > { %v14854_v57 = vpop.eup %14853  ;;  %11769 = vst [vmem:[%s20613_s26 + $0x48] sm:$0xff] %v12874_v41  ;;  %v12878_v27 = vpack.c.bf16 %v14852_v19, %v14850_v51  ;;  %v21109_v13 = vadd.f32 %v13183_v58, %v21044_v5  ;;  %14875 = vpow2.f32 %v12739_v24  ;;  %v21114_v40 = vpop.f32.mrb[165].mxu0  ;;  %v13319_v19 = vadd.f32 %v21100_v8, %v21064_v33 }
 0x8c5   : > { %v14856_v36 = vpop.eup %14855  ;;  %v11102_v20 = vadd.f32 1.0, %v14854_v57  ;;  %14877 = vpow2.f32 %v12740_v43  ;;  %v13184_v10 = vpop.f32.mrb[20].mxu1  ;;  %v13318_v43 = vadd.f32 %v21096_v29, %v21060_v47  ;;  %v12762_v29 = vmul.f32 -1.442695, %v21105_v45 }
 0x8c6   : > { %v14858_v39 = vpop.eup %14857  ;;  %11773 = vst [vmem:[%s20613_s26 + $0x64] sm:$0xff] %v12878_v27  ;;  %v11103_v35 = vadd.f32 1.0, %v14856_v36  ;;  %v21117_v6 = vpop.f32.mrb[166].mxu0  ;;  %v13321_v53 = vadd.f32 %v21114_v40, %v21064_v33 }
 0x8c7   : > { %v14860_v34 = vpop.eup %14859  ;;  %14879 = vrcp.f32 %v11102_v20  ;;  %v11118_v5 = vadd.f32 1.0, %v14858_v39  ;;  %v13185_v37 = vpop.f32.mrb[21].mxu1  ;;  %v13322_v40 = vadd.f32 %v21117_v6, %v21060_v47 }
 0x8c8   : > { %v21119_v9 = vpop.f32.mrb[167].mxu0  ;;  %v14862_v23 = vpop.eup %14861  ;;  %14881 = vrcp.f32 %v11103_v35  ;;  %v11109_v3 = vadd.f32 1.0, %v14860_v34  ;;  %v13186_v49 = vadd.f32 %v13185_v37, %v13184_v10  ;;  %v12761_v6 = vmul.f32 -1.442695, %v13321_v53 }
 0x8c9   : > { %v13187_v50 = vpop.f32.mrb[22].mxu1  ;;  %v14864_v55 = vpop.eup %14863  ;;  %14883 = vrcp.f32 %v11118_v5  ;;  %v11110_v15 = vadd.f32 1.0, %v14862_v23  ;;  %v13320_v5 = vadd.f32 %v21111_v2, %v21060_v47 }
 0x8ca   : > { %v13188_v30 = vpop.f32.mrb[23].mxu1  ;;  %v14866_v44 = vpop.eup %14865  ;;  %v12883_v21 = vpack.c.bf16 %v14864_v55, %v14864_v55  ;;  %14885 = vrcp.f32 %v11109_v3  ;;  %v21124_v22 = vadd.f32 %v13186_v49, %v21047_v56  ;;  %v12753_v3 = vmul.f32 -1.442695, %v13318_v43 }
 0x8cb   : > { %v13189_v32 = vadd.f32 %v13188_v30, %v13187_v50  ;;  %v14868_v18 = vpop.eup %14867  ;;  %14887 = vrcp.f32 %v11110_v15  ;;  %v11125_v14 = vadd.f32 1.0, %v14866_v44  ;;  %v10327_v28 = vpop.f32.mrb[168].mxu0  ;;  %v12754_v55 = vmul.f32 -1.442695, %v13319_v19 }
 0x8cc   : > { %v14870_v46 = vpop.eup %14869  ;;  %11778 = vst.msk [vmem:[%s20613_s26 + $0x88] sm:$0xf] %vm11761_vm1, %v12883_v21  ;;  %v12887_v17 = vpack.c.bf16 %v14868_v18, %v14868_v18  ;;  %14889 = vpow2.f32 %v12755_v26  ;;  %v21132_v56 = vadd.f32 %v10327_v28, %v21060_v47  ;;  %v10329_v12 = vpop.f32.mrb[169].mxu0  ;;  %v12769_v15 = vmul.f32 -1.442695, %v21109_v13 }
 0x8cd   : > { %v21129_v25 = vadd.f32 %v13189_v32, %v21050_v7  ;;  %v14872_v11 = vpop.eup %14871  ;;  %14891 = vrcp.f32 %v11125_v14  ;;  %v11116_v42 = vadd.f32 1.0, %v14870_v46  ;;  %v13190_v54 = vpop.f32.mrb[24].mxu1  ;;  %v21139_v7 = vadd.f32 %v10329_v12, %v21064_v33 }
 0x8ce   : > { %v14874_v1 = vpop.eup %14873  ;;  %11782 = vst.msk [vmem:[%s20613_s26 + $0xa4] sm:$0xf] %vm11761_vm1, %v12887_v17  ;;  %v11117_v24 = vadd.f32 1.0, %v14872_v11  ;;  %14893 = vpow2.f32 %v12746_v60  ;;  %v10331_v51 = vpop.f32.mrb[170].mxu0  ;;  %v12760_v21 = vmul.f32 -1.442695, %v13320_v5  ;;  %v13323_v11 = vadd.f32 %v21119_v9, %v21064_v33 }
 0x8cf   : > { %v14876_v41 = vpop.eup %14875  ;;  %14895 = vrcp.f32 %v11116_v42  ;;  %v11132_v58 = vadd.f32 1.0, %v14874_v1  ;;  %v13191_v57 = vpop.f32.mrb[25].mxu1  ;;  %v21144_v27 = vadd.f32 %v10331_v51, %v21060_v47  ;;  %v12776_v51 = vmul.f32 -1.442695, %v21124_v22 }
 0x8d0   : > { %v10333_v36 = vpop.f32.mrb[171].mxu0  ;;  %v14878_v20 = vpop.eup %14877  ;;  %14897 = vrcp.f32 %v11117_v24  ;;  %v11123_v4 = vadd.f32 1.0, %v14876_v41  ;;  %v13192_v39 = vadd.f32 %v13191_v57, %v13190_v54  ;;  %v12768_v19 = vmul.f32 -1.442695, %v13323_v11 }
 0x8d1   : > { %v13193_v35 = vpop.f32.mrb[26].mxu1  ;;  %v14880_v10 = vpop.eup %14879  ;;  %14899 = vrcp.f32 %v11132_v58  ;;  %v11124_v34 = vadd.f32 1.0, %v14878_v20  ;;  %v21150_v8 = vadd.f32 %v10333_v36, %v21064_v33 }
 0x8d2   : > { %v13194_v37 = vpop.f32.mrb[27].mxu1  ;;  %v14882_v23 = vpop.eup %14881  ;;  %14901 = vrcp.f32 %v11123_v4  ;;  %v21153_v26 = vadd.f32 %v13192_v39, %v21052_v16 }
 0x8d3   : > { %v13195_v45 = vadd.f32 %v13194_v37, %v13193_v35  ;;  %v14884_v49 = vpop.eup %14883  ;;  %v12882_v50 = vpack.c.bf16 %v14882_v23, %v14880_v10  ;;  %14903 = vrcp.f32 %v11124_v34  ;;  %v10337_v44 = vpop.f32.mrb[172].mxu0 }
 0x8d4   : > { %v14886_v2 = vpop.eup %14885  ;;  %v12891_v60 = vpack.c.bf16 %v14884_v49, %v14884_v49  ;;  %14905 = vpow2.f32 %v12747_v52  ;;  %v21163_v32 = vadd.f32 %v10337_v44, %v21060_v47  ;;  %v10339_v18 = vpop.f32.mrb[173].mxu0 }
 0x8d5   : > { %v21159_v30 = vadd.f32 %v13195_v45, %v21054_v62  ;;  %v14888_v16 = vpop.eup %14887  ;;  %11777 = vst [vmem:[%s20613_s26 + $0x80] sm:$0xff] %v12882_v50  ;;  %14907 = vpow2.f32 %v12762_v29  ;;  %v21170_v62 = vadd.f32 %v10339_v18, %v21064_v33  ;;  %v10341_v46 = vpop.f32.mrb[174].mxu0 }
 0x8d6   : > { %v14890_v13 = vpop.eup %14889  ;;  %11786 = vst.msk [vmem:[%s20613_s26 + $0xc0] sm:$0xf] %vm11761_vm1, %v12891_v60  ;;  %v12886_v14 = vpack.c.bf16 %v14888_v16, %v14886_v2  ;;  %14909 = vpow2.f32 %v12753_v3  ;;  %v21175_v42 = vadd.f32 %v10341_v46, %v21060_v47  ;;  %v10343_v52 = vpop.f32.mrb[175].mxu0  ;;  %v12767_v47 = vmul.f32 -1.442695, %v13322_v40 }
 0x8d7   : > { %v14892_v17 = vpop.eup %14891  ;;  %v11139_v28 = vadd.f32 1.0, %v14890_v13  ;;  %14911 = vpow2.f32 %v12754_v55  ;;  %v21179_v24 = vadd.f32 %v10343_v52, %v21064_v33  ;;  %v12783_v33 = vmul.f32 -1.442695, %v21129_v25 }
 0x8d8   : > { %v14894_v12 = vpop.eup %14893  ;;  %11781 = vst [vmem:[%s20613_s26 + $0x9c] sm:$0xff] %v12886_v14  ;;  %v12895_v1 = vpack.c.bf16 %v14892_v17, %v14892_v17  ;;  %14913 = vpow2.f32 %v12769_v15  ;;  %v12774_v55 = vmul.f32 -1.442695, %v21132_v56 }
 0x8d9   : > { %v14896_v43 = vpop.eup %14895  ;;  %14915 = vrcp.f32 %v11139_v28  ;;  %v11130_v54 = vadd.f32 1.0, %v14894_v12 }
 0x8da   : > { %v14898_v41 = vpop.eup %14897  ;;  %11790 = vst.msk [vmem:[%s20613_s26 + $0xdc] sm:$0xf] %vm11761_vm1, %v12895_v1  ;;  %14917 = vpow2.f32 %v12760_v21  ;;  %v12775_v21 = vmul.f32 -1.442695, %v21139_v7 }
 0x8db   : > { %v14900_v9 = vpop.eup %14899  ;;  %v12890_v58 = vpack.c.bf16 %v14898_v41, %v14896_v43  ;;  %14919 = vrcp.f32 %v11130_v54  ;;  %v12956_v20 = vpop.f32.mrb[176].mxu0  ;;  %v12790_v43 = vmul.f32 -1.442695, %v21153_v26  ;;  %v12781_v54 = vmul.f32 -1.442695, %v21144_v27 }
 0x8dc   : > { %v14902_v57 = vpop.eup %14901  ;;  %v12899_v36 = vpack.c.bf16 %v14900_v9, %v14900_v9  ;;  %14921 = vpow2.f32 %v12761_v6  ;;  %v12957_v22 = vpop.f32.mrb[177].mxu0  ;;  %v12788_v26 = vmul.f32 -1.442695, %v21163_v32  ;;  %v12795_v32 = vmul.f32 -1.442695, %v21175_v42 }
 0x8dd   : > { %v14904_v4 = vpop.eup %14903  ;;  %11785 = vst [vmem:[%s20613_s26 + $0xb8] sm:$0xff] %v12890_v58  ;;  %14923 = vpow2.f32 %v12776_v51  ;;  %v12958_v35 = vadd.f32 %v12957_v22, %v12956_v20  ;;  %v12959_v10 = vpop.f32.mrb[178].mxu0  ;;  %v12797_v58 = vmul.f32 -1.442695, %v21159_v30 }
 0x8de   : > { %v14906_v29 = vpop.eup %14905  ;;  %11794 = vst.msk [vmem:[%s20613_s26 + $0xf8] sm:$0xf] %vm11761_vm1, %v12899_v36  ;;  %v12894_v39 = vpack.c.bf16 %v14904_v4, %v14902_v57  ;;  %14925 = vpow2.f32 %v12767_v47  ;;  %v12960_v37 = vpop.f32.mrb[179].mxu0 }
 0x8df   : > { %v14908_v34 = vpop.eup %14907  ;;  %v11131_v5 = vadd.f32 1.0, %v14906_v29  ;;  %14927 = vpow2.f32 %v12768_v19  ;;  %v10381_v3 = vadd.f32 %v12958_v35, %v20952_v38  ;;  %v12961_v45 = vadd.f32 %v12960_v37, %v12959_v10 }
 0x8e0   : > { %v14910_v23 = vpop.eup %14909  ;;  %11789 = vst [vmem:[%s20613_s26 + $0xd4] sm:$0xff] %v12894_v39  ;;  %v11146_v25 = vadd.f32 1.0, %v14908_v34  ;;  %14929 = vpow2.f32 %v12783_v33  ;;  %v12796_v39 = vmul.f32 -1.442695, %v21179_v24 }
 0x8e1   : > { %v14912_v49 = vpop.eup %14911  ;;  %14931 = vrcp.f32 %v11131_v5  ;;  %v11137_v50 = vadd.f32 1.0, %v14910_v23  ;;  %v10478_v60 = vadd.f32 %v20941_v63, %v10381_v3  ;;  %v10384_v53 = vadd.f32 %v12961_v45, %v20952_v38 }
 0x8e2   : > { %v14914_v15 = vpop.eup %14913  ;;  %14933 = vrcp.f32 %v11146_v25  ;;  %v11138_v2 = vadd.f32 1.0, %v14912_v49 }
 0x8e3   : > { %v14916_v44 = vpop.eup %14915  ;;  %14935 = vrcp.f32 %v11137_v50  ;;  %v11153_v16 = vadd.f32 1.0, %v14914_v15  ;;  %v10575_v14 = vadd.f32 %v21012_v31, %v10478_v60  ;;  %v10481_v56 = vadd.f32 %v20943_v61, %v10384_v53 }
 0x8e4   : > { %v14918_v18 = vpop.eup %14917  ;;  %v12903_v13 = vpack.c.bf16 %v14916_v44, %v14916_v44  ;;  %14937 = vrcp.f32 %v11138_v2 }
 0x8e5   : > { %v14920_v40 = vpop.eup %14919  ;;  %14939 = vrcp.f32 %v11153_v16  ;;  %v11144_v46 = vadd.f32 1.0, %v14918_v18  ;;  %v10672_v63 = vadd.f32 %v21056_v48, %v10575_v14  ;;  %v10578_v38 = vadd.f32 %v21014_v0, %v10481_v56 }
 0x8e6   : > { %v14922_v17 = vpop.eup %14921  ;;  %11798 = vst.msk [vmem:[%s20613_s26 + $0x114] sm:$0xf] %vm11761_vm1, %v12903_v13  ;;  %14941 = vpow2.f32 %v12774_v55 }
 0x8e7   : > { %v14924_v28 = vpop.eup %14923  ;;  %14943 = vrcp.f32 %v11144_v46  ;;  %v11145_v7 = vadd.f32 1.0, %v14922_v17  ;;  %v10675_v31 = vadd.f32 %v21066_v59, %v10578_v38  ;;  %v12782_v59 = vmul.f32 -1.442695, %v21150_v8 }
 0x8e8   : > { %v14926_v11 = vpop.eup %14925  ;;  %v11160_v52 = vadd.f32 1.0, %v14924_v28  ;;  %14945 = vpow2.f32 %v12775_v21  ;;  %v12789_v8 = vmul.f32 -1.442695, %v21170_v62  ;;  %v12692_v62 = vmul.f32 -1.442695, %v10672_v63 }
 0x8e9   : > { %v14928_v61 = vpop.eup %14927  ;;  %14947 = vrcp.f32 %v11145_v7  ;;  %v11151_v12 = vadd.f32 1.0, %v14926_v11  ;;  %v12699_v37 = vmul.f32 -1.442695, %v10675_v31 }
 0x8ea   : > { %v14930_v1 = vpop.eup %14929  ;;  %14949 = vrcp.f32 %v11160_v52  ;;  %v11152_v6 = vadd.f32 1.0, %v14928_v61 }
 0x8eb   : > { %v14932_v48 = vpop.eup %14931  ;;  %14951 = vrcp.f32 %v11151_v12  ;;  %v11167_v0 = vadd.f32 1.0, %v14930_v1 }
 0x8ec   : > { %v14934_v51 = vpop.eup %14933  ;;  %v12898_v41 = vpack.c.bf16 %v14932_v48, %v14920_v40  ;;  %14953 = vrcp.f32 %v11152_v6 }
 0x8ed   : > { %v14936_v47 = vpop.eup %14935  ;;  %v12907_v9 = vpack.c.bf16 %v14934_v51, %v14934_v51  ;;  %14955 = vrcp.f32 %v11167_v0 }
 0x8ee   : > { %v14938_v19 = vpop.eup %14937  ;;  %11793 = vst [vmem:[%s20613_s26 + $0xf0] sm:$0xff] %v12898_v41  ;;  %14957 = vpow2.f32 %v12790_v43 }
 0x8ef   : > { %v14940_v57 = vpop.eup %14939  ;;  %11802 = vst.msk [vmem:[%s20613_s26 + $0x130] sm:$0xf] %vm11761_vm1, %v12907_v9  ;;  %v12902_v27 = vpack.c.bf16 %v14938_v19, %v14936_v47  ;;  %14959 = vpow2.f32 %v12781_v54 }
 0x8f0   : > { %v14942_v36 = vpop.eup %14941  ;;  %v12911_v33 = vpack.c.bf16 %v14940_v57, %v14940_v57  ;;  %14961 = vpow2.f32 %v12782_v59 }
 0x8f1   : > { %v14944_v20 = vpop.eup %14943  ;;  %11797 = vst [vmem:[%s20613_s26 + $0x10c] sm:$0xff] %v12902_v27  ;;  %v11158_v4 = vadd.f32 1.0, %v14942_v36  ;;  %14963 = vpow2.f32 %v12797_v58 }
 0x8f2   : > { %v14946_v30 = vpop.eup %14945  ;;  %11806 = vst.msk [vmem:[%s20613_s26 + $0x14c] sm:$0xf] %vm11761_vm1, %v12911_v33  ;;  %14965 = vpow2.f32 %v12788_v26 }
 0x8f3   : > { %v14948_v22 = vpop.eup %14947  ;;  %14967 = vrcp.f32 %v11158_v4  ;;  %v11159_v29 = vadd.f32 1.0, %v14946_v30 }
 0x8f4   : > { %v14950_v35 = vpop.eup %14949  ;;  %v12906_v10 = vpack.c.bf16 %v14948_v22, %v14944_v20  ;;  %14969 = vpow2.f32 %v12789_v8 }
 0x8f5   : > { %v14952_v34 = vpop.eup %14951  ;;  %v12915_v5 = vpack.c.bf16 %v14950_v35, %v14950_v35  ;;  %14971 = vrcp.f32 %v11159_v29 }
 0x8f6   : > { %v14954_v23 = vpop.eup %14953  ;;  %11801 = vst [vmem:[%s20613_s26 + $0x128] sm:$0xff] %v12906_v10  ;;  %14973 = vpow2.f32 %v12795_v32 }
 0x8f7   : > { %v14956_v42 = vpop.eup %14955  ;;  %11810 = vst.msk [vmem:[%s20613_s26 + $0x168] sm:$0xf] %vm11761_vm1, %v12915_v5  ;;  %v12910_v25 = vpack.c.bf16 %v14954_v23, %v14952_v34  ;;  %14975 = vpow2.f32 %v12796_v39 }
 0x8f8   : > { %v14958_v3 = vpop.eup %14957  ;;  %v12919_v24 = vpack.c.bf16 %v14956_v42, %v14956_v42  ;;  %14977 = vpow2.f32 %v12692_v62 }
 0x8f9   : > { %v14960_v45 = vpop.eup %14959  ;;  %11805 = vst [vmem:[%s20613_s26 + $0x144] sm:$0xff] %v12910_v25  ;;  %v11174_v49 = vadd.f32 1.0, %v14958_v3  ;;  %14979 = vpow2.f32 %v12699_v37 }
 0x8fa   : > { %v14962_v50 = vpop.eup %14961  ;;  %11814 = vst.msk [vmem:[%s20613_s26 + $0x184] sm:$0xf] %vm11761_vm1, %v12919_v24  ;;  %v11165_v55 = vadd.f32 1.0, %v14960_v45 }
 0x8fb   : > { %v14964_v15 = vpop.eup %14963  ;;  %14981 = vrcp.f32 %v11174_v49  ;;  %v11166_v2 = vadd.f32 1.0, %v14962_v50 }
 0x8fc   : > { %v14966_v60 = vpop.eup %14965  ;;  %14983 = vrcp.f32 %v11165_v55  ;;  %v11181_v53 = vadd.f32 1.0, %v14964_v15 }
 0x8fd   : > { %v14968_v44 = vpop.eup %14967  ;;  %14985 = vrcp.f32 %v11166_v2  ;;  %v11172_v16 = vadd.f32 1.0, %v14966_v60 }
 0x8fe   : > { %v14970_v21 = vpop.eup %14969  ;;  %14987 = vrcp.f32 %v11181_v53 }
 0x8ff   : > { %v14972_v18 = vpop.eup %14971  ;;  %14989 = vrcp.f32 %v11172_v16  ;;  %v11173_v13 = vadd.f32 1.0, %v14970_v21 }
 0x900   : > { %v14974_v14 = vpop.eup %14973  ;;  %v12914_v56 = vpack.c.bf16 %v14972_v18, %v14968_v44 }
 0x901   : > { %v14976_v40 = vpop.eup %14975  ;;  %14991 = vrcp.f32 %v11173_v13  ;;  %v11179_v46 = vadd.f32 1.0, %v14974_v14 }
 0x902   : > { %v14978_v17 = vpop.eup %14977  ;;  %11809 = vst [vmem:[%s20613_s26 + $0x160] sm:$0xff] %v12914_v56  ;;  %v11180_v63 = vadd.f32 1.0, %v14976_v40 }
 0x903   : > { %v14980_v38 = vpop.eup %14979  ;;  %14993 = vrcp.f32 %v11179_v46  ;;  %v11076_v28 = vadd.f32 1.0, %v14978_v17 }
 0x904   : > { %14995 = vrcp.f32 %v11180_v63  ;;  %v11083_v7 = vadd.f32 1.0, %v14980_v38 }
 0x905   : > { %v14982_v11 = vpop.eup %14981  ;;  %14997 = vrcp.f32 %v11076_v28 }
 0x906   : > { %v14984_v52 = vpop.eup %14983  ;;  %v12923_v31 = vpack.c.bf16 %v14982_v11, %v14982_v11  ;;  %14999 = vrcp.f32 %v11083_v7 }
 0x907   : > { %v14986_v61 = vpop.eup %14985 }
 0x908   : > { %v14988_v12 = vpop.eup %14987  ;;  %11818 = vst.msk [vmem:[%s20613_s26 + $0x1a0] sm:$0xf] %vm11761_vm1, %v12923_v31  ;;  %v12918_v1 = vpack.c.bf16 %v14986_v61, %v14984_v52 }
 0x909   : > { %v14990_v6 = vpop.eup %14989  ;;  %v12927_v43 = vpack.c.bf16 %v14988_v12, %v14988_v12 }
 0x90a   : > { %11813 = vst [vmem:[%s20613_s26 + $0x17c] sm:$0xff] %v12918_v1 }
 0x90b   : > { %v14992_v48 = vpop.eup %14991  ;;  %11822 = vst.msk [vmem:[%s20613_s26 + $0x1bc] sm:$0xf] %vm11761_vm1, %v12927_v43 }
 0x90c   : > { %v12922_v0 = vpack.c.bf16 %v14992_v48, %v14990_v6 }
 0x90d   : > { %v14994_v54 = vpop.eup %14993 }
 0x90e   : > { %v14996_v51 = vpop.eup %14995  ;;  %11817 = vst [vmem:[%s20613_s26 + $0x198] sm:$0xff] %v12922_v0 }
 0x90f   : > { %v14998_v41 = vpop.eup %14997  ;;  %v12926_v59 = vpack.c.bf16 %v14996_v51, %v14994_v54 }
 0x910   : > { %v15000_v47 = vpop.eup %14999  ;;  %v12867_v9 = vpack.c.bf16 %v14998_v41, %v14998_v41 }
 0x911   : > { %11821 = vst [vmem:[%s20613_s26 + $0x1b4] sm:$0xff] %v12926_v59  ;;  %v12871_v58 = vpack.c.bf16 %v15000_v47, %v15000_v47 }
 0x912   : > { %11762 = vst.msk [vmem:[%s20613_s26 + $0x18] sm:$0xf] %vm11761_vm1, %v12867_v9 }
 0x913   : > { %11766 = vst.msk [vmem:[%s20613_s26 + $0x34] sm:$0xf] %vm11761_vm1, %v12871_v58 }
 0x914 PF: > { %s25_s18 = sadd.s32 1, %s15024_s18  }
 0x915   : > { %p22_p4 = scmp.ge.s32.totalorder %s25_s18, 4  }
 0x917   :  { %24 = sbr.rel (!%p22_p4) target bundleno = 1 (0x1), region = 110 }

</bundles_post_ra>
